<compile_context>
chip_gen: v7x
topology: tpu7x:2x2x1
jax: 0.10.0
libtpu: 0.0.40
codegen_flags: <defaults>
</compile_context>

<pallas_src>
import functools

import jax
import jax.numpy as jnp
from jax import lax
from jax.experimental import pallas as pl
from jax.experimental.pallas import tpu as pltpu


# ----------------------------------------------------------------------------
# Hardware-dependent constants (trace-time Python; safe fallbacks everywhere).
# ----------------------------------------------------------------------------
def _physical_vmem_bytes():
    try:
        return int(pltpu.get_tpu_info().vmem_capacity_bytes)
    except Exception:
        return 64 * 1024 * 1024          # conservative: v7x per-TensorCore VMEM


_VMEM_PHYS = _physical_vmem_bytes()
_VMEM_LIMIT = max(_VMEM_PHYS - (2 << 20), 32 << 20)     # scoped limit given to Mosaic
_VMEM_BUDGET = max(_VMEM_LIMIT - (8 << 20), 16 << 20)   # what the tile chooser targets

try:
    _DEVICE_KIND = jax.devices()[0].device_kind.lower()
except Exception:
    _DEVICE_KIND = ""
# bf16 EUP/VPU path exists on v6e/v7x (faster sigmoid/tanh); v5e/v4 stay f32.
_GATE_DTYPE = (jnp.bfloat16
               if ("v6" in _DEVICE_KIND or "v7" in _DEVICE_KIND)
               else jnp.float32)


# ----------------------------------------------------------------------------
# Fused kernel: GRU -> NewAttention -> q_net/v_net -> classifier_All
# (one batch tile per grid step)
# ----------------------------------------------------------------------------
def ll4al_kernel(x_ref, v_ref,
                 wih_ref, whh_ref, bgi_ref, bhn_ref,
                 wav_ref, bav_ref, waq_ref, baq_ref, wal_ref, bal_ref,
                 wqn_ref, bqn_ref, wvn_ref, bvn_ref,
                 wc1_ref, bc1_ref, wc2_ref, bc2_ref,
                 logits_ref, vsum_ref, qrepr_ref, joint_ref,
                 gi_ref, *, gate_dtype):
    f32 = jnp.float32
    bf16 = jnp.bfloat16

    S, TB, E = x_ref.shape
    H = whh_ref.shape[0]
    O, D = v_ref.shape[1], v_ref.shape[2]

    # ---- GRU: hoisted input projection = one big MXU GEMM --------------------
    # gi columns are [r | z | n]; b_ih (all gates) + b_hh (r,z only) pre-folded.
    x2 = x_ref[...].reshape(S * TB, E)                                 # bf16
    gi = jnp.dot(x2, wih_ref[...], preferred_element_type=f32) + bgi_ref[...]
    gi_ref[...] = gi.reshape(S, TB, 3 * H).astype(gi_ref.dtype)        # bf16 scratch

    whh = whh_ref[...]                                                 # bf16 [H,3H]
    b_hn = jnp.broadcast_to(bhn_ref[...], (TB, H))                     # hoisted broadcast

    def step(t, h):
        gi_t = gi_ref[t]                                               # [TB,3H] bf16
        gh = jnp.dot(h.astype(bf16), whh, preferred_element_type=f32)  # [TB,3H] f32
        r = jax.nn.sigmoid((gi_t[:, 0:H] + gh[:, 0:H]).astype(gate_dtype))
        z = jax.nn.sigmoid((gi_t[:, H:2 * H] + gh[:, H:2 * H]).astype(gate_dtype))
        n = jnp.tanh((gi_t[:, 2 * H:3 * H]
                      + r.astype(f32) * (gh[:, 2 * H:3 * H] + b_hn)).astype(gate_dtype))
        # state update kept in f32
        return (1.0 - z.astype(f32)) * n.astype(f32) + z.astype(f32) * h

    q_emb = lax.fori_loop(0, S, step, jnp.zeros((TB, H), f32), unroll=True)

    # ---- v_att (NewAttention) -------------------------------------------------
    v_bf = v_ref[...]                                                  # bf16 [TB,O,D]
    v_f32 = v_bf.astype(f32)
    q_bf = q_emb.astype(bf16)

    # v-projection as ONE large-M 2-D GEMM (TB*O rows), not a batched einsum.
    v_proj = jax.nn.relu(
        jnp.dot(v_bf.reshape(TB * O, D), wav_ref[...],
                preferred_element_type=f32).reshape(TB, O, H) + bav_ref[...])
    q_proj = jax.nn.relu(
        jnp.dot(q_bf, waq_ref[...], preferred_element_type=f32) + baq_ref[...])

    # Fold the 1-unit projection w_l into q_proj: [TB,H] multiply instead of a
    # full [TB,O,H] multiply, then lane-reduce + softmax over objects.
    q_scaled = q_proj * wal_ref[...]                                   # [TB,H]
    att_log = jnp.sum(v_proj * q_scaled[:, None, :], axis=-1) + bal_ref[0, 0]  # [TB,O]
    att_log = att_log - jnp.max(att_log, axis=-1, keepdims=True)
    e = jnp.exp(att_log)
    att = e * pl.reciprocal(jnp.sum(e, axis=-1, keepdims=True), approx=True)

    # v_emb = (att * v).sum(1): VPU weighted sum (degenerate M=1 matmul avoided),
    # f32 accumulation.
    v_emb = jnp.sum(att[:, :, None] * v_f32, axis=1)                   # [TB,D] f32

    # ---- q_net / v_net (FCNet = Linear + ReLU) --------------------------------
    q_repr = jax.nn.relu(
        jnp.dot(q_bf, wqn_ref[...], preferred_element_type=f32) + bqn_ref[...])
    v_repr = jax.nn.relu(
        jnp.dot(v_emb.astype(bf16), wvn_ref[...], preferred_element_type=f32)
        + bvn_ref[...])
    joint = q_repr * v_repr                                            # [TB,H]

    # ---- classifier_All: Linear -> ReLU -> Linear -----------------------------
    hid = jax.nn.relu(
        jnp.dot(joint.astype(bf16), wc1_ref[...], preferred_element_type=f32)
        + bc1_ref[...])
    logits = jnp.dot(hid.astype(bf16), wc2_ref[...], preferred_element_type=f32) \
        + bc2_ref[...]

    logits_ref[...] = logits
    vsum_ref[...] = jnp.sum(v_f32, axis=1)                             # v.sum(1), f32 acc
    qrepr_ref[...] = q_repr
    joint_ref[...] = joint


# ----------------------------------------------------------------------------
# Batch-tile selection against the per-generation VMEM budget
# ----------------------------------------------------------------------------
def _tile_vmem_bytes(tb, S, E, H, O, D, A, weight_bytes, weight_bufs):
    bf2, f4 = 2, 4
    x_in = S * tb * E * bf2 * 2              # bf16 input, double-buffered
    v_in = tb * O * D * bf2 * 2              # bf16 input, double-buffered
    gi_scr = S * tb * 3 * H * bf2            # bf16 scratch (single buffer)
    gi_f32 = S * tb * 3 * H * f4             # live f32 GEMM result before bf16 store
    att_tmp = tb * O * max(H, D) * f4 * 2    # v_proj + other [TB,O,*] f32 temps
    outs = (tb * A + tb * D + 2 * tb * H) * f4 * 2
    return x_in + v_in + gi_scr + gi_f32 + att_tmp + outs + weight_bytes * weight_bufs


def _choose_batch_tile(B, fits):
    cands = [t for t in range(8, min(B, 256) + 1, 8) if B % t == 0]
    if not cands:
        return B                             # tiny / ragged batch: single full tile
    cands.sort(reverse=True)
    multi = [t for t in cands if B // t >= 2]   # keep grid >= 2 (v7x megacore)
    for pool in (multi, cands):
        for t in pool:
            if fits(t):
                return t
    return cands[-1]


# ----------------------------------------------------------------------------
# Wrapper
# ----------------------------------------------------------------------------
@functools.partial(jax.jit, static_argnames=("single_buffer_weights",))
def _forward_impl(params, v, q, *, single_buffer_weights):
    B, O, D = v.shape
    S = q.shape[1]
    E = params['w_ih'].shape[0]
    H = params['w_hh'].shape[0]
    A = params['w_c2'].shape[1]

    # Embedding lookup + time-major layout (trace-time glue, outside the kernel).
    x = jnp.take(params['emb_table'], q, axis=0)        # [B,S,E] bf16
    x = jnp.transpose(x, (1, 0, 2))                     # [S,B,E]

    # v is cast once to bf16 (halves its DMA/VMEM cost); all matmuls use it in
    # bf16 anyway and v.sum(1) is accumulated in f32 inside the kernel.
    v_bf = v.astype(jnp.bfloat16)

    # Fold GRU biases: r/z columns get b_ih + b_hh, n column keeps only b_ih
    # (its b_hh part must stay inside r*(h@W_hn + b_hn)).
    b_ih, b_hh = params['b_ih'], params['b_hh']
    b_gi = b_ih + jnp.concatenate(
        [b_hh[:, :2 * H], jnp.zeros((1, H), jnp.float32)], axis=1)     # [1,3H]
    b_hn = b_hh[:, 2 * H:]                                             # [1,H]

    weights = (params['w_ih'], params['w_hh'], b_gi, b_hn,
               params['w_att_v'], params['b_att_v'],
               params['w_att_q'], params['b_att_q'],
               params['w_att_l'],
               params['w_qnet'], params['b_qnet'],
               params['w_vnet'], params['b_vnet'],
               params['w_c1'], params['b_c1'],
               params['w_c2'], params['b_c2'])
    weight_bytes = sum(int(w.size) * w.dtype.itemsize for w in weights)
    weight_bufs = 1 if single_buffer_weights else 2

    TB = _choose_batch_tile(
        B, lambda tb: _tile_vmem_bytes(tb, S, E, H, O, D, A,
                                       weight_bytes, weight_bufs) <= _VMEM_BUDGET)

    args = (x, v_bf,
            params['w_ih'], params['w_hh'], b_gi, b_hn,
            params['w_att_v'], params['b_att_v'],
            params['w_att_q'], params['b_att_q'],
            params['w_att_l'], params['b_att_l'],
            params['w_qnet'], params['b_qnet'],
            params['w_vnet'], params['b_vnet'],
            params['w_c1'], params['b_c1'],
            params['w_c2'], params['b_c2'])

    def _w_spec(a):
        nd = a.ndim
        idx = lambda i, _n=nd: (0,) * _n
        if single_buffer_weights:
            # Grid-invariant weights: a single VMEM buffer is enough.
            return pl.BlockSpec(a.shape, idx, pipeline_mode=pl.Buffered(1))
        return pl.BlockSpec(a.shape, idx)

    in_specs = [
        pl.BlockSpec((S, TB, E), lambda i: (0, i, 0)),                 # w_emb(q)
        pl.BlockSpec((TB, O, D), lambda i: (i, 0, 0)),                 # v (bf16)
        _w_spec(params['w_ih']), _w_spec(params['w_hh']),
        _w_spec(b_gi), _w_spec(b_hn),
        _w_spec(params['w_att_v']), _w_spec(params['b_att_v']),
        _w_spec(params['w_att_q']), _w_spec(params['b_att_q']),
        _w_spec(params['w_att_l']),
        pl.BlockSpec(memory_space=pltpu.MemorySpace.SMEM),             # b_att_l scalar
        _w_spec(params['w_qnet']), _w_spec(params['b_qnet']),
        _w_spec(params['w_vnet']), _w_spec(params['b_vnet']),
        _w_spec(params['w_c1']), _w_spec(params['b_c1']),
        _w_spec(params['w_c2']), _w_spec(params['b_c2']),
    ]

    out_shape = (jax.ShapeDtypeStruct((B, A), jnp.float32),            # logits_all
                 jax.ShapeDtypeStruct((B, D), jnp.float32),            # v.sum(1)
                 jax.ShapeDtypeStruct((B, H), jnp.float32),            # q_repr
                 jax.ShapeDtypeStruct((B, H), jnp.float32))            # joint_repr
    out_specs = (pl.BlockSpec((TB, A), lambda i: (i, 0)),
                 pl.BlockSpec((TB, D), lambda i: (i, 0)),
                 pl.BlockSpec((TB, H), lambda i: (i, 0)),
                 pl.BlockSpec((TB, H), lambda i: (i, 0)))

    return pl.pallas_call(
        functools.partial(ll4al_kernel, gate_dtype=_GATE_DTYPE),
        grid=(B // TB,),
        in_specs=in_specs,
        out_specs=out_specs,
        out_shape=out_shape,
        scratch_shapes=[pltpu.VMEM((S, TB, 3 * H), jnp.bfloat16)],     # hoisted gi (bf16)
        compiler_params=pltpu.CompilerParams(
            dimension_semantics=("parallel",),                         # megacore on v7x
            vmem_limit_bytes=_VMEM_LIMIT),
    )(*args)


def ll4al_forward(params, v, b, q, labels):
    # b and labels are unused in the reference forward pass.
    del b, labels
    try:
        # Preferred path: single-buffered (grid-invariant) weights.
        return jax.block_until_ready(
            _forward_impl(params, v, q, single_buffer_weights=True))
    except Exception:
        # Fallback if pipeline_mode/Buffered(1) is unsupported in this jax build.
        return jax.block_until_ready(
            _forward_impl(params, v, q, single_buffer_weights=False))


# ----------------------------------------------------------------------------
# Deterministic parameter construction (weights bf16, biases f32)
# ----------------------------------------------------------------------------
def make_params(key, ntoken, emb_dim, num_hid, v_dim, num_ans):
    ks = jax.random.split(key, 18)
    f32, bf16 = jnp.float32, jnp.bfloat16

    def nrm(k, shape, dtype=bf16, s=0.1):
        return (s * jax.random.normal(k, shape, dtype=f32)).astype(dtype)

    return {
        # w_emb
        'emb_table': nrm(ks[0], (ntoken, emb_dim)),
        # q_emb (GRU, gates ordered r,z,n as in PyTorch; weights [in, 3H])
        'w_ih': nrm(ks[1], (emb_dim, 3 * num_hid)),
        'w_hh': nrm(ks[2], (num_hid, 3 * num_hid)),
        'b_ih': nrm(ks[3], (1, 3 * num_hid), f32),
        'b_hh': nrm(ks[4], (1, 3 * num_hid), f32),
        # v_att (NewAttention)
        'w_att_v': nrm(ks[5], (v_dim, num_hid)),
        'b_att_v': nrm(ks[6], (1, num_hid), f32),
        'w_att_q': nrm(ks[7], (num_hid, num_hid)),
        'b_att_q': nrm(ks[8], (1, num_hid), f32),
        'w_att_l': nrm(ks[9], (1, num_hid), f32),   # 1-unit projection, lane-dense
        'b_att_l': nrm(ks[10], (1, 1), f32),        # scalar -> SMEM in the kernel
        # q_net / v_net
        'w_qnet': nrm(ks[11], (num_hid, num_hid)),
        'b_qnet': nrm(ks[12], (1, num_hid), f32),
        'w_vnet': nrm(ks[13], (v_dim, num_hid)),
        'b_vnet': nrm(ks[14], (1, num_hid), f32),
        # classifier_All
        'w_c1': nrm(ks[15], (num_hid, 2 * num_hid)),
        'b_c1': jnp.zeros((1, 2 * num_hid), f32),
        'w_c2': nrm(ks[16], (2 * num_hid, num_ans)),
        'b_c2': jnp.zeros((1, num_ans), f32),
        # TODO(synk): classifier_LL (loss-prediction head) exists in __init__ but
        # is not used by forward(), so it is not instantiated here.
    }


if __name__ == "__main__":
    # Small but (8,128)-aligned shapes: lane dims are multiples of 128,
    # sublane/batch tiles multiples of 8 (no masked stores, aligned MXU operands).
    B, O, D = 16, 8, 128      # batch, num_objs, obj_dim (v_dim)
    BD = 8                    # b_dim (unused by forward)
    S = 8                     # seq_length
    NTOK, E, H, A = 256, 128, 128, 128

    key = jax.random.PRNGKey(0)
    k_v, k_b, k_q, k_l, k_p = jax.random.split(key, 5)

    params = make_params(k_p, NTOK, E, H, D, A)
    v = jax.random.normal(k_v, (B, O, D), dtype=jnp.float32)
    b = jax.random.normal(k_b, (B, O, BD), dtype=jnp.float32)
    q = jax.random.randint(k_q, (B, S), 0, NTOK, dtype=jnp.int32)
    labels = jax.random.randint(k_l, (B,), 0, A, dtype=jnp.int32)

    logits_all, v_sum, q_repr, joint_repr = jax.block_until_ready(
        ll4al_forward(params, v, b, q, labels))

    assert logits_all.shape == (B, A) and logits_all.dtype == jnp.float32
    assert v_sum.shape == (B, D)
    assert q_repr.shape == (B, H)
    assert joint_repr.shape == (B, H)
    assert bool(jnp.all(jnp.isfinite(logits_all)))
    assert bool(jnp.all(jnp.isfinite(v_sum)))
    print("KERNEL_OK")
</pallas_src>

<mosaic_0001>
module attributes {stable_mosaic.version = 11 : i64} {
  func.func @ll4al_kernel(%arg0: i32, %arg1: memref<8x8x128xbf16, #tpu.memory_space<vmem>>, %arg2: memref<8x8x128xbf16, #tpu.memory_space<vmem>>, %arg3: memref<128x384xbf16, #tpu.memory_space<vmem>>, %arg4: memref<128x384xbf16, #tpu.memory_space<vmem>>, %arg5: memref<1x384xf32, #tpu.memory_space<vmem>>, %arg6: memref<1x128xf32, #tpu.memory_space<vmem>>, %arg7: memref<128x128xbf16, #tpu.memory_space<vmem>>, %arg8: memref<1x128xf32, #tpu.memory_space<vmem>>, %arg9: memref<128x128xbf16, #tpu.memory_space<vmem>>, %arg10: memref<1x128xf32, #tpu.memory_space<vmem>>, %arg11: memref<1x128xf32, #tpu.memory_space<vmem>>, %arg12: memref<1x1xf32, #tpu.memory_space<smem>>, %arg13: memref<128x128xbf16, #tpu.memory_space<vmem>>, %arg14: memref<1x128xf32, #tpu.memory_space<vmem>>, %arg15: memref<128x128xbf16, #tpu.memory_space<vmem>>, %arg16: memref<1x128xf32, #tpu.memory_space<vmem>>, %arg17: memref<128x256xbf16, #tpu.memory_space<vmem>>, %arg18: memref<1x256xf32, #tpu.memory_space<vmem>>, %arg19: memref<256x128xbf16, #tpu.memory_space<vmem>>, %arg20: memref<1x128xf32, #tpu.memory_space<vmem>>, %arg21: memref<8x128xf32, #tpu.memory_space<vmem>>, %arg22: memref<8x128xf32, #tpu.memory_space<vmem>>, %arg23: memref<8x128xf32, #tpu.memory_space<vmem>>, %arg24: memref<8x128xf32, #tpu.memory_space<vmem>>, %arg25: memref<8x8x384xbf16, #tpu.memory_space<vmem>>) attributes {dimension_semantics = [#tpu.dimension_semantics<parallel>], iteration_bounds = array<i64: 2>, scalar_prefetch = 0 : i64, scratch_operands = 1 : i64, tpu.core_type = #tpu.core_type<tc>, window_params = [{transform_indices = @transform_0, window_bounds = array<i64: 8, 8, 128>}, {transform_indices = @transform_1, window_bounds = array<i64: 8, 8, 128>}, {pipeline_mode = #tpu.pipeline_mode<synchronous>, transform_indices = @transform_2, window_bounds = array<i64: 128, 384>}, {pipeline_mode = #tpu.pipeline_mode<synchronous>, transform_indices = @transform_3, window_bounds = array<i64: 128, 384>}, {pipeline_mode = #tpu.pipeline_mode<synchronous>, transform_indices = @transform_4, window_bounds = array<i64: 1, 384>}, {pipeline_mode = #tpu.pipeline_mode<synchronous>, transform_indices = @transform_5, window_bounds = array<i64: 1, 128>}, {pipeline_mode = #tpu.pipeline_mode<synchronous>, transform_indices = @transform_6, window_bounds = array<i64: 128, 128>}, {pipeline_mode = #tpu.pipeline_mode<synchronous>, transform_indices = @transform_7, window_bounds = array<i64: 1, 128>}, {pipeline_mode = #tpu.pipeline_mode<synchronous>, transform_indices = @transform_8, window_bounds = array<i64: 128, 128>}, {pipeline_mode = #tpu.pipeline_mode<synchronous>, transform_indices = @transform_9, window_bounds = array<i64: 1, 128>}, {pipeline_mode = #tpu.pipeline_mode<synchronous>, transform_indices = @transform_10, window_bounds = array<i64: 1, 128>}, {transform_indices = @transform_11, window_bounds = array<i64: 1, 1>}, {pipeline_mode = #tpu.pipeline_mode<synchronous>, transform_indices = @transform_12, window_bounds = array<i64: 128, 128>}, {pipeline_mode = #tpu.pipeline_mode<synchronous>, transform_indices = @transform_13, window_bounds = array<i64: 1, 128>}, {pipeline_mode = #tpu.pipeline_mode<synchronous>, transform_indices = @transform_14, window_bounds = array<i64: 128, 128>}, {pipeline_mode = #tpu.pipeline_mode<synchronous>, transform_indices = @transform_15, window_bounds = array<i64: 1, 128>}, {pipeline_mode = #tpu.pipeline_mode<synchronous>, transform_indices = @transform_16, window_bounds = array<i64: 128, 256>}, {pipeline_mode = #tpu.pipeline_mode<synchronous>, transform_indices = @transform_17, window_bounds = array<i64: 1, 256>}, {pipeline_mode = #tpu.pipeline_mode<synchronous>, transform_indices = @transform_18, window_bounds = array<i64: 256, 128>}, {pipeline_mode = #tpu.pipeline_mode<synchronous>, transform_indices = @transform_19, window_bounds = array<i64: 1, 128>}, {transform_indices = @transform_20, window_bounds = array<i64: 8, 128>}, {transform_indices = @transform_21, window_bounds = array<i64: 8, 128>}, {transform_indices = @transform_22, window_bounds = array<i64: 8, 128>}, {transform_indices = @transform_23, window_bounds = array<i64: 8, 128>}]} {
    %c0 = arith.constant 0 : index
    %c0_0 = arith.constant 0 : index
    %c0_1 = arith.constant 0 : index
    %0 = vector.load %arg1[%c0, %c0_0, %c0_1] : memref<8x8x128xbf16, #tpu.memory_space<vmem>>, vector<8x8x128xbf16>
    %1 = vector.shape_cast %0 : vector<8x8x128xbf16> to vector<64x128xbf16>
    %c0_2 = arith.constant 0 : index
    %c0_3 = arith.constant 0 : index
    %2 = vector.load %arg3[%c0_2, %c0_3] : memref<128x384xbf16, #tpu.memory_space<vmem>>, vector<128x384xbf16>
    %cst = arith.constant dense<0.000000e+00> : vector<64x384xf32>
    %3 = tpu.matmul %1, %2, %cst {dimension_numbers = #tpu.dot_dimension_numbers<[1], [0], [0], [1], [0, 0, 1, 1], [], []>} : vector<64x128xbf16>, vector<128x384xbf16>, vector<64x384xf32> -> vector<64x384xf32>
    %c0_4 = arith.constant 0 : index
    %c0_5 = arith.constant 0 : index
    %4 = vector.load %arg5[%c0_4, %c0_5] : memref<1x384xf32, #tpu.memory_space<vmem>>, vector<1x384xf32>
    %5 = vector.broadcast %4 : vector<1x384xf32> to vector<64x384xf32>
    %6 = arith.addf %3, %5 : vector<64x384xf32>
    %7 = vector.shape_cast %6 : vector<64x384xf32> to vector<8x8x384xf32>
    %8 = arith.truncf %7 : vector<8x8x384xf32> to vector<8x8x384xbf16>
    %c0_6 = arith.constant 0 : index
    %c0_7 = arith.constant 0 : index
    %c0_8 = arith.constant 0 : index
    %9 = vector.load %arg25[%c0_6, %c0_7, %c0_8] : memref<8x8x384xbf16, #tpu.memory_space<vmem>>, vector<8x8x384xbf16>
    tpu.vector_store %arg25[%c0_6, %c0_7, %c0_8], %8 {strides = array<i32>} : memref<8x8x384xbf16, #tpu.memory_space<vmem>>, vector<8x8x384xbf16>,
    %c0_9 = arith.constant 0 : index
    %c0_10 = arith.constant 0 : index
    %10 = vector.load %arg4[%c0_9, %c0_10] : memref<128x384xbf16, #tpu.memory_space<vmem>>, vector<128x384xbf16>
    %c0_11 = arith.constant 0 : index
    %c0_12 = arith.constant 0 : index
    %11 = vector.load %arg6[%c0_11, %c0_12] : memref<1x128xf32, #tpu.memory_space<vmem>>, vector<1x128xf32>
    %12 = vector.shape_cast %11 : vector<1x128xf32> to vector<1x128xf32>
    %13 = vector.broadcast %12 : vector<1x128xf32> to vector<8x128xf32>
    %cst_13 = arith.constant 0.000000e+00 : f32
    %14 = vector.broadcast %cst_13 : f32 to vector<8x128xf32>
    %c0_i32 = arith.constant 0 : i32
    %15 = arith.index_cast %c0_i32 : i32 to index
    %c0_14 = arith.constant 0 : index
    %c0_15 = arith.constant 0 : index
    %16 = vector.load %arg25[%15, %c0_14, %c0_15] : memref<8x8x384xbf16, #tpu.memory_space<vmem>>, vector<1x8x384xbf16>
    %17 = vector.shape_cast %16 : vector<1x8x384xbf16> to vector<8x384xbf16>
    %18 = arith.truncf %14 : vector<8x128xf32> to vector<8x128xbf16>
    %cst_16 = arith.constant dense<0.000000e+00> : vector<8x384xf32>
    %19 = tpu.matmul %18, %10, %cst_16 {dimension_numbers = #tpu.dot_dimension_numbers<[1], [0], [0], [1], [0, 0, 1, 1], [], []>} : vector<8x128xbf16>, vector<128x384xbf16>, vector<8x384xf32> -> vector<8x384xf32>
    %20 = vector.extract_strided_slice %17 {offsets = [0, 0], sizes = [8, 128], strides = [1, 1]} : vector<8x384xbf16> to vector<8x128xbf16>
    %21 = vector.extract_strided_slice %19 {offsets = [0, 0], sizes = [8, 128], strides = [1, 1]} : vector<8x384xf32> to vector<8x128xf32>
    %22 = arith.extf %20 : vector<8x128xbf16> to vector<8x128xf32>
    %23 = arith.addf %22, %21 : vector<8x128xf32>
    %24 = arith.negf %23 : vector<8x128xf32>
    %25 = math.exp %24 : vector<8x128xf32>
    %cst_17 = arith.constant 1.000000e+00 : f32
    %26 = vector.broadcast %cst_17 : f32 to vector<8x128xf32>
    %27 = arith.addf %26, %25 : vector<8x128xf32>
    %28 = arith.divf %26, %27 : vector<8x128xf32>
    %29 = vector.extract_strided_slice %17 {offsets = [0, 128], sizes = [8, 128], strides = [1, 1]} : vector<8x384xbf16> to vector<8x128xbf16>
    %30 = vector.extract_strided_slice %19 {offsets = [0, 128], sizes = [8, 128], strides = [1, 1]} : vector<8x384xf32> to vector<8x128xf32>
    %31 = arith.extf %29 : vector<8x128xbf16> to vector<8x128xf32>
    %32 = arith.addf %31, %30 : vector<8x128xf32>
    %33 = arith.negf %32 : vector<8x128xf32>
    %34 = math.exp %33 : vector<8x128xf32>
    %cst_18 = arith.constant 1.000000e+00 : f32
    %35 = vector.broadcast %cst_18 : f32 to vector<8x128xf32>
    %36 = arith.addf %35, %34 : vector<8x128xf32>
    %37 = arith.divf %35, %36 : vector<8x128xf32>
    %38 = vector.extract_strided_slice %17 {offsets = [0, 256], sizes = [8, 128], strides = [1, 1]} : vector<8x384xbf16> to vector<8x128xbf16>
    %39 = vector.extract_strided_slice %19 {offsets = [0, 256], sizes = [8, 128], strides = [1, 1]} : vector<8x384xf32> to vector<8x128xf32>
    %40 = arith.addf %39, %13 : vector<8x128xf32>
    %41 = arith.mulf %28, %40 : vector<8x128xf32>
    %42 = arith.extf %38 : vector<8x128xbf16> to vector<8x128xf32>
    %43 = arith.addf %42, %41 : vector<8x128xf32>
    %44 = math.tanh %43 : vector<8x128xf32>
    %cst_19 = arith.constant 1.000000e+00 : f32
    %45 = vector.broadcast %cst_19 : f32 to vector<8x128xf32>
    %46 = arith.subf %45, %37 : vector<8x128xf32>
    %47 = arith.mulf %46, %44 : vector<8x128xf32>
    %48 = arith.mulf %37, %14 : vector<8x128xf32>
    %49 = arith.addf %47, %48 : vector<8x128xf32>
    %c1_i32 = arith.constant 1 : i32
    %50 = arith.index_cast %c1_i32 : i32 to index
    %c0_20 = arith.constant 0 : index
    %c0_21 = arith.constant 0 : index
    %51 = vector.load %arg25[%50, %c0_20, %c0_21] : memref<8x8x384xbf16, #tpu.memory_space<vmem>>, vector<1x8x384xbf16>
    %52 = vector.shape_cast %51 : vector<1x8x384xbf16> to vector<8x384xbf16>
    %53 = arith.truncf %49 : vector<8x128xf32> to vector<8x128xbf16>
    %cst_22 = arith.constant dense<0.000000e+00> : vector<8x384xf32>
    %54 = tpu.matmul %53, %10, %cst_22 {dimension_numbers = #tpu.dot_dimension_numbers<[1], [0], [0], [1], [0, 0, 1, 1], [], []>} : vector<8x128xbf16>, vector<128x384xbf16>, vector<8x384xf32> -> vector<8x384xf32>
    %55 = vector.extract_strided_slice %52 {offsets = [0, 0], sizes = [8, 128], strides = [1, 1]} : vector<8x384xbf16> to vector<8x128xbf16>
    %56 = vector.extract_strided_slice %54 {offsets = [0, 0], sizes = [8, 128], strides = [1, 1]} : vector<8x384xf32> to vector<8x128xf32>
    %57 = arith.extf %55 : vector<8x128xbf16> to vector<8x128xf32>
    %58 = arith.addf %57, %56 : vector<8x128xf32>
    %59 = arith.negf %58 : vector<8x128xf32>
    %60 = math.exp %59 : vector<8x128xf32>
    %cst_23 = arith.constant 1.000000e+00 : f32
    %61 = vector.broadcast %cst_23 : f32 to vector<8x128xf32>
    %62 = arith.addf %61, %60 : vector<8x128xf32>
    %63 = arith.divf %61, %62 : vector<8x128xf32>
    %64 = vector.extract_strided_slice %52 {offsets = [0, 128], sizes = [8, 128], strides = [1, 1]} : vector<8x384xbf16> to vector<8x128xbf16>
    %65 = vector.extract_strided_slice %54 {offsets = [0, 128], sizes = [8, 128], strides = [1, 1]} : vector<8x384xf32> to vector<8x128xf32>
    %66 = arith.extf %64 : vector<8x128xbf16> to vector<8x128xf32>
    %67 = arith.addf %66, %65 : vector<8x128xf32>
    %68 = arith.negf %67 : vector<8x128xf32>
    %69 = math.exp %68 : vector<8x128xf32>
    %cst_24 = arith.constant 1.000000e+00 : f32
    %70 = vector.broadcast %cst_24 : f32 to vector<8x128xf32>
    %71 = arith.addf %70, %69 : vector<8x128xf32>
    %72 = arith.divf %70, %71 : vector<8x128xf32>
    %73 = vector.extract_strided_slice %52 {offsets = [0, 256], sizes = [8, 128], strides = [1, 1]} : vector<8x384xbf16> to vector<8x128xbf16>
    %74 = vector.extract_strided_slice %54 {offsets = [0, 256], sizes = [8, 128], strides = [1, 1]} : vector<8x384xf32> to vector<8x128xf32>
    %75 = arith.addf %74, %13 : vector<8x128xf32>
    %76 = arith.mulf %63, %75 : vector<8x128xf32>
    %77 = arith.extf %73 : vector<8x128xbf16> to vector<8x128xf32>
    %78 = arith.addf %77, %76 : vector<8x128xf32>
    %79 = math.tanh %78 : vector<8x128xf32>
    %cst_25 = arith.constant 1.000000e+00 : f32
    %80 = vector.broadcast %cst_25 : f32 to vector<8x128xf32>
    %81 = arith.subf %80, %72 : vector<8x128xf32>
    %82 = arith.mulf %81, %79 : vector<8x128xf32>
    %83 = arith.mulf %72, %49 : vector<8x128xf32>
    %84 = arith.addf %82, %83 : vector<8x128xf32>
    %c2_i32 = arith.constant 2 : i32
    %85 = arith.index_cast %c2_i32 : i32 to index
    %c0_26 = arith.constant 0 : index
    %c0_27 = arith.constant 0 : index
    %86 = vector.load %arg25[%85, %c0_26, %c0_27] : memref<8x8x384xbf16, #tpu.memory_space<vmem>>, vector<1x8x384xbf16>
    %87 = vector.shape_cast %86 : vector<1x8x384xbf16> to vector<8x384xbf16>
    %88 = arith.truncf %84 : vector<8x128xf32> to vector<8x128xbf16>
    %cst_28 = arith.constant dense<0.000000e+00> : vector<8x384xf32>
    %89 = tpu.matmul %88, %10, %cst_28 {dimension_numbers = #tpu.dot_dimension_numbers<[1], [0], [0], [1], [0, 0, 1, 1], [], []>} : vector<8x128xbf16>, vector<128x384xbf16>, vector<8x384xf32> -> vector<8x384xf32>
    %90 = vector.extract_strided_slice %87 {offsets = [0, 0], sizes = [8, 128], strides = [1, 1]} : vector<8x384xbf16> to vector<8x128xbf16>
    %91 = vector.extract_strided_slice %89 {offsets = [0, 0], sizes = [8, 128], strides = [1, 1]} : vector<8x384xf32> to vector<8x128xf32>
    %92 = arith.extf %90 : vector<8x128xbf16> to vector<8x128xf32>
    %93 = arith.addf %92, %91 : vector<8x128xf32>
    %94 = arith.negf %93 : vector<8x128xf32>
    %95 = math.exp %94 : vector<8x128xf32>
    %cst_29 = arith.constant 1.000000e+00 : f32
    %96 = vector.broadcast %cst_29 : f32 to vector<8x128xf32>
    %97 = arith.addf %96, %95 : vector<8x128xf32>
    %98 = arith.divf %96, %97 : vector<8x128xf32>
    %99 = vector.extract_strided_slice %87 {offsets = [0, 128], sizes = [8, 128], strides = [1, 1]} : vector<8x384xbf16> to vector<8x128xbf16>
    %100 = vector.extract_strided_slice %89 {offsets = [0, 128], sizes = [8, 128], strides = [1, 1]} : vector<8x384xf32> to vector<8x128xf32>
    %101 = arith.extf %99 : vector<8x128xbf16> to vector<8x128xf32>
    %102 = arith.addf %101, %100 : vector<8x128xf32>
    %103 = arith.negf %102 : vector<8x128xf32>
    %104 = math.exp %103 : vector<8x128xf32>
    %cst_30 = arith.constant 1.000000e+00 : f32
    %105 = vector.broadcast %cst_30 : f32 to vector<8x128xf32>
    %106 = arith.addf %105, %104 : vector<8x128xf32>
    %107 = arith.divf %105, %106 : vector<8x128xf32>
    %108 = vector.extract_strided_slice %87 {offsets = [0, 256], sizes = [8, 128], strides = [1, 1]} : vector<8x384xbf16> to vector<8x128xbf16>
    %109 = vector.extract_strided_slice %89 {offsets = [0, 256], sizes = [8, 128], strides = [1, 1]} : vector<8x384xf32> to vector<8x128xf32>
    %110 = arith.addf %109, %13 : vector<8x128xf32>
    %111 = arith.mulf %98, %110 : vector<8x128xf32>
    %112 = arith.extf %108 : vector<8x128xbf16> to vector<8x128xf32>
    %113 = arith.addf %112, %111 : vector<8x128xf32>
    %114 = math.tanh %113 : vector<8x128xf32>
    %cst_31 = arith.constant 1.000000e+00 : f32
    %115 = vector.broadcast %cst_31 : f32 to vector<8x128xf32>
    %116 = arith.subf %115, %107 : vector<8x128xf32>
    %117 = arith.mulf %116, %114 : vector<8x128xf32>
    %118 = arith.mulf %107, %84 : vector<8x128xf32>
    %119 = arith.addf %117, %118 : vector<8x128xf32>
    %c3_i32 = arith.constant 3 : i32
    %120 = arith.index_cast %c3_i32 : i32 to index
    %c0_32 = arith.constant 0 : index
    %c0_33 = arith.constant 0 : index
    %121 = vector.load %arg25[%120, %c0_32, %c0_33] : memref<8x8x384xbf16, #tpu.memory_space<vmem>>, vector<1x8x384xbf16>
    %122 = vector.shape_cast %121 : vector<1x8x384xbf16> to vector<8x384xbf16>
    %123 = arith.truncf %119 : vector<8x128xf32> to vector<8x128xbf16>
    %cst_34 = arith.constant dense<0.000000e+00> : vector<8x384xf32>
    %124 = tpu.matmul %123, %10, %cst_34 {dimension_numbers = #tpu.dot_dimension_numbers<[1], [0], [0], [1], [0, 0, 1, 1], [], []>} : vector<8x128xbf16>, vector<128x384xbf16>, vector<8x384xf32> -> vector<8x384xf32>
    %125 = vector.extract_strided_slice %122 {offsets = [0, 0], sizes = [8, 128], strides = [1, 1]} : vector<8x384xbf16> to vector<8x128xbf16>
    %126 = vector.extract_strided_slice %124 {offsets = [0, 0], sizes = [8, 128], strides = [1, 1]} : vector<8x384xf32> to vector<8x128xf32>
    %127 = arith.extf %125 : vector<8x128xbf16> to vector<8x128xf32>
    %128 = arith.addf %127, %126 : vector<8x128xf32>
    %129 = arith.negf %128 : vector<8x128xf32>
    %130 = math.exp %129 : vector<8x128xf32>
    %cst_35 = arith.constant 1.000000e+00 : f32
    %131 = vector.broadcast %cst_35 : f32 to vector<8x128xf32>
    %132 = arith.addf %131, %130 : vector<8x128xf32>
    %133 = arith.divf %131, %132 : vector<8x128xf32>
    %134 = vector.extract_strided_slice %122 {offsets = [0, 128], sizes = [8, 128], strides = [1, 1]} : vector<8x384xbf16> to vector<8x128xbf16>
    %135 = vector.extract_strided_slice %124 {offsets = [0, 128], sizes = [8, 128], strides = [1, 1]} : vector<8x384xf32> to vector<8x128xf32>
    %136 = arith.extf %134 : vector<8x128xbf16> to vector<8x128xf32>
    %137 = arith.addf %136, %135 : vector<8x128xf32>
    %138 = arith.negf %137 : vector<8x128xf32>
    %139 = math.exp %138 : vector<8x128xf32>
    %cst_36 = arith.constant 1.000000e+00 : f32
    %140 = vector.broadcast %cst_36 : f32 to vector<8x128xf32>
    %141 = arith.addf %140, %139 : vector<8x128xf32>
    %142 = arith.divf %140, %141 : vector<8x128xf32>
    %143 = vector.extract_strided_slice %122 {offsets = [0, 256], sizes = [8, 128], strides = [1, 1]} : vector<8x384xbf16> to vector<8x128xbf16>
    %144 = vector.extract_strided_slice %124 {offsets = [0, 256], sizes = [8, 128], strides = [1, 1]} : vector<8x384xf32> to vector<8x128xf32>
    %145 = arith.addf %144, %13 : vector<8x128xf32>
    %146 = arith.mulf %133, %145 : vector<8x128xf32>
    %147 = arith.extf %143 : vector<8x128xbf16> to vector<8x128xf32>
    %148 = arith.addf %147, %146 : vector<8x128xf32>
    %149 = math.tanh %148 : vector<8x128xf32>
    %cst_37 = arith.constant 1.000000e+00 : f32
    %150 = vector.broadcast %cst_37 : f32 to vector<8x128xf32>
    %151 = arith.subf %150, %142 : vector<8x128xf32>
    %152 = arith.mulf %151, %149 : vector<8x128xf32>
    %153 = arith.mulf %142, %119 : vector<8x128xf32>
    %154 = arith.addf %152, %153 : vector<8x128xf32>
    %c4_i32 = arith.constant 4 : i32
    %155 = arith.index_cast %c4_i32 : i32 to index
    %c0_38 = arith.constant 0 : index
    %c0_39 = arith.constant 0 : index
    %156 = vector.load %arg25[%155, %c0_38, %c0_39] : memref<8x8x384xbf16, #tpu.memory_space<vmem>>, vector<1x8x384xbf16>
    %157 = vector.shape_cast %156 : vector<1x8x384xbf16> to vector<8x384xbf16>
    %158 = arith.truncf %154 : vector<8x128xf32> to vector<8x128xbf16>
    %cst_40 = arith.constant dense<0.000000e+00> : vector<8x384xf32>
    %159 = tpu.matmul %158, %10, %cst_40 {dimension_numbers = #tpu.dot_dimension_numbers<[1], [0], [0], [1], [0, 0, 1, 1], [], []>} : vector<8x128xbf16>, vector<128x384xbf16>, vector<8x384xf32> -> vector<8x384xf32>
    %160 = vector.extract_strided_slice %157 {offsets = [0, 0], sizes = [8, 128], strides = [1, 1]} : vector<8x384xbf16> to vector<8x128xbf16>
    %161 = vector.extract_strided_slice %159 {offsets = [0, 0], sizes = [8, 128], strides = [1, 1]} : vector<8x384xf32> to vector<8x128xf32>
    %162 = arith.extf %160 : vector<8x128xbf16> to vector<8x128xf32>
    %163 = arith.addf %162, %161 : vector<8x128xf32>
    %164 = arith.negf %163 : vector<8x128xf32>
    %165 = math.exp %164 : vector<8x128xf32>
    %cst_41 = arith.constant 1.000000e+00 : f32
    %166 = vector.broadcast %cst_41 : f32 to vector<8x128xf32>
    %167 = arith.addf %166, %165 : vector<8x128xf32>
    %168 = arith.divf %166, %167 : vector<8x128xf32>
    %169 = vector.extract_strided_slice %157 {offsets = [0, 128], sizes = [8, 128], strides = [1, 1]} : vector<8x384xbf16> to vector<8x128xbf16>
    %170 = vector.extract_strided_slice %159 {offsets = [0, 128], sizes = [8, 128], strides = [1, 1]} : vector<8x384xf32> to vector<8x128xf32>
    %171 = arith.extf %169 : vector<8x128xbf16> to vector<8x128xf32>
    %172 = arith.addf %171, %170 : vector<8x128xf32>
    %173 = arith.negf %172 : vector<8x128xf32>
    %174 = math.exp %173 : vector<8x128xf32>
    %cst_42 = arith.constant 1.000000e+00 : f32
    %175 = vector.broadcast %cst_42 : f32 to vector<8x128xf32>
    %176 = arith.addf %175, %174 : vector<8x128xf32>
    %177 = arith.divf %175, %176 : vector<8x128xf32>
    %178 = vector.extract_strided_slice %157 {offsets = [0, 256], sizes = [8, 128], strides = [1, 1]} : vector<8x384xbf16> to vector<8x128xbf16>
    %179 = vector.extract_strided_slice %159 {offsets = [0, 256], sizes = [8, 128], strides = [1, 1]} : vector<8x384xf32> to vector<8x128xf32>
    %180 = arith.addf %179, %13 : vector<8x128xf32>
    %181 = arith.mulf %168, %180 : vector<8x128xf32>
    %182 = arith.extf %178 : vector<8x128xbf16> to vector<8x128xf32>
    %183 = arith.addf %182, %181 : vector<8x128xf32>
    %184 = math.tanh %183 : vector<8x128xf32>
    %cst_43 = arith.constant 1.000000e+00 : f32
    %185 = vector.broadcast %cst_43 : f32 to vector<8x128xf32>
    %186 = arith.subf %185, %177 : vector<8x128xf32>
    %187 = arith.mulf %186, %184 : vector<8x128xf32>
    %188 = arith.mulf %177, %154 : vector<8x128xf32>
    %189 = arith.addf %187, %188 : vector<8x128xf32>
    %c5_i32 = arith.constant 5 : i32
    %190 = arith.index_cast %c5_i32 : i32 to index
    %c0_44 = arith.constant 0 : index
    %c0_45 = arith.constant 0 : index
    %191 = vector.load %arg25[%190, %c0_44, %c0_45] : memref<8x8x384xbf16, #tpu.memory_space<vmem>>, vector<1x8x384xbf16>
    %192 = vector.shape_cast %191 : vector<1x8x384xbf16> to vector<8x384xbf16>
    %193 = arith.truncf %189 : vector<8x128xf32> to vector<8x128xbf16>
    %cst_46 = arith.constant dense<0.000000e+00> : vector<8x384xf32>
    %194 = tpu.matmul %193, %10, %cst_46 {dimension_numbers = #tpu.dot_dimension_numbers<[1], [0], [0], [1], [0, 0, 1, 1], [], []>} : vector<8x128xbf16>, vector<128x384xbf16>, vector<8x384xf32> -> vector<8x384xf32>
    %195 = vector.extract_strided_slice %192 {offsets = [0, 0], sizes = [8, 128], strides = [1, 1]} : vector<8x384xbf16> to vector<8x128xbf16>
    %196 = vector.extract_strided_slice %194 {offsets = [0, 0], sizes = [8, 128], strides = [1, 1]} : vector<8x384xf32> to vector<8x128xf32>
    %197 = arith.extf %195 : vector<8x128xbf16> to vector<8x128xf32>
    %198 = arith.addf %197, %196 : vector<8x128xf32>
    %199 = arith.negf %198 : vector<8x128xf32>
    %200 = math.exp %199 : vector<8x128xf32>
    %cst_47 = arith.constant 1.000000e+00 : f32
    %201 = vector.broadcast %cst_47 : f32 to vector<8x128xf32>
    %202 = arith.addf %201, %200 : vector<8x128xf32>
    %203 = arith.divf %201, %202 : vector<8x128xf32>
    %204 = vector.extract_strided_slice %192 {offsets = [0, 128], sizes = [8, 128], strides = [1, 1]} : vector<8x384xbf16> to vector<8x128xbf16>
    %205 = vector.extract_strided_slice %194 {offsets = [0, 128], sizes = [8, 128], strides = [1, 1]} : vector<8x384xf32> to vector<8x128xf32>
    %206 = arith.extf %204 : vector<8x128xbf16> to vector<8x128xf32>
    %207 = arith.addf %206, %205 : vector<8x128xf32>
    %208 = arith.negf %207 : vector<8x128xf32>
    %209 = math.exp %208 : vector<8x128xf32>
    %cst_48 = arith.constant 1.000000e+00 : f32
    %210 = vector.broadcast %cst_48 : f32 to vector<8x128xf32>
    %211 = arith.addf %210, %209 : vector<8x128xf32>
    %212 = arith.divf %210, %211 : vector<8x128xf32>
    %213 = vector.extract_strided_slice %192 {offsets = [0, 256], sizes = [8, 128], strides = [1, 1]} : vector<8x384xbf16> to vector<8x128xbf16>
    %214 = vector.extract_strided_slice %194 {offsets = [0, 256], sizes = [8, 128], strides = [1, 1]} : vector<8x384xf32> to vector<8x128xf32>
    %215 = arith.addf %214, %13 : vector<8x128xf32>
    %216 = arith.mulf %203, %215 : vector<8x128xf32>
    %217 = arith.extf %213 : vector<8x128xbf16> to vector<8x128xf32>
    %218 = arith.addf %217, %216 : vector<8x128xf32>
    %219 = math.tanh %218 : vector<8x128xf32>
    %cst_49 = arith.constant 1.000000e+00 : f32
    %220 = vector.broadcast %cst_49 : f32 to vector<8x128xf32>
    %221 = arith.subf %220, %212 : vector<8x128xf32>
    %222 = arith.mulf %221, %219 : vector<8x128xf32>
    %223 = arith.mulf %212, %189 : vector<8x128xf32>
    %224 = arith.addf %222, %223 : vector<8x128xf32>
    %c6_i32 = arith.constant 6 : i32
    %225 = arith.index_cast %c6_i32 : i32 to index
    %c0_50 = arith.constant 0 : index
    %c0_51 = arith.constant 0 : index
    %226 = vector.load %arg25[%225, %c0_50, %c0_51] : memref<8x8x384xbf16, #tpu.memory_space<vmem>>, vector<1x8x384xbf16>
    %227 = vector.shape_cast %226 : vector<1x8x384xbf16> to vector<8x384xbf16>
    %228 = arith.truncf %224 : vector<8x128xf32> to vector<8x128xbf16>
    %cst_52 = arith.constant dense<0.000000e+00> : vector<8x384xf32>
    %229 = tpu.matmul %228, %10, %cst_52 {dimension_numbers = #tpu.dot_dimension_numbers<[1], [0], [0], [1], [0, 0, 1, 1], [], []>} : vector<8x128xbf16>, vector<128x384xbf16>, vector<8x384xf32> -> vector<8x384xf32>
    %230 = vector.extract_strided_slice %227 {offsets = [0, 0], sizes = [8, 128], strides = [1, 1]} : vector<8x384xbf16> to vector<8x128xbf16>
    %231 = vector.extract_strided_slice %229 {offsets = [0, 0], sizes = [8, 128], strides = [1, 1]} : vector<8x384xf32> to vector<8x128xf32>
    %232 = arith.extf %230 : vector<8x128xbf16> to vector<8x128xf32>
    %233 = arith.addf %232, %231 : vector<8x128xf32>
    %234 = arith.negf %233 : vector<8x128xf32>
    %235 = math.exp %234 : vector<8x128xf32>
    %cst_53 = arith.constant 1.000000e+00 : f32
    %236 = vector.broadcast %cst_53 : f32 to vector<8x128xf32>
    %237 = arith.addf %236, %235 : vector<8x128xf32>
    %238 = arith.divf %236, %237 : vector<8x128xf32>
    %239 = vector.extract_strided_slice %227 {offsets = [0, 128], sizes = [8, 128], strides = [1, 1]} : vector<8x384xbf16> to vector<8x128xbf16>
    %240 = vector.extract_strided_slice %229 {offsets = [0, 128], sizes = [8, 128], strides = [1, 1]} : vector<8x384xf32> to vector<8x128xf32>
    %241 = arith.extf %239 : vector<8x128xbf16> to vector<8x128xf32>
    %242 = arith.addf %241, %240 : vector<8x128xf32>
    %243 = arith.negf %242 : vector<8x128xf32>
    %244 = math.exp %243 : vector<8x128xf32>
    %cst_54 = arith.constant 1.000000e+00 : f32
    %245 = vector.broadcast %cst_54 : f32 to vector<8x128xf32>
    %246 = arith.addf %245, %244 : vector<8x128xf32>
    %247 = arith.divf %245, %246 : vector<8x128xf32>
    %248 = vector.extract_strided_slice %227 {offsets = [0, 256], sizes = [8, 128], strides = [1, 1]} : vector<8x384xbf16> to vector<8x128xbf16>
    %249 = vector.extract_strided_slice %229 {offsets = [0, 256], sizes = [8, 128], strides = [1, 1]} : vector<8x384xf32> to vector<8x128xf32>
    %250 = arith.addf %249, %13 : vector<8x128xf32>
    %251 = arith.mulf %238, %250 : vector<8x128xf32>
    %252 = arith.extf %248 : vector<8x128xbf16> to vector<8x128xf32>
    %253 = arith.addf %252, %251 : vector<8x128xf32>
    %254 = math.tanh %253 : vector<8x128xf32>
    %cst_55 = arith.constant 1.000000e+00 : f32
    %255 = vector.broadcast %cst_55 : f32 to vector<8x128xf32>
    %256 = arith.subf %255, %247 : vector<8x128xf32>
    %257 = arith.mulf %256, %254 : vector<8x128xf32>
    %258 = arith.mulf %247, %224 : vector<8x128xf32>
    %259 = arith.addf %257, %258 : vector<8x128xf32>
    %c7_i32 = arith.constant 7 : i32
    %260 = arith.index_cast %c7_i32 : i32 to index
    %c0_56 = arith.constant 0 : index
    %c0_57 = arith.constant 0 : index
    %261 = vector.load %arg25[%260, %c0_56, %c0_57] : memref<8x8x384xbf16, #tpu.memory_space<vmem>>, vector<1x8x384xbf16>
    %262 = vector.shape_cast %261 : vector<1x8x384xbf16> to vector<8x384xbf16>
    %263 = arith.truncf %259 : vector<8x128xf32> to vector<8x128xbf16>
    %cst_58 = arith.constant dense<0.000000e+00> : vector<8x384xf32>
    %264 = tpu.matmul %263, %10, %cst_58 {dimension_numbers = #tpu.dot_dimension_numbers<[1], [0], [0], [1], [0, 0, 1, 1], [], []>} : vector<8x128xbf16>, vector<128x384xbf16>, vector<8x384xf32> -> vector<8x384xf32>
    %265 = vector.extract_strided_slice %262 {offsets = [0, 0], sizes = [8, 128], strides = [1, 1]} : vector<8x384xbf16> to vector<8x128xbf16>
    %266 = vector.extract_strided_slice %264 {offsets = [0, 0], sizes = [8, 128], strides = [1, 1]} : vector<8x384xf32> to vector<8x128xf32>
    %267 = arith.extf %265 : vector<8x128xbf16> to vector<8x128xf32>
    %268 = arith.addf %267, %266 : vector<8x128xf32>
    %269 = arith.negf %268 : vector<8x128xf32>
    %270 = math.exp %269 : vector<8x128xf32>
    %cst_59 = arith.constant 1.000000e+00 : f32
    %271 = vector.broadcast %cst_59 : f32 to vector<8x128xf32>
    %272 = arith.addf %271, %270 : vector<8x128xf32>
    %273 = arith.divf %271, %272 : vector<8x128xf32>
    %274 = vector.extract_strided_slice %262 {offsets = [0, 128], sizes = [8, 128], strides = [1, 1]} : vector<8x384xbf16> to vector<8x128xbf16>
    %275 = vector.extract_strided_slice %264 {offsets = [0, 128], sizes = [8, 128], strides = [1, 1]} : vector<8x384xf32> to vector<8x128xf32>
    %276 = arith.extf %274 : vector<8x128xbf16> to vector<8x128xf32>
    %277 = arith.addf %276, %275 : vector<8x128xf32>
    %278 = arith.negf %277 : vector<8x128xf32>
    %279 = math.exp %278 : vector<8x128xf32>
    %cst_60 = arith.constant 1.000000e+00 : f32
    %280 = vector.broadcast %cst_60 : f32 to vector<8x128xf32>
    %281 = arith.addf %280, %279 : vector<8x128xf32>
    %282 = arith.divf %280, %281 : vector<8x128xf32>
    %283 = vector.extract_strided_slice %262 {offsets = [0, 256], sizes = [8, 128], strides = [1, 1]} : vector<8x384xbf16> to vector<8x128xbf16>
    %284 = vector.extract_strided_slice %264 {offsets = [0, 256], sizes = [8, 128], strides = [1, 1]} : vector<8x384xf32> to vector<8x128xf32>
    %285 = arith.addf %284, %13 : vector<8x128xf32>
    %286 = arith.mulf %273, %285 : vector<8x128xf32>
    %287 = arith.extf %283 : vector<8x128xbf16> to vector<8x128xf32>
    %288 = arith.addf %287, %286 : vector<8x128xf32>
    %289 = math.tanh %288 : vector<8x128xf32>
    %cst_61 = arith.constant 1.000000e+00 : f32
    %290 = vector.broadcast %cst_61 : f32 to vector<8x128xf32>
    %291 = arith.subf %290, %282 : vector<8x128xf32>
    %292 = arith.mulf %291, %289 : vector<8x128xf32>
    %293 = arith.mulf %282, %259 : vector<8x128xf32>
    %294 = arith.addf %292, %293 : vector<8x128xf32>
    %c8_i32 = arith.constant 8 : i32
    %c0_62 = arith.constant 0 : index
    %c0_63 = arith.constant 0 : index
    %c0_64 = arith.constant 0 : index
    %295 = vector.load %arg2[%c0_62, %c0_63, %c0_64] : memref<8x8x128xbf16, #tpu.memory_space<vmem>>, vector<8x8x128xbf16>
    %296 = arith.extf %295 : vector<8x8x128xbf16> to vector<8x8x128xf32>
    %297 = arith.truncf %294 : vector<8x128xf32> to vector<8x128xbf16>
    %298 = vector.shape_cast %295 : vector<8x8x128xbf16> to vector<64x128xbf16>
    %c0_65 = arith.constant 0 : index
    %c0_66 = arith.constant 0 : index
    %299 = vector.load %arg7[%c0_65, %c0_66] : memref<128x128xbf16, #tpu.memory_space<vmem>>, vector<128x128xbf16>
    %cst_67 = arith.constant dense<0.000000e+00> : vector<64x128xf32>
    %300 = tpu.matmul %298, %299, %cst_67 {dimension_numbers = #tpu.dot_dimension_numbers<[1], [0], [0], [1], [0, 0, 1, 1], [], []>} : vector<64x128xbf16>, vector<128x128xbf16>, vector<64x128xf32> -> vector<64x128xf32>
    %301 = vector.shape_cast %300 : vector<64x128xf32> to vector<8x8x128xf32>
    %c0_68 = arith.constant 0 : index
    %c0_69 = arith.constant 0 : index
    %302 = vector.load %arg8[%c0_68, %c0_69] : memref<1x128xf32, #tpu.memory_space<vmem>>, vector<1x128xf32>
    %303 = vector.shape_cast %302 : vector<1x128xf32> to vector<1x1x128xf32>
    %304 = vector.broadcast %303 : vector<1x1x128xf32> to vector<8x8x128xf32>
    %305 = arith.addf %301, %304 : vector<8x8x128xf32>
    %cst_70 = arith.constant 0.000000e+00 : f32
    %306 = vector.broadcast %cst_70 : f32 to vector<8x8x128xf32>
    %307 = arith.maximumf %305, %306 : vector<8x8x128xf32>
    %c0_71 = arith.constant 0 : index
    %c0_72 = arith.constant 0 : index
    %308 = vector.load %arg9[%c0_71, %c0_72] : memref<128x128xbf16, #tpu.memory_space<vmem>>, vector<128x128xbf16>
    %cst_73 = arith.constant dense<0.000000e+00> : vector<8x128xf32>
    %309 = tpu.matmul %297, %308, %cst_73 {dimension_numbers = #tpu.dot_dimension_numbers<[1], [0], [0], [1], [0, 0, 1, 1], [], []>} : vector<8x128xbf16>, vector<128x128xbf16>, vector<8x128xf32> -> vector<8x128xf32>
    %c0_74 = arith.constant 0 : index
    %c0_75 = arith.constant 0 : index
    %310 = vector.load %arg10[%c0_74, %c0_75] : memref<1x128xf32, #tpu.memory_space<vmem>>, vector<1x128xf32>
    %311 = vector.broadcast %310 : vector<1x128xf32> to vector<8x128xf32>
    %312 = arith.addf %309, %311 : vector<8x128xf32>
    %cst_76 = arith.constant 0.000000e+00 : f32
    %313 = vector.broadcast %cst_76 : f32 to vector<8x128xf32>
    %314 = arith.maximumf %312, %313 : vector<8x128xf32>
    %c0_77 = arith.constant 0 : index
    %c0_78 = arith.constant 0 : index
    %315 = vector.load %arg11[%c0_77, %c0_78] : memref<1x128xf32, #tpu.memory_space<vmem>>, vector<1x128xf32>
    %316 = vector.broadcast %315 : vector<1x128xf32> to vector<8x128xf32>
    %317 = arith.mulf %314, %316 : vector<8x128xf32>
    %318 = vector.shape_cast %317 : vector<8x128xf32> to vector<8x1x128xf32>
    %319 = vector.broadcast %318 : vector<8x1x128xf32> to vector<8x8x128xf32>
    %320 = arith.mulf %307, %319 : vector<8x8x128xf32>
    %cst_79 = arith.constant dense<0.000000e+00> : vector<8x8xf32>
    %321 = vector.multi_reduction <add>, %320, %cst_79 [2] : vector<8x8x128xf32> to vector<8x8xf32>
    %c0_80 = arith.constant 0 : index
    %c0_81 = arith.constant 0 : index
    %322 = memref.load %arg12[%c0_80, %c0_81] : memref<1x1xf32, #tpu.memory_space<smem>>
    %323 = vector.broadcast %322 : f32 to vector<8x8xf32>
    %324 = arith.addf %321, %323 : vector<8x8xf32>
    %cst_82 = arith.constant dense<0xFF800000> : vector<8xf32>
    %325 = vector.multi_reduction <maximumf>, %324, %cst_82 [1] : vector<8x8xf32> to vector<8xf32>
    %326 = vector.shape_cast %325 : vector<8xf32> to vector<8x1xf32>
    %327 = vector.broadcast %326 : vector<8x1xf32> to vector<8x8xf32>
    %328 = arith.subf %324, %327 : vector<8x8xf32>
    %329 = math.exp %328 : vector<8x8xf32>
    %cst_83 = arith.constant dense<0.000000e+00> : vector<8xf32>
    %330 = vector.multi_reduction <add>, %329, %cst_83 [1] : vector<8x8xf32> to vector<8xf32>
    %331 = vector.shape_cast %330 : vector<8xf32> to vector<8x1xf32>
    %332 = tpu.reciprocal %331 {approx = true} : vector<8x1xf32> -> vector<8x1xf32>
    %333 = vector.broadcast %332 : vector<8x1xf32> to vector<8x8xf32>
    %334 = arith.mulf %329, %333 : vector<8x8xf32>
    %335 = vector.shape_cast %334 : vector<8x8xf32> to vector<8x8x1xf32>
    %336 = vector.broadcast %335 : vector<8x8x1xf32> to vector<8x8x128xf32>
    %337 = arith.mulf %336, %296 : vector<8x8x128xf32>
    %cst_84 = arith.constant dense<0.000000e+00> : vector<8x128xf32>
    %338 = vector.multi_reduction <add>, %337, %cst_84 [1] : vector<8x8x128xf32> to vector<8x128xf32>
    %c0_85 = arith.constant 0 : index
    %c0_86 = arith.constant 0 : index
    %339 = vector.load %arg13[%c0_85, %c0_86] : memref<128x128xbf16, #tpu.memory_space<vmem>>, vector<128x128xbf16>
    %cst_87 = arith.constant dense<0.000000e+00> : vector<8x128xf32>
    %340 = tpu.matmul %297, %339, %cst_87 {dimension_numbers = #tpu.dot_dimension_numbers<[1], [0], [0], [1], [0, 0, 1, 1], [], []>} : vector<8x128xbf16>, vector<128x128xbf16>, vector<8x128xf32> -> vector<8x128xf32>
    %c0_88 = arith.constant 0 : index
    %c0_89 = arith.constant 0 : index
    %341 = vector.load %arg14[%c0_88, %c0_89] : memref<1x128xf32, #tpu.memory_space<vmem>>, vector<1x128xf32>
    %342 = vector.broadcast %341 : vector<1x128xf32> to vector<8x128xf32>
    %343 = arith.addf %340, %342 : vector<8x128xf32>
    %cst_90 = arith.constant 0.000000e+00 : f32
    %344 = vector.broadcast %cst_90 : f32 to vector<8x128xf32>
    %345 = arith.maximumf %343, %344 : vector<8x128xf32>
    %346 = arith.truncf %338 : vector<8x128xf32> to vector<8x128xbf16>
    %c0_91 = arith.constant 0 : index
    %c0_92 = arith.constant 0 : index
    %347 = vector.load %arg15[%c0_91, %c0_92] : memref<128x128xbf16, #tpu.memory_space<vmem>>, vector<128x128xbf16>
    %cst_93 = arith.constant dense<0.000000e+00> : vector<8x128xf32>
    %348 = tpu.matmul %346, %347, %cst_93 {dimension_numbers = #tpu.dot_dimension_numbers<[1], [0], [0], [1], [0, 0, 1, 1], [], []>} : vector<8x128xbf16>, vector<128x128xbf16>, vector<8x128xf32> -> vector<8x128xf32>
    %c0_94 = arith.constant 0 : index
    %c0_95 = arith.constant 0 : index
    %349 = vector.load %arg16[%c0_94, %c0_95] : memref<1x128xf32, #tpu.memory_space<vmem>>, vector<1x128xf32>
    %350 = vector.broadcast %349 : vector<1x128xf32> to vector<8x128xf32>
    %351 = arith.addf %348, %350 : vector<8x128xf32>
    %cst_96 = arith.constant 0.000000e+00 : f32
    %352 = vector.broadcast %cst_96 : f32 to vector<8x128xf32>
    %353 = arith.maximumf %351, %352 : vector<8x128xf32>
    %354 = arith.mulf %345, %353 : vector<8x128xf32>
    %355 = arith.truncf %354 : vector<8x128xf32> to vector<8x128xbf16>
    %c0_97 = arith.constant 0 : index
    %c0_98 = arith.constant 0 : index
    %356 = vector.load %arg17[%c0_97, %c0_98] : memref<128x256xbf16, #tpu.memory_space<vmem>>, vector<128x256xbf16>
    %cst_99 = arith.constant dense<0.000000e+00> : vector<8x256xf32>
    %357 = tpu.matmul %355, %356, %cst_99 {dimension_numbers = #tpu.dot_dimension_numbers<[1], [0], [0], [1], [0, 0, 1, 1], [], []>} : vector<8x128xbf16>, vector<128x256xbf16>, vector<8x256xf32> -> vector<8x256xf32>
    %c0_100 = arith.constant 0 : index
    %c0_101 = arith.constant 0 : index
    %358 = vector.load %arg18[%c0_100, %c0_101] : memref<1x256xf32, #tpu.memory_space<vmem>>, vector<1x256xf32>
    %359 = vector.broadcast %358 : vector<1x256xf32> to vector<8x256xf32>
    %360 = arith.addf %357, %359 : vector<8x256xf32>
    %cst_102 = arith.constant 0.000000e+00 : f32
    %361 = vector.broadcast %cst_102 : f32 to vector<8x256xf32>
    %362 = arith.maximumf %360, %361 : vector<8x256xf32>
    %363 = arith.truncf %362 : vector<8x256xf32> to vector<8x256xbf16>
    %c0_103 = arith.constant 0 : index
    %c0_104 = arith.constant 0 : index
    %364 = vector.load %arg19[%c0_103, %c0_104] : memref<256x128xbf16, #tpu.memory_space<vmem>>, vector<256x128xbf16>
    %cst_105 = arith.constant dense<0.000000e+00> : vector<8x128xf32>
    %365 = tpu.matmul %363, %364, %cst_105 {dimension_numbers = #tpu.dot_dimension_numbers<[1], [0], [0], [1], [0, 0, 1, 1], [], []>} : vector<8x256xbf16>, vector<256x128xbf16>, vector<8x128xf32> -> vector<8x128xf32>
    %c0_106 = arith.constant 0 : index
    %c0_107 = arith.constant 0 : index
    %366 = vector.load %arg20[%c0_106, %c0_107] : memref<1x128xf32, #tpu.memory_space<vmem>>, vector<1x128xf32>
    %367 = vector.broadcast %366 : vector<1x128xf32> to vector<8x128xf32>
    %368 = arith.addf %365, %367 : vector<8x128xf32>
    %c0_108 = arith.constant 0 : index
    %c0_109 = arith.constant 0 : index
    %369 = vector.load %arg21[%c0_108, %c0_109] : memref<8x128xf32, #tpu.memory_space<vmem>>, vector<8x128xf32>
    tpu.vector_store %arg21[%c0_108, %c0_109], %368 {strides = array<i32>} : memref<8x128xf32, #tpu.memory_space<vmem>>, vector<8x128xf32>,
    %cst_110 = arith.constant dense<0.000000e+00> : vector<8x128xf32>
    %370 = vector.multi_reduction <add>, %296, %cst_110 [1] : vector<8x8x128xf32> to vector<8x128xf32>
    %c0_111 = arith.constant 0 : index
    %c0_112 = arith.constant 0 : index
    %371 = vector.load %arg22[%c0_111, %c0_112] : memref<8x128xf32, #tpu.memory_space<vmem>>, vector<8x128xf32>
    tpu.vector_store %arg22[%c0_111, %c0_112], %370 {strides = array<i32>} : memref<8x128xf32, #tpu.memory_space<vmem>>, vector<8x128xf32>,
    %c0_113 = arith.constant 0 : index
    %c0_114 = arith.constant 0 : index
    %372 = vector.load %arg23[%c0_113, %c0_114] : memref<8x128xf32, #tpu.memory_space<vmem>>, vector<8x128xf32>
    tpu.vector_store %arg23[%c0_113, %c0_114], %345 {strides = array<i32>} : memref<8x128xf32, #tpu.memory_space<vmem>>, vector<8x128xf32>,
    %c0_115 = arith.constant 0 : index
    %c0_116 = arith.constant 0 : index
    %373 = vector.load %arg24[%c0_115, %c0_116] : memref<8x128xf32, #tpu.memory_space<vmem>>, vector<8x128xf32>
    tpu.vector_store %arg24[%c0_115, %c0_116], %354 {strides = array<i32>} : memref<8x128xf32, #tpu.memory_space<vmem>>, vector<8x128xf32>,
    return
  }
  func.func @transform_0(%arg0: i32) -> (i32, i32, i32) {
    %c0_i32 = arith.constant 0 : i32
    %c0_i32_0 = arith.constant 0 : i32
    %c0_i32_1 = arith.constant 0 : i32
    return %c0_i32, %arg0, %c0_i32_0 : i32, i32, i32
  }
  func.func @transform_1(%arg0: i32) -> (i32, i32, i32) {
    %c0_i32 = arith.constant 0 : i32
    %c0_i32_0 = arith.constant 0 : i32
    %c0_i32_1 = arith.constant 0 : i32
    return %arg0, %c0_i32, %c0_i32_0 : i32, i32, i32
  }
  func.func @transform_2(%arg0: i32) -> (i32, i32) {
    %c0_i32 = arith.constant 0 : i32
    %c0_i32_0 = arith.constant 0 : i32
    %c0_i32_1 = arith.constant 0 : i32
    return %c0_i32, %c0_i32_0 : i32, i32
  }
  func.func @transform_3(%arg0: i32) -> (i32, i32) {
    %c0_i32 = arith.constant 0 : i32
    %c0_i32_0 = arith.constant 0 : i32
    %c0_i32_1 = arith.constant 0 : i32
    return %c0_i32, %c0_i32_0 : i32, i32
  }
  func.func @transform_4(%arg0: i32) -> (i32, i32) {
    %c0_i32 = arith.constant 0 : i32
    %c0_i32_0 = arith.constant 0 : i32
    %c0_i32_1 = arith.constant 0 : i32
    return %c0_i32, %c0_i32_0 : i32, i32
  }
  func.func @transform_5(%arg0: i32) -> (i32, i32) {
    %c0_i32 = arith.constant 0 : i32
    %c0_i32_0 = arith.constant 0 : i32
    %c0_i32_1 = arith.constant 0 : i32
    return %c0_i32, %c0_i32_0 : i32, i32
  }
  func.func @transform_6(%arg0: i32) -> (i32, i32) {
    %c0_i32 = arith.constant 0 : i32
    %c0_i32_0 = arith.constant 0 : i32
    %c0_i32_1 = arith.constant 0 : i32
    return %c0_i32, %c0_i32_0 : i32, i32
  }
  func.func @transform_7(%arg0: i32) -> (i32, i32) {
    %c0_i32 = arith.constant 0 : i32
    %c0_i32_0 = arith.constant 0 : i32
    %c0_i32_1 = arith.constant 0 : i32
    return %c0_i32, %c0_i32_0 : i32, i32
  }
  func.func @transform_8(%arg0: i32) -> (i32, i32) {
    %c0_i32 = arith.constant 0 : i32
    %c0_i32_0 = arith.constant 0 : i32
    %c0_i32_1 = arith.constant 0 : i32
    return %c0_i32, %c0_i32_0 : i32, i32
  }
  func.func @transform_9(%arg0: i32) -> (i32, i32) {
    %c0_i32 = arith.constant 0 : i32
    %c0_i32_0 = arith.constant 0 : i32
    %c0_i32_1 = arith.constant 0 : i32
    return %c0_i32, %c0_i32_0 : i32, i32
  }
  func.func @transform_10(%arg0: i32) -> (i32, i32) {
    %c0_i32 = arith.constant 0 : i32
    %c0_i32_0 = arith.constant 0 : i32
    %c0_i32_1 = arith.constant 0 : i32
    return %c0_i32, %c0_i32_0 : i32, i32
  }
  func.func @transform_11(%arg0: i32) -> (i32, i32) {
    %c0_i32 = arith.constant 0 : i32
    %c0_i32_0 = arith.constant 0 : i32
    %c0_i32_1 = arith.constant 0 : i32
    return %c0_i32, %c0_i32_0 : i32, i32
  }
  func.func @transform_12(%arg0: i32) -> (i32, i32) {
    %c0_i32 = arith.constant 0 : i32
    %c0_i32_0 = arith.constant 0 : i32
    %c0_i32_1 = arith.constant 0 : i32
    return %c0_i32, %c0_i32_0 : i32, i32
  }
  func.func @transform_13(%arg0: i32) -> (i32, i32) {
    %c0_i32 = arith.constant 0 : i32
    %c0_i32_0 = arith.constant 0 : i32
    %c0_i32_1 = arith.constant 0 : i32
    return %c0_i32, %c0_i32_0 : i32, i32
  }
  func.func @transform_14(%arg0: i32) -> (i32, i32) {
    %c0_i32 = arith.constant 0 : i32
    %c0_i32_0 = arith.constant 0 : i32
    %c0_i32_1 = arith.constant 0 : i32
    return %c0_i32, %c0_i32_0 : i32, i32
  }
  func.func @transform_15(%arg0: i32) -> (i32, i32) {
    %c0_i32 = arith.constant 0 : i32
    %c0_i32_0 = arith.constant 0 : i32
    %c0_i32_1 = arith.constant 0 : i32
    return %c0_i32, %c0_i32_0 : i32, i32
  }
  func.func @transform_16(%arg0: i32) -> (i32, i32) {
    %c0_i32 = arith.constant 0 : i32
    %c0_i32_0 = arith.constant 0 : i32
    %c0_i32_1 = arith.constant 0 : i32
    return %c0_i32, %c0_i32_0 : i32, i32
  }
  func.func @transform_17(%arg0: i32) -> (i32, i32) {
    %c0_i32 = arith.constant 0 : i32
    %c0_i32_0 = arith.constant 0 : i32
    %c0_i32_1 = arith.constant 0 : i32
    return %c0_i32, %c0_i32_0 : i32, i32
  }
  func.func @transform_18(%arg0: i32) -> (i32, i32) {
    %c0_i32 = arith.constant 0 : i32
    %c0_i32_0 = arith.constant 0 : i32
    %c0_i32_1 = arith.constant 0 : i32
    return %c0_i32, %c0_i32_0 : i32, i32
  }
  func.func @transform_19(%arg0: i32) -> (i32, i32) {
    %c0_i32 = arith.constant 0 : i32
    %c0_i32_0 = arith.constant 0 : i32
    %c0_i32_1 = arith.constant 0 : i32
    return %c0_i32, %c0_i32_0 : i32, i32
  }
  func.func @transform_20(%arg0: i32) -> (i32, i32) {
    %c0_i32 = arith.constant 0 : i32
    %c0_i32_0 = arith.constant 0 : i32
    return %arg0, %c0_i32 : i32, i32
  }
  func.func @transform_21(%arg0: i32) -> (i32, i32) {
    %c0_i32 = arith.constant 0 : i32
    %c0_i32_0 = arith.constant 0 : i32
    return %arg0, %c0_i32 : i32, i32
  }
  func.func @transform_22(%arg0: i32) -> (i32, i32) {
    %c0_i32 = arith.constant 0 : i32
    %c0_i32_0 = arith.constant 0 : i32
    return %arg0, %c0_i32 : i32, i32
  }
  func.func @transform_23(%arg0: i32) -> (i32, i32) {
    %c0_i32 = arith.constant 0 : i32
    %c0_i32_0 = arith.constant 0 : i32
    return %arg0, %c0_i32 : i32, i32
  }
}

module attributes {stable_mosaic.version = 11 : i64} {
  func.func @ll4al_kernel(%arg0: i32, %arg1: memref<8x8x128xbf16, #tpu.memory_space<vmem>>, %arg2: memref<8x8x128xbf16, #tpu.memory_space<vmem>>, %arg3: memref<128x384xbf16, #tpu.memory_space<vmem>>, %arg4: memref<128x384xbf16, #tpu.memory_space<vmem>>, %arg5: memref<1x384xf32, #tpu.memory_space<vmem>>, %arg6: memref<1x128xf32, #tpu.memory_space<vmem>>, %arg7: memref<128x128xbf16, #tpu.memory_space<vmem>>, %arg8: memref<1x128xf32, #tpu.memory_space<vmem>>, %arg9: memref<128x128xbf16, #tpu.memory_space<vmem>>, %arg10: memref<1x128xf32, #tpu.memory_space<vmem>>, %arg11: memref<1x128xf32, #tpu.memory_space<vmem>>, %arg12: memref<1x1xf32, #tpu.memory_space<smem>>, %arg13: memref<128x128xbf16, #tpu.memory_space<vmem>>, %arg14: memref<1x128xf32, #tpu.memory_space<vmem>>, %arg15: memref<128x128xbf16, #tpu.memory_space<vmem>>, %arg16: memref<1x128xf32, #tpu.memory_space<vmem>>, %arg17: memref<128x256xbf16, #tpu.memory_space<vmem>>, %arg18: memref<1x256xf32, #tpu.memory_space<vmem>>, %arg19: memref<256x128xbf16, #tpu.memory_space<vmem>>, %arg20: memref<1x128xf32, #tpu.memory_space<vmem>>, %arg21: memref<8x128xf32, #tpu.memory_space<vmem>>, %arg22: memref<8x128xf32, #tpu.memory_space<vmem>>, %arg23: memref<8x128xf32, #tpu.memory_space<vmem>>, %arg24: memref<8x128xf32, #tpu.memory_space<vmem>>, %arg25: memref<8x8x384xbf16, #tpu.memory_space<vmem>>) attributes {dimension_semantics = [#tpu.dimension_semantics<parallel>], iteration_bounds = array<i64: 2>, scalar_prefetch = 0 : i64, scratch_operands = 1 : i64, tpu.core_type = #tpu.core_type<tc>, window_params = [{transform_indices = @transform_0, window_bounds = array<i64: 8, 8, 128>}, {transform_indices = @transform_1, window_bounds = array<i64: 8, 8, 128>}, {pipeline_mode = #tpu.pipeline_mode<synchronous>, transform_indices = @transform_2, window_bounds = array<i64: 128, 384>}, {pipeline_mode = #tpu.pipeline_mode<synchronous>, transform_indices = @transform_3, window_bounds = array<i64: 128, 384>}, {pipeline_mode = #tpu.pipeline_mode<synchronous>, transform_indices = @transform_4, window_bounds = array<i64: 1, 384>}, {pipeline_mode = #tpu.pipeline_mode<synchronous>, transform_indices = @transform_5, window_bounds = array<i64: 1, 128>}, {pipeline_mode = #tpu.pipeline_mode<synchronous>, transform_indices = @transform_6, window_bounds = array<i64: 128, 128>}, {pipeline_mode = #tpu.pipeline_mode<synchronous>, transform_indices = @transform_7, window_bounds = array<i64: 1, 128>}, {pipeline_mode = #tpu.pipeline_mode<synchronous>, transform_indices = @transform_8, window_bounds = array<i64: 128, 128>}, {pipeline_mode = #tpu.pipeline_mode<synchronous>, transform_indices = @transform_9, window_bounds = array<i64: 1, 128>}, {pipeline_mode = #tpu.pipeline_mode<synchronous>, transform_indices = @transform_10, window_bounds = array<i64: 1, 128>}, {transform_indices = @transform_11, window_bounds = array<i64: 1, 1>}, {pipeline_mode = #tpu.pipeline_mode<synchronous>, transform_indices = @transform_12, window_bounds = array<i64: 128, 128>}, {pipeline_mode = #tpu.pipeline_mode<synchronous>, transform_indices = @transform_13, window_bounds = array<i64: 1, 128>}, {pipeline_mode = #tpu.pipeline_mode<synchronous>, transform_indices = @transform_14, window_bounds = array<i64: 128, 128>}, {pipeline_mode = #tpu.pipeline_mode<synchronous>, transform_indices = @transform_15, window_bounds = array<i64: 1, 128>}, {pipeline_mode = #tpu.pipeline_mode<synchronous>, transform_indices = @transform_16, window_bounds = array<i64: 128, 256>}, {pipeline_mode = #tpu.pipeline_mode<synchronous>, transform_indices = @transform_17, window_bounds = array<i64: 1, 256>}, {pipeline_mode = #tpu.pipeline_mode<synchronous>, transform_indices = @transform_18, window_bounds = array<i64: 256, 128>}, {pipeline_mode = #tpu.pipeline_mode<synchronous>, transform_indices = @transform_19, window_bounds = array<i64: 1, 128>}, {transform_indices = @transform_20, window_bounds = array<i64: 8, 128>}, {transform_indices = @transform_21, window_bounds = array<i64: 8, 128>}, {transform_indices = @transform_22, window_bounds = array<i64: 8, 128>}, {transform_indices = @transform_23, window_bounds = array<i64: 8, 128>}]} {
    %c0 = arith.constant 0 : index
    %c0_0 = arith.constant 0 : index
    %c0_1 = arith.constant 0 : index
    %0 = vector.load %arg1[%c0, %c0_0, %c0_1] : memref<8x8x128xbf16, #tpu.memory_space<vmem>>, vector<8x8x128xbf16>
    %1 = vector.shape_cast %0 : vector<8x8x128xbf16> to vector<64x128xbf16>
    %c0_2 = arith.constant 0 : index
    %c0_3 = arith.constant 0 : index
    %2 = vector.load %arg3[%c0_2, %c0_3] : memref<128x384xbf16, #tpu.memory_space<vmem>>, vector<128x384xbf16>
    %cst = arith.constant dense<0.000000e+00> : vector<64x384xf32>
    %3 = tpu.matmul %1, %2, %cst {dimension_numbers = #tpu.dot_dimension_numbers<[1], [0], [0], [1], [0, 0, 1, 1], [], []>} : vector<64x128xbf16>, vector<128x384xbf16>, vector<64x384xf32> -> vector<64x384xf32>
    %c0_4 = arith.constant 0 : index
    %c0_5 = arith.constant 0 : index
    %4 = vector.load %arg5[%c0_4, %c0_5] : memref<1x384xf32, #tpu.memory_space<vmem>>, vector<1x384xf32>
    %5 = vector.broadcast %4 : vector<1x384xf32> to vector<64x384xf32>
    %6 = arith.addf %3, %5 : vector<64x384xf32>
    %7 = vector.shape_cast %6 : vector<64x384xf32> to vector<8x8x384xf32>
    %8 = arith.truncf %7 : vector<8x8x384xf32> to vector<8x8x384xbf16>
    %c0_6 = arith.constant 0 : index
    %c0_7 = arith.constant 0 : index
    %c0_8 = arith.constant 0 : index
    %9 = vector.load %arg25[%c0_6, %c0_7, %c0_8] : memref<8x8x384xbf16, #tpu.memory_space<vmem>>, vector<8x8x384xbf16>
    tpu.vector_store %arg25[%c0_6, %c0_7, %c0_8], %8 {strides = array<i32>} : memref<8x8x384xbf16, #tpu.memory_space<vmem>>, vector<8x8x384xbf16>,
    %c0_9 = arith.constant 0 : index
    %c0_10 = arith.constant 0 : index
    %10 = vector.load %arg4[%c0_9, %c0_10] : memref<128x384xbf16, #tpu.memory_space<vmem>>, vector<128x384xbf16>
    %c0_11 = arith.constant 0 : index
    %c0_12 = arith.constant 0 : index
    %11 = vector.load %arg6[%c0_11, %c0_12] : memref<1x128xf32, #tpu.memory_space<vmem>>, vector<1x128xf32>
    %12 = vector.shape_cast %11 : vector<1x128xf32> to vector<1x128xf32>
    %13 = vector.broadcast %12 : vector<1x128xf32> to vector<8x128xf32>
    %cst_13 = arith.constant 0.000000e+00 : f32
    %14 = vector.broadcast %cst_13 : f32 to vector<8x128xf32>
    %c0_i32 = arith.constant 0 : i32
    %15 = arith.index_cast %c0_i32 : i32 to index
    %c0_14 = arith.constant 0 : index
    %c0_15 = arith.constant 0 : index
    %16 = vector.load %arg25[%15, %c0_14, %c0_15] : memref<8x8x384xbf16, #tpu.memory_space<vmem>>, vector<1x8x384xbf16>
    %17 = vector.shape_cast %16 : vector<1x8x384xbf16> to vector<8x384xbf16>
    %18 = arith.truncf %14 : vector<8x128xf32> to vector<8x128xbf16>
    %cst_16 = arith.constant dense<0.000000e+00> : vector<8x384xf32>
    %19 = tpu.matmul %18, %10, %cst_16 {dimension_numbers = #tpu.dot_dimension_numbers<[1], [0], [0], [1], [0, 0, 1, 1], [], []>} : vector<8x128xbf16>, vector<128x384xbf16>, vector<8x384xf32> -> vector<8x384xf32>
    %20 = vector.extract_strided_slice %17 {offsets = [0, 0], sizes = [8, 128], strides = [1, 1]} : vector<8x384xbf16> to vector<8x128xbf16>
    %21 = vector.extract_strided_slice %19 {offsets = [0, 0], sizes = [8, 128], strides = [1, 1]} : vector<8x384xf32> to vector<8x128xf32>
    %22 = arith.extf %20 : vector<8x128xbf16> to vector<8x128xf32>
    %23 = arith.addf %22, %21 : vector<8x128xf32>
    %24 = arith.negf %23 : vector<8x128xf32>
    %25 = math.exp %24 : vector<8x128xf32>
    %cst_17 = arith.constant 1.000000e+00 : f32
    %26 = vector.broadcast %cst_17 : f32 to vector<8x128xf32>
    %27 = arith.addf %26, %25 : vector<8x128xf32>
    %28 = arith.divf %26, %27 : vector<8x128xf32>
    %29 = vector.extract_strided_slice %17 {offsets = [0, 128], sizes = [8, 128], strides = [1, 1]} : vector<8x384xbf16> to vector<8x128xbf16>
    %30 = vector.extract_strided_slice %19 {offsets = [0, 128], sizes = [8, 128], strides = [1, 1]} : vector<8x384xf32> to vector<8x128xf32>
    %31 = arith.extf %29 : vector<8x128xbf16> to vector<8x128xf32>
    %32 = arith.addf %31, %30 : vector<8x128xf32>
    %33 = arith.negf %32 : vector<8x128xf32>
    %34 = math.exp %33 : vector<8x128xf32>
    %cst_18 = arith.constant 1.000000e+00 : f32
    %35 = vector.broadcast %cst_18 : f32 to vector<8x128xf32>
    %36 = arith.addf %35, %34 : vector<8x128xf32>
    %37 = arith.divf %35, %36 : vector<8x128xf32>
    %38 = vector.extract_strided_slice %17 {offsets = [0, 256], sizes = [8, 128], strides = [1, 1]} : vector<8x384xbf16> to vector<8x128xbf16>
    %39 = vector.extract_strided_slice %19 {offsets = [0, 256], sizes = [8, 128], strides = [1, 1]} : vector<8x384xf32> to vector<8x128xf32>
    %40 = arith.addf %39, %13 : vector<8x128xf32>
    %41 = arith.mulf %28, %40 : vector<8x128xf32>
    %42 = arith.extf %38 : vector<8x128xbf16> to vector<8x128xf32>
    %43 = arith.addf %42, %41 : vector<8x128xf32>
    %44 = math.tanh %43 : vector<8x128xf32>
    %cst_19 = arith.constant 1.000000e+00 : f32
    %45 = vector.broadcast %cst_19 : f32 to vector<8x128xf32>
    %46 = arith.subf %45, %37 : vector<8x128xf32>
    %47 = arith.mulf %46, %44 : vector<8x128xf32>
    %48 = arith.mulf %37, %14 : vector<8x128xf32>
    %49 = arith.addf %47, %48 : vector<8x128xf32>
    %c1_i32 = arith.constant 1 : i32
    %50 = arith.index_cast %c1_i32 : i32 to index
    %c0_20 = arith.constant 0 : index
    %c0_21 = arith.constant 0 : index
    %51 = vector.load %arg25[%50, %c0_20, %c0_21] : memref<8x8x384xbf16, #tpu.memory_space<vmem>>, vector<1x8x384xbf16>
    %52 = vector.shape_cast %51 : vector<1x8x384xbf16> to vector<8x384xbf16>
    %53 = arith.truncf %49 : vector<8x128xf32> to vector<8x128xbf16>
    %cst_22 = arith.constant dense<0.000000e+00> : vector<8x384xf32>
    %54 = tpu.matmul %53, %10, %cst_22 {dimension_numbers = #tpu.dot_dimension_numbers<[1], [0], [0], [1], [0, 0, 1, 1], [], []>} : vector<8x128xbf16>, vector<128x384xbf16>, vector<8x384xf32> -> vector<8x384xf32>
    %55 = vector.extract_strided_slice %52 {offsets = [0, 0], sizes = [8, 128], strides = [1, 1]} : vector<8x384xbf16> to vector<8x128xbf16>
    %56 = vector.extract_strided_slice %54 {offsets = [0, 0], sizes = [8, 128], strides = [1, 1]} : vector<8x384xf32> to vector<8x128xf32>
    %57 = arith.extf %55 : vector<8x128xbf16> to vector<8x128xf32>
    %58 = arith.addf %57, %56 : vector<8x128xf32>
    %59 = arith.negf %58 : vector<8x128xf32>
    %60 = math.exp %59 : vector<8x128xf32>
    %cst_23 = arith.constant 1.000000e+00 : f32
    %61 = vector.broadcast %cst_23 : f32 to vector<8x128xf32>
    %62 = arith.addf %61, %60 : vector<8x128xf32>
    %63 = arith.divf %61, %62 : vector<8x128xf32>
    %64 = vector.extract_strided_slice %52 {offsets = [0, 128], sizes = [8, 128], strides = [1, 1]} : vector<8x384xbf16> to vector<8x128xbf16>
    %65 = vector.extract_strided_slice %54 {offsets = [0, 128], sizes = [8, 128], strides = [1, 1]} : vector<8x384xf32> to vector<8x128xf32>
    %66 = arith.extf %64 : vector<8x128xbf16> to vector<8x128xf32>
    %67 = arith.addf %66, %65 : vector<8x128xf32>
    %68 = arith.negf %67 : vector<8x128xf32>
    %69 = math.exp %68 : vector<8x128xf32>
    %cst_24 = arith.constant 1.000000e+00 : f32
    %70 = vector.broadcast %cst_24 : f32 to vector<8x128xf32>
    %71 = arith.addf %70, %69 : vector<8x128xf32>
    %72 = arith.divf %70, %71 : vector<8x128xf32>
    %73 = vector.extract_strided_slice %52 {offsets = [0, 256], sizes = [8, 128], strides = [1, 1]} : vector<8x384xbf16> to vector<8x128xbf16>
    %74 = vector.extract_strided_slice %54 {offsets = [0, 256], sizes = [8, 128], strides = [1, 1]} : vector<8x384xf32> to vector<8x128xf32>
    %75 = arith.addf %74, %13 : vector<8x128xf32>
    %76 = arith.mulf %63, %75 : vector<8x128xf32>
    %77 = arith.extf %73 : vector<8x128xbf16> to vector<8x128xf32>
    %78 = arith.addf %77, %76 : vector<8x128xf32>
    %79 = math.tanh %78 : vector<8x128xf32>
    %cst_25 = arith.constant 1.000000e+00 : f32
    %80 = vector.broadcast %cst_25 : f32 to vector<8x128xf32>
    %81 = arith.subf %80, %72 : vector<8x128xf32>
    %82 = arith.mulf %81, %79 : vector<8x128xf32>
    %83 = arith.mulf %72, %49 : vector<8x128xf32>
    %84 = arith.addf %82, %83 : vector<8x128xf32>
    %c2_i32 = arith.constant 2 : i32
    %85 = arith.index_cast %c2_i32 : i32 to index
    %c0_26 = arith.constant 0 : index
    %c0_27 = arith.constant 0 : index
    %86 = vector.load %arg25[%85, %c0_26, %c0_27] : memref<8x8x384xbf16, #tpu.memory_space<vmem>>, vector<1x8x384xbf16>
    %87 = vector.shape_cast %86 : vector<1x8x384xbf16> to vector<8x384xbf16>
    %88 = arith.truncf %84 : vector<8x128xf32> to vector<8x128xbf16>
    %cst_28 = arith.constant dense<0.000000e+00> : vector<8x384xf32>
    %89 = tpu.matmul %88, %10, %cst_28 {dimension_numbers = #tpu.dot_dimension_numbers<[1], [0], [0], [1], [0, 0, 1, 1], [], []>} : vector<8x128xbf16>, vector<128x384xbf16>, vector<8x384xf32> -> vector<8x384xf32>
    %90 = vector.extract_strided_slice %87 {offsets = [0, 0], sizes = [8, 128], strides = [1, 1]} : vector<8x384xbf16> to vector<8x128xbf16>
    %91 = vector.extract_strided_slice %89 {offsets = [0, 0], sizes = [8, 128], strides = [1, 1]} : vector<8x384xf32> to vector<8x128xf32>
    %92 = arith.extf %90 : vector<8x128xbf16> to vector<8x128xf32>
    %93 = arith.addf %92, %91 : vector<8x128xf32>
    %94 = arith.negf %93 : vector<8x128xf32>
    %95 = math.exp %94 : vector<8x128xf32>
    %cst_29 = arith.constant 1.000000e+00 : f32
    %96 = vector.broadcast %cst_29 : f32 to vector<8x128xf32>
    %97 = arith.addf %96, %95 : vector<8x128xf32>
    %98 = arith.divf %96, %97 : vector<8x128xf32>
    %99 = vector.extract_strided_slice %87 {offsets = [0, 128], sizes = [8, 128], strides = [1, 1]} : vector<8x384xbf16> to vector<8x128xbf16>
    %100 = vector.extract_strided_slice %89 {offsets = [0, 128], sizes = [8, 128], strides = [1, 1]} : vector<8x384xf32> to vector<8x128xf32>
    %101 = arith.extf %99 : vector<8x128xbf16> to vector<8x128xf32>
    %102 = arith.addf %101, %100 : vector<8x128xf32>
    %103 = arith.negf %102 : vector<8x128xf32>
    %104 = math.exp %103 : vector<8x128xf32>
    %cst_30 = arith.constant 1.000000e+00 : f32
    %105 = vector.broadcast %cst_30 : f32 to vector<8x128xf32>
    %106 = arith.addf %105, %104 : vector<8x128xf32>
    %107 = arith.divf %105, %106 : vector<8x128xf32>
    %108 = vector.extract_strided_slice %87 {offsets = [0, 256], sizes = [8, 128], strides = [1, 1]} : vector<8x384xbf16> to vector<8x128xbf16>
    %109 = vector.extract_strided_slice %89 {offsets = [0, 256], sizes = [8, 128], strides = [1, 1]} : vector<8x384xf32> to vector<8x128xf32>
    %110 = arith.addf %109, %13 : vector<8x128xf32>
    %111 = arith.mulf %98, %110 : vector<8x128xf32>
    %112 = arith.extf %108 : vector<8x128xbf16> to vector<8x128xf32>
    %113 = arith.addf %112, %111 : vector<8x128xf32>
    %114 = math.tanh %113 : vector<8x128xf32>
    %cst_31 = arith.constant 1.000000e+00 : f32
    %115 = vector.broadcast %cst_31 : f32 to vector<8x128xf32>
    %116 = arith.subf %115, %107 : vector<8x128xf32>
    %117 = arith.mulf %116, %114 : vector<8x128xf32>
    %118 = arith.mulf %107, %84 : vector<8x128xf32>
    %119 = arith.addf %117, %118 : vector<8x128xf32>
    %c3_i32 = arith.constant 3 : i32
    %120 = arith.index_cast %c3_i32 : i32 to index
    %c0_32 = arith.constant 0 : index
    %c0_33 = arith.constant 0 : index
    %121 = vector.load %arg25[%120, %c0_32, %c0_33] : memref<8x8x384xbf16, #tpu.memory_space<vmem>>, vector<1x8x384xbf16>
    %122 = vector.shape_cast %121 : vector<1x8x384xbf16> to vector<8x384xbf16>
    %123 = arith.truncf %119 : vector<8x128xf32> to vector<8x128xbf16>
    %cst_34 = arith.constant dense<0.000000e+00> : vector<8x384xf32>
    %124 = tpu.matmul %123, %10, %cst_34 {dimension_numbers = #tpu.dot_dimension_numbers<[1], [0], [0], [1], [0, 0, 1, 1], [], []>} : vector<8x128xbf16>, vector<128x384xbf16>, vector<8x384xf32> -> vector<8x384xf32>
    %125 = vector.extract_strided_slice %122 {offsets = [0, 0], sizes = [8, 128], strides = [1, 1]} : vector<8x384xbf16> to vector<8x128xbf16>
    %126 = vector.extract_strided_slice %124 {offsets = [0, 0], sizes = [8, 128], strides = [1, 1]} : vector<8x384xf32> to vector<8x128xf32>
    %127 = arith.extf %125 : vector<8x128xbf16> to vector<8x128xf32>
    %128 = arith.addf %127, %126 : vector<8x128xf32>
    %129 = arith.negf %128 : vector<8x128xf32>
    %130 = math.exp %129 : vector<8x128xf32>
    %cst_35 = arith.constant 1.000000e+00 : f32
    %131 = vector.broadcast %cst_35 : f32 to vector<8x128xf32>
    %132 = arith.addf %131, %130 : vector<8x128xf32>
    %133 = arith.divf %131, %132 : vector<8x128xf32>
    %134 = vector.extract_strided_slice %122 {offsets = [0, 128], sizes = [8, 128], strides = [1, 1]} : vector<8x384xbf16> to vector<8x128xbf16>
    %135 = vector.extract_strided_slice %124 {offsets = [0, 128], sizes = [8, 128], strides = [1, 1]} : vector<8x384xf32> to vector<8x128xf32>
    %136 = arith.extf %134 : vector<8x128xbf16> to vector<8x128xf32>
    %137 = arith.addf %136, %135 : vector<8x128xf32>
    %138 = arith.negf %137 : vector<8x128xf32>
    %139 = math.exp %138 : vector<8x128xf32>
    %cst_36 = arith.constant 1.000000e+00 : f32
    %140 = vector.broadcast %cst_36 : f32 to vector<8x128xf32>
    %141 = arith.addf %140, %139 : vector<8x128xf32>
    %142 = arith.divf %140, %141 : vector<8x128xf32>
    %143 = vector.extract_strided_slice %122 {offsets = [0, 256], sizes = [8, 128], strides = [1, 1]} : vector<8x384xbf16> to vector<8x128xbf16>
    %144 = vector.extract_strided_slice %124 {offsets = [0, 256], sizes = [8, 128], strides = [1, 1]} : vector<8x384xf32> to vector<8x128xf32>
    %145 = arith.addf %144, %13 : vector<8x128xf32>
    %146 = arith.mulf %133, %145 : vector<8x128xf32>
    %147 = arith.extf %143 : vector<8x128xbf16> to vector<8x128xf32>
    %148 = arith.addf %147, %146 : vector<8x128xf32>
    %149 = math.tanh %148 : vector<8x128xf32>
    %cst_37 = arith.constant 1.000000e+00 : f32
    %150 = vector.broadcast %cst_37 : f32 to vector<8x128xf32>
    %151 = arith.subf %150, %142 : vector<8x128xf32>
    %152 = arith.mulf %151, %149 : vector<8x128xf32>
    %153 = arith.mulf %142, %119 : vector<8x128xf32>
    %154 = arith.addf %152, %153 : vector<8x128xf32>
    %c4_i32 = arith.constant 4 : i32
    %155 = arith.index_cast %c4_i32 : i32 to index
    %c0_38 = arith.constant 0 : index
    %c0_39 = arith.constant 0 : index
    %156 = vector.load %arg25[%155, %c0_38, %c0_39] : memref<8x8x384xbf16, #tpu.memory_space<vmem>>, vector<1x8x384xbf16>
    %157 = vector.shape_cast %156 : vector<1x8x384xbf16> to vector<8x384xbf16>
    %158 = arith.truncf %154 : vector<8x128xf32> to vector<8x128xbf16>
    %cst_40 = arith.constant dense<0.000000e+00> : vector<8x384xf32>
    %159 = tpu.matmul %158, %10, %cst_40 {dimension_numbers = #tpu.dot_dimension_numbers<[1], [0], [0], [1], [0, 0, 1, 1], [], []>} : vector<8x128xbf16>, vector<128x384xbf16>, vector<8x384xf32> -> vector<8x384xf32>
    %160 = vector.extract_strided_slice %157 {offsets = [0, 0], sizes = [8, 128], strides = [1, 1]} : vector<8x384xbf16> to vector<8x128xbf16>
    %161 = vector.extract_strided_slice %159 {offsets = [0, 0], sizes = [8, 128], strides = [1, 1]} : vector<8x384xf32> to vector<8x128xf32>
    %162 = arith.extf %160 : vector<8x128xbf16> to vector<8x128xf32>
    %163 = arith.addf %162, %161 : vector<8x128xf32>
    %164 = arith.negf %163 : vector<8x128xf32>
    %165 = math.exp %164 : vector<8x128xf32>
    %cst_41 = arith.constant 1.000000e+00 : f32
    %166 = vector.broadcast %cst_41 : f32 to vector<8x128xf32>
    %167 = arith.addf %166, %165 : vector<8x128xf32>
    %168 = arith.divf %166, %167 : vector<8x128xf32>
    %169 = vector.extract_strided_slice %157 {offsets = [0, 128], sizes = [8, 128], strides = [1, 1]} : vector<8x384xbf16> to vector<8x128xbf16>
    %170 = vector.extract_strided_slice %159 {offsets = [0, 128], sizes = [8, 128], strides = [1, 1]} : vector<8x384xf32> to vector<8x128xf32>
    %171 = arith.extf %169 : vector<8x128xbf16> to vector<8x128xf32>
    %172 = arith.addf %171, %170 : vector<8x128xf32>
    %173 = arith.negf %172 : vector<8x128xf32>
    %174 = math.exp %173 : vector<8x128xf32>
    %cst_42 = arith.constant 1.000000e+00 : f32
    %175 = vector.broadcast %cst_42 : f32 to vector<8x128xf32>
    %176 = arith.addf %175, %174 : vector<8x128xf32>
    %177 = arith.divf %175, %176 : vector<8x128xf32>
    %178 = vector.extract_strided_slice %157 {offsets = [0, 256], sizes = [8, 128], strides = [1, 1]} : vector<8x384xbf16> to vector<8x128xbf16>
    %179 = vector.extract_strided_slice %159 {offsets = [0, 256], sizes = [8, 128], strides = [1, 1]} : vector<8x384xf32> to vector<8x128xf32>
    %180 = arith.addf %179, %13 : vector<8x128xf32>
    %181 = arith.mulf %168, %180 : vector<8x128xf32>
    %182 = arith.extf %178 : vector<8x128xbf16> to vector<8x128xf32>
    %183 = arith.addf %182, %181 : vector<8x128xf32>
    %184 = math.tanh %183 : vector<8x128xf32>
    %cst_43 = arith.constant 1.000000e+00 : f32
    %185 = vector.broadcast %cst_43 : f32 to vector<8x128xf32>
    %186 = arith.subf %185, %177 : vector<8x128xf32>
    %187 = arith.mulf %186, %184 : vector<8x128xf32>
    %188 = arith.mulf %177, %154 : vector<8x128xf32>
    %189 = arith.addf %187, %188 : vector<8x128xf32>
    %c5_i32 = arith.constant 5 : i32
    %190 = arith.index_cast %c5_i32 : i32 to index
    %c0_44 = arith.constant 0 : index
    %c0_45 = arith.constant 0 : index
    %191 = vector.load %arg25[%190, %c0_44, %c0_45] : memref<8x8x384xbf16, #tpu.memory_space<vmem>>, vector<1x8x384xbf16>
    %192 = vector.shape_cast %191 : vector<1x8x384xbf16> to vector<8x384xbf16>
    %193 = arith.truncf %189 : vector<8x128xf32> to vector<8x128xbf16>
    %cst_46 = arith.constant dense<0.000000e+00> : vector<8x384xf32>
    %194 = tpu.matmul %193, %10, %cst_46 {dimension_numbers = #tpu.dot_dimension_numbers<[1], [0], [0], [1], [0, 0, 1, 1], [], []>} : vector<8x128xbf16>, vector<128x384xbf16>, vector<8x384xf32> -> vector<8x384xf32>
    %195 = vector.extract_strided_slice %192 {offsets = [0, 0], sizes = [8, 128], strides = [1, 1]} : vector<8x384xbf16> to vector<8x128xbf16>
    %196 = vector.extract_strided_slice %194 {offsets = [0, 0], sizes = [8, 128], strides = [1, 1]} : vector<8x384xf32> to vector<8x128xf32>
    %197 = arith.extf %195 : vector<8x128xbf16> to vector<8x128xf32>
    %198 = arith.addf %197, %196 : vector<8x128xf32>
    %199 = arith.negf %198 : vector<8x128xf32>
    %200 = math.exp %199 : vector<8x128xf32>
    %cst_47 = arith.constant 1.000000e+00 : f32
    %201 = vector.broadcast %cst_47 : f32 to vector<8x128xf32>
    %202 = arith.addf %201, %200 : vector<8x128xf32>
    %203 = arith.divf %201, %202 : vector<8x128xf32>
    %204 = vector.extract_strided_slice %192 {offsets = [0, 128], sizes = [8, 128], strides = [1, 1]} : vector<8x384xbf16> to vector<8x128xbf16>
    %205 = vector.extract_strided_slice %194 {offsets = [0, 128], sizes = [8, 128], strides = [1, 1]} : vector<8x384xf32> to vector<8x128xf32>
    %206 = arith.extf %204 : vector<8x128xbf16> to vector<8x128xf32>
    %207 = arith.addf %206, %205 : vector<8x128xf32>
    %208 = arith.negf %207 : vector<8x128xf32>
    %209 = math.exp %208 : vector<8x128xf32>
    %cst_48 = arith.constant 1.000000e+00 : f32
    %210 = vector.broadcast %cst_48 : f32 to vector<8x128xf32>
    %211 = arith.addf %210, %209 : vector<8x128xf32>
    %212 = arith.divf %210, %211 : vector<8x128xf32>
    %213 = vector.extract_strided_slice %192 {offsets = [0, 256], sizes = [8, 128], strides = [1, 1]} : vector<8x384xbf16> to vector<8x128xbf16>
    %214 = vector.extract_strided_slice %194 {offsets = [0, 256], sizes = [8, 128], strides = [1, 1]} : vector<8x384xf32> to vector<8x128xf32>
    %215 = arith.addf %214, %13 : vector<8x128xf32>
    %216 = arith.mulf %203, %215 : vector<8x128xf32>
    %217 = arith.extf %213 : vector<8x128xbf16> to vector<8x128xf32>
    %218 = arith.addf %217, %216 : vector<8x128xf32>
    %219 = math.tanh %218 : vector<8x128xf32>
    %cst_49 = arith.constant 1.000000e+00 : f32
    %220 = vector.broadcast %cst_49 : f32 to vector<8x128xf32>
    %221 = arith.subf %220, %212 : vector<8x128xf32>
    %222 = arith.mulf %221, %219 : vector<8x128xf32>
    %223 = arith.mulf %212, %189 : vector<8x128xf32>
    %224 = arith.addf %222, %223 : vector<8x128xf32>
    %c6_i32 = arith.constant 6 : i32
    %225 = arith.index_cast %c6_i32 : i32 to index
    %c0_50 = arith.constant 0 : index
    %c0_51 = arith.constant 0 : index
    %226 = vector.load %arg25[%225, %c0_50, %c0_51] : memref<8x8x384xbf16, #tpu.memory_space<vmem>>, vector<1x8x384xbf16>
    %227 = vector.shape_cast %226 : vector<1x8x384xbf16> to vector<8x384xbf16>
    %228 = arith.truncf %224 : vector<8x128xf32> to vector<8x128xbf16>
    %cst_52 = arith.constant dense<0.000000e+00> : vector<8x384xf32>
    %229 = tpu.matmul %228, %10, %cst_52 {dimension_numbers = #tpu.dot_dimension_numbers<[1], [0], [0], [1], [0, 0, 1, 1], [], []>} : vector<8x128xbf16>, vector<128x384xbf16>, vector<8x384xf32> -> vector<8x384xf32>
    %230 = vector.extract_strided_slice %227 {offsets = [0, 0], sizes = [8, 128], strides = [1, 1]} : vector<8x384xbf16> to vector<8x128xbf16>
    %231 = vector.extract_strided_slice %229 {offsets = [0, 0], sizes = [8, 128], strides = [1, 1]} : vector<8x384xf32> to vector<8x128xf32>
    %232 = arith.extf %230 : vector<8x128xbf16> to vector<8x128xf32>
    %233 = arith.addf %232, %231 : vector<8x128xf32>
    %234 = arith.negf %233 : vector<8x128xf32>
    %235 = math.exp %234 : vector<8x128xf32>
    %cst_53 = arith.constant 1.000000e+00 : f32
    %236 = vector.broadcast %cst_53 : f32 to vector<8x128xf32>
    %237 = arith.addf %236, %235 : vector<8x128xf32>
    %238 = arith.divf %236, %237 : vector<8x128xf32>
    %239 = vector.extract_strided_slice %227 {offsets = [0, 128], sizes = [8, 128], strides = [1, 1]} : vector<8x384xbf16> to vector<8x128xbf16>
    %240 = vector.extract_strided_slice %229 {offsets = [0, 128], sizes = [8, 128], strides = [1, 1]} : vector<8x384xf32> to vector<8x128xf32>
    %241 = arith.extf %239 : vector<8x128xbf16> to vector<8x128xf32>
    %242 = arith.addf %241, %240 : vector<8x128xf32>
    %243 = arith.negf %242 : vector<8x128xf32>
    %244 = math.exp %243 : vector<8x128xf32>
    %cst_54 = arith.constant 1.000000e+00 : f32
    %245 = vector.broadcast %cst_54 : f32 to vector<8x128xf32>
    %246 = arith.addf %245, %244 : vector<8x128xf32>
    %247 = arith.divf %245, %246 : vector<8x128xf32>
    %248 = vector.extract_strided_slice %227 {offsets = [0, 256], sizes = [8, 128], strides = [1, 1]} : vector<8x384xbf16> to vector<8x128xbf16>
    %249 = vector.extract_strided_slice %229 {offsets = [0, 256], sizes = [8, 128], strides = [1, 1]} : vector<8x384xf32> to vector<8x128xf32>
    %250 = arith.addf %249, %13 : vector<8x128xf32>
    %251 = arith.mulf %238, %250 : vector<8x128xf32>
    %252 = arith.extf %248 : vector<8x128xbf16> to vector<8x128xf32>
    %253 = arith.addf %252, %251 : vector<8x128xf32>
    %254 = math.tanh %253 : vector<8x128xf32>
    %cst_55 = arith.constant 1.000000e+00 : f32
    %255 = vector.broadcast %cst_55 : f32 to vector<8x128xf32>
    %256 = arith.subf %255, %247 : vector<8x128xf32>
    %257 = arith.mulf %256, %254 : vector<8x128xf32>
    %258 = arith.mulf %247, %224 : vector<8x128xf32>
    %259 = arith.addf %257, %258 : vector<8x128xf32>
    %c7_i32 = arith.constant 7 : i32
    %260 = arith.index_cast %c7_i32 : i32 to index
    %c0_56 = arith.constant 0 : index
    %c0_57 = arith.constant 0 : index
    %261 = vector.load %arg25[%260, %c0_56, %c0_57] : memref<8x8x384xbf16, #tpu.memory_space<vmem>>, vector<1x8x384xbf16>
    %262 = vector.shape_cast %261 : vector<1x8x384xbf16> to vector<8x384xbf16>
    %263 = arith.truncf %259 : vector<8x128xf32> to vector<8x128xbf16>
    %cst_58 = arith.constant dense<0.000000e+00> : vector<8x384xf32>
    %264 = tpu.matmul %263, %10, %cst_58 {dimension_numbers = #tpu.dot_dimension_numbers<[1], [0], [0], [1], [0, 0, 1, 1], [], []>} : vector<8x128xbf16>, vector<128x384xbf16>, vector<8x384xf32> -> vector<8x384xf32>
    %265 = vector.extract_strided_slice %262 {offsets = [0, 0], sizes = [8, 128], strides = [1, 1]} : vector<8x384xbf16> to vector<8x128xbf16>
    %266 = vector.extract_strided_slice %264 {offsets = [0, 0], sizes = [8, 128], strides = [1, 1]} : vector<8x384xf32> to vector<8x128xf32>
    %267 = arith.extf %265 : vector<8x128xbf16> to vector<8x128xf32>
    %268 = arith.addf %267, %266 : vector<8x128xf32>
    %269 = arith.negf %268 : vector<8x128xf32>
    %270 = math.exp %269 : vector<8x128xf32>
    %cst_59 = arith.constant 1.000000e+00 : f32
    %271 = vector.broadcast %cst_59 : f32 to vector<8x128xf32>
    %272 = arith.addf %271, %270 : vector<8x128xf32>
    %273 = arith.divf %271, %272 : vector<8x128xf32>
    %274 = vector.extract_strided_slice %262 {offsets = [0, 128], sizes = [8, 128], strides = [1, 1]} : vector<8x384xbf16> to vector<8x128xbf16>
    %275 = vector.extract_strided_slice %264 {offsets = [0, 128], sizes = [8, 128], strides = [1, 1]} : vector<8x384xf32> to vector<8x128xf32>
    %276 = arith.extf %274 : vector<8x128xbf16> to vector<8x128xf32>
    %277 = arith.addf %276, %275 : vector<8x128xf32>
    %278 = arith.negf %277 : vector<8x128xf32>
    %279 = math.exp %278 : vector<8x128xf32>
    %cst_60 = arith.constant 1.000000e+00 : f32
    %280 = vector.broadcast %cst_60 : f32 to vector<8x128xf32>
    %281 = arith.addf %280, %279 : vector<8x128xf32>
    %282 = arith.divf %280, %281 : vector<8x128xf32>
    %283 = vector.extract_strided_slice %262 {offsets = [0, 256], sizes = [8, 128], strides = [1, 1]} : vector<8x384xbf16> to vector<8x128xbf16>
    %284 = vector.extract_strided_slice %264 {offsets = [0, 256], sizes = [8, 128], strides = [1, 1]} : vector<8x384xf32> to vector<8x128xf32>
    %285 = arith.addf %284, %13 : vector<8x128xf32>
    %286 = arith.mulf %273, %285 : vector<8x128xf32>
    %287 = arith.extf %283 : vector<8x128xbf16> to vector<8x128xf32>
    %288 = arith.addf %287, %286 : vector<8x128xf32>
    %289 = math.tanh %288 : vector<8x128xf32>
    %cst_61 = arith.constant 1.000000e+00 : f32
    %290 = vector.broadcast %cst_61 : f32 to vector<8x128xf32>
    %291 = arith.subf %290, %282 : vector<8x128xf32>
    %292 = arith.mulf %291, %289 : vector<8x128xf32>
    %293 = arith.mulf %282, %259 : vector<8x128xf32>
    %294 = arith.addf %292, %293 : vector<8x128xf32>
    %c8_i32 = arith.constant 8 : i32
    %c0_62 = arith.constant 0 : index
    %c0_63 = arith.constant 0 : index
    %c0_64 = arith.constant 0 : index
    %295 = vector.load %arg2[%c0_62, %c0_63, %c0_64] : memref<8x8x128xbf16, #tpu.memory_space<vmem>>, vector<8x8x128xbf16>
    %296 = arith.extf %295 : vector<8x8x128xbf16> to vector<8x8x128xf32>
    %297 = arith.truncf %294 : vector<8x128xf32> to vector<8x128xbf16>
    %298 = vector.shape_cast %295 : vector<8x8x128xbf16> to vector<64x128xbf16>
    %c0_65 = arith.constant 0 : index
    %c0_66 = arith.constant 0 : index
    %299 = vector.load %arg7[%c0_65, %c0_66] : memref<128x128xbf16, #tpu.memory_space<vmem>>, vector<128x128xbf16>
    %cst_67 = arith.constant dense<0.000000e+00> : vector<64x128xf32>
    %300 = tpu.matmul %298, %299, %cst_67 {dimension_numbers = #tpu.dot_dimension_numbers<[1], [0], [0], [1], [0, 0, 1, 1], [], []>} : vector<64x128xbf16>, vector<128x128xbf16>, vector<64x128xf32> -> vector<64x128xf32>
    %301 = vector.shape_cast %300 : vector<64x128xf32> to vector<8x8x128xf32>
    %c0_68 = arith.constant 0 : index
    %c0_69 = arith.constant 0 : index
    %302 = vector.load %arg8[%c0_68, %c0_69] : memref<1x128xf32, #tpu.memory_space<vmem>>, vector<1x128xf32>
    %303 = vector.shape_cast %302 : vector<1x128xf32> to vector<1x1x128xf32>
    %304 = vector.broadcast %303 : vector<1x1x128xf32> to vector<8x8x128xf32>
    %305 = arith.addf %301, %304 : vector<8x8x128xf32>
    %cst_70 = arith.constant 0.000000e+00 : f32
    %306 = vector.broadcast %cst_70 : f32 to vector<8x8x128xf32>
    %307 = arith.maximumf %305, %306 : vector<8x8x128xf32>
    %c0_71 = arith.constant 0 : index
    %c0_72 = arith.constant 0 : index
    %308 = vector.load %arg9[%c0_71, %c0_72] : memref<128x128xbf16, #tpu.memory_space<vmem>>, vector<128x128xbf16>
    %cst_73 = arith.constant dense<0.000000e+00> : vector<8x128xf32>
    %309 = tpu.matmul %297, %308, %cst_73 {dimension_numbers = #tpu.dot_dimension_numbers<[1], [0], [0], [1], [0, 0, 1, 1], [], []>} : vector<8x128xbf16>, vector<128x128xbf16>, vector<8x128xf32> -> vector<8x128xf32>
    %c0_74 = arith.constant 0 : index
    %c0_75 = arith.constant 0 : index
    %310 = vector.load %arg10[%c0_74, %c0_75] : memref<1x128xf32, #tpu.memory_space<vmem>>, vector<1x128xf32>
    %311 = vector.broadcast %310 : vector<1x128xf32> to vector<8x128xf32>
    %312 = arith.addf %309, %311 : vector<8x128xf32>
    %cst_76 = arith.constant 0.000000e+00 : f32
    %313 = vector.broadcast %cst_76 : f32 to vector<8x128xf32>
    %314 = arith.maximumf %312, %313 : vector<8x128xf32>
    %c0_77 = arith.constant 0 : index
    %c0_78 = arith.constant 0 : index
    %315 = vector.load %arg11[%c0_77, %c0_78] : memref<1x128xf32, #tpu.memory_space<vmem>>, vector<1x128xf32>
    %316 = vector.broadcast %315 : vector<1x128xf32> to vector<8x128xf32>
    %317 = arith.mulf %314, %316 : vector<8x128xf32>
    %318 = vector.shape_cast %317 : vector<8x128xf32> to vector<8x1x128xf32>
    %319 = vector.broadcast %318 : vector<8x1x128xf32> to vector<8x8x128xf32>
    %320 = arith.mulf %307, %319 : vector<8x8x128xf32>
    %cst_79 = arith.constant dense<0.000000e+00> : vector<8x8xf32>
    %321 = vector.multi_reduction <add>, %320, %cst_79 [2] : vector<8x8x128xf32> to vector<8x8xf32>
    %c0_80 = arith.constant 0 : index
    %c0_81 = arith.constant 0 : index
    %322 = memref.load %arg12[%c0_80, %c0_81] : memref<1x1xf32, #tpu.memory_space<smem>>
    %323 = vector.broadcast %322 : f32 to vector<8x8xf32>
    %324 = arith.addf %321, %323 : vector<8x8xf32>
    %cst_82 = arith.constant dense<0xFF800000> : vector<8xf32>
    %325 = vector.multi_reduction <maximumf>, %324, %cst_82 [1] : vector<8x8xf32> to vector<8xf32>
    %326 = vector.shape_cast %325 : vector<8xf32> to vector<8x1xf32>
    %327 = vector.broadcast %326 : vector<8x1xf32> to vector<8x8xf32>
    %328 = arith.subf %324, %327 : vector<8x8xf32>
    %329 = math.exp %328 : vector<8x8xf32>
    %cst_83 = arith.constant dense<0.000000e+00> : vector<8xf32>
    %330 = vector.multi_reduction <add>, %329, %cst_83 [1] : vector<8x8xf32> to vector<8xf32>
    %331 = vector.shape_cast %330 : vector<8xf32> to vector<8x1xf32>
    %332 = tpu.reciprocal %331 {approx = true} : vector<8x1xf32> -> vector<8x1xf32>
    %333 = vector.broadcast %332 : vector<8x1xf32> to vector<8x8xf32>
    %334 = arith.mulf %329, %333 : vector<8x8xf32>
    %335 = vector.shape_cast %334 : vector<8x8xf32> to vector<8x8x1xf32>
    %336 = vector.broadcast %335 : vector<8x8x1xf32> to vector<8x8x128xf32>
    %337 = arith.mulf %336, %296 : vector<8x8x128xf32>
    %cst_84 = arith.constant dense<0.000000e+00> : vector<8x128xf32>
    %338 = vector.multi_reduction <add>, %337, %cst_84 [1] : vector<8x8x128xf32> to vector<8x128xf32>
    %c0_85 = arith.constant 0 : index
    %c0_86 = arith.constant 0 : index
    %339 = vector.load %arg13[%c0_85, %c0_86] : memref<128x128xbf16, #tpu.memory_space<vmem>>, vector<128x128xbf16>
    %cst_87 = arith.constant dense<0.000000e+00> : vector<8x128xf32>
    %340 = tpu.matmul %297, %339, %cst_87 {dimension_numbers = #tpu.dot_dimension_numbers<[1], [0], [0], [1], [0, 0, 1, 1], [], []>} : vector<8x128xbf16>, vector<128x128xbf16>, vector<8x128xf32> -> vector<8x128xf32>
    %c0_88 = arith.constant 0 : index
    %c0_89 = arith.constant 0 : index
    %341 = vector.load %arg14[%c0_88, %c0_89] : memref<1x128xf32, #tpu.memory_space<vmem>>, vector<1x128xf32>
    %342 = vector.broadcast %341 : vector<1x128xf32> to vector<8x128xf32>
    %343 = arith.addf %340, %342 : vector<8x128xf32>
    %cst_90 = arith.constant 0.000000e+00 : f32
    %344 = vector.broadcast %cst_90 : f32 to vector<8x128xf32>
    %345 = arith.maximumf %343, %344 : vector<8x128xf32>
    %346 = arith.truncf %338 : vector<8x128xf32> to vector<8x128xbf16>
    %c0_91 = arith.constant 0 : index
    %c0_92 = arith.constant 0 : index
    %347 = vector.load %arg15[%c0_91, %c0_92] : memref<128x128xbf16, #tpu.memory_space<vmem>>, vector<128x128xbf16>
    %cst_93 = arith.constant dense<0.000000e+00> : vector<8x128xf32>
    %348 = tpu.matmul %346, %347, %cst_93 {dimension_numbers = #tpu.dot_dimension_numbers<[1], [0], [0], [1], [0, 0, 1, 1], [], []>} : vector<8x128xbf16>, vector<128x128xbf16>, vector<8x128xf32> -> vector<8x128xf32>
    %c0_94 = arith.constant 0 : index
    %c0_95 = arith.constant 0 : index
    %349 = vector.load %arg16[%c0_94, %c0_95] : memref<1x128xf32, #tpu.memory_space<vmem>>, vector<1x128xf32>
    %350 = vector.broadcast %349 : vector<1x128xf32> to vector<8x128xf32>
    %351 = arith.addf %348, %350 : vector<8x128xf32>
    %cst_96 = arith.constant 0.000000e+00 : f32
    %352 = vector.broadcast %cst_96 : f32 to vector<8x128xf32>
    %353 = arith.maximumf %351, %352 : vector<8x128xf32>
    %354 = arith.mulf %345, %353 : vector<8x128xf32>
    %355 = arith.truncf %354 : vector<8x128xf32> to vector<8x128xbf16>
    %c0_97 = arith.constant 0 : index
    %c0_98 = arith.constant 0 : index
    %356 = vector.load %arg17[%c0_97, %c0_98] : memref<128x256xbf16, #tpu.memory_space<vmem>>, vector<128x256xbf16>
    %cst_99 = arith.constant dense<0.000000e+00> : vector<8x256xf32>
    %357 = tpu.matmul %355, %356, %cst_99 {dimension_numbers = #tpu.dot_dimension_numbers<[1], [0], [0], [1], [0, 0, 1, 1], [], []>} : vector<8x128xbf16>, vector<128x256xbf16>, vector<8x256xf32> -> vector<8x256xf32>
    %c0_100 = arith.constant 0 : index
    %c0_101 = arith.constant 0 : index
    %358 = vector.load %arg18[%c0_100, %c0_101] : memref<1x256xf32, #tpu.memory_space<vmem>>, vector<1x256xf32>
    %359 = vector.broadcast %358 : vector<1x256xf32> to vector<8x256xf32>
    %360 = arith.addf %357, %359 : vector<8x256xf32>
    %cst_102 = arith.constant 0.000000e+00 : f32
    %361 = vector.broadcast %cst_102 : f32 to vector<8x256xf32>
    %362 = arith.maximumf %360, %361 : vector<8x256xf32>
    %363 = arith.truncf %362 : vector<8x256xf32> to vector<8x256xbf16>
    %c0_103 = arith.constant 0 : index
    %c0_104 = arith.constant 0 : index
    %364 = vector.load %arg19[%c0_103, %c0_104] : memref<256x128xbf16, #tpu.memory_space<vmem>>, vector<256x128xbf16>
    %cst_105 = arith.constant dense<0.000000e+00> : vector<8x128xf32>
    %365 = tpu.matmul %363, %364, %cst_105 {dimension_numbers = #tpu.dot_dimension_numbers<[1], [0], [0], [1], [0, 0, 1, 1], [], []>} : vector<8x256xbf16>, vector<256x128xbf16>, vector<8x128xf32> -> vector<8x128xf32>
    %c0_106 = arith.constant 0 : index
    %c0_107 = arith.constant 0 : index
    %366 = vector.load %arg20[%c0_106, %c0_107] : memref<1x128xf32, #tpu.memory_space<vmem>>, vector<1x128xf32>
    %367 = vector.broadcast %366 : vector<1x128xf32> to vector<8x128xf32>
    %368 = arith.addf %365, %367 : vector<8x128xf32>
    %c0_108 = arith.constant 0 : index
    %c0_109 = arith.constant 0 : index
    %369 = vector.load %arg21[%c0_108, %c0_109] : memref<8x128xf32, #tpu.memory_space<vmem>>, vector<8x128xf32>
    tpu.vector_store %arg21[%c0_108, %c0_109], %368 {strides = array<i32>} : memref<8x128xf32, #tpu.memory_space<vmem>>, vector<8x128xf32>,
    %cst_110 = arith.constant dense<0.000000e+00> : vector<8x128xf32>
    %370 = vector.multi_reduction <add>, %296, %cst_110 [1] : vector<8x8x128xf32> to vector<8x128xf32>
    %c0_111 = arith.constant 0 : index
    %c0_112 = arith.constant 0 : index
    %371 = vector.load %arg22[%c0_111, %c0_112] : memref<8x128xf32, #tpu.memory_space<vmem>>, vector<8x128xf32>
    tpu.vector_store %arg22[%c0_111, %c0_112], %370 {strides = array<i32>} : memref<8x128xf32, #tpu.memory_space<vmem>>, vector<8x128xf32>,
    %c0_113 = arith.constant 0 : index
    %c0_114 = arith.constant 0 : index
    %372 = vector.load %arg23[%c0_113, %c0_114] : memref<8x128xf32, #tpu.memory_space<vmem>>, vector<8x128xf32>
    tpu.vector_store %arg23[%c0_113, %c0_114], %345 {strides = array<i32>} : memref<8x128xf32, #tpu.memory_space<vmem>>, vector<8x128xf32>,
    %c0_115 = arith.constant 0 : index
    %c0_116 = arith.constant 0 : index
    %373 = vector.load %arg24[%c0_115, %c0_116] : memref<8x128xf32, #tpu.memory_space<vmem>>, vector<8x128xf32>
    tpu.vector_store %arg24[%c0_115, %c0_116], %354 {strides = array<i32>} : memref<8x128xf32, #tpu.memory_space<vmem>>, vector<8x128xf32>,
    return
  }
  func.func @transform_0(%arg0: i32) -> (i32, i32, i32) {
    %c0_i32 = arith.constant 0 : i32
    %c0_i32_0 = arith.constant 0 : i32
    %c0_i32_1 = arith.constant 0 : i32
    return %c0_i32, %arg0, %c0_i32_0 : i32, i32, i32
  }
  func.func @transform_1(%arg0: i32) -> (i32, i32, i32) {
    %c0_i32 = arith.constant 0 : i32
    %c0_i32_0 = arith.constant 0 : i32
    %c0_i32_1 = arith.constant 0 : i32
    return %arg0, %c0_i32, %c0_i32_0 : i32, i32, i32
  }
  func.func @transform_2(%arg0: i32) -> (i32, i32) {
    %c0_i32 = arith.constant 0 : i32
    %c0_i32_0 = arith.constant 0 : i32
    %c0_i32_1 = arith.constant 0 : i32
    return %c0_i32, %c0_i32_0 : i32, i32
  }
  func.func @transform_3(%arg0: i32) -> (i32, i32) {
    %c0_i32 = arith.constant 0 : i32
    %c0_i32_0 = arith.constant 0 : i32
    %c0_i32_1 = arith.constant 0 : i32
    return %c0_i32, %c0_i32_0 : i32, i32
  }
  func.func @transform_4(%arg0: i32) -> (i32, i32) {
    %c0_i32 = arith.constant 0 : i32
    %c0_i32_0 = arith.constant 0 : i32
    %c0_i32_1 = arith.constant 0 : i32
    return %c0_i32, %c0_i32_0 : i32, i32
  }
  func.func @transform_5(%arg0: i32) -> (i32, i32) {
    %c0_i32 = arith.constant 0 : i32
    %c0_i32_0 = arith.constant 0 : i32
    %c0_i32_1 = arith.constant 0 : i32
    return %c0_i32, %c0_i32_0 : i32, i32
  }
  func.func @transform_6(%arg0: i32) -> (i32, i32) {
    %c0_i32 = arith.constant 0 : i32
    %c0_i32_0 = arith.constant 0 : i32
    %c0_i32_1 = arith.constant 0 : i32
    return %c0_i32, %c0_i32_0 : i32, i32
  }
  func.func @transform_7(%arg0: i32) -> (i32, i32) {
    %c0_i32 = arith.constant 0 : i32
    %c0_i32_0 = arith.constant 0 : i32
    %c0_i32_1 = arith.constant 0 : i32
    return %c0_i32, %c0_i32_0 : i32, i32
  }
  func.func @transform_8(%arg0: i32) -> (i32, i32) {
    %c0_i32 = arith.constant 0 : i32
    %c0_i32_0 = arith.constant 0 : i32
    %c0_i32_1 = arith.constant 0 : i32
    return %c0_i32, %c0_i32_0 : i32, i32
  }
  func.func @transform_9(%arg0: i32) -> (i32, i32) {
    %c0_i32 = arith.constant 0 : i32
    %c0_i32_0 = arith.constant 0 : i32
    %c0_i32_1 = arith.constant 0 : i32
    return %c0_i32, %c0_i32_0 : i32, i32
  }
  func.func @transform_10(%arg0: i32) -> (i32, i32) {
    %c0_i32 = arith.constant 0 : i32
    %c0_i32_0 = arith.constant 0 : i32
    %c0_i32_1 = arith.constant 0 : i32
    return %c0_i32, %c0_i32_0 : i32, i32
  }
  func.func @transform_11(%arg0: i32) -> (i32, i32) {
    %c0_i32 = arith.constant 0 : i32
    %c0_i32_0 = arith.constant 0 : i32
    %c0_i32_1 = arith.constant 0 : i32
    return %c0_i32, %c0_i32_0 : i32, i32
  }
  func.func @transform_12(%arg0: i32) -> (i32, i32) {
    %c0_i32 = arith.constant 0 : i32
    %c0_i32_0 = arith.constant 0 : i32
    %c0_i32_1 = arith.constant 0 : i32
    return %c0_i32, %c0_i32_0 : i32, i32
  }
  func.func @transform_13(%arg0: i32) -> (i32, i32) {
    %c0_i32 = arith.constant 0 : i32
    %c0_i32_0 = arith.constant 0 : i32
    %c0_i32_1 = arith.constant 0 : i32
    return %c0_i32, %c0_i32_0 : i32, i32
  }
  func.func @transform_14(%arg0: i32) -> (i32, i32) {
    %c0_i32 = arith.constant 0 : i32
    %c0_i32_0 = arith.constant 0 : i32
    %c0_i32_1 = arith.constant 0 : i32
    return %c0_i32, %c0_i32_0 : i32, i32
  }
  func.func @transform_15(%arg0: i32) -> (i32, i32) {
    %c0_i32 = arith.constant 0 : i32
    %c0_i32_0 = arith.constant 0 : i32
    %c0_i32_1 = arith.constant 0 : i32
    return %c0_i32, %c0_i32_0 : i32, i32
  }
  func.func @transform_16(%arg0: i32) -> (i32, i32) {
    %c0_i32 = arith.constant 0 : i32
    %c0_i32_0 = arith.constant 0 : i32
    %c0_i32_1 = arith.constant 0 : i32
    return %c0_i32, %c0_i32_0 : i32, i32
  }
  func.func @transform_17(%arg0: i32) -> (i32, i32) {
    %c0_i32 = arith.constant 0 : i32
    %c0_i32_0 = arith.constant 0 : i32
    %c0_i32_1 = arith.constant 0 : i32
    return %c0_i32, %c0_i32_0 : i32, i32
  }
  func.func @transform_18(%arg0: i32) -> (i32, i32) {
    %c0_i32 = arith.constant 0 : i32
    %c0_i32_0 = arith.constant 0 : i32
    %c0_i32_1 = arith.constant 0 : i32
    return %c0_i32, %c0_i32_0 : i32, i32
  }
  func.func @transform_19(%arg0: i32) -> (i32, i32) {
    %c0_i32 = arith.constant 0 : i32
    %c0_i32_0 = arith.constant 0 : i32
    %c0_i32_1 = arith.constant 0 : i32
    return %c0_i32, %c0_i32_0 : i32, i32
  }
  func.func @transform_20(%arg0: i32) -> (i32, i32) {
    %c0_i32 = arith.constant 0 : i32
    %c0_i32_0 = arith.constant 0 : i32
    return %arg0, %c0_i32 : i32, i32
  }
  func.func @transform_21(%arg0: i32) -> (i32, i32) {
    %c0_i32 = arith.constant 0 : i32
    %c0_i32_0 = arith.constant 0 : i32
    return %arg0, %c0_i32 : i32, i32
  }
  func.func @transform_22(%arg0: i32) -> (i32, i32) {
    %c0_i32 = arith.constant 0 : i32
    %c0_i32_0 = arith.constant 0 : i32
    return %arg0, %c0_i32 : i32, i32
  }
  func.func @transform_23(%arg0: i32) -> (i32, i32) {
    %c0_i32 = arith.constant 0 : i32
    %c0_i32_0 = arith.constant 0 : i32
    return %arg0, %c0_i32 : i32, i32
  }
}

</mosaic_0001>

<bundles_post_ra>
// kernel: _forward_impl.1
= control target key start
LH: loop header
LB: loop body
LE: loop exit
PB: predicated region body
PF: predicated region fallthrough
CT: control target
= control target key end

     0   :  { %s7183_s0 = inlined_call_operand.vmem [shape: bf16[8,16,128], index: 0, kind: input, shape index: {}]   ;;  %s7184_s1 = inlined_call_operand.vmem [shape: bf16[16,8,128], index: 1, kind: input, shape index: {}]   ;;  %s7185_s2 = inlined_call_operand.vmem [shape: bf16[128,384], index: 2, kind: input, shape index: {}]   ;;  %s7186_s3 = inlined_call_operand.vmem [shape: bf16[128,384], index: 3, kind: input, shape index: {}]   ;;  %s7187_s4 = inlined_call_operand.vmem [shape: f32[1,384], index: 4, kind: input, shape index: {}]   ;;  %s7188_s5 = inlined_call_operand.vmem [shape: f32[1,128], index: 5, kind: input, shape index: {}]   ;;  %s7189_s6 = inlined_call_operand.vmem [shape: bf16[128,128], index: 6, kind: input, shape index: {}]   ;;  %s7190_s7 = inlined_call_operand.hbm [shape: f32[1,128], index: 7, kind: input, shape index: {}]   ;;  %s7191_s8 = inlined_call_operand.vmem [shape: bf16[128,128], index: 8, kind: input, shape index: {}]   ;;  %s7192_s9 = inlined_call_operand.hbm [shape: f32[1,128], index: 9, kind: input, shape index: {}]   ;;  %s7193_s10 = inlined_call_operand.vmem [shape: f32[1,128], index: 10, kind: input, shape index: {}]   ;;  %s7194_s11 = inlined_call_operand.<no memory space> [shape: f32[1,1], index: 11, kind: input, shape index: {}]   ;;  %s7195_s12 = inlined_call_operand.vmem [shape: bf16[128,128], index: 12, kind: input, shape index: {}]   ;;  %s7196_s13 = inlined_call_operand.hbm [shape: f32[1,128], index: 13, kind: input, shape index: {}]   ;;  %s7197_s14 = inlined_call_operand.vmem [shape: bf16[128,128], index: 14, kind: input, shape index: {}]   ;;  %s7198_s15 = inlined_call_operand.hbm [shape: f32[1,128], index: 15, kind: input, shape index: {}]   ;;  %s7199_s16 = inlined_call_operand.vmem [shape: bf16[128,256], index: 16, kind: input, shape index: {}]   ;;  %s7200_s17 = inlined_call_operand.hbm [shape: f32[1,256], index: 17, kind: input, shape index: {}]   ;;  %s7201_s18 = inlined_call_operand.vmem [shape: bf16[256,128], index: 18, kind: input, shape index: {}]   ;;  %s7202_s19 = inlined_call_operand.hbm [shape: f32[1,128], index: 19, kind: input, shape index: {}]   ;;  %s7203_s20 = inlined_call_operand.hbm [shape: f32[16,128], index: 20, kind: output, shape index: {0}]   ;;  %s7204_s21 = inlined_call_operand.hbm [shape: f32[16,128], index: 21, kind: output, shape index: {1}]   ;;  %s7205_s22 = inlined_call_operand.hbm [shape: f32[16,128], index: 22, kind: output, shape index: {2}]   ;;  %s7206_s23 = inlined_call_operand.hbm [shape: f32[16,128], index: 23, kind: output, shape index: {3}]  }
   0x1   :  { %7233 = sst [smem:[#allocation34_spill]] %s7183_s0 }
   0x2   :  { %7234 = sst [smem:[#allocation35_spill]] %s7184_s1 }
   0x3   :  { %7235 = sst [smem:[#allocation36_spill]] %s7185_s2 }
   0x4   :  { %7236 = sst [smem:[#allocation37_spill]] %s7186_s3 }
   0x5   :  { %7237 = sst [smem:[#allocation38_spill]] %s7187_s4 }
   0x6   :  { %7238 = sst [smem:[#allocation39_spill]] %s7188_s5 }
   0x7   :  { %7239 = sst [smem:[#allocation40_spill]] %s7189_s6 }
   0x8   :  { %7240 = sst [smem:[#allocation41_spill]] %s7190_s7 }
   0x9   :  { %7241 = sst [smem:[#allocation42_spill]] %s7191_s8 }
   0xa   :  { %7242 = sst [smem:[#allocation43_spill]] %s7192_s9 }
   0xb   :  { %7243 = sst [smem:[#allocation44_spill]] %s7198_s15 }
   0xc   :  { %7244 = sst [smem:[#allocation45_spill]] %s7203_s20 }
   0xd   :  { %7245 = sst [smem:[#allocation46_spill]] %s7204_s21 }
   0xe   :  { %7246 = sst [smem:[#allocation47_spill]] %s7205_s22 }
   0xf   :  { %7247 = sst [smem:[#allocation48_spill]] %s7206_s23 }
  0x10   :  { %29 = sst [smem:[#allocation3]] %s7194_s11 }
  0x11   :  { %30 = vsyncpa [#allocation6], 0 }
  0x12   :  { %31 = vsyncpa [#allocation9], 0 }
  0x13   :  { %32 = vsyncpa [#allocation12], 0 }
  0x14   :  { %33 = vsyncpa [#allocation15], 0 }
  0x15   :  { %34 = vsyncpa [#allocation7], 0 }
  0x16   :  { %36 = vsyncpa [#allocation7 + $0x1], 0 }
  0x17   :  { %37 = vsyncpa [#allocation18], 0 }
  0x18   :  { %39 = vsyncpa [#allocation18 + $0x1], 0 }
  0x19   :  { %40 = vsyncpa [#allocation21], 0 }
  0x1a   :  { %42 = vsyncpa [#allocation21 + $0x1], 0  ;;  %s5671_s24 = smov 0   ;;  %s5673_s25 = smov 0  }
  0x1b   :  { %s5675_s5 = smov 0   ;;  %s5677_s1 = smov 0  }
  0x1c LB: > { %7248 = sst [smem:[#allocation29_spill]] %s5520_s24  ;;  %s5692_s11 = sadd.s32 4294967295, %s5532_s1   ;;  %s5532_s1 = sphi %s5677_s1, %s7292_s1   ;;  %s5528_s5 = sphi %s5675_s5, %s7296_s5   ;;  %s5524_s25 = sphi %s5673_s25, %s7295_s25   ;;  %s5520_s24 = sphi %s5671_s24, %s7294_s24  }
  0x1d   : > { %s7212_s26 = sadd.s32 4294967294, %s5532_s1   ;;  %s5696_s2 = sadd.s32 1, %s5532_s1  }
  0x1e   : > { %7249 = sst [smem:[#allocation30_spill]] %s5696_s2  ;;  %s55_s6 = sadd.s32 1, %s5528_s5 }
  0x1f   : > { %s52_s27 = ssub.s32 %s5532_s1, %s5696_s2  ;;  %p62_p0 = scmp.ne.s32.totalorder %s5528_s5, %s5524_s25 }
  0x20   : > { %p53_p1 = scmp.eq.s32.totalorder %s52_s27, 0  ;;  %p63_p2 = scmp.eq.s32.totalorder %s5532_s1, 0 }
  0x21   : > { %p496_p3 = scmp.eq.s32.totalorder %s5692_s11, 1  ;;  %p501_p4 = scmp.ne.s32.totalorder %s5524_s25, %s5520_s24 }
  0x22   : > { %s5708_s7 = scalar_select %p53_p1, %s5528_s5, %s55_s6  }
  0x23   : > { %p5710_p5 = por %p63_p2, %p62_p0  ;;  %p5714_p6 = por %p496_p3, %p62_p0 }
  0x24   : > { %7250 = sst [smem:[#allocation31_spill]] %s5708_s7  ;;  %p502_p7 = scmp.eq.s32.totalorder %s7212_s26, 1 }
  0x25   : > { %s7251_s28 = scalar_select %p5710_p5, 1, 0 }
  0x26   : > { %s7252_s29 = scalar_select %p5714_p6, 1, 0 }
  0x27   : > { %p4180_p8 = scmp.ge.s32.totalorder %s5532_s1, 1  ;;  %p587_p9 = scmp.lt.s32.totalorder %s5532_s1, 3 }
  0x28   : > { %7253 = sst [smem:[#allocation32_spill]] %s7252_s29  ;;  %p5722_p10 = por %p502_p7, %p501_p4 }
  0x29   : > { %p7220_p11 = scmp.eq.s32.totalorder %s5692_s11, 0  ;;  %p5727_p12 = pnand %p4180_p8, %p587_p9 }
  0x2a   : > { %s7254_s3 = scalar_select %p5722_p10, 1, 0 }
  0x2b   : > { %s7256_s0 = scalar_select %p5727_p12, 1, 0 }
  0x2c   : > { %7255 = sst [smem:[#allocation33_spill]] %s7254_s3  ;;  %s5534_s4 = smov [#allocation8]  }
  0x2d   : > { %s629_s30 = sshll.u32 %s5534_s4, 4  ;;  %p4834_p13 = pneg %p5727_p12  ;;  %s630_s30 = int_to_ptr.vmem [resolvable:$true] %s629_s30 }
  0x2e   : > { %s5535_s6 = smov [#allocation11]   ;;  %s5536_s7 = smov [#allocation5]  }
  0x2f   : > { %s663_s27 = sshll.u32 %s5535_s6, 4  ;;  %p5735_p0 = pnand %p7220_p11, %p4834_p13  ;;  %s5739_s27 = int_to_ptr.vmem [resolvable:$true] %s663_s27 }
  0x30   : > { %s615_s2 = sshll.u32 %s5536_s7, 4  ;;  %s7258_s9 = sld [smem:[#allocation43_spill]]  ;;  %s5741_s2 = int_to_ptr.vmem [resolvable:$true] %s615_s2 }
  0x31   : > { %p5751_p2 = pneg %p5735_p0 }
  0x36   : > { %s5194_s4 = scalar_lea.hbm %s7258_s9, 16 }
  0x37   : > { %p5195_p1 = scmp.ne.s32.totalorder %s7258_s9, %s5194_s4  ;;  %p5201_p7 = scmp.lt.u32.totalorder %s5194_s4, %s7258_s9 }
  0x39   : > { %p5197_p3 = pnand %p5751_p2, %p5195_p1 }
  0x3b   : > { %p5198_p4 = pneg %p5197_p3 }
  0x3d   : > { %p5203_p8 = pnand %p5201_p7, %p5198_p4 }
  0x3f   : > { %5206 = shalt.err (!%p5203_p8)
}
  0x40   : > { %s5207_s24 = scalar_lea.vmem %s630_s30, 16  ;;  %s5214_s20 = scalar_lea.vmem %s630_s30, 32 }
  0x41   : > { %p5208_p9 = scmp.ne.s32.totalorder %s630_s30, %s5207_s24  ;;  %p5215_p10 = scmp.lt.s32.totalorder %s630_s30, %s630_s30 }
  0x42   : > { %p5216_p6 = scmp.lt.s32.totalorder %s5214_s20, %s5207_s24 }
  0x43   : > { %p5210_p13 = pnand %p5208_p9, %p5751_p2 }
  0x44   : > { %p5217_p12 = por %p5216_p6, %p5215_p10 }
  0x45   : > { %p5211_p11 = pneg %p5210_p13 }
  0x47   : > { %p5218_p5 = pnand %p5217_p12, %p5211_p11 }
  0x49   : > { %5221 = shalt.err (!%p5218_p5)
}
  0x4a   : > { %4840 = dma.hbm_to_vmem [thread:$0]  (!%p5735_p0), %s7258_s9, 16, %s630_s30, [#allocation9]  }
  0x4b   : > { %s7260_s15 = sld [smem:[#allocation44_spill]] }
  0x51   : > { %s5222_s7 = scalar_lea.hbm %s7260_s15, 16 }
  0x52   : > { %p5223_p1 = scmp.ne.s32.totalorder %s7260_s15, %s5222_s7  ;;  %p5229_p5 = scmp.lt.u32.totalorder %s5222_s7, %s7260_s15 }
  0x54   : > { %p5225_p3 = pnand %p5223_p1, %p5751_p2 }
  0x56   : > { %p5226_p6 = pneg %p5225_p3 }
  0x58   : > { %p5231_p10 = pnand %p5229_p5, %p5226_p6 }
  0x5a   : > { %5234 = shalt.err (!%p5231_p10)
}
  0x5b   : > { %s5235_s30 = scalar_lea.vmem %s5739_s27, 16  ;;  %s5242_s21 = scalar_lea.vmem %s5739_s27, 32 }
  0x5c   : > { %p5236_p11 = scmp.ne.s32.totalorder %s5739_s27, %s5235_s30  ;;  %p5243_p7 = scmp.lt.s32.totalorder %s5739_s27, %s5739_s27 }
  0x5d   : > { %p5244_p8 = scmp.lt.s32.totalorder %s5242_s21, %s5235_s30 }
  0x5e   : > { %p5238_p12 = pnand %p5236_p11, %p5751_p2 }
  0x5f   : > { %p5245_p9 = por %p5244_p8, %p5243_p7 }
  0x60   : > { %p5239_p4 = pneg %p5238_p12 }
  0x62   : > { %p5246_p13 = pnand %p5245_p9, %p5239_p4 }
  0x64   : > { %5249 = shalt.err (!%p5246_p13)
}
  0x65   : > { %4846 = dma.hbm_to_vmem [thread:$0]  (!%p5735_p0), %s7260_s15, 16, %s5739_s27, [#allocation12]  }
  0x66   : > { %s7261_s4 = sld [smem:[#allocation41_spill]] }
  0x6c   : > { %s5250_s7 = scalar_lea.hbm %s7261_s4, 16 }
  0x6d   : > { %p5251_p1 = scmp.ne.s32.totalorder %s7261_s4, %s5250_s7  ;;  %p5257_p5 = scmp.lt.u32.totalorder %s5250_s7, %s7261_s4 }
  0x6f   : > { %p5253_p3 = pnand %p5251_p1, %p5751_p2 }
  0x71   : > { %p5254_p6 = pneg %p5253_p3 }
  0x73   : > { %p5259_p10 = pnand %p5257_p5, %p5254_p6 }
  0x75   : > { %5262 = shalt.err (!%p5259_p10)
}
  0x76   : > { %s5263_s27 = scalar_lea.vmem %s5741_s2, 16  ;;  %s5270_s29 = scalar_lea.vmem %s5741_s2, 32 }
  0x77   : > { %p5264_p11 = scmp.ne.s32.totalorder %s5741_s2, %s5263_s27  ;;  %p5271_p7 = scmp.lt.s32.totalorder %s5741_s2, %s5741_s2 }
  0x78   : > { %p5272_p8 = scmp.lt.s32.totalorder %s5270_s29, %s5263_s27 }
  0x79   : > { %p5266_p12 = pnand %p5264_p11, %p5751_p2 }
  0x7a   : > { %p5273_p9 = por %p5272_p8, %p5271_p7 }
  0x7b   : > { %p5267_p4 = pneg %p5266_p12 }
  0x7d   : > { %p5274_p13 = pnand %p5273_p9, %p5267_p4 }
  0x7f   : > { %5277 = shalt.err (!%p5274_p13)
}
  0x80   : > { %4837 = dma.hbm_to_vmem [thread:$0]  (!%p5735_p0), %s7261_s4, 16, %s5741_s2, [#allocation6]  }
  0x81   : > { %s5537_s22 = smov [#allocation10]   ;;  %s5538_s24 = smov [#allocation13]  }
  0x82   : > { %s649_s7 = sshll.u32 %s5537_s22, 4  ;;  %s677_s20 = sshll.u32 %s5538_s24, 4  ;;  %s650_s7 = int_to_ptr.vmem [resolvable:$true] %s649_s7  ;;  %s678_s20 = int_to_ptr.vmem [resolvable:$true] %s677_s20 }
  0x83   : > { %s5278_s27 = scalar_lea.hbm %s7196_s13, 16 }
  0x84   : > { %p5279_p1 = scmp.ne.s32.totalorder %s7196_s13, %s5278_s27  ;;  %p5285_p5 = scmp.lt.u32.totalorder %s5278_s27, %s7196_s13 }
  0x86   : > { %p5281_p3 = pnand %p5279_p1, %p5751_p2 }
  0x88   : > { %p5282_p6 = pneg %p5281_p3 }
  0x8a   : > { %p5287_p10 = pnand %p5285_p5, %p5282_p6 }
  0x8c   : > { %5290 = shalt.err (!%p5287_p10)
}
  0x8d   : > { %s5291_s2 = scalar_lea.vmem %s650_s7, 16  ;;  %s5298_s3 = scalar_lea.vmem %s650_s7, 32 }
  0x8e   : > { %p5292_p11 = scmp.ne.s32.totalorder %s650_s7, %s5291_s2  ;;  %p5299_p7 = scmp.lt.s32.totalorder %s650_s7, %s650_s7 }
  0x8f   : > { %p5300_p8 = scmp.lt.s32.totalorder %s5298_s3, %s5291_s2 }
  0x90   : > { %p5294_p12 = pnand %p5292_p11, %p5751_p2 }
  0x91   : > { %p5301_p9 = por %p5300_p8, %p5299_p7 }
  0x92   : > { %p5295_p4 = pneg %p5294_p12 }
  0x94   : > { %p5302_p13 = pnand %p5301_p9, %p5295_p4 }
  0x96   : > { %5305 = shalt.err (!%p5302_p13)
}
  0x97   : > { %4843 = dma.hbm_to_vmem [thread:$0]  (!%p5735_p0), %s7196_s13, 16, %s650_s7, [#allocation9]  }
  0x98   : > { %s5306_s30 = scalar_lea.hbm %s7200_s17, 32 }
  0x99   : > { %p5307_p1 = scmp.ne.s32.totalorder %s7200_s17, %s5306_s30  ;;  %p5313_p5 = scmp.lt.u32.totalorder %s5306_s30, %s7200_s17 }
  0x9b   : > { %p5309_p3 = pnand %p5307_p1, %p5751_p2 }
  0x9d   : > { %p5310_p6 = pneg %p5309_p3 }
  0x9f   : > { %p5315_p10 = pnand %p5313_p5, %p5310_p6 }
  0xa1   : > { %5318 = shalt.err (!%p5315_p10)
}
  0xa2   : > { %s5319_s2 = scalar_lea.vmem %s678_s20, 32  ;;  %p5327_p7 = scmp.lt.s32.totalorder %s678_s20, %s678_s20 }
  0xa3   : > { %p5320_p11 = scmp.ne.s32.totalorder %s678_s20, %s5319_s2  ;;  %p5328_p8 = scmp.lt.s32.totalorder %s5319_s2, %s5319_s2 }
  0xa5   : > { %p5322_p12 = pnand %p5320_p11, %p5751_p2  ;;  %p5329_p9 = por %p5328_p8, %p5327_p7 }
  0xa7   : > { %p5323_p4 = pneg %p5322_p12 }
  0xa9   : > { %p5330_p13 = pnand %p5329_p9, %p5323_p4 }
  0xab   : > { %5333 = shalt.err (!%p5330_p13)
}
  0xac   : > { %4849 = dma.hbm_to_vmem [thread:$0]  (!%p5735_p0), %s7200_s17, 32, %s678_s20, [#allocation12]  }
  0xad   : > { %s5539_s9 = smov [#allocation14]   ;;  %s5334_s30 = scalar_lea.hbm %s7202_s19, 16 }
  0xae   : > { %s691_s22 = sshll.u32 %s5539_s9, 4  ;;  %p5335_p1 = scmp.ne.s32.totalorder %s7202_s19, %s5334_s30  ;;  %s692_s22 = int_to_ptr.vmem [resolvable:$true] %s691_s22 }
  0xaf   : > { %p5341_p5 = scmp.lt.u32.totalorder %s5334_s30, %s7202_s19 }
  0xb0   : > { %p5337_p3 = pnand %p5335_p1, %p5751_p2 }
  0xb2   : > { %p5338_p6 = pneg %p5337_p3 }
  0xb4   : > { %p5343_p10 = pnand %p5341_p5, %p5338_p6 }
  0xb6   : > { %5346 = shalt.err (!%p5343_p10)
}
  0xb7   : > { %s5347_s20 = scalar_lea.vmem %s692_s22, 16  ;;  %s5354_s2 = scalar_lea.vmem %s692_s22, 32 }
  0xb8   : > { %p5348_p11 = scmp.ne.s32.totalorder %s692_s22, %s5347_s20  ;;  %p5355_p7 = scmp.lt.s32.totalorder %s692_s22, %s692_s22 }
  0xb9   : > { %p5356_p8 = scmp.lt.s32.totalorder %s5354_s2, %s5347_s20 }
  0xba   : > { %p5350_p12 = pnand %p5348_p11, %p5751_p2 }
  0xbb   : > { %p5357_p9 = por %p5356_p8, %p5355_p7 }
  0xbc   : > { %p5351_p4 = pneg %p5350_p12 }
  0xbe   : > { %p5358_p13 = pnand %p5357_p9, %p5351_p4 }
  0xc0   : > { %5361 = shalt.err (!%p5358_p13)
}
  0xc1   : > { %4852 = dma.hbm_to_vmem [thread:$0]  (!%p5735_p0), %s7202_s19, 16, %s692_s22, [#allocation15]  }
  0xc2   : > { %p4187_p1 = scmp.ge.s32.totalorder %s5532_s1, 2 }
  0xc3   : > { %p7262_p2 = scmp.ne.s32.totalorder (!%p4187_p1), %s7251_s28, 0 }
  0xc4   : > { %698 = sbr.rel (%p4187_p1) target bundleno = 218 (0xda), region = 88 }
  0xcb   : > { %701 = sbr.rel (!%p7262_p2) target bundleno = 218 (0xda), region = 92  ;;  %s703_s6 = sand.u32 (%p7262_p2), 1, %s5528_s5  }
  0xcc   : > { %s4189_s9 = sshll.u32 (%p7262_p2), %s5532_s1, 2  ;;  %s4188_s15 = sshll.u32 (%p7262_p2), %s703_s6, 5 }
  0xcd   : > { %s7263_s26 = sld [smem:[#allocation34_spill]] (%p7262_p2)  ;;  %s705_s22 = scalar_lea.vmem (%p7262_p2), [#allocation4], %s4188_s15 }
  0xd3   : > { %s707_s21 = scalar_lea.vmem %s7263_s26, %s4189_s9 }
  0xd4   : > { %v723_v0 = vld [vmem:[%s707_s21] sm:$0xf]  ;;  %v725_v1 = vld [vmem:[%s707_s21 + $0x8] sm:$0xf]  ;;  %v727_v2 = vld [vmem:[%s707_s21 + $0x10] sm:$0xf] }
  0xd5   : > { %724 = vst [vmem:[%s705_s22] sm:$0xf] %v723_v0  ;;  %726 = vst [vmem:[%s705_s22 + $0x4] sm:$0xf] %v725_v1  ;;  %v729_v3 = vld [vmem:[%s707_s21 + $0x18] sm:$0xf] }
  0xd6   : > { %v731_v4 = vld [vmem:[%s707_s21 + $0x20] sm:$0xf]  ;;  %728 = vst [vmem:[%s705_s22 + $0x8] sm:$0xf] %v727_v2  ;;  %730 = vst [vmem:[%s705_s22 + $0xc] sm:$0xf] %v729_v3 }
  0xd7   : > { %732 = vst [vmem:[%s705_s22 + $0x10] sm:$0xf] %v731_v4  ;;  %v733_v5 = vld [vmem:[%s707_s21 + $0x28] sm:$0xf]  ;;  %v735_v6 = vld [vmem:[%s707_s21 + $0x30] sm:$0xf] }
  0xd8   : > { %v737_v7 = vld [vmem:[%s707_s21 + $0x38] sm:$0xf]  ;;  %734 = vst [vmem:[%s705_s22 + $0x14] sm:$0xf] %v733_v5  ;;  %736 = vst [vmem:[%s705_s22 + $0x18] sm:$0xf] %v735_v6 }
  0xd9   : > { %738 = vst [vmem:[%s705_s22 + $0x1c] sm:$0xf] %v737_v7 }
  0xda PF: > { %p7264_p0 = scmp.ne.s32.totalorder %s7256_s0, 0 }
  0xdb   : > { %s5882_s28 = sand.u32 (!%p7264_p0), 1, %s5524_s25   ;;  %p7265_p3 = scmp.eq.s32.totalorder (!%p7264_p0), %s5692_s11, 0 }
  0xdc   : > { %789 = sbr.rel (%p7264_p0) target bundleno = 4104 (0x1008), region = 137  ;;  %s4191_s27 = sshll.u32 (!%p7264_p0), %s5882_s28, 5 }
  0xdd   : > { %s5885_s29 = scalar_lea.vmem (!%p7264_p0), [#allocation4], %s4191_s27 }
  0xe3   : > { %5491 = dma.done.wait (%p7265_p3), [#allocation6], 16   ;;  %p7266_p6 = pmov %p7265_p3 }
  0xe4   : > { %p7267_p5 = pmov %p7265_p3 }
  0xe5   : > { %5493 = vsyncadd (%p7266_p6), [#allocation6], 4294967280 }
  0xe6   : > { %5495 = dma.done.wait (%p7267_p5), [#allocation9], 32   ;;  %p7268_p10 = pmov %p7265_p3 }
  0xe7   : > { %p7269_p11 = pmov %p7265_p3 }
  0xe8   : > { %5497 = vsyncadd (%p7268_p10), [#allocation9], 4294967264 }
  0xe9   : > { %5499 = dma.done.wait (%p7269_p11), [#allocation12], 48   ;;  %p7270_p12 = pmov %p7265_p3 }
  0xea   : > { %p7271_p4 = pmov %p7265_p3 }
  0xeb   : > { %5501 = vsyncadd (%p7270_p12), [#allocation12], 4294967248 }
  0xec   : > { %5503 = dma.done.wait (%p7271_p4), [#allocation15], 16   ;;  %p7272_p7 = pmov %p7265_p3 }
  0xed   : > { %v5540_v8 = vmov 0   ;;  %s7273_s20 = sld [smem:[#allocation36_spill]]  ;;  %v4949_v20 = vld [vmem:[%s5885_s29] sm:$0xff]   ;;  %s7274_s3 = sld [smem:[#allocation37_spill]]  ;;  %v4958_v39 = vld [vmem:[%s5885_s29 + $0x8] sm:$0xff]   ;;  %v4967_v43 = vld [vmem:[%s5885_s29 + $0x10] sm:$0xff]   ;;  %v948_v62 = vlaneseq }
  0xee   : > { %5505 = vsyncadd (%p7272_p7), [#allocation15], 4294967280  ;;  %1147 = vmatprep.mubr.bf16.mxu0 %v5540_v8  ;;  %4922 = vset.pattern.permute.xlu0 %v5540_v8  ;;  %v5541_v44 = vmov 0.0   ;;  %v4976_v51 = vld [vmem:[%s5885_s29 + $0x18] sm:$0xff]   ;;  %vm5542_vm0 = vmmov 0   ;;  %s7275_s2 = sld [smem:[#allocation38_spill]] }
  0xef   : > { %4921 = vset.pattern.permute.xlu1 %v5540_v8  ;;  %4550 = vmatprep.mubr.bf16.mxu1 %v4949_v20  ;;  %v6180_v63 = vshrl.u32 %v948_v62, 7  ;;  %s7276_s9 = sld [smem:[#allocation39_spill]]  ;;  %s7277_s7 = sld [smem:[#allocation40_spill]]  ;;  %vm2921_vm1 = vcmask 1041409   ;;  %vm2923_vm2 = vcmask 1042434   ;;  %vm2925_vm3 = vcmask 1043459  }
  0xf0   : > { %s4202_s6 = sshll.u32 %s5692_s11, 3  ;;  %s7278_s22 = sld [smem:[#allocation35_spill]]  ;;  %vm2927_vm4 = vcmask 1044484   ;;  %vm2929_vm5 = vcmask 1045509   ;;  %vm2931_vm6 = vcmask 1046534   ;;  %vm2933_vm7 = vcmask 1047559  }
  0xf1   : > { %v6183_v0 = vsub.s32 0, %v6180_v63  ;;  %v6189_v2 = vsub.s32 1, %v6180_v63  ;;  %p900_p8 = scmp.lt.s32.totalorder %s4202_s6, 15  ;;  %s7279_s8 = sld [smem:[#allocation42_spill]]  ;;  %vm2936_vm8 = vcmask 64512  }
  0xf2   : > { %s6758_s27 = sshll.u32 %s5882_s28, 3  ;;  %s7280_s15 = sld [smem:[#allocation32_spill]] }
  0xf3   : > { %v4923_v9 = vld [vmem:[%s7273_s20 + $0x4] ss:$12 sps:$4 sm:$0xff]   ;;  %v4925_v10 = vld [vmem:[%s7273_s20] ss:$12 sps:$4 sm:$0xff]   ;;  %v4926_v11 = vld [vmem:[%s7273_s20 + $0x1c] ss:$12 sps:$4 sm:$0xff]  }
  0xf4   : > { %1115 = vmatprep.subr.bf16.mxu0 %v4923_v9  ;;  %v4928_v12 = vld [vmem:[%s7273_s20 + $0x18] ss:$12 sps:$4 sm:$0xff]   ;;  %v4929_v13 = vld [vmem:[%s7273_s20 + $0x34] ss:$12 sps:$4 sm:$0xff]   ;;  %v4931_v14 = vld [vmem:[%s7273_s20 + $0x30] ss:$12 sps:$4 sm:$0xff]  }
  0xf5   : > { %1116 = vmatpush1.bf16.msra.mxu0 %v4925_v10  ;;  %v4932_v15 = vld [vmem:[%s7273_s20 + $0x4c] ss:$12 sps:$4 sm:$0xff]   ;;  %v4943_v16 = vld [vmem:[%s7273_s20 + $0x8] ss:$12 sps:$4 sm:$0xff]   ;;  %v4935_v18 = vld [vmem:[%s7273_s20 + $0x64] ss:$12 sps:$4 sm:$0xff]  }
  0xf6   : > { %1117 = vmatprep.subr.bf16.mxu0 %v4926_v11  ;;  %v4934_v17 = vld [vmem:[%s7273_s20 + $0x48] ss:$12 sps:$4 sm:$0xff]   ;;  %4534 = vmatprep.subr.bf16.mxu1 %v4943_v16  ;;  %v4947_v19 = vld [vmem:[%s7273_s20 + $0x20] ss:$12 sps:$4 sm:$0xff]   ;;  %v4950_v21 = vld [vmem:[%s7273_s20 + $0x38] ss:$12 sps:$4 sm:$0xff]  }
  0xf7   : > { %4535 = vmatpush3.bf16.msra.mxu1 %v4943_v16  ;;  %v4937_v22 = vld [vmem:[%s7273_s20 + $0x60] ss:$12 sps:$4 sm:$0xff]   ;;  %v4938_v23 = vld [vmem:[%s7273_s20 + $0x7c] ss:$12 sps:$4 sm:$0xff]   ;;  %v4940_v25 = vld [vmem:[%s7273_s20 + $0x78] ss:$12 sps:$4 sm:$0xff]  }
  0xf8   : > { %4536 = vmatprep.subr.bf16.mxu1 %v4947_v19  ;;  %v4954_v24 = vld [vmem:[%s7273_s20 + $0x50] ss:$12 sps:$4 sm:$0xff]   ;;  %v4941_v26 = vld [vmem:[%s7273_s20 + $0x94] ss:$12 sps:$4 sm:$0xff]   ;;  %v4945_v29 = vld [vmem:[%s7273_s20 + $0xac] ss:$12 sps:$4 sm:$0xff]  }
  0xf9   : > { %1118 = vmatpush1.bf16.msra.mxu0 %v4928_v12  ;;  %v4959_v27 = vld [vmem:[%s7273_s20 + $0x68] ss:$12 sps:$4 sm:$0xff]   ;;  %v4944_v28 = vld [vmem:[%s7273_s20 + $0x90] ss:$12 sps:$4 sm:$0xff]   ;;  %v4963_v30 = vld [vmem:[%s7273_s20 + $0x80] ss:$12 sps:$4 sm:$0xff]  }
  0xfa   : > { %1119 = vmatprep.subr.bf16.mxu0 %v4929_v13  ;;  %v4948_v31 = vld [vmem:[%s7273_s20 + $0xa8] ss:$12 sps:$4 sm:$0xff]   ;;  %v5976_v32 = vld [vmem:[%s7274_s3 + $0x4] ss:$12 sps:$4 sm:$0xff]   ;;  %v5984_v34 = vld [vmem:[%s7274_s3] ss:$12 sps:$4 sm:$0xff]  }
  0xfb   : > { %4537 = vmatpush3.bf16.msra.mxu1 %v4947_v19  ;;  %v4968_v33 = vld [vmem:[%s7273_s20 + $0x98] ss:$12 sps:$4 sm:$0xff]   ;;  %v5990_v35 = vld [vmem:[%s7274_s3 + $0x1c] ss:$12 sps:$4 sm:$0xff]   ;;  %v6006_v38 = vld [vmem:[%s7274_s3 + $0x34] ss:$12 sps:$4 sm:$0xff]  }
  0xfc   : > { %4538 = vmatprep.subr.bf16.mxu1 %v4950_v21  ;;  %v4972_v36 = vld [vmem:[%s7273_s20 + $0xb0] ss:$12 sps:$4 sm:$0xff]   ;;  %v5999_v37 = vld [vmem:[%s7274_s3 + $0x18] ss:$12 sps:$4 sm:$0xff]   ;;  %v6024_v42 = vld [vmem:[%s7274_s3 + $0x48] ss:$12 sps:$4 sm:$0xff]  }
  0xfd   : > { %1120 = vmatpush1.bf16.msra.mxu0 %v4931_v14  ;;  %v6013_v40 = vld [vmem:[%s7274_s3 + $0x30] ss:$12 sps:$4 sm:$0xff]   ;;  %v6019_v41 = vld [vmem:[%s7274_s3 + $0x4c] ss:$12 sps:$4 sm:$0xff]   ;;  %v6031_v45 = vld [vmem:[%s7274_s3 + $0x8] ss:$12 sps:$4 sm:$0xff]  }
  0xfe   : > { %1121 = vmatprep.subr.bf16.mxu0 %v4932_v15  ;;  %v6036_v46 = vld [vmem:[%s7274_s3 + $0x64] ss:$12 sps:$4 sm:$0xff]   ;;  %v6043_v47 = vld [vmem:[%s7274_s3 + $0x20] ss:$12 sps:$4 sm:$0xff]   ;;  %v6055_v49 = vld [vmem:[%s7274_s3 + $0x7c] ss:$12 sps:$4 sm:$0xff]  }
  0xff   : > { %4539 = vmatpush3.bf16.msra.mxu1 %v4950_v21  ;;  %v6049_v48 = vld [vmem:[%s7274_s3 + $0x60] ss:$12 sps:$4 sm:$0xff]   ;;  %v6062_v50 = vld [vmem:[%s7274_s3 + $0x38] ss:$12 sps:$4 sm:$0xff]   ;;  %v6083_v54 = vld [vmem:[%s7274_s3 + $0x50] ss:$12 sps:$4 sm:$0xff]  }
 0x100   : > { %4540 = vmatprep.subr.bf16.mxu1 %v4954_v24  ;;  %v6069_v52 = vld [vmem:[%s7274_s3 + $0x78] ss:$12 sps:$4 sm:$0xff]   ;;  %v6075_v53 = vld [vmem:[%s7274_s3 + $0x94] ss:$12 sps:$4 sm:$0xff]   ;;  %v6089_v55 = vld [vmem:[%s7274_s3 + $0x90] ss:$12 sps:$4 sm:$0xff]  }
 0x101   : > { %1122 = vmatpush1.bf16.msra.mxu0 %v4934_v17  ;;  %v6097_v56 = vld [vmem:[%s7274_s3 + $0xac] ss:$12 sps:$4 sm:$0xff]   ;;  %v6104_v57 = vld [vmem:[%s7274_s3 + $0x68] ss:$12 sps:$4 sm:$0xff]   ;;  %v6137_v61 = vld [vmem:[%s7274_s3 + $0xb0] ss:$12 sps:$4 sm:$0xff]  }
 0x102   : > { %1123 = vmatprep.subr.bf16.mxu0 %v4935_v18  ;;  %v6110_v58 = vld [vmem:[%s7274_s3 + $0xa8] ss:$12 sps:$4 sm:$0xff]   ;;  %v6119_v59 = vld [vmem:[%s7274_s3 + $0x80] ss:$12 sps:$4 sm:$0xff]   ;;  %v6128_v60 = vld [vmem:[%s7274_s3 + $0x98] ss:$12 sps:$4 sm:$0xff]  }
 0x103   : > { %4541 = vmatpush3.bf16.msra.mxu1 %v4954_v24  ;;  %v946_v1 = vld [vmem:[%s7275_s2] sm:$0x7]  ;;  %v6201_v13 = vsub.s32 2, %v6180_v63  ;;  %s7298_s6 = smov (!%p900_p8, %s4202_s6), 15  ;;  %s7227_s23 = scalar_lea.vmem [#allocation19], %s6758_s27 }
 0x104   : > { %4542 = vmatprep.subr.bf16.mxu1 %v4959_v27  ;;  %v6192_v3 = vrot.slane %v946_v1, %v6183_v0  ;;  %v6195_v4 = vrot.slane %v946_v1, %v6189_v2  ;;  %s4203_s30 = sshll.u32 %s7298_s6, 2  ;;  %s2869_s2 = sld [smem:[#allocation3]] }
 0x105   : > { %1124 = vmatpush1.bf16.msra.mxu0 %v4937_v22  ;;  %v959_v17 = vrot.slane %v946_v1, %v6201_v13  ;;  %s6665_s29 = scalar_lea.vmem %s7278_s22, %s4203_s30  ;;  %s7226_s24 = scalar_lea.vmem [#allocation20], %s6758_s27 }
 0x106   : > { %1125 = vmatprep.subr.bf16.mxu0 %v4938_v23  ;;  %s3886_s30 = sand.u32 1, %s5692_s11   ;;  %s7042_s26 = sshll.u32 %s5692_s11, 7 }
 0x107   : > { %4543 = vmatpush3.bf16.msra.mxu1 %v4959_v27  ;;  %s884_s21 = scalar_lea.vmem [#allocation17], %s6758_s27  ;;  %s7062_s4 = scalar_lea.sflag [#allocation18], %s3886_s30 }
 0x108   : > { %4544 = vmatprep.subr.bf16.mxu1 %v4963_v30  ;;  %s3923_s22 = sshll.u32 %s884_s21, 4  ;;  %p7283_p13 = scmp.ne.s32.totalorder %s7280_s15, 0  ;;  %s7053_s22 = int_to_ptr.vmem [resolvable:$true] %s3923_s22 }
 0x109   : > { %1126 = vmatpush1.bf16.msra.mxu0 %v4940_v25  ;;  %s5544_s0 = smov [#allocation17]  }
 0x10a   : > { %1127 = vmatprep.subr.bf16.mxu0 %v4941_v26 }
 0x10b   : > { %4545 = vmatpush3.bf16.msra.mxu1 %v4963_v30 }
 0x10c   : > { %4546 = vmatprep.subr.bf16.mxu1 %v4968_v33 }
 0x10d   : > { %1128 = vmatpush1.bf16.msra.mxu0 %v4944_v28 }
 0x10e   : > { %1129 = vmatprep.subr.bf16.mxu0 %v4945_v29 }
 0x10f   : > { %4547 = vmatpush3.bf16.msra.mxu1 %v4968_v33 }
 0x110   : > { %4548 = vmatprep.subr.bf16.mxu1 %v4972_v36 }
 0x111   : > { %1130 = vmatpush1.bf16.msra.mxu0 %v4948_v31 }
 0x112   : > { %1542 = vmatprep.subr.bf16.mxu0 %v5976_v32 }
 0x113   : > { %4549 = vmatpush3.bf16.msra.mxu1 %v4972_v36 }
 0x114   : > { %1148 = vmatmul.mubr.bf16.vlgmr.msra.gmra.mrb[0].mxu0 %v4949_v20  ;;  %4558 = vmatprep.subr.bf16.mxu1 %v5541_v44 }
 0x115   : > { %1543 = vmatpush1.bf16.msra.mxu0 %v5984_v34  ;;  %1157 = vmatprep.mubr.bf16.mxu0 %v5540_v8 }
 0x116   : > { %1544 = vmatprep.subr.bf16.mxu0 %v5990_v35  ;;  %4551 = vmatmul.mubr.bf16.vlgmr.msra.gmra.mrb[0].mxu1 %v4958_v39 }
 0x117   : > { %4559 = vmatpush3.bf16.msra.mxu1 %v6031_v45  ;;  %4554 = vmatprep.mubr.bf16.mxu1 %v4967_v43 }
 0x118   : > { %4560 = vmatprep.subr.bf16.mxu1 %v5541_v44 }
 0x119   : > { %1545 = vmatpush1.bf16.msra.mxu0 %v5999_v37 }
 0x11a   : > { %1546 = vmatprep.subr.bf16.mxu0 %v6006_v38 }
 0x11b   : > { %4561 = vmatpush3.bf16.msra.mxu1 %v6043_v47 }
 0x11c   : > { %1158 = vmatmul.mubr.bf16.gmra.mrb[4].mxu0 %v4958_v39  ;;  %4562 = vmatprep.subr.bf16.mxu1 %v5541_v44 }
 0x11d   : > { %1547 = vmatpush1.bf16.msra.mxu0 %v6013_v40  ;;  %1167 = vmatprep.mubr.bf16.mxu0 %v5540_v8 }
 0x11e   : > { %1548 = vmatprep.subr.bf16.mxu0 %v6019_v41  ;;  %4555 = vmatmul.mubr.bf16.gmra.mrb[4].mxu1 %v4976_v51 }
 0x11f   : > { %4563 = vmatpush3.bf16.msra.mxu1 %v6062_v50  ;;  %4574 = vmatprep.mubr.msk.bf16.mxu1 %vm5542_vm0, %v5541_v44 }
 0x120   : > { %4564 = vmatprep.subr.bf16.mxu1 %v5541_v44 }
 0x121   : > { %1549 = vmatpush1.bf16.msra.mxu0 %v6024_v42 }
 0x122   : > { %1550 = vmatprep.subr.bf16.mxu0 %v6036_v46 }
 0x123   : > { %4565 = vmatpush3.bf16.msra.mxu1 %v6083_v54 }
 0x124   : > { %1168 = vmatmul.mubr.bf16.gmra.mrb[8].mxu0 %v4967_v43  ;;  %4566 = vmatprep.subr.bf16.mxu1 %v5541_v44 }
 0x125   : > { %1551 = vmatpush1.bf16.msra.mxu0 %v6049_v48  ;;  %1177 = vmatprep.mubr.bf16.mxu0 %v5540_v8 }
 0x126   : > { %1552 = vmatprep.subr.bf16.mxu0 %v6055_v49 }
 0x127   : > { %4567 = vmatpush3.bf16.msra.mxu1 %v6104_v57 }
 0x128   : > { %4568 = vmatprep.subr.bf16.mxu1 %v5541_v44 }
 0x129   : > { %1553 = vmatpush1.bf16.msra.mxu0 %v6069_v52 }
 0x12a   : > { %1554 = vmatprep.subr.bf16.mxu0 %v6075_v53 }
 0x12b   : > { %4569 = vmatpush3.bf16.msra.mxu1 %v6119_v59 }
 0x12c   : > { %1178 = vmatmul.mubr.bf16.gmra.mrb[12].mxu0 %v4976_v51  ;;  %4570 = vmatprep.subr.bf16.mxu1 %v5541_v44 }
 0x12d   : > { %1555 = vmatpush1.bf16.msra.mxu0 %v6089_v55  ;;  %1574 = vmatprep.mubr.bf16.mxu0 %v5540_v8 }
 0x12e   : > { %1556 = vmatprep.subr.bf16.mxu0 %v6097_v56 }
 0x12f   : > { %4571 = vmatpush3.bf16.msra.mxu1 %v6128_v60 }
 0x130   : > { %4572 = vmatprep.subr.bf16.mxu1 %v5541_v44 }
 0x131   : > { %1557 = vmatpush1.bf16.msra.mxu0 %v6110_v58 }
 0x132   : > { %1655 = vmatprep.subr.bf16.mxu0 %v5976_v32 }
 0x133   : > { %4573 = vmatpush3.bf16.msra.mxu1 %v6137_v61 }
 0x134   : > { %1575 = vmatmul.mubr.bf16.vlgmr.msra.gmra.mrb[16].mxu0 %v5540_v8  ;;  %4578 = vmatprep.subr.bf16.mxu1 %v5541_v44 }
 0x135   : > { %1656 = vmatpush1.bf16.msra.mxu0 %v5984_v34  ;;  %1687 = vmatprep.mubr.bf16.mxu0 %v5540_v8 }
 0x136   : > { %1657 = vmatprep.subr.bf16.mxu0 %v5990_v35  ;;  %4575 = vmatmul.mubr.bf16.vlgmr.msra.gmra.mrb[8].mxu1 %v5540_v8 }
 0x137   : > { %4579 = vmatpush3.bf16.msra.mxu1 %v6031_v45  ;;  %4594 = vmatprep.mubr.msk.bf16.mxu1 %vm5542_vm0, %v5541_v44 }
 0x138   : > { %4580 = vmatprep.subr.bf16.mxu1 %v5541_v44 }
 0x139   : > { %1658 = vmatpush1.bf16.msra.mxu0 %v5999_v37 }
 0x13a   : > { %1659 = vmatprep.subr.bf16.mxu0 %v6006_v38 }
 0x13b   : > { %4581 = vmatpush3.bf16.msra.mxu1 %v6043_v47 }
 0x13c   : > { %4582 = vmatprep.subr.bf16.mxu1 %v5541_v44 }
 0x13d   : > { %1660 = vmatpush1.bf16.msra.mxu0 %v6013_v40 }
 0x13e   : > { %1661 = vmatprep.subr.bf16.mxu0 %v6019_v41 }
 0x13f   : > { %4583 = vmatpush3.bf16.msra.mxu1 %v6062_v50 }
 0x140   : > { %4584 = vmatprep.subr.bf16.mxu1 %v5541_v44 }
 0x141   : > { %1662 = vmatpush1.bf16.msra.mxu0 %v6024_v42 }
 0x142   : > { %1663 = vmatprep.subr.bf16.mxu0 %v6036_v46 }
 0x143   : > { %4585 = vmatpush3.bf16.msra.mxu1 %v6083_v54 }
 0x144   : > { %4586 = vmatprep.subr.bf16.mxu1 %v5541_v44 }
 0x145   : > { %1664 = vmatpush1.bf16.msra.mxu0 %v6049_v48 }
 0x146   : > { %1665 = vmatprep.subr.bf16.mxu0 %v6055_v49 }
 0x147   : > { %4587 = vmatpush3.bf16.msra.mxu1 %v6104_v57 }
 0x148   : > { %4588 = vmatprep.subr.bf16.mxu1 %v5541_v44 }
 0x149   : > { %1666 = vmatpush1.bf16.msra.mxu0 %v6069_v52 }
 0x14a   : > { %1667 = vmatprep.subr.bf16.mxu0 %v6075_v53 }
 0x14b   : > { %4589 = vmatpush3.bf16.msra.mxu1 %v6119_v59 }
 0x14c   : > { %4590 = vmatprep.subr.bf16.mxu1 %v5541_v44 }
 0x14d   : > { %1668 = vmatpush1.bf16.msra.mxu0 %v6089_v55 }
 0x14e   : > { %1669 = vmatprep.subr.bf16.mxu0 %v6097_v56 }
 0x14f   : > { %4591 = vmatpush3.bf16.msra.mxu1 %v6128_v60 }
 0x150   : > { %4592 = vmatprep.subr.bf16.mxu1 %v5541_v44 }
 0x151   : > { %1670 = vmatpush1.bf16.msra.mxu0 %v6110_v58 }
 0x152   : > { %1768 = vmatprep.subr.bf16.mxu0 %v5976_v32 }
 0x153   : > { %4593 = vmatpush3.bf16.msra.mxu1 %v6137_v61 }
 0x154   : > { %4598 = vmatprep.subr.bf16.mxu1 %v5541_v44 }
 0x1e7   : > { %v1149_v5 = vpop.f32.mrb[0].mxu0 }
 0x1e8   : > { %v1150_v6 = vadd.f32 %v1149_v5, %v6192_v3  ;;  %v1151_v7 = vpop.f32.mrb[1].mxu0 }
 0x1e9   : > { %v1152_v9 = vadd.f32 %v1151_v7, %v6195_v4  ;;  %v1153_v10 = vpop.f32.mrb[2].mxu0  ;;  %v4552_v23 = vpop.f32.mrb[0].mxu1 }
 0x1ea   : > { %v1154_v11 = vadd.f32 %v1153_v10, %v6192_v3  ;;  %v1155_v12 = vpop.f32.mrb[3].mxu0  ;;  %v1231_v26 = vadd.f32 %v4552_v23, %v959_v17  ;;  %v1222_v27 = vpop.f32.mrb[1].mxu1 }
 0x1eb   : > { %v6203_v14 = vpack.c.bf16 %v1152_v9, %v1150_v6  ;;  %v1156_v15 = vadd.f32 %v1155_v12, %v6195_v4  ;;  %v1223_v30 = vadd.f32 %v1222_v27, %v959_v17  ;;  %v4553_v31 = vpop.f32.mrb[2].mxu1 }
 0x1ec   : > { %v4378_v33 = vpack.c.bf16 %v1231_v26, %v1231_v26  ;;  %v1234_v36 = vadd.f32 %v4553_v31, %v959_v17  ;;  %v1225_v39 = vpop.f32.mrb[3].mxu1 }
 0x1ed   : > { %v6206_v16 = vpack.c.bf16 %v1156_v15, %v1154_v11  ;;  %v4374_v51 = vpack.c.bf16 %v1223_v30, %v1223_v30  ;;  %v1226_v1 = vadd.f32 %v1225_v39, %v959_v17 }
 0x1ee   : > { %1362 = vst [vmem:[#allocation2 + $0x20] sm:$0xf] %v4378_v33  ;;  %v4380_v5 = vpack.c.bf16 %v1234_v36, %v1234_v36 }
 0x1ef   : > { %v1159_v18 = vpop.f32.mrb[4].mxu0  ;;  %1358 = vst [vmem:[#allocation2 + $0x8] sm:$0xf] %v4374_v51  ;;  %v4376_v7 = vpack.c.bf16 %v1226_v1, %v1226_v1 }
 0x1f0   : > { %v1160_v19 = vadd.f32 %v1159_v18, %v6192_v3  ;;  %v1161_v20 = vpop.f32.mrb[5].mxu0  ;;  %1364 = vst [vmem:[#allocation2 + $0x2c] sm:$0xf] %v4380_v5 }
 0x1f1   : > { %v1162_v21 = vadd.f32 %v1161_v20, %v6195_v4  ;;  %v1163_v22 = vpop.f32.mrb[6].mxu0  ;;  %1360 = vst [vmem:[#allocation2 + $0x14] sm:$0xf] %v4376_v7  ;;  %v4556_v15 = vpop.f32.mrb[4].mxu1 }
 0x1f2   : > { %v1164_v24 = vadd.f32 %v1163_v22, %v6192_v3  ;;  %v1165_v25 = vpop.f32.mrb[7].mxu0  ;;  %v1247_v20 = vadd.f32 %v4556_v15, %v959_v17 }
 0x1f3   : > { %v6212_v28 = vpack.c.bf16 %v1162_v21, %v1160_v19  ;;  %v1166_v29 = vadd.f32 %v1165_v25, %v6195_v4  ;;  %v1238_v21 = vpop.f32.mrb[5].mxu1 }
 0x1f4   : > { %v4557_v25 = vpop.f32.mrb[6].mxu1  ;;  %v4386_v26 = vpack.c.bf16 %v1247_v20, %v1247_v20 }
 0x1f5   : > { %v6215_v43 = vpack.c.bf16 %v1166_v29, %v1164_v24  ;;  %v1239_v24 = vadd.f32 %v1238_v21, %v959_v17  ;;  %v1250_v27 = vadd.f32 %v4557_v25, %v959_v17  ;;  %v1241_v29 = vpop.f32.mrb[7].mxu1 }
 0x1f6   : > { %v1242_v33 = vadd.f32 %v1241_v29, %v959_v17  ;;  %1370 = vst [vmem:[#allocation2 + $0x50] sm:$0xf] %v4386_v26 }
 0x1f7   : > { %v1169_v6 = vpop.f32.mrb[8].mxu0  ;;  %v4382_v31 = vpack.c.bf16 %v1239_v24, %v1239_v24  ;;  %v4388_v36 = vpack.c.bf16 %v1250_v27, %v1250_v27 }
 0x1f8   : > { %v1170_v9 = vadd.f32 %v1169_v6, %v6192_v3  ;;  %v1171_v10 = vpop.f32.mrb[9].mxu0  ;;  %v4384_v51 = vpack.c.bf16 %v1242_v33, %v1242_v33 }
 0x1f9   : > { %v1172_v11 = vadd.f32 %v1171_v10, %v6195_v4  ;;  %v1173_v12 = vpop.f32.mrb[10].mxu0  ;;  %1366 = vst [vmem:[#allocation2 + $0x38] sm:$0xf] %v4382_v31  ;;  %1372 = vst [vmem:[#allocation2 + $0x5c] sm:$0xf] %v4388_v36 }
 0x1fa   : > { %v1174_v18 = vadd.f32 %v1173_v12, %v6192_v3  ;;  %v1175_v19 = vpop.f32.mrb[11].mxu0  ;;  %1368 = vst [vmem:[#allocation2 + $0x44] sm:$0xf] %v4384_v51  ;;  %v1632_v12 = vrot.slane %v6203_v14, 4  ;;  %v6236_v51 = vld [vmem:[%s7276_s9] ss:$0 sm:$0xff] }
 0x1fb   : > { %v6220_v22 = vpack.c.bf16 %v1172_v11, %v1170_v9  ;;  %v1176_v23 = vadd.f32 %v1175_v19, %v6195_v4 }
 0x1fc   : > { %v1634_v20 = vunpack.c.l.bf16 %v1632_v12 }
 0x1fd   : > { %v6223_v30 = vpack.c.bf16 %v1176_v23, %v1174_v18  ;;  %v1623_v18 = vunpack.c.l.bf16 %v6203_v14 }
 0x1ff   : > { %v1179_v39 = vpop.f32.mrb[12].mxu0 }
 0x200   : > { %v1180_v1 = vadd.f32 %v1179_v39, %v6192_v3  ;;  %v1181_v5 = vpop.f32.mrb[13].mxu0 }
 0x201   : > { %v1182_v6 = vadd.f32 %v1181_v5, %v6195_v4  ;;  %v1183_v7 = vpop.f32.mrb[14].mxu0 }
 0x202   : > { %v1184_v9 = vadd.f32 %v1183_v7, %v6192_v3  ;;  %v1185_v10 = vpop.f32.mrb[15].mxu0 }
 0x203   : > { %v6228_v11 = vpack.c.bf16 %v1182_v6, %v1180_v1  ;;  %v1186_v17 = vadd.f32 %v1185_v10, %v6195_v4  ;;  %v6239_v6 = vld [vmem:[#allocation2 + $0x8] ss:$12 sps:$4 sm:$0xff]  }
 0x204   : > { %v1644_v10 = vunpack.c.l.bf16 %v6239_v6 }
 0x205   : > { %v4387_v15 = vpack.c.bf16 %v1186_v17, %v1184_v9 }
 0x207   : > { %1371 = vst [vmem:[#allocation2 + $0x54] sm:$0xff] %v4387_v15  ;;  %v1576_v19 = vpop.f32.mrb[16].mxu0 }
 0x208   : > { %v1624_v21 = vadd.f32 %v1623_v18, %v1576_v19  ;;  %v1578_v23 = vpop.f32.mrb[17].mxu0 }
 0x209   : > { %v1635_v24 = vadd.f32 %v1634_v20, %v1578_v23  ;;  %v1580_v25 = vpop.f32.mrb[18].mxu0  ;;  %v1617_v29 = vpop.f32.mrb[8].mxu1 }
 0x20a   : > { %v4273_v26 = vmul.f32 -1.442695, %v1624_v21  ;;  %v1581_v27 = vpop.f32.mrb[19].mxu0  ;;  %v4576_v31 = vpop.f32.mrb[9].mxu1  ;;  %v1642_v5 = vadd.f32 %v6236_v51, %v1617_v29  ;;  %v1736_v25 = vunpack.c.l.bf16 %v6206_v16 }
 0x20b   : > { %v4274_v3 = vmul.f32 -1.442695, %v1635_v24  ;;  %v1620_v4 = vpop.f32.mrb[10].mxu1  ;;  %v1745_v24 = vrot.slane %v6206_v16, 4 }
 0x20c   : > { %5071 = vpow2.f32 %v4273_v26  ;;  %v4577_v33 = vpop.f32.mrb[11].mxu1 }
 0x20d   : > { %5073 = vpow2.f32 %v4274_v3  ;;  %v1747_v3 = vunpack.c.l.bf16 %v1745_v24 }
 0x216   : > { %v5072_v36 = vpop.eup %5071 }
 0x217   : > { %v1628_v39 = vadd.f32 1.0, %v5072_v36  ;;  %v5074_v14 = vpop.eup %5073 }
 0x218   : > { %v1639_v1 = vadd.f32 1.0, %v5074_v14 }
 0x219   : > { %5075 = vrcp.f32 %v1628_v39 }
 0x21a   : > { %5077 = vrcp.f32 %v1639_v1 }
 0x223   : > { %v5076_v7 = vpop.eup %5075 }
 0x224   : > { %v1643_v9 = vmul.f32 %v5076_v7, %v1642_v5  ;;  %v5078_v12 = vpop.eup %5077 }
 0x225   : > { %v1647_v15 = vsub.f32 1.0, %v5078_v12  ;;  %v1649_v20 = vmul.f32 0.0, %v5078_v12 }
 0x226   : > { %v1645_v17 = vadd.f32 %v1644_v10, %v1643_v9 }
 0x228   : > { %5079 = vtanh.f32 %v1645_v17 }
 0x232   : > { %v5080_v18 = vpop.eup %5079 }
 0x233   : > { %v1648_v19 = vmul.f32 %v5080_v18, %v1647_v15 }
 0x235   : > { %v6242_v21 = vadd.f32 %v1649_v20, %v1648_v19  ;;  %v1757_v19 = vunpack.c.h.bf16 %v6239_v6 }
 0x237   : > { %v1654_v23 = vpack.c.bf16 %v6242_v21, %v6242_v21 }
 0x239   : > { %1688 = vmatmul.mubr.bf16.vlgmr.msra.gmra.mrb[20].mxu0 %v1654_v23  ;;  %4595 = vmatmul.mubr.bf16.vlgmr.msra.gmra.mrb[12].mxu1 %v1654_v23 }
 0x23a   : > { %1769 = vmatpush1.bf16.msra.mxu0 %v5984_v34  ;;  %4599 = vmatpush3.bf16.msra.mxu1 %v6031_v45 }
 0x23b   : > { %1770 = vmatprep.subr.bf16.mxu0 %v5990_v35  ;;  %4600 = vmatprep.subr.bf16.mxu1 %v5541_v44 }
 0x23c   : > { %1800 = vmatprep.mubr.bf16.mxu0 %v5540_v8  ;;  %4614 = vmatprep.mubr.msk.bf16.mxu1 %vm5542_vm0, %v5541_v44 }
 0x23e   : > { %1771 = vmatpush1.bf16.msra.mxu0 %v5999_v37  ;;  %4601 = vmatpush3.bf16.msra.mxu1 %v6043_v47 }
 0x23f   : > { %1772 = vmatprep.subr.bf16.mxu0 %v6006_v38  ;;  %4602 = vmatprep.subr.bf16.mxu1 %v5541_v44 }
 0x242   : > { %1773 = vmatpush1.bf16.msra.mxu0 %v6013_v40  ;;  %4603 = vmatpush3.bf16.msra.mxu1 %v6062_v50 }
 0x243   : > { %1774 = vmatprep.subr.bf16.mxu0 %v6019_v41  ;;  %4604 = vmatprep.subr.bf16.mxu1 %v5541_v44 }
 0x246   : > { %1775 = vmatpush1.bf16.msra.mxu0 %v6024_v42  ;;  %4605 = vmatpush3.bf16.msra.mxu1 %v6083_v54 }
 0x247   : > { %1776 = vmatprep.subr.bf16.mxu0 %v6036_v46  ;;  %4606 = vmatprep.subr.bf16.mxu1 %v5541_v44 }
 0x24a   : > { %1777 = vmatpush1.bf16.msra.mxu0 %v6049_v48  ;;  %4607 = vmatpush3.bf16.msra.mxu1 %v6104_v57 }
 0x24b   : > { %1778 = vmatprep.subr.bf16.mxu0 %v6055_v49  ;;  %4608 = vmatprep.subr.bf16.mxu1 %v5541_v44 }
 0x24e   : > { %1779 = vmatpush1.bf16.msra.mxu0 %v6069_v52  ;;  %4609 = vmatpush3.bf16.msra.mxu1 %v6119_v59 }
 0x24f   : > { %1780 = vmatprep.subr.bf16.mxu0 %v6075_v53  ;;  %4610 = vmatprep.subr.bf16.mxu1 %v5541_v44 }
 0x252   : > { %1781 = vmatpush1.bf16.msra.mxu0 %v6089_v55  ;;  %4611 = vmatpush3.bf16.msra.mxu1 %v6128_v60 }
 0x253   : > { %1782 = vmatprep.subr.bf16.mxu0 %v6097_v56  ;;  %4612 = vmatprep.subr.bf16.mxu1 %v5541_v44 }
 0x256   : > { %1783 = vmatpush1.bf16.msra.mxu0 %v6110_v58  ;;  %4613 = vmatpush3.bf16.msra.mxu1 %v6137_v61 }
 0x257   : > { %1881 = vmatprep.subr.bf16.mxu0 %v5976_v32  ;;  %4618 = vmatprep.subr.bf16.mxu1 %v5541_v44 }
 0x30c   : > { %v1689_v26 = vpop.f32.mrb[20].mxu0  ;;  %v1730_v27 = vpop.f32.mrb[12].mxu1 }
 0x30d   : > { %v1737_v29 = vadd.f32 %v1736_v25, %v1689_v26  ;;  %v1691_v31 = vpop.f32.mrb[21].mxu0  ;;  %v4596_v4 = vpop.f32.mrb[13].mxu1  ;;  %v1755_v12 = vadd.f32 %v6236_v51, %v1730_v27 }
 0x30e   : > { %v1748_v33 = vadd.f32 %v1747_v3, %v1691_v31  ;;  %v1693_v36 = vpop.f32.mrb[22].mxu0  ;;  %v1733_v39 = vpop.f32.mrb[14].mxu1 }
 0x30f   : > { %v4275_v14 = vmul.f32 -1.442695, %v1737_v29  ;;  %v1694_v1 = vpop.f32.mrb[23].mxu0  ;;  %v4597_v5 = vpop.f32.mrb[15].mxu1 }
 0x310   : > { %v4276_v7 = vmul.f32 -1.442695, %v1748_v33 }
 0x311   : > { %5081 = vpow2.f32 %v4275_v14 }
 0x312   : > { %5083 = vpow2.f32 %v4276_v7 }
 0x31b   : > { %v5082_v9 = vpop.eup %5081 }
 0x31c   : > { %v1741_v10 = vadd.f32 1.0, %v5082_v9  ;;  %v5084_v17 = vpop.eup %5083 }
 0x31d   : > { %v1752_v16 = vadd.f32 1.0, %v5084_v17 }
 0x31e   : > { %5085 = vrcp.f32 %v1741_v10 }
 0x31f   : > { %5087 = vrcp.f32 %v1752_v16  ;;  %v6327_v16 = vld [vmem:[#allocation2 + $0x20] ss:$12 sps:$4 sm:$0xff]  }
 0x328   : > { %v5086_v15 = vpop.eup %5085 }
 0x329   : > { %v1756_v18 = vmul.f32 %v5086_v15, %v1755_v12  ;;  %v5088_v23 = vpop.eup %5087 }
 0x32a   : > { %v1760_v24 = vsub.f32 1.0, %v5088_v23  ;;  %v1762_v3 = vmul.f32 %v5088_v23, %v6242_v21 }
 0x32b   : > { %v1758_v20 = vadd.f32 %v1757_v19, %v1756_v18  ;;  %v1870_v19 = vunpack.c.l.bf16 %v6327_v16 }
 0x32d   : > { %5089 = vtanh.f32 %v1758_v20 }
 0x337   : > { %v5090_v25 = vpop.eup %5089 }
 0x338   : > { %v1761_v26 = vmul.f32 %v5090_v25, %v1760_v24 }
 0x33a   : > { %v6286_v29 = vadd.f32 %v1762_v3, %v1761_v26 }
 0x33c   : > { %v1767_v31 = vpack.c.bf16 %v6286_v29, %v6286_v29 }
 0x33e   : > { %1801 = vmatmul.mubr.bf16.vlgmr.msra.gmra.mrb[24].mxu0 %v1767_v31  ;;  %4615 = vmatmul.mubr.bf16.vlgmr.msra.gmra.mrb[16].mxu1 %v1767_v31 }
 0x33f   : > { %1882 = vmatpush1.bf16.msra.mxu0 %v5984_v34  ;;  %4619 = vmatpush3.bf16.msra.mxu1 %v6031_v45  ;;  %v1858_v34 = vrot.slane %v6212_v28, 4 }
 0x340   : > { %1883 = vmatprep.subr.bf16.mxu0 %v5990_v35  ;;  %4620 = vmatprep.subr.bf16.mxu1 %v5541_v44  ;;  %v1849_v35 = vunpack.c.l.bf16 %v6212_v28 }
 0x341   : > { %1913 = vmatprep.mubr.bf16.mxu0 %v5540_v8  ;;  %4634 = vmatprep.mubr.msk.bf16.mxu1 %vm5542_vm0, %v5541_v44  ;;  %v1860_v21 = vunpack.c.l.bf16 %v1858_v34 }
 0x343   : > { %1884 = vmatpush1.bf16.msra.mxu0 %v5999_v37  ;;  %4621 = vmatpush3.bf16.msra.mxu1 %v6043_v47 }
 0x344   : > { %1885 = vmatprep.subr.bf16.mxu0 %v6006_v38  ;;  %4622 = vmatprep.subr.bf16.mxu1 %v5541_v44 }
 0x347   : > { %1886 = vmatpush1.bf16.msra.mxu0 %v6013_v40  ;;  %4623 = vmatpush3.bf16.msra.mxu1 %v6062_v50 }
 0x348   : > { %1887 = vmatprep.subr.bf16.mxu0 %v6019_v41  ;;  %4624 = vmatprep.subr.bf16.mxu1 %v5541_v44 }
 0x34b   : > { %1888 = vmatpush1.bf16.msra.mxu0 %v6024_v42  ;;  %4625 = vmatpush3.bf16.msra.mxu1 %v6083_v54 }
 0x34c   : > { %1889 = vmatprep.subr.bf16.mxu0 %v6036_v46  ;;  %4626 = vmatprep.subr.bf16.mxu1 %v5541_v44 }
 0x34f   : > { %1890 = vmatpush1.bf16.msra.mxu0 %v6049_v48  ;;  %4627 = vmatpush3.bf16.msra.mxu1 %v6104_v57 }
 0x350   : > { %1891 = vmatprep.subr.bf16.mxu0 %v6055_v49  ;;  %4628 = vmatprep.subr.bf16.mxu1 %v5541_v44 }
 0x353   : > { %1892 = vmatpush1.bf16.msra.mxu0 %v6069_v52  ;;  %4629 = vmatpush3.bf16.msra.mxu1 %v6119_v59 }
 0x354   : > { %1893 = vmatprep.subr.bf16.mxu0 %v6075_v53  ;;  %4630 = vmatprep.subr.bf16.mxu1 %v5541_v44 }
 0x357   : > { %1894 = vmatpush1.bf16.msra.mxu0 %v6089_v55  ;;  %4631 = vmatpush3.bf16.msra.mxu1 %v6128_v60 }
 0x358   : > { %1895 = vmatprep.subr.bf16.mxu0 %v6097_v56  ;;  %4632 = vmatprep.subr.bf16.mxu1 %v5541_v44 }
 0x35b   : > { %1896 = vmatpush1.bf16.msra.mxu0 %v6110_v58  ;;  %4633 = vmatpush3.bf16.msra.mxu1 %v6137_v61 }
 0x35c   : > { %1994 = vmatprep.subr.bf16.mxu0 %v5976_v32  ;;  %4638 = vmatprep.subr.bf16.mxu1 %v5541_v44 }
 0x411   : > { %v1802_v37 = vpop.f32.mrb[24].mxu0  ;;  %v1843_v6 = vpop.f32.mrb[16].mxu1 }
 0x412   : > { %v1850_v27 = vadd.f32 %v1849_v35, %v1802_v37  ;;  %v1804_v4 = vpop.f32.mrb[25].mxu0  ;;  %v4616_v33 = vpop.f32.mrb[17].mxu1  ;;  %v1868_v12 = vadd.f32 %v6236_v51, %v1843_v6  ;;  %v6339_v35 = vld [vmem:[%s7274_s3] ss:$12 sps:$4 sm:$0xff]   ;;  %v6356_v37 = vld [vmem:[%s7274_s3 + $0x18] ss:$12 sps:$4 sm:$0xff]  }
 0x413   : > { %v1861_v36 = vadd.f32 %v1860_v21, %v1804_v4  ;;  %v1806_v39 = vpop.f32.mrb[26].mxu0  ;;  %v1846_v14 = vpop.f32.mrb[18].mxu1 }
 0x414   : > { %v4277_v1 = vmul.f32 -1.442695, %v1850_v27  ;;  %v1807_v5 = vpop.f32.mrb[27].mxu0  ;;  %v4617_v7 = vpop.f32.mrb[19].mxu1 }
 0x415   : > { %v4278_v32 = vmul.f32 -1.442695, %v1861_v36 }
 0x416   : > { %5091 = vpow2.f32 %v4277_v1  ;;  %v1983_v1 = vunpack.c.h.bf16 %v6327_v16  ;;  %v6404_v16 = vld [vmem:[%s7274_s3 + $0x8] ss:$12 sps:$4 sm:$0xff]  }
 0x417   : > { %5093 = vpow2.f32 %v4278_v32 }
 0x420   : > { %v5092_v9 = vpop.eup %5091 }
 0x421   : > { %v1854_v10 = vadd.f32 1.0, %v5092_v9  ;;  %v5094_v17 = vpop.eup %5093 }
 0x422   : > { %v1865_v28 = vadd.f32 1.0, %v5094_v17 }
 0x423   : > { %5095 = vrcp.f32 %v1854_v10 }
 0x424   : > { %5097 = vrcp.f32 %v1865_v28 }
 0x42d   : > { %v5096_v15 = vpop.eup %5095 }
 0x42e   : > { %v1869_v18 = vmul.f32 %v5096_v15, %v1868_v12  ;;  %v5098_v23 = vpop.eup %5097  ;;  %v6416_v15 = vld [vmem:[%s7274_s3 + $0x20] ss:$12 sps:$4 sm:$0xff]  }
 0x42f   : > { %v1873_v24 = vsub.f32 1.0, %v5098_v23  ;;  %v1875_v3 = vmul.f32 %v5098_v23, %v6286_v29  ;;  %v6346_v29 = vld [vmem:[%s7274_s3 + $0x1c] ss:$12 sps:$4 sm:$0xff]   ;;  %v6441_v23 = vld [vmem:[%s7274_s3 + $0x4c] ss:$12 sps:$4 sm:$0xff]  }
 0x430   : > { %v1871_v20 = vadd.f32 %v1870_v19, %v1869_v18  ;;  %v6422_v18 = vld [vmem:[%s7274_s3 + $0x34] ss:$12 sps:$4 sm:$0xff]   ;;  %v6429_v19 = vld [vmem:[%s7274_s3 + $0x30] ss:$12 sps:$4 sm:$0xff]  }
 0x432   : > { %5099 = vtanh.f32 %v1871_v20  ;;  %v6435_v20 = vld [vmem:[%s7274_s3 + $0x38] ss:$12 sps:$4 sm:$0xff]  }
 0x43c   : > { %v5100_v25 = vpop.eup %5099 }
 0x43d   : > { %v1874_v26 = vmul.f32 %v5100_v25, %v1873_v24  ;;  %v6448_v24 = vld [vmem:[%s7274_s3 + $0x48] ss:$12 sps:$4 sm:$0xff]   ;;  %v6454_v25 = vld [vmem:[%s7274_s3 + $0x50] ss:$12 sps:$4 sm:$0xff]  }
 0x43f   : > { %v6332_v31 = vadd.f32 %v1875_v3, %v1874_v26  ;;  %v6460_v26 = vld [vmem:[%s7274_s3 + $0x64] ss:$12 sps:$4 sm:$0xff]   ;;  %v6467_v3 = vld [vmem:[%s7274_s3 + $0x60] ss:$12 sps:$4 sm:$0xff]  }
 0x441   : > { %v1880_v34 = vpack.c.bf16 %v6332_v31, %v6332_v31 }
 0x443   : > { %1914 = vmatmul.mubr.bf16.vlgmr.msra.gmra.mrb[28].mxu0 %v1880_v34  ;;  %4635 = vmatmul.mubr.bf16.vlgmr.msra.gmra.mrb[20].mxu1 %v1880_v34  ;;  %v6481_v34 = vld [vmem:[%s7274_s3 + $0x78] ss:$12 sps:$4 sm:$0xff]  }
 0x444   : > { %1995 = vmatpush1.bf16.msra.mxu0 %v6339_v35  ;;  %4639 = vmatpush3.bf16.msra.mxu1 %v6031_v45 }
 0x445   : > { %1996 = vmatprep.subr.bf16.mxu0 %v6346_v29  ;;  %4640 = vmatprep.subr.bf16.mxu1 %v5541_v44 }
 0x446   : > { %2026 = vmatprep.mubr.bf16.mxu0 %v5540_v8  ;;  %4654 = vmatprep.mubr.msk.bf16.mxu1 %vm5542_vm0, %v5541_v44 }
 0x448   : > { %1997 = vmatpush1.bf16.msra.mxu0 %v6356_v37  ;;  %4641 = vmatpush3.bf16.msra.mxu1 %v6043_v47 }
 0x449   : > { %1998 = vmatprep.subr.bf16.mxu0 %v6006_v38  ;;  %4642 = vmatprep.subr.bf16.mxu1 %v5541_v44  ;;  %v6387_v38 = vld [vmem:[%s7274_s3 + $0x4] ss:$12 sps:$4 sm:$0xff]  }
 0x44c   : > { %1999 = vmatpush1.bf16.msra.mxu0 %v6013_v40  ;;  %4643 = vmatpush3.bf16.msra.mxu1 %v6062_v50  ;;  %v1971_v40 = vrot.slane %v6215_v43, 4 }
 0x44d   : > { %2000 = vmatprep.subr.bf16.mxu0 %v6019_v41  ;;  %4644 = vmatprep.subr.bf16.mxu1 %v5541_v44  ;;  %v1962_v41 = vunpack.c.l.bf16 %v6215_v43 }
 0x450   : > { %2001 = vmatpush1.bf16.msra.mxu0 %v6024_v42  ;;  %4645 = vmatpush3.bf16.msra.mxu1 %v6083_v54 }
 0x451   : > { %2002 = vmatprep.subr.bf16.mxu0 %v6036_v46  ;;  %4646 = vmatprep.subr.bf16.mxu1 %v5541_v44  ;;  %v1973_v46 = vunpack.c.l.bf16 %v1971_v40  ;;  %v6495_v40 = vld [vmem:[%s7274_s3 + $0x90] ss:$12 sps:$4 sm:$0xff]  }
 0x454   : > { %2003 = vmatpush1.bf16.msra.mxu0 %v6049_v48  ;;  %4647 = vmatpush3.bf16.msra.mxu1 %v6104_v57 }
 0x455   : > { %2004 = vmatprep.subr.bf16.mxu0 %v6055_v49  ;;  %4648 = vmatprep.subr.bf16.mxu1 %v5541_v44 }
 0x458   : > { %2005 = vmatpush1.bf16.msra.mxu0 %v6069_v52  ;;  %4649 = vmatpush3.bf16.msra.mxu1 %v6119_v59 }
 0x459   : > { %2006 = vmatprep.subr.bf16.mxu0 %v6075_v53  ;;  %4650 = vmatprep.subr.bf16.mxu1 %v5541_v44 }
 0x45c   : > { %2007 = vmatpush1.bf16.msra.mxu0 %v6089_v55  ;;  %4651 = vmatpush3.bf16.msra.mxu1 %v6128_v60 }
 0x45d   : > { %2008 = vmatprep.subr.bf16.mxu0 %v6097_v56  ;;  %4652 = vmatprep.subr.bf16.mxu1 %v5541_v44 }
 0x460   : > { %2009 = vmatpush1.bf16.msra.mxu0 %v6110_v58  ;;  %4653 = vmatpush3.bf16.msra.mxu1 %v6137_v61 }
 0x461   : > { %2107 = vmatprep.subr.bf16.mxu0 %v6387_v38  ;;  %4658 = vmatprep.subr.bf16.mxu1 %v5541_v44 }
 0x516   : > { %v1915_v42 = vpop.f32.mrb[28].mxu0  ;;  %v1956_v45 = vpop.f32.mrb[20].mxu1 }
 0x517   : > { %v1963_v47 = vadd.f32 %v1962_v41, %v1915_v42  ;;  %v1917_v48 = vpop.f32.mrb[29].mxu0  ;;  %v4636_v49 = vpop.f32.mrb[21].mxu1  ;;  %v1981_v36 = vadd.f32 %v6236_v51, %v1956_v45  ;;  %v2075_v41 = vunpack.c.l.bf16 %v6220_v22 }
 0x518   : > { %v1974_v50 = vadd.f32 %v1973_v46, %v1917_v48  ;;  %v1919_v52 = vpop.f32.mrb[30].mxu0  ;;  %v1959_v53 = vpop.f32.mrb[22].mxu1 }
 0x519   : > { %v4279_v54 = vmul.f32 -1.442695, %v1963_v47  ;;  %v1920_v55 = vpop.f32.mrb[31].mxu0  ;;  %v4637_v6 = vpop.f32.mrb[23].mxu1 }
 0x51a   : > { %v4280_v21 = vmul.f32 -1.442695, %v1974_v50 }
 0x51b   : > { %5101 = vpow2.f32 %v4279_v54 }
 0x51c   : > { %5103 = vpow2.f32 %v4280_v21  ;;  %v6507_v21 = vld [vmem:[#allocation2 + $0x38] ss:$12 sps:$4 sm:$0xff]  }
 0x525   : > { %v5102_v27 = vpop.eup %5101 }
 0x526   : > { %v1967_v4 = vadd.f32 1.0, %v5102_v27  ;;  %v5104_v33 = vpop.eup %5103 }
 0x527   : > { %v1978_v43 = vadd.f32 1.0, %v5104_v33 }
 0x528   : > { %5105 = vrcp.f32 %v1967_v4 }
 0x529   : > { %5107 = vrcp.f32 %v1978_v43  ;;  %v2096_v43 = vunpack.c.l.bf16 %v6507_v21 }
 0x532   : > { %v5106_v39 = vpop.eup %5105 }
 0x533   : > { %v1982_v14 = vmul.f32 %v5106_v39, %v1981_v36  ;;  %v5108_v7 = vpop.eup %5107 }
 0x534   : > { %v1986_v32 = vsub.f32 1.0, %v5108_v7  ;;  %v1988_v17 = vmul.f32 %v5108_v7, %v6332_v31  ;;  %v6474_v31 = vld [vmem:[%s7274_s3 + $0x7c] ss:$12 sps:$4 sm:$0xff]  }
 0x535   : > { %v1984_v5 = vadd.f32 %v1983_v1, %v1982_v14 }
 0x537   : > { %5109 = vtanh.f32 %v1984_v5 }
 0x541   : > { %v5110_v9 = vpop.eup %5109 }
 0x542   : > { %v1987_v10 = vmul.f32 %v5110_v9, %v1986_v32 }
 0x544   : > { %v6396_v28 = vadd.f32 %v1988_v17, %v1987_v10  ;;  %v6539_v10 = vld [vmem:[%s7274_s3 + $0x68] ss:$12 sps:$4 sm:$0xff]   ;;  %v6548_v17 = vld [vmem:[%s7274_s3 + $0x80] ss:$12 sps:$4 sm:$0xff]  }
 0x546   : > { %v1993_v12 = vpack.c.bf16 %v6396_v28, %v6396_v28 }
 0x548   : > { %2027 = vmatmul.mubr.bf16.vlgmr.msra.gmra.mrb[32].mxu0 %v1993_v12  ;;  %4655 = vmatmul.mubr.bf16.vlgmr.msra.gmra.mrb[24].mxu1 %v1993_v12  ;;  %v6563_v12 = vld [vmem:[%s7274_s3 + $0xac] ss:$12 sps:$4 sm:$0xff]  }
 0x549   : > { %2108 = vmatpush1.bf16.msra.mxu0 %v6339_v35  ;;  %4659 = vmatpush3.bf16.msra.mxu1 %v6404_v16 }
 0x54a   : > { %2109 = vmatprep.subr.bf16.mxu0 %v6346_v29  ;;  %4660 = vmatprep.subr.bf16.mxu1 %v5541_v44 }
 0x54b   : > { %2139 = vmatprep.mubr.bf16.mxu0 %v5540_v8  ;;  %4674 = vmatprep.mubr.msk.bf16.mxu1 %vm5542_vm0, %v5541_v44 }
 0x54d   : > { %2110 = vmatpush1.bf16.msra.mxu0 %v6356_v37  ;;  %4661 = vmatpush3.bf16.msra.mxu1 %v6416_v15 }
 0x54e   : > { %2111 = vmatprep.subr.bf16.mxu0 %v6422_v18  ;;  %4662 = vmatprep.subr.bf16.mxu1 %v5541_v44 }
 0x551   : > { %2112 = vmatpush1.bf16.msra.mxu0 %v6429_v19  ;;  %4663 = vmatpush3.bf16.msra.mxu1 %v6435_v20 }
 0x552   : > { %2113 = vmatprep.subr.bf16.mxu0 %v6441_v23  ;;  %4664 = vmatprep.subr.bf16.mxu1 %v5541_v44 }
 0x555   : > { %2114 = vmatpush1.bf16.msra.mxu0 %v6448_v24  ;;  %4665 = vmatpush3.bf16.msra.mxu1 %v6454_v25 }
 0x556   : > { %2115 = vmatprep.subr.bf16.mxu0 %v6460_v26  ;;  %4666 = vmatprep.subr.bf16.mxu1 %v5541_v44 }
 0x559   : > { %2116 = vmatpush1.bf16.msra.mxu0 %v6467_v3  ;;  %4667 = vmatpush3.bf16.msra.mxu1 %v6104_v57  ;;  %v6488_v57 = vld [vmem:[%s7274_s3 + $0x94] ss:$12 sps:$4 sm:$0xff]  }
 0x55a   : > { %2117 = vmatprep.subr.bf16.mxu0 %v6474_v31  ;;  %4668 = vmatprep.subr.bf16.mxu1 %v5541_v44 }
 0x55d   : > { %2118 = vmatpush1.bf16.msra.mxu0 %v6481_v34  ;;  %4669 = vmatpush3.bf16.msra.mxu1 %v6119_v59  ;;  %v2084_v59 = vrot.slane %v6220_v22, 4 }
 0x55e   : > { %2119 = vmatprep.subr.bf16.mxu0 %v6488_v57  ;;  %4670 = vmatprep.subr.bf16.mxu1 %v5541_v44 }
 0x55f   : > { %v2086_v46 = vunpack.c.l.bf16 %v2084_v59  ;;  %v6570_v59 = vld [vmem:[%s7274_s3 + $0xa8] ss:$12 sps:$4 sm:$0xff]  }
 0x561   : > { %2120 = vmatpush1.bf16.msra.mxu0 %v6495_v40  ;;  %4671 = vmatpush3.bf16.msra.mxu1 %v6128_v60 }
 0x562   : > { %2121 = vmatprep.subr.bf16.mxu0 %v6097_v56  ;;  %4672 = vmatprep.subr.bf16.mxu1 %v5541_v44 }
 0x565   : > { %2122 = vmatpush1.bf16.msra.mxu0 %v6110_v58  ;;  %4673 = vmatpush3.bf16.msra.mxu1 %v6137_v61 }
 0x566   : > { %2220 = vmatprep.subr.bf16.mxu0 %v6387_v38  ;;  %4678 = vmatprep.subr.bf16.mxu1 %v5541_v44 }
 0x61b   : > { %v2028_v42 = vpop.f32.mrb[32].mxu0  ;;  %v2069_v45 = vpop.f32.mrb[24].mxu1 }
 0x61c   : > { %v2076_v60 = vadd.f32 %v2075_v41, %v2028_v42  ;;  %v2030_v47 = vpop.f32.mrb[33].mxu0  ;;  %v4656_v56 = vpop.f32.mrb[25].mxu1  ;;  %v2094_v27 = vadd.f32 %v6236_v51, %v2069_v45  ;;  %v6576_v41 = vld [vmem:[%s7274_s3 + $0xb0] ss:$12 sps:$4 sm:$0xff]   ;;  %v2197_v42 = vrot.slane %v6223_v30, 4  ;;  %v2188_v45 = vunpack.c.l.bf16 %v6223_v30 }
 0x61d   : > { %v2087_v48 = vadd.f32 %v2086_v46, %v2030_v47  ;;  %v2032_v49 = vpop.f32.mrb[34].mxu0  ;;  %v2072_v50 = vpop.f32.mrb[26].mxu1 }
 0x61e   : > { %v4281_v58 = vmul.f32 -1.442695, %v2076_v60  ;;  %v2033_v52 = vpop.f32.mrb[35].mxu0  ;;  %v4657_v61 = vpop.f32.mrb[27].mxu1  ;;  %v2199_v47 = vunpack.c.l.bf16 %v2197_v42 }
 0x61f   : > { %v4282_v53 = vmul.f32 -1.442695, %v2087_v48 }
 0x620   : > { %5111 = vpow2.f32 %v4281_v58 }
 0x621   : > { %5113 = vpow2.f32 %v4282_v53 }
 0x62a   : > { %v5112_v54 = vpop.eup %5111 }
 0x62b   : > { %v2080_v55 = vadd.f32 1.0, %v5112_v54  ;;  %v5114_v6 = vpop.eup %5113 }
 0x62c   : > { %v2091_v22 = vadd.f32 1.0, %v5114_v6 }
 0x62d   : > { %5115 = vrcp.f32 %v2080_v55 }
 0x62e   : > { %5117 = vrcp.f32 %v2091_v22 }
 0x637   : > { %v5116_v4 = vpop.eup %5115 }
 0x638   : > { %v2095_v33 = vmul.f32 %v5116_v4, %v2094_v27  ;;  %v5118_v39 = vpop.eup %5117 }
 0x639   : > { %v2099_v14 = vsub.f32 1.0, %v5118_v39  ;;  %v2101_v7 = vmul.f32 %v5118_v39, %v6396_v28  ;;  %v6557_v28 = vld [vmem:[%s7274_s3 + $0x98] ss:$12 sps:$4 sm:$0xff]  }
 0x63a   : > { %v2097_v36 = vadd.f32 %v2096_v43, %v2095_v33  ;;  %v2209_v43 = vunpack.c.h.bf16 %v6507_v21 }
 0x63c   : > { %5119 = vtanh.f32 %v2097_v36 }
 0x646   : > { %v5120_v1 = vpop.eup %5119 }
 0x647   : > { %v2100_v5 = vmul.f32 %v5120_v1, %v2099_v14 }
 0x649   : > { %v6512_v32 = vadd.f32 %v2101_v7, %v2100_v5 }
 0x64b   : > { %v2106_v9 = vpack.c.bf16 %v6512_v32, %v6512_v32 }
 0x64d   : > { %2140 = vmatmul.mubr.bf16.vlgmr.msra.gmra.mrb[36].mxu0 %v2106_v9  ;;  %4675 = vmatmul.mubr.bf16.vlgmr.msra.gmra.mrb[28].mxu1 %v2106_v9 }
 0x64e   : > { %2221 = vmatpush1.bf16.msra.mxu0 %v6339_v35  ;;  %4679 = vmatpush3.bf16.msra.mxu1 %v6404_v16 }
 0x64f   : > { %2222 = vmatprep.subr.bf16.mxu0 %v6346_v29  ;;  %4680 = vmatprep.subr.bf16.mxu1 %v5541_v44 }
 0x650   : > { %2252 = vmatprep.mubr.bf16.mxu0 %v5540_v8  ;;  %4694 = vmatprep.mubr.msk.bf16.mxu1 %vm5542_vm0, %v5541_v44 }
 0x652   : > { %2223 = vmatpush1.bf16.msra.mxu0 %v6356_v37  ;;  %4681 = vmatpush3.bf16.msra.mxu1 %v6416_v15 }
 0x653   : > { %2224 = vmatprep.subr.bf16.mxu0 %v6422_v18  ;;  %4682 = vmatprep.subr.bf16.mxu1 %v5541_v44 }
 0x656   : > { %2225 = vmatpush1.bf16.msra.mxu0 %v6429_v19  ;;  %4683 = vmatpush3.bf16.msra.mxu1 %v6435_v20 }
 0x657   : > { %2226 = vmatprep.subr.bf16.mxu0 %v6441_v23  ;;  %4684 = vmatprep.subr.bf16.mxu1 %v5541_v44 }
 0x65a   : > { %2227 = vmatpush1.bf16.msra.mxu0 %v6448_v24  ;;  %4685 = vmatpush3.bf16.msra.mxu1 %v6454_v25 }
 0x65b   : > { %2228 = vmatprep.subr.bf16.mxu0 %v6460_v26  ;;  %4686 = vmatprep.subr.bf16.mxu1 %v5541_v44 }
 0x65e   : > { %2229 = vmatpush1.bf16.msra.mxu0 %v6467_v3  ;;  %4687 = vmatpush3.bf16.msra.mxu1 %v6539_v10 }
 0x65f   : > { %2230 = vmatprep.subr.bf16.mxu0 %v6474_v31  ;;  %4688 = vmatprep.subr.bf16.mxu1 %v5541_v44 }
 0x662   : > { %2231 = vmatpush1.bf16.msra.mxu0 %v6481_v34  ;;  %4689 = vmatpush3.bf16.msra.mxu1 %v6548_v17 }
 0x663   : > { %2232 = vmatprep.subr.bf16.mxu0 %v6488_v57  ;;  %4690 = vmatprep.subr.bf16.mxu1 %v5541_v44 }
 0x666   : > { %2233 = vmatpush1.bf16.msra.mxu0 %v6495_v40  ;;  %4691 = vmatpush3.bf16.msra.mxu1 %v6557_v28 }
 0x667   : > { %2234 = vmatprep.subr.bf16.mxu0 %v6563_v12  ;;  %4692 = vmatprep.subr.bf16.mxu1 %v5541_v44 }
 0x66a   : > { %2235 = vmatpush1.bf16.msra.mxu0 %v6570_v59  ;;  %4693 = vmatpush3.bf16.msra.mxu1 %v6576_v41 }
 0x66b   : > { %2333 = vmatprep.subr.bf16.mxu0 %v6387_v38  ;;  %4698 = vmatprep.subr.bf16.mxu1 %v5541_v44 }
 0x720   : > { %v2141_v46 = vpop.f32.mrb[36].mxu0  ;;  %v2182_v60 = vpop.f32.mrb[28].mxu1 }
 0x721   : > { %v2189_v56 = vadd.f32 %v2188_v45, %v2141_v46  ;;  %v2143_v48 = vpop.f32.mrb[37].mxu0  ;;  %v4676_v49 = vpop.f32.mrb[29].mxu1  ;;  %v2207_v27 = vadd.f32 %v6236_v51, %v2182_v60 }
 0x722   : > { %v2200_v50 = vadd.f32 %v2199_v47, %v2143_v48  ;;  %v2145_v58 = vpop.f32.mrb[38].mxu0  ;;  %v2185_v52 = vpop.f32.mrb[30].mxu1 }
 0x723   : > { %v4283_v61 = vmul.f32 -1.442695, %v2189_v56  ;;  %v2146_v53 = vpop.f32.mrb[39].mxu0  ;;  %v4677_v54 = vpop.f32.mrb[31].mxu1  ;;  %v4994_v58 = vld [vmem:[%s7277_s7 + $0x18] sm:$0xff]   ;;  %v4995_v52 = vld [vmem:[%s7277_s7 + $0x20] sm:$0xff]  }
 0x724   : > { %v4284_v38 = vmul.f32 -1.442695, %v2200_v50  ;;  %v4993_v50 = vld [vmem:[%s7277_s7 + $0x10] sm:$0xff]   ;;  %v4998_v54 = vld [vmem:[%s7277_s7 + $0x38] sm:$0xff]  }
 0x725   : > { %5121 = vpow2.f32 %v4283_v61  ;;  %v4996_v61 = vld [vmem:[%s7277_s7 + $0x28] sm:$0xff]   ;;  %v4997_v53 = vld [vmem:[%s7277_s7 + $0x30] sm:$0xff]  }
 0x726   : > { %5123 = vpow2.f32 %v4284_v38  ;;  %v6668_v38 = vld [vmem:[%s6665_s29] sm:$0xff]  }
 0x72f   : > { %v5122_v55 = vpop.eup %5121 }
 0x730   : > { %v2193_v6 = vadd.f32 1.0, %v5122_v55  ;;  %v5124_v22 = vpop.eup %5123  ;;  %v6672_v55 = vld [vmem:[%s6665_s29 + $0x8] sm:$0xff]  }
 0x731   : > { %v2204_v30 = vadd.f32 1.0, %v5124_v22  ;;  %v5002_v22 = vld [vmem:[%s7195_s12] sm:$0xff]  }
 0x732   : > { %5125 = vrcp.f32 %v2193_v6  ;;  %v5001_v6 = vld [vmem:[%s7279_s8] sm:$0xff]  }
 0x733   : > { %5127 = vrcp.f32 %v2204_v30  ;;  %v5003_v30 = vld [vmem:[%s7279_s8 + $0x8] sm:$0xff]  }
 0x73c   : > { %v5126_v4 = vpop.eup %5125 }
 0x73d   : > { %v2208_v33 = vmul.f32 %v5126_v4, %v2207_v27  ;;  %v5128_v39 = vpop.eup %5127  ;;  %v5004_v27 = vld [vmem:[%s7195_s12 + $0x8] sm:$0xff]   ;;  %v5005_v4 = vld [vmem:[%s7279_s8 + $0x10] sm:$0xff]  }
 0x73e   : > { %v2212_v14 = vsub.f32 1.0, %v5128_v39  ;;  %v2214_v7 = vmul.f32 %v5128_v39, %v6512_v32  ;;  %v5009_v39 = vld [vmem:[%s7279_s8 + $0x20] sm:$0xff]  }
 0x73f   : > { %v2210_v36 = vadd.f32 %v2209_v43, %v2208_v33  ;;  %v5006_v33 = vld [vmem:[%s7195_s12 + $0x10] sm:$0xff]   ;;  %v5007_v43 = vld [vmem:[%s7279_s8 + $0x18] sm:$0xff]  }
 0x741   : > { %5129 = vtanh.f32 %v2210_v36  ;;  %v5008_v36 = vld [vmem:[%s7195_s12 + $0x18] sm:$0xff]  }
 0x74b   : > { %v5130_v1 = vpop.eup %5129 }
 0x74c   : > { %v2213_v5 = vmul.f32 %v5130_v1, %v2212_v14  ;;  %v5010_v14 = vld [vmem:[%s7195_s12 + $0x20] sm:$0xff]   ;;  %v6715_v1 = vld [vmem:[%s6665_s29 + $0x10] sm:$0xff]  }
 0x74e   : > { %v6586_v9 = vadd.f32 %v2214_v7, %v2213_v5  ;;  %v6718_v5 = vld [vmem:[%s6665_s29 + $0x18] sm:$0xff]   ;;  %v5011_v7 = vld [vmem:[%s7279_s8 + $0x28] sm:$0xff]   ;;  %s5366_s29 = sshll.u32 %s5544_s0, 4  ;;  %s5367_s29 = int_to_ptr.vmem [resolvable:$false] %s5366_s29 }
 0x74f   : > { %p5369_p3 = scmp.lt.s32.totalorder %s7053_s22, %s5367_s29 }
 0x750   : > { %v2219_v42 = vpack.c.bf16 %v6586_v9, %v6586_v9 }
 0x752   : > { %2253 = vmatmul.mubr.bf16.vlgmr.msra.gmra.mrb[40].mxu0 %v2219_v42  ;;  %4695 = vmatmul.mubr.bf16.vlgmr.msra.gmra.mrb[32].mxu1 %v2219_v42  ;;  %v5015_v42 = vld [vmem:[%s7279_s8 + $0x30] sm:$0xff]  }
 0x753   : > { %2334 = vmatpush1.bf16.msra.mxu0 %v6339_v35  ;;  %4699 = vmatpush3.bf16.msra.mxu1 %v6404_v16  ;;  %v4991_v35 = vld [vmem:[%s7277_s7] sm:$0xff]  }
 0x754   : > { %2335 = vmatprep.subr.bf16.mxu0 %v6346_v29  ;;  %4700 = vmatprep.subr.bf16.mxu1 %v5541_v44  ;;  %v2310_v29 = vrot.slane %v6228_v11, 4 }
 0x755   : > { %2365 = vmatprep.mubr.bf16.mxu0 %v5540_v8  ;;  %4714 = vmatprep.mubr.msk.bf16.mxu1 %vm5542_vm0, %v5541_v44 }
 0x757   : > { %2336 = vmatpush1.bf16.msra.mxu0 %v6356_v37  ;;  %4701 = vmatpush3.bf16.msra.mxu1 %v6416_v15  ;;  %v2301_v37 = vunpack.c.l.bf16 %v6228_v11 }
 0x758   : > { %2337 = vmatprep.subr.bf16.mxu0 %v6422_v18  ;;  %4702 = vmatprep.subr.bf16.mxu1 %v5541_v44  ;;  %v2312_v18 = vunpack.c.l.bf16 %v2310_v29  ;;  %v5017_v29 = vld [vmem:[%s7279_s8 + $0x38] sm:$0xff]   ;;  %s5368_s8 = scalar_lea.vmem %s5367_s29, 256 }
 0x75b   : > { %2338 = vmatpush1.bf16.msra.mxu0 %v6429_v19  ;;  %4703 = vmatpush3.bf16.msra.mxu1 %v6435_v20 }
 0x75c   : > { %2339 = vmatprep.subr.bf16.mxu0 %v6441_v23  ;;  %4704 = vmatprep.subr.bf16.mxu1 %v5541_v44 }
 0x75f   : > { %2340 = vmatpush1.bf16.msra.mxu0 %v6448_v24  ;;  %4705 = vmatpush3.bf16.msra.mxu1 %v6454_v25 }
 0x760   : > { %2341 = vmatprep.subr.bf16.mxu0 %v6460_v26  ;;  %4706 = vmatprep.subr.bf16.mxu1 %v5541_v44 }
 0x763   : > { %2342 = vmatpush1.bf16.msra.mxu0 %v6467_v3  ;;  %4707 = vmatpush3.bf16.msra.mxu1 %v6539_v10  ;;  %v6629_v10 = vld [vmem:[#allocation2 + $0x50] ss:$12 sps:$4 sm:$0xff]  }
 0x764   : > { %2343 = vmatprep.subr.bf16.mxu0 %v6474_v31  ;;  %4708 = vmatprep.subr.bf16.mxu1 %v5541_v44 }
 0x767   : > { %2344 = vmatpush1.bf16.msra.mxu0 %v6481_v34  ;;  %4709 = vmatpush3.bf16.msra.mxu1 %v6548_v17 }
 0x768   : > { %2345 = vmatprep.subr.bf16.mxu0 %v6488_v57  ;;  %4710 = vmatprep.subr.bf16.mxu1 %v5541_v44 }
 0x76b   : > { %2346 = vmatpush1.bf16.msra.mxu0 %v6495_v40  ;;  %4711 = vmatpush3.bf16.msra.mxu1 %v6557_v28 }
 0x76c   : > { %2347 = vmatprep.subr.bf16.mxu0 %v6563_v12  ;;  %4712 = vmatprep.subr.bf16.mxu1 %v5541_v44 }
 0x76f   : > { %2348 = vmatpush1.bf16.msra.mxu0 %v6570_v59  ;;  %4713 = vmatpush3.bf16.msra.mxu1 %v6576_v41  ;;  %v2322_v59 = vunpack.c.l.bf16 %v6629_v10 }
 0x770   : > { %4742 = vmatprep.subr.bf16.mxu1 %v5541_v44  ;;  %4718 = vmatprep.subr.bf16.mxu0 %v4991_v35 }
 0x825   : > { %v2254_v16 = vpop.f32.mrb[40].mxu0  ;;  %v2295_v15 = vpop.f32.mrb[32].mxu1 }
 0x826   : > { %v2302_v19 = vadd.f32 %v2301_v37, %v2254_v16  ;;  %v2256_v20 = vpop.f32.mrb[41].mxu0  ;;  %v4696_v23 = vpop.f32.mrb[33].mxu1  ;;  %v2320_v17 = vadd.f32 %v6236_v51, %v2295_v15  ;;  %v4992_v51 = vld [vmem:[%s7277_s7 + $0x8] sm:$0xff]   ;;  %v5018_v37 = vld [vmem:[%s7195_s12 + $0x38] sm:$0xff]   ;;  %s5362_s7 = scalar_lea.vmem %s7053_s22, 128 }
 0x827   : > { %v2313_v24 = vadd.f32 %v2312_v18, %v2256_v20  ;;  %v2258_v25 = vpop.f32.mrb[42].mxu0  ;;  %v2298_v26 = vpop.f32.mrb[34].mxu1  ;;  %v2330_v16 = vld [vmem:[#allocation2 + $0x54] sm:$0xff]  ;;  %p5363_p9 = scmp.ne.s32.totalorder %s7053_s22, %s5362_s7  ;;  %p5370_p6 = scmp.lt.s32.totalorder %s5368_s8, %s5362_s7 }
 0x828   : > { %v4285_v3 = vmul.f32 -1.442695, %v2302_v19  ;;  %v2259_v31 = vpop.f32.mrb[43].mxu0  ;;  %v4697_v34 = vpop.f32.mrb[35].mxu1  ;;  %v2423_v15 = vrot.slane %v2330_v16, 4  ;;  %v2414_v18 = vunpack.c.l.bf16 %v2330_v16 }
 0x829   : > { %v4286_v57 = vmul.f32 -1.442695, %v2313_v24  ;;  %p5364_p2 = pnand %p5363_p9, %p7283_p13  ;;  %p5371_p5 = por %p5370_p6, %p5369_p3 }
 0x82a   : > { %5131 = vpow2.f32 %v4285_v3  ;;  %v2425_v26 = vunpack.c.l.bf16 %v2423_v15 }
 0x82b   : > { %5133 = vpow2.f32 %v4286_v57  ;;  %p5365_p0 = pneg %p5364_p2 }
 0x82d   : > { %p5372_p10 = pnand %p5371_p5, %p5365_p0 }
 0x834   : > { %v5132_v40 = vpop.eup %5131 }
 0x835   : > { %v2306_v21 = vadd.f32 1.0, %v5132_v40  ;;  %v5134_v32 = vpop.eup %5133 }
 0x836   : > { %v2317_v11 = vadd.f32 1.0, %v5134_v32 }
 0x837   : > { %5135 = vrcp.f32 %v2306_v21 }
 0x838   : > { %5137 = vrcp.f32 %v2317_v11 }
 0x841   : > { %v5136_v28 = vpop.eup %5135 }
 0x842   : > { %v2321_v12 = vmul.f32 %v5136_v28, %v2320_v17  ;;  %v5138_v45 = vpop.eup %5137 }
 0x843   : > { %v2325_v46 = vsub.f32 1.0, %v5138_v45  ;;  %v2327_v56 = vmul.f32 %v5138_v45, %v6586_v9  ;;  %v5012_v9 = vld [vmem:[%s7195_s12 + $0x28] sm:$0xff]  }
 0x844   : > { %v2323_v41 = vadd.f32 %v2322_v59, %v2321_v12  ;;  %v5193_v59 = vld [vmem:[%s7276_s9] ss:$0 sm:$0xff] }
 0x846   : > { %5139 = vtanh.f32 %v2323_v41 }
 0x850   : > { %v5140_v60 = vpop.eup %5139 }
 0x851   : > { %v2326_v47 = vmul.f32 %v5140_v60, %v2325_v46  ;;  %v2435_v60 = vunpack.c.h.bf16 %v6629_v10 }
 0x853   : > { %v6634_v48 = vadd.f32 %v2327_v56, %v2326_v47 }
 0x855   : > { %v2332_v49 = vpack.c.bf16 %v6634_v48, %v6634_v48 }
 0x857   : > { %2366 = vmatmul.mubr.bf16.vlgmr.msra.gmra.mrb[44].mxu0 %v2332_v49  ;;  %4715 = vmatmul.mubr.bf16.vlgmr.msra.gmra.mrb[36].mxu1 %v2332_v49 }
 0x858   : > { %4719 = vmatpush3.bf16.msra.mxu0 %v4991_v35  ;;  %4758 = vmatprep.mubr.msk.bf16.mxu1 %vm5542_vm0, %v5541_v44  ;;  %v5016_v35 = vld [vmem:[%s7195_s12 + $0x30] sm:$0xff]  }
 0x859   : > { %4720 = vmatprep.subr.bf16.mxu0 %v4992_v51  ;;  %4734 = vmatprep.mubr.bf16.mxu0 %v6668_v38 }
 0x85a   : > { %4743 = vmatpush3.bf16.msra.mxu1 %v5001_v6 }
 0x85b   : > { %4744 = vmatprep.subr.bf16.mxu1 %v5541_v44 }
 0x85c   : > { %4721 = vmatpush3.bf16.msra.mxu0 %v4992_v51 }
 0x85d   : > { %4722 = vmatprep.subr.bf16.mxu0 %v4993_v50 }
 0x85e   : > { %4745 = vmatpush3.bf16.msra.mxu1 %v5003_v30 }
 0x85f   : > { %4746 = vmatprep.subr.bf16.mxu1 %v5541_v44 }
 0x860   : > { %4723 = vmatpush3.bf16.msra.mxu0 %v4993_v50 }
 0x861   : > { %4724 = vmatprep.subr.bf16.mxu0 %v4994_v58 }
 0x862   : > { %4747 = vmatpush3.bf16.msra.mxu1 %v5005_v4 }
 0x863   : > { %4748 = vmatprep.subr.bf16.mxu1 %v5541_v44 }
 0x864   : > { %4725 = vmatpush3.bf16.msra.mxu0 %v4994_v58 }
 0x865   : > { %4726 = vmatprep.subr.bf16.mxu0 %v4995_v52 }
 0x866   : > { %4749 = vmatpush3.bf16.msra.mxu1 %v5007_v43  ;;  %v4302_v43 = vld [vmem:[#allocation8] ss:$0 sm:$0xff] }
 0x867   : > { %4750 = vmatprep.subr.bf16.mxu1 %v5541_v44 }
 0x868   : > { %4727 = vmatpush3.bf16.msra.mxu0 %v4995_v52 }
 0x869   : > { %4728 = vmatprep.subr.bf16.mxu0 %v4996_v61 }
 0x86a   : > { %4751 = vmatpush3.bf16.msra.mxu1 %v5009_v39 }
 0x86b   : > { %4752 = vmatprep.subr.bf16.mxu1 %v5541_v44 }
 0x86c   : > { %4729 = vmatpush3.bf16.msra.mxu0 %v4996_v61 }
 0x86d   : > { %4730 = vmatprep.subr.bf16.mxu0 %v4997_v53 }
 0x86e   : > { %4753 = vmatpush3.bf16.msra.mxu1 %v5011_v7 }
 0x86f   : > { %4754 = vmatprep.subr.bf16.mxu1 %v5541_v44 }
 0x870   : > { %4731 = vmatpush3.bf16.msra.mxu0 %v4997_v53 }
 0x871   : > { %4732 = vmatprep.subr.bf16.mxu0 %v4998_v54 }
 0x872   : > { %4755 = vmatpush3.bf16.msra.mxu1 %v5015_v42 }
 0x873   : > { %4756 = vmatprep.subr.bf16.mxu1 %v5541_v44 }
 0x874   : > { %4733 = vmatpush3.bf16.msra.mxu0 %v4998_v54 }
 0x875   : > { %4762 = vmatprep.subr.bf16.mxu0 %v5541_v44 }
 0x876   : > { %4757 = vmatpush3.bf16.msra.mxu1 %v5017_v29 }
 0x877   : > { %4735 = vmatmul.mubr.bf16.vlgmr.msra.gmra.mrb[48].mxu0 %v6672_v55  ;;  %4782 = vmatprep.subr.bf16.mxu1 %v5541_v44 }
 0x878   : > { %4763 = vmatpush3.bf16.msra.mxu0 %v5002_v22  ;;  %4738 = vmatprep.mubr.bf16.mxu0 %v6715_v1 }
 0x879   : > { %4764 = vmatprep.subr.bf16.mxu0 %v5541_v44 }
 0x87c   : > { %4765 = vmatpush3.bf16.msra.mxu0 %v5004_v27 }
 0x87d   : > { %4766 = vmatprep.subr.bf16.mxu0 %v5541_v44 }
 0x87f   : > { %4739 = vmatmul.mubr.bf16.gmra.mrb[52].mxu0 %v6718_v5 }
 0x880   : > { %4767 = vmatpush3.bf16.msra.mxu0 %v5006_v33  ;;  %4778 = vmatprep.mubr.msk.bf16.mxu0 %vm5542_vm0, %v5541_v44  ;;  %v5543_v33 = vmov 1966171168  }
 0x881   : > { %4768 = vmatprep.subr.bf16.mxu0 %v5541_v44 }
 0x884   : > { %4769 = vmatpush3.bf16.msra.mxu0 %v5008_v36  ;;  %v4312_v36 = vld [vmem:[#allocation10] ss:$0 sm:$0xff] }
 0x885   : > { %4770 = vmatprep.subr.bf16.mxu0 %v5541_v44 }
 0x888   : > { %4771 = vmatpush3.bf16.msra.mxu0 %v5010_v14 }
 0x889   : > { %4772 = vmatprep.subr.bf16.mxu0 %v5541_v44 }
 0x88c   : > { %4773 = vmatpush3.bf16.msra.mxu0 %v5012_v9  ;;  %v4301_v9 = vld [vmem:[#allocation5] ss:$0 sm:$0xff] }
 0x88d   : > { %4774 = vmatprep.subr.bf16.mxu0 %v5541_v44 }
 0x890   : > { %4775 = vmatpush3.bf16.msra.mxu0 %v5016_v35 }
 0x891   : > { %4776 = vmatprep.subr.bf16.mxu0 %v5541_v44 }
 0x894   : > { %4777 = vmatpush3.bf16.msra.mxu0 %v5018_v37  ;;  %v4311_v37 = vld [vmem:[%s7193_s10] ss:$0 sm:$0xff] }
 0x92a   : > { %v2367_v19 = vpop.f32.mrb[44].mxu0  ;;  %v2408_v20 = vpop.f32.mrb[36].mxu1 }
 0x92b   : > { %v2415_v23 = vadd.f32 %v2414_v18, %v2367_v19  ;;  %v2369_v24 = vpop.f32.mrb[45].mxu0  ;;  %v4716_v25 = vpop.f32.mrb[37].mxu1  ;;  %v2433_v41 = vadd.f32 %v5193_v59, %v2408_v20 }
 0x92c   : > { %v2371_v3 = vpop.f32.mrb[46].mxu0  ;;  %v2411_v31 = vpop.f32.mrb[38].mxu1  ;;  %v2426_v21 = vadd.f32 %v2425_v26, %v2369_v24 }
 0x92d   : > { %v4287_v34 = vmul.f32 -1.442695, %v2415_v23  ;;  %v2372_v57 = vpop.f32.mrb[47].mxu0  ;;  %v4717_v40 = vpop.f32.mrb[39].mxu1 }
 0x92e   : > { %v4288_v32 = vmul.f32 -1.442695, %v2426_v21 }
 0x92f   : > { %5141 = vpow2.f32 %v4287_v34 }
 0x930   : > { %5143 = vpow2.f32 %v4288_v32 }
 0x939   : > { %v5142_v11 = vpop.eup %5141 }
 0x93a   : > { %v2419_v17 = vadd.f32 1.0, %v5142_v11  ;;  %v5144_v28 = vpop.eup %5143 }
 0x93b   : > { %v2430_v12 = vadd.f32 1.0, %v5144_v28 }
 0x93c   : > { %5145 = vrcp.f32 %v2419_v17 }
 0x93d   : > { %5147 = vrcp.f32 %v2430_v12 }
 0x946   : > { %v5146_v45 = vpop.eup %5145 }
 0x947   : > { %v2434_v46 = vmul.f32 %v5146_v45, %v2433_v41  ;;  %v5148_v56 = vpop.eup %5147 }
 0x948   : > { %v2438_v49 = vsub.f32 1.0, %v5148_v56  ;;  %v2440_v58 = vmul.f32 %v5148_v56, %v6634_v48  ;;  %v2758_v48 = vunpack.c.l.s4 %v5543_v33 }
 0x949   : > { %v2436_v47 = vadd.f32 %v2435_v60, %v2434_v46 }
 0x94a   : > { %v4736_v10 = vpop.f32.mrb[48].mxu0  ;;  %v2759_v39 = vunpack.c.0.s8 %v2758_v48 }
 0x94b   : > { %5149 = vtanh.f32 %v2436_v47  ;;  %v2581_v53 = vpop.f32.mrb[49].mxu0  ;;  %v2621_v3 = vadd.f32 %v4736_v10, %v4301_v9 }
 0x94c   : > { %v4737_v54 = vpop.f32.mrb[50].mxu0  ;;  %v2762_v19 = vsub.s32 %v2759_v39, %v6180_v63  ;;  %v2619_v25 = vadd.f32 %v4301_v9, %v2581_v53 }
 0x94d   : > { %v2584_v6 = vpop.f32.mrb[51].mxu0  ;;  %v2622_v31 = vadd.f32 %v4737_v54, %v4301_v9  ;;  %v2629_v59 = vmax.f32 %v2621_v3, 0.0 }
 0x94e   : > { %v2620_v40 = vadd.f32 %v4301_v9, %v2584_v6  ;;  %v2627_v11 = vmax.f32 %v2619_v25, 0.0 }
 0x94f   : > { %v2630_v41 = vmax.f32 %v2622_v31, 0.0 }
 0x952   : > { %v4740_v22 = vpop.f32.mrb[52].mxu0 }
 0x953   : > { %v2597_v30 = vpop.f32.mrb[53].mxu0  ;;  %v2625_v21 = vadd.f32 %v4740_v22, %v4301_v9 }
 0x954   : > { %v4741_v27 = vpop.f32.mrb[54].mxu0  ;;  %v2623_v32 = vadd.f32 %v4301_v9, %v2597_v30 }
 0x955   : > { %v5150_v51 = vpop.eup %5149  ;;  %v2600_v4 = vpop.f32.mrb[55].mxu0  ;;  %v2626_v45 = vadd.f32 %v4741_v27, %v4301_v9 }
 0x956   : > { %v2439_v50 = vmul.f32 %v5150_v51, %v2438_v49  ;;  %v2624_v46 = vadd.f32 %v4301_v9, %v2600_v4  ;;  %v2628_v51 = vmax.f32 %v2620_v40, 0.0 }
 0x957   : > { %v2634_v4 = vmax.f32 %v2626_v45, 0.0 }
 0x958   : > { %v2441_v52 = vadd.f32 %v2440_v58, %v2439_v50  ;;  %v2633_v50 = vmax.f32 %v2625_v21, 0.0  ;;  %v2631_v58 = vmax.f32 %v2623_v32, 0.0  ;;  %v2632_v6 = vmax.f32 %v2624_v46, 0.0 }
 0x95a   : > { %v2458_v61 = vpack.c.bf16 %v2441_v52, %v2441_v52 }
 0x95c   : > { %4759 = vmatmul.mubr.bf16.vlgmr.msra.gmra.mrb[40].mxu1 %v2458_v61  ;;  %4779 = vmatmul.mubr.bf16.vlgmr.msra.gmra.mrb[56].mxu0 %v2458_v61 }
 0x95d   : > { %4798 = vmatprep.mubr.msk.bf16.mxu1 %vm5542_vm0, %v5541_v44  ;;  %3625 = vmatprep.mubr.bf16.mxu0 %v5540_v8 }
 0xa2f   : > { %v2740_v14 = vpop.f32.mrb[40].mxu1  ;;  %v3331_v7 = vpop.f32.mrb[56].mxu0 }
 0xa30   : > { %v2741_v8 = vadd.f32 %v4302_v43, %v2740_v14  ;;  %v6760_v42 = vadd.f32 %v4312_v36, %v3331_v7  ;;  %v4760_v35 = vpop.f32.mrb[41].mxu1  ;;  %v4780_v29 = vpop.f32.mrb[57].mxu0 }
 0xa31   : > { %v2743_v16 = vpop.f32.mrb[42].mxu1  ;;  %v3334_v15 = vpop.f32.mrb[58].mxu0 }
 0xa32   : > { %v2746_v18 = vmax.f32 %v2741_v8, 0.0  ;;  %v3337_v20 = vmax.f32 %v6760_v42, 0.0  ;;  %v4761_v23 = vpop.f32.mrb[43].mxu1  ;;  %v4781_v24 = vpop.f32.mrb[59].mxu0  ;;  %v2888_v16 = vand.u32 127, %v948_v62  ;;  %v2870_v15 = vstv %s2869_s2  ;;  %v5066_v42 = vld [vmem:[%s7201_s18 + $0x38] sm:$0xff]  }
 0xa33   : > { %s7281_s2 = sld [smem:[#allocation46_spill]] }
 0xa34   : > { %v2754_v26 = vmul.f32 %v4311_v37, %v2746_v18  ;;  %3879 = vst [vmem:[%s7227_s23] sm:$0xff] %v3337_v20  ;;  %v6782_v23 = vsub.s32 %v2888_v16, %v6180_v63  ;;  %s7282_s23 = sld [smem:[#allocation47_spill]] }
 0xa36   : > { %v2756_v34 = vcombine.high %v2754_v26, %v2754_v26  ;;  %v2763_v57 = vrot.slane %v2754_v26, %v2762_v19 }
 0xa38   : > { %v2770_v17 = vrot.slane %v2756_v34, %v2762_v19  ;;  %v2771_v28 = vcombine.high %v2763_v57, %v2763_v57  ;;  %v2779_v12 = vrot.slane %v2763_v57, %v2762_v19 }
 0xa39   : > { %s7051_s6 = scalar_lea.hbm %s7281_s2, %s7042_s26 }
 0xa3a   : > { %v2808_v60 = vrot.slane %v2779_v12, %v6183_v0  ;;  %v2801_v47 = vcombine.high %v2779_v12, %v2779_v12  ;;  %v2793_v56 = vrot.slane %v2771_v28, %v2762_v19  ;;  %v2786_v49 = vrot.slane %v2770_v17, %v2762_v19  ;;  %s7060_s3 = scalar_lea.hbm %s7282_s23, %s7042_s26 }
 0xa3b   : > { %v2772_v52 = vcombine.high %v2770_v17, %v2770_v17 }
 0xa3c   : > { %v2845_v61 = vmul.f32 %v2808_v60, %v2627_v11  ;;  %v2816_v10 = vrot.slane %v2801_v47, %v6183_v0  ;;  %v2812_v53 = vrot.slane %v2793_v56, %v6183_v0  ;;  %v2803_v54 = vcombine.high %v2793_v56, %v2793_v56 }
 0xa3d   : > { %v2824_v22 = vrot.slane %v2786_v49, %v6183_v0  ;;  %v2800_v30 = vrot.slane %v2772_v52, %v2762_v19  ;;  %v2802_v27 = vcombine.high %v2786_v49, %v2786_v49 }
 0xa3e   : > { %2853 = vadd.xlane.f32.xlu0 %v2845_v61  ;;  %v2847_v33 = vmul.f32 %v2816_v10, %v2629_v59  ;;  %v2846_v48 = vmul.f32 %v2812_v53, %v2628_v51  ;;  %v2820_v43 = vrot.slane %v2803_v54, %v6183_v0  ;;  %v2955_v54 = vsub.s32 3, %v6180_v63 }
 0xa3f   : > { %v2849_v36 = vmul.f32 %v2824_v22, %v2631_v58  ;;  %v2828_v39 = vrot.slane %v2800_v30, %v6183_v0  ;;  %v2832_v14 = vrot.slane %v2802_v27, %v6183_v0  ;;  %v2804_v7 = vcombine.high %v2800_v30, %v2800_v30 }
 0xa40   : > { %2857 = vadd.xlane.f32.xlu1 %v2847_v33  ;;  %v2848_v9 = vmul.f32 %v2820_v43, %v2630_v41 }
 0xa41   : > { %v2850_v8 = vmul.f32 %v2828_v39, %v2632_v6  ;;  %v2851_v35 = vmul.f32 %v2832_v14, %v2633_v50  ;;  %v2836_v29 = vrot.slane %v2804_v7, %v6183_v0  ;;  %v2963_v7 = vsub.s32 5, %v6180_v63 }
 0xa42   : > { %2855 = vadd.xlane.f32.xlu0 %v2846_v48 }
 0xa43   : > { %v2852_v37 = vmul.f32 %v2836_v29, %v2634_v4  ;;  %v2959_v4 = vsub.s32 4, %v6180_v63  ;;  %v2967_v29 = vsub.s32 6, %v6180_v63 }
 0xa44   : > { %2859 = vadd.xlane.f32.xlu1 %v2848_v9 }
 0xa46   : > { %2861 = vadd.xlane.f32.xlu0 %v2849_v36 }
 0xa48   : > { %2863 = vadd.xlane.f32.xlu1 %v2850_v8 }
 0xa4a   : > { %2865 = vadd.xlane.f32.xlu0 %v2851_v35 }
 0xa4c   : > { %2867 = vadd.xlane.f32.xlu1 %v2852_v37 }
 0xacb   : > { %v2854_v18 = vpop.xlane.xlu0 %2853 }
 0xacc   : > { %v2871_v24 = vadd.f32 %v2870_v15, %v2854_v18  ;;  %v2971_v18 = vsub.s32 7, %v6180_v63  ;;  %v5021_v63 = vld [vmem:[%s7197_s14 + $0x10] sm:$0xff]  }
 0xacd   : > { %v2858_v19 = vpop.xlane.xlu1 %2857 }
 0xace   : > { %v2873_v25 = vadd.f32 %v2870_v15, %v2858_v19  ;;  %v2892_v34 = vrot.slane %v2871_v24, %v6782_v23 }
 0xacf   : > { %v2856_v26 = vpop.xlane.xlu0 %2855 }
 0xad0   : > { %v2872_v3 = vadd.f32 %v2870_v15, %v2856_v26  ;;  %v2900_v62 = vrot.slane %v2873_v25, %v6782_v23 }
 0xad1   : > { %v2860_v31 = vpop.xlane.xlu1 %2859 }
 0xad2   : > { %v2896_v57 = vrot.slane %v2872_v3, %v6782_v23  ;;  %v2874_v40 = vadd.f32 %v2870_v15, %v2860_v31 }
 0xad3   : > { %v2862_v21 = vpop.xlane.xlu0 %2861 }
 0xad4   : > { %v2922_v32 = vsel %vm2921_vm1, %v2896_v57, %v2892_v34  ;;  %v2904_v11 = vrot.slane %v2874_v40, %v6782_v23  ;;  %v2875_v17 = vadd.f32 %v2870_v15, %v2862_v21 }
 0xad5   : > { %v2924_v28 = vsel %vm2923_vm2, %v2900_v62, %v2922_v32  ;;  %v2864_v12 = vpop.xlane.xlu1 %2863 }
 0xad6   : > { %v2926_v59 = vsel %vm2925_vm3, %v2904_v11, %v2924_v28  ;;  %v2908_v41 = vrot.slane %v2875_v17, %v6782_v23  ;;  %v2876_v45 = vadd.f32 %v2870_v15, %v2864_v12 }
 0xad7   : > { %v2866_v46 = vpop.xlane.xlu0 %2865 }
 0xad8   : > { %v2928_v60 = vsel %vm2927_vm4, %v2908_v41, %v2926_v59  ;;  %v2912_v47 = vrot.slane %v2876_v45, %v6782_v23  ;;  %v2877_v56 = vadd.f32 %v2870_v15, %v2866_v46 }
 0xad9   : > { %v2868_v49 = vpop.xlane.xlu1 %2867 }
 0xada   : > { %v2916_v51 = vrot.slane %v2877_v56, %v6782_v23  ;;  %v2878_v50 = vadd.f32 %v2870_v15, %v2868_v49  ;;  %v2930_v58 = vsel %vm2929_vm5, %v2912_v47, %v2928_v60 }
 0xadc   : > { %v2920_v52 = vrot.slane %v2878_v50, %v6782_v23  ;;  %v2932_v61 = vsel %vm2931_vm6, %v2916_v51, %v2930_v58 }
 0xade   : > { %v2934_v10 = vsel %vm2933_vm7, %v2920_v52, %v2932_v61 }
 0xadf   : > { %v2937_v53 = vsel %vm2936_vm8, %v2934_v10, -inf }
 0xae0   : > { %2938 = vmax.xlane.f32.xlu0 %v2937_v53 }
 0xb6d   : > { %v2939_v6 = vpop.xlane.xlu0 %2938 }
 0xb6e   : > { %v2944_v22 = vrot.slane %v2939_v6, %v6183_v0  ;;  %v2948_v30 = vrot.slane %v2939_v6, %v6189_v2  ;;  %v2952_v27 = vrot.slane %v2939_v6, %v6201_v13  ;;  %v2956_v33 = vrot.slane %v2939_v6, %v2955_v54 }
 0xb6f   : > { %v2960_v9 = vrot.slane %v2939_v6, %v2959_v4  ;;  %v2964_v37 = vrot.slane %v2939_v6, %v2963_v7  ;;  %v2968_v19 = vrot.slane %v2939_v6, %v2967_v29  ;;  %v2972_v31 = vrot.slane %v2939_v6, %v2971_v18 }
 0xb70   : > { %v2981_v48 = vsub.f32 %v2871_v24, %v2944_v22  ;;  %v2982_v43 = vsub.f32 %v2872_v3, %v2948_v30  ;;  %v2983_v36 = vsub.f32 %v2873_v25, %v2952_v27  ;;  %v2984_v8 = vsub.f32 %v2874_v40, %v2956_v33 }
 0xb71   : > { %v2985_v16 = vsub.f32 %v2875_v17, %v2960_v9  ;;  %v2986_v24 = vsub.f32 %v2876_v45, %v2964_v37  ;;  %v2987_v34 = vsub.f32 %v2877_v56, %v2968_v19  ;;  %v2988_v62 = vsub.f32 %v2878_v50, %v2972_v31 }
 0xb72   : > { %v2989_v39 = vmul.f32 1.442695, %v2981_v48  ;;  %v2991_v14 = vmul.f32 1.442695, %v2982_v43  ;;  %v2993_v35 = vmul.f32 1.442695, %v2983_v36 }
 0xb73   : > { %v2995_v15 = vmul.f32 1.442695, %v2984_v8  ;;  %v2997_v25 = vmul.f32 1.442695, %v2985_v16  ;;  %v2999_v57 = vmul.f32 1.442695, %v2986_v24 }
 0xb74   : > { %5151 = vpow2.f32 %v2989_v39  ;;  %v3001_v21 = vmul.f32 1.442695, %v2987_v34  ;;  %v3003_v11 = vmul.f32 1.442695, %v2988_v62  ;;  %v5024_v62 = vld [vmem:[%s7197_s14 + $0x28] sm:$0xff]  }
 0xb75   : > { %5153 = vpow2.f32 %v2991_v14 }
 0xb76   : > { %5155 = vpow2.f32 %v2993_v35 }
 0xb77   : > { %5157 = vpow2.f32 %v2995_v15 }
 0xb78   : > { %5159 = vpow2.f32 %v2997_v25 }
 0xb79   : > { %5161 = vpow2.f32 %v2999_v57 }
 0xb7a   : > { %5163 = vpow2.f32 %v3001_v21  ;;  %v5025_v21 = vld [vmem:[%s7197_s14 + $0x30] sm:$0xff]  }
 0xb7b   : > { %5165 = vpow2.f32 %v3003_v11  ;;  %v5027_v11 = vld [vmem:[%s7199_s16] ss:$8 sps:$4 sm:$0xff]  }
 0xb7e   : > { %v5152_v26 = vpop.eup %5151 }
 0xb7f   : > { %v5154_v3 = vpop.eup %5153  ;;  %3014 = vperm.xlu1 %4921, %v5152_v26  }
 0xb80   : > { %3017 = vperm.xlu0 %4922, %v5154_v3   ;;  %v5156_v40 = vpop.eup %5155 }
 0xb81   : > { %v5158_v32 = vpop.eup %5157 }
 0xb82   : > { %v5160_v17 = vpop.eup %5159 }
 0xb83   : > { %3020 = vperm.xlu1 %4921, %v5156_v40   ;;  %v5162_v28 = vpop.eup %5161 }
 0xb84   : > { %v5164_v12 = vpop.eup %5163 }
 0xb85   : > { %v5166_v59 = vpop.eup %5165 }
 0xb87   : > { %3023 = vperm.xlu1 %4921, %v5158_v32  }
 0xb8b   : > { %3026 = vperm.xlu1 %4921, %v5160_v17  }
 0xb8f   : > { %3029 = vperm.xlu1 %4921, %v5162_v28  }
 0xb93   : > { %3032 = vperm.xlu1 %4921, %v5164_v12  }
 0xb97   : > { %3035 = vperm.xlu1 %4921, %v5166_v59  }
 0xbfe   : > { %v3015_v41 = vpop.permute.xlu1 %3014 }
 0xbff   : > { %v3018_v47 = vpop.permute.xlu0 %3017  ;;  %v3040_v51 = vrot.slane %v3015_v41, %v6782_v23  ;;  %v5038_v41 = vld [vmem:[%s7199_s16 + $0x34] ss:$8 sps:$4 sm:$0xff]  }
 0xc00   : > { %v3044_v49 = vrot.slane %v3018_v47, %v6782_v23  ;;  %v5044_v47 = vld [vmem:[%s7199_s16 + $0x54] ss:$8 sps:$4 sm:$0xff]  }
 0xc02   : > { %v3021_v45 = vpop.permute.xlu1 %3020  ;;  %v3069_v10 = vsel %vm2921_vm1, %v3044_v49, %v3040_v51  ;;  %v6915_v51 = vunpack.c.h.bf16 %v6668_v38 }
 0xc03   : > { %v3048_v50 = vrot.slane %v3021_v45, %v6782_v23  ;;  %v5036_v45 = vld [vmem:[%s7199_s16 + $0x30] ss:$8 sps:$4 sm:$0xff]  }
 0xc05   : > { %v3070_v6 = vsel %vm2923_vm2, %v3048_v50, %v3069_v10  ;;  %v6918_v50 = vunpack.c.l.bf16 %v6668_v38 }
 0xc06   : > { %v3024_v46 = vpop.permute.xlu1 %3023 }
 0xc07   : > { %v3052_v58 = vrot.slane %v3024_v46, %v6782_v23  ;;  %v5041_v46 = vld [vmem:[%s7199_s16 + $0x44] ss:$8 sps:$4 sm:$0xff]  }
 0xc09   : > { %v3071_v30 = vsel %vm2925_vm3, %v3052_v58, %v3070_v6 }
 0xc0a   : > { %v3027_v60 = vpop.permute.xlu1 %3026 }
 0xc0b   : > { %v3056_v52 = vrot.slane %v3027_v60, %v6782_v23  ;;  %v5039_v60 = vld [vmem:[%s7199_s16 + $0x40] ss:$8 sps:$4 sm:$0xff]  }
 0xc0d   : > { %v3072_v27 = vsel %vm2927_vm4, %v3056_v52, %v3071_v30  ;;  %v6927_v30 = vunpack.c.h.bf16 %v6672_v55 }
 0xc0e   : > { %v3030_v56 = vpop.permute.xlu1 %3029 }
 0xc0f   : > { %v3060_v53 = vrot.slane %v3030_v56, %v6782_v23  ;;  %v5042_v56 = vld [vmem:[%s7199_s16 + $0x50] ss:$8 sps:$4 sm:$0xff]  }
 0xc11   : > { %v3073_v48 = vsel %vm2929_vm5, %v3060_v53, %v3072_v27 }
 0xc12   : > { %v3033_v61 = vpop.permute.xlu1 %3032 }
 0xc13   : > { %v3064_v22 = vrot.slane %v3033_v61, %v6782_v23  ;;  %v6922_v61 = vunpack.c.l.bf16 %v6672_v55 }
 0xc15   : > { %v3074_v36 = vsel %vm2931_vm6, %v3064_v22, %v3073_v48 }
 0xc16   : > { %v3036_v33 = vpop.permute.xlu1 %3035 }
 0xc17   : > { %v3068_v43 = vrot.slane %v3036_v33, %v6782_v23 }
 0xc19   : > { %v3075_v39 = vsel %vm2933_vm7, %v3068_v43, %v3074_v36 }
 0xc1a   : > { %v3077_v14 = vsel %vm2936_vm8, %v3075_v39, 0.0 }
 0xc1b   : > { %3078 = vadd.xlane.f32.xlu1 %v3077_v14  ;;  %v6931_v14 = vunpack.c.l.bf16 %v6715_v1 }
 0xca8   : > { %v3079_v9 = vpop.xlane.xlu1 %3078 }
 0xca9   : > { %5167 = vrcp.f32 %v3079_v9 }
 0xcb3   : > { %v5168_v8 = vpop.eup %5167 }
 0xcb4   : > { %v3085_v35 = vrot.slane %v5168_v8, %v6183_v0  ;;  %v3089_v16 = vrot.slane %v5168_v8, %v6189_v2  ;;  %v3093_v19 = vrot.slane %v5168_v8, %v6201_v13  ;;  %v3097_v24 = vrot.slane %v5168_v8, %v2955_v54 }
 0xcb5   : > { %v3101_v31 = vrot.slane %v5168_v8, %v2959_v4  ;;  %v3109_v13 = vrot.slane %v5168_v8, %v2967_v29  ;;  %v3113_v54 = vrot.slane %v5168_v8, %v2971_v18  ;;  %v5022_v29 = vld [vmem:[%s7197_s14 + $0x18] sm:$0xff]   ;;  %v5023_v18 = vld [vmem:[%s7197_s14 + $0x20] sm:$0xff]  }
 0xcb6   : > { %v3122_v37 = vmul.f32 %v5152_v26, %v3085_v35  ;;  %v3123_v15 = vmul.f32 %v5154_v3, %v3089_v16  ;;  %v3124_v23 = vmul.f32 %v5156_v40, %v3093_v19  ;;  %v3125_v25 = vmul.f32 %v5158_v32, %v3097_v24  ;;  %v5019_v40 = vld [vmem:[%s7197_s14] sm:$0xff]   ;;  %v5026_v32 = vld [vmem:[%s7197_s14 + $0x38] sm:$0xff]  }
 0xcb7   : > { %v3126_v34 = vmul.f32 %v5160_v17, %v3101_v31  ;;  %v3105_v26 = vrot.slane %v5168_v8, %v2963_v7  ;;  %v3128_v3 = vmul.f32 %v5164_v12, %v3109_v13  ;;  %4783 = vmatpush3.bf16.msra.mxu1 %v5019_v40  ;;  %v3129_v4 = vmul.f32 %v5166_v59, %v3113_v54  ;;  %v5020_v7 = vld [vmem:[%s7197_s14 + $0x8] sm:$0xff]   ;;  %v5030_v12 = vld [vmem:[%s7199_s16 + $0x10] ss:$8 sps:$4 sm:$0xff]  }
 0xcb8   : > { %3132 = vperm.xlu0 %4922, %v3122_v37   ;;  %4784 = vmatprep.subr.bf16.mxu1 %v5541_v44  ;;  %v5029_v17 = vld [vmem:[%s7199_s16 + $0x4] ss:$8 sps:$4 sm:$0xff]   ;;  %v6934_v16 = vunpack.c.h.bf16 %v6715_v1 }
 0xcb9   : > { %v3127_v57 = vmul.f32 %v5162_v28, %v3105_v26  ;;  %v5032_v28 = vld [vmem:[%s7199_s16 + $0x14] ss:$8 sps:$4 sm:$0xff]   ;;  %3593 = vmatprep.subr.bf16.mxu0 %v5029_v17  ;;  %v5035_v59 = vld [vmem:[%s7199_s16 + $0x24] ss:$8 sps:$4 sm:$0xff]   ;;  %v6939_v26 = vunpack.c.l.bf16 %v6718_v5 }
 0xcba   : > { %3594 = vmatpush1.bf16.msra.mxu0 %v5027_v11 }
 0xcbb   : > { %4785 = vmatpush3.bf16.msra.mxu1 %v5020_v7  ;;  %3595 = vmatprep.subr.bf16.mxu0 %v5032_v28 }
 0xcbc   : > { %3137 = vperm.xlu0 %4922, %v3123_v15   ;;  %4786 = vmatprep.subr.bf16.mxu1 %v5541_v44 }
 0xcbe   : > { %3596 = vmatpush1.bf16.msra.mxu0 %v5030_v12 }
 0xcbf   : > { %4787 = vmatpush3.bf16.msra.mxu1 %v5021_v63  ;;  %3597 = vmatprep.subr.bf16.mxu0 %v5035_v59 }
 0xcc0   : > { %3142 = vperm.xlu0 %4922, %v3124_v23   ;;  %4788 = vmatprep.subr.bf16.mxu1 %v5541_v44 }
 0xcc3   : > { %4789 = vmatpush3.bf16.msra.mxu1 %v5022_v29 }
 0xcc4   : > { %3147 = vperm.xlu0 %4922, %v3125_v25   ;;  %4790 = vmatprep.subr.bf16.mxu1 %v5541_v44 }
 0xcc7   : > { %4791 = vmatpush3.bf16.msra.mxu1 %v5023_v18  ;;  %v6943_v18 = vunpack.c.h.bf16 %v6718_v5 }
 0xcc8   : > { %3152 = vperm.xlu0 %4922, %v3126_v34   ;;  %4792 = vmatprep.subr.bf16.mxu1 %v5541_v44 }
 0xccb   : > { %4793 = vmatpush3.bf16.msra.mxu1 %v5024_v62 }
 0xccc   : > { %3157 = vperm.xlu0 %4922, %v3127_v57   ;;  %4794 = vmatprep.subr.bf16.mxu1 %v5541_v44 }
 0xccf   : > { %4795 = vmatpush3.bf16.msra.mxu1 %v5025_v21 }
 0xcd0   : > { %3162 = vperm.xlu0 %4922, %v3128_v3   ;;  %4796 = vmatprep.subr.bf16.mxu1 %v5541_v44  ;;  %v5033_v44 = vld [vmem:[%s7199_s16 + $0x20] ss:$8 sps:$4 sm:$0xff]  }
 0xcd1   : > { %3598 = vmatpush1.bf16.msra.mxu0 %v5033_v44 }
 0xcd2   : > { %3599 = vmatprep.subr.bf16.mxu0 %v5038_v41 }
 0xcd3   : > { %4797 = vmatpush3.bf16.msra.mxu1 %v5026_v32 }
 0xcd4   : > { %3167 = vperm.xlu0 %4922, %v3129_v4  }
 0xcd5   : > { %3600 = vmatpush1.bf16.msra.mxu0 %v5036_v45 }
 0xcd6   : > { %3601 = vmatprep.subr.bf16.mxu0 %v5041_v46 }
 0xcd9   : > { %3602 = vmatpush1.bf16.msra.mxu0 %v5039_v60 }
 0xcda   : > { %3603 = vmatprep.subr.bf16.mxu0 %v5044_v47 }
 0xcdd   : > { %3604 = vmatpush1.bf16.msra.mxu0 %v5042_v56 }
 0xd37   : > { %v3133_v49 = vpop.permute.xlu0 %3132 }
 0xd38   : > { %v3170_v10 = vmul.f32 %v3133_v49, %v6918_v50 }
 0xd3a   : > { %v3178_v27 = vrot.slane %v3170_v10, 4 }
 0xd3b   : > { %v3138_v58 = vpop.permute.xlu0 %3137 }
 0xd3c   : > { %v3171_v52 = vmul.f32 %v3138_v58, %v6915_v51  ;;  %v3179_v36 = vadd.f32 %v3178_v27, %v3170_v10 }
 0xd3e   : > { %v3184_v6 = vrot.slane %v3171_v52, 4  ;;  %v3180_v55 = vrot.slane %v3179_v36, 2 }
 0xd3f   : > { %v3143_v53 = vpop.permute.xlu0 %3142 }
 0xd40   : > { %v3172_v22 = vmul.f32 %v3143_v53, %v6922_v61  ;;  %v3185_v38 = vadd.f32 %v3184_v6, %v3171_v52  ;;  %v3181_v57 = vadd.f32 %v3180_v55, %v3179_v36 }
 0xd42   : > { %v3190_v33 = vrot.slane %v3172_v22, 4  ;;  %v3186_v35 = vrot.slane %v3185_v38, 2  ;;  %v3182_v62 = vrot.slane %v3181_v57, 1 }
 0xd43   : > { %v3148_v48 = vpop.permute.xlu0 %3147 }
 0xd44   : > { %v3173_v43 = vmul.f32 %v3148_v48, %v6927_v30  ;;  %v3191_v39 = vadd.f32 %v3190_v33, %v3172_v22  ;;  %v3187_v31 = vadd.f32 %v3186_v35, %v3185_v38  ;;  %v3183_v60 = vadd.f32 %v3182_v62, %v3181_v57  ;;  %v5047_v62 = vld [vmem:[%s7199_s16 + $0x64] ss:$8 sps:$4 sm:$0xff]  }
 0xd45   : > { %3605 = vmatprep.subr.bf16.mxu0 %v5047_v62 }
 0xd46   : > { %v3196_v9 = vrot.slane %v3173_v43, 4  ;;  %v3192_v15 = vrot.slane %v3191_v39, 2  ;;  %v3188_v7 = vrot.slane %v3187_v31, 1  ;;  %v3338_v33 = vpack.c.bf16 %v3183_v60, %v3183_v60  ;;  %v5059_v60 = vld [vmem:[%s7201_s18 + $0x60] sm:$0xff]  }
 0xd47   : > { %v3153_v8 = vpop.permute.xlu0 %3152 }
 0xd48   : > { %v3197_v37 = vadd.f32 %v3196_v9, %v3173_v43  ;;  %v3174_v19 = vmul.f32 %v3153_v8, %v6931_v14  ;;  %v3193_v13 = vadd.f32 %v3192_v15, %v3191_v39  ;;  %v3189_v44 = vadd.f32 %v3188_v7, %v3187_v31 }
 0xd49   : > { %v3377_v55 = vunpack.c.l.b16 %v3338_v33 }
 0xd4a   : > { %v3198_v23 = vrot.slane %v3197_v37, 2  ;;  %v3202_v24 = vrot.slane %v3174_v19, 4  ;;  %v3194_v21 = vrot.slane %v3193_v13, 1  ;;  %v3339_v10 = vpack.c.bf16 %v3189_v44, %v3189_v44  ;;  %v5055_v44 = vld [vmem:[%s7201_s18 + $0x50] sm:$0xff]  }
 0xd4b   : > { %v3158_v25 = vpop.permute.xlu0 %3157 }
 0xd4c   : > { %v3175_v34 = vmul.f32 %v3158_v25, %v6934_v16  ;;  %v3203_v3 = vadd.f32 %v3202_v24, %v3174_v19  ;;  %v3199_v54 = vadd.f32 %v3198_v23, %v3197_v37  ;;  %v3195_v47 = vadd.f32 %v3194_v21, %v3193_v13  ;;  %v5045_v21 = vld [vmem:[%s7199_s16 + $0x60] ss:$8 sps:$4 sm:$0xff]  }
 0xd4d   : > { %v3378_v39 = vunpack.c.l.b16 %v3339_v10  ;;  %3606 = vmatpush1.bf16.msra.mxu0 %v5045_v21 }
 0xd4e   : > { %v3208_v40 = vrot.slane %v3175_v34, 4  ;;  %v3204_v1 = vrot.slane %v3203_v3, 2  ;;  %v3200_v11 = vrot.slane %v3199_v54, 1  ;;  %v3340_v27 = vpack.c.bf16 %v3195_v47, %v3195_v47  ;;  %v5060_v47 = vld [vmem:[%s7201_s18 + $0x20] sm:$0xff]  }
 0xd4f   : > { %v3163_v4 = vpop.permute.xlu0 %3162  ;;  %v3385_v25 = vsel %vm2921_vm1, %v3378_v39, %v3377_v55 }
 0xd50   : > { %v3209_v63 = vadd.f32 %v3208_v40, %v3175_v34  ;;  %v3176_v29 = vmul.f32 %v3163_v4, %v6939_v26  ;;  %v3205_v32 = vadd.f32 %v3204_v1, %v3203_v3  ;;  %v3201_v56 = vadd.f32 %v3200_v11, %v3199_v54  ;;  %v5048_v11 = vld [vmem:[%s7199_s16 + $0x70] ss:$8 sps:$4 sm:$0xff]  }
 0xd51   : > { %v3379_v37 = vunpack.c.l.b16 %v3340_v27 }
 0xd52   : > { %v3210_v17 = vrot.slane %v3209_v63, 2  ;;  %v3214_v28 = vrot.slane %v3176_v29, 4  ;;  %v3206_v12 = vrot.slane %v3205_v32, 1  ;;  %v3341_v48 = vpack.c.bf16 %v3201_v56, %v3201_v56  ;;  %v5061_v56 = vld [vmem:[%s7201_s18 + $0x68] sm:$0xff]  }
 0xd53   : > { %v3168_v59 = vpop.permute.xlu0 %3167  ;;  %v3386_v57 = vsel %vm2923_vm2, %v3379_v37, %v3385_v25 }
 0xd54   : > { %v3211_v41 = vadd.f32 %v3210_v17, %v3209_v63  ;;  %v3215_v45 = vadd.f32 %v3214_v28, %v3176_v29  ;;  %v3177_v46 = vmul.f32 %v3168_v59, %v6943_v18  ;;  %v3207_v52 = vadd.f32 %v3206_v12, %v3205_v32  ;;  %v5050_v32 = vld [vmem:[%s7199_s16 + $0x74] ss:$8 sps:$4 sm:$0xff]   ;;  %v5051_v17 = vld [vmem:[%s7201_s18 + $0x40] sm:$0xff]   ;;  %v5053_v12 = vld [vmem:[%s7201_s18 + $0x48] sm:$0xff]  }
 0xd55   : > { %v3380_v15 = vunpack.c.l.b16 %v3341_v48  ;;  %v5052_v28 = vld [vmem:[%s7201_s18] sm:$0xff]   ;;  %3607 = vmatprep.subr.bf16.mxu0 %v5050_v32  ;;  %4512 = vmatprep.subr.bf16.mxu1 %v5051_v17  ;;  %v5054_v59 = vld [vmem:[%s7201_s18 + $0x8] sm:$0xff]   ;;  %v5063_v48 = vld [vmem:[%s7201_s18 + $0x70] sm:$0xff]  }
 0xd56   : > { %v3212_v49 = vrot.slane %v3211_v41, 1  ;;  %v3216_v58 = vrot.slane %v3215_v45, 2  ;;  %v3220_v5 = vrot.slane %v3177_v46, 4  ;;  %v3342_v36 = vpack.c.bf16 %v3207_v52, %v3207_v52  ;;  %3608 = vmatpush1.bf16.msra.mxu0 %v5048_v11 }
 0xd57   : > { %v3387_v3 = vsel %vm2925_vm3, %v3380_v15, %v3386_v57 }
 0xd58   : > { %v3213_v53 = vadd.f32 %v3212_v49, %v3211_v41  ;;  %v3217_v6 = vadd.f32 %v3216_v58, %v3215_v45  ;;  %v3221_v22 = vadd.f32 %v3220_v5, %v3177_v46  ;;  %v3381_v24 = vunpack.c.l.b16 %v3342_v36  ;;  %v5056_v41 = vld [vmem:[%s7201_s18 + $0x10] sm:$0xff]   ;;  %v5057_v45 = vld [vmem:[%s7201_s18 + $0x58] sm:$0xff]   ;;  %v5062_v49 = vld [vmem:[%s7201_s18 + $0x28] sm:$0xff]  }
 0xd59   : > { %v5058_v46 = vld [vmem:[%s7201_s18 + $0x18] sm:$0xff]   ;;  %v4321_v58 = vld [vmem:[#allocation11] ss:$0 sm:$0xff] }
 0xd5a   : > { %v3218_v38 = vrot.slane %v3217_v6, 1  ;;  %v3222_v43 = vrot.slane %v3221_v22, 2  ;;  %v3343_v9 = vpack.c.bf16 %v3213_v53, %v3213_v53  ;;  %v3388_v40 = vsel %vm2927_vm4, %v3381_v24, %v3387_v3 }
 0xd5c   : > { %v3219_v8 = vadd.f32 %v3218_v38, %v3217_v6  ;;  %v3223_v35 = vadd.f32 %v3222_v43, %v3221_v22  ;;  %v3382_v31 = vunpack.c.l.b16 %v3343_v9  ;;  %v5064_v38 = vld [vmem:[%s7201_s18 + $0x30] sm:$0xff]   ;;  %v5065_v43 = vld [vmem:[%s7201_s18 + $0x78] sm:$0xff]  }
 0xd5e   : > { %v3344_v19 = vpack.c.bf16 %v3219_v8, %v3219_v8  ;;  %v3224_v23 = vrot.slane %v3223_v35, 1  ;;  %v3389_v1 = vsel %vm2929_vm5, %v3382_v31, %v3388_v40  ;;  %v3814_v31 = vrot.slane %v6918_v50, 4 }
 0xd60   : > { %v3225_v34 = vadd.f32 %v3224_v23, %v3223_v35  ;;  %v3383_v13 = vunpack.c.l.b16 %v3344_v19 }
 0xd62   : > { %v3345_v54 = vpack.c.bf16 %v3225_v34, %v3225_v34  ;;  %v3390_v7 = vsel %vm2931_vm6, %v3383_v13, %v3389_v1  ;;  %v3820_v34 = vrot.slane %v6915_v51, 4  ;;  %v3832_v13 = vrot.slane %v6927_v30, 4 }
 0xd64   : > { %v3384_v4 = vunpack.c.l.b16 %v3345_v54  ;;  %v3821_v57 = vadd.f32 %v3820_v34, %v6915_v51  ;;  %v3838_v54 = vrot.slane %v6931_v14, 4 }
 0xd66   : > { %v3391_v63 = vsel %vm2933_vm7, %v3384_v4, %v3390_v7  ;;  %v3822_v1 = vrot.slane %v3821_v57, 2  ;;  %v3844_v4 = vrot.slane %v6934_v16, 4  ;;  %v3850_v7 = vrot.slane %v6939_v26, 4 }
 0xd67   : > { %v3392_v29 = vpack.c.b16 %v3391_v63, %v3391_v63  ;;  %v3833_v63 = vadd.f32 %v3832_v13, %v6927_v30 }
 0xd68   : > { %v3823_v21 = vadd.f32 %v3822_v1, %v3821_v57  ;;  %v3845_v32 = vadd.f32 %v3844_v4, %v6934_v16 }
 0xd69   : > { %4799 = vmatmul.mubr.bf16.vlgmr.msra.gmra.mrb[44].mxu1 %v3392_v29  ;;  %v3856_v29 = vrot.slane %v6943_v18, 4  ;;  %v3834_v11 = vrot.slane %v3833_v63, 2 }
 0xd6a   : > { %4513 = vmatpush3.bf16.msra.mxu1 %v5052_v28 }
 0xd6b   : > { %4514 = vmatprep.subr.bf16.mxu1 %v5053_v12  ;;  %v3857_v17 = vadd.f32 %v3856_v29, %v6943_v18 }
 0xd6e   : > { %4515 = vmatpush3.bf16.msra.mxu1 %v5054_v59 }
 0xd6f   : > { %4516 = vmatprep.subr.bf16.mxu1 %v5055_v44  ;;  %v3824_v44 = vrot.slane %v3823_v21, 1 }
 0xd72   : > { %4517 = vmatpush3.bf16.msra.mxu1 %v5056_v41  ;;  %v3846_v41 = vrot.slane %v3845_v32, 2 }
 0xd73   : > { %4518 = vmatprep.subr.bf16.mxu1 %v5057_v45  ;;  %v3835_v45 = vadd.f32 %v3834_v11, %v3833_v63 }
 0xd75   : > { %v3836_v16 = vrot.slane %v3835_v45, 1 }
 0xd76   : > { %4519 = vmatpush3.bf16.msra.mxu1 %v5058_v46  ;;  %v3858_v46 = vrot.slane %v3857_v17, 2 }
 0xd77   : > { %4520 = vmatprep.subr.bf16.mxu1 %v5059_v60 }
 0xd7a   : > { %4521 = vmatpush3.bf16.msra.mxu1 %v5060_v47 }
 0xd7b   : > { %4522 = vmatprep.subr.bf16.mxu1 %v5061_v56  ;;  %v3825_v56 = vadd.f32 %v3824_v44, %v3823_v21 }
 0xd7e   : > { %4523 = vmatpush3.bf16.msra.mxu1 %v5062_v49  ;;  %v3847_v49 = vadd.f32 %v3846_v41, %v3845_v32 }
 0xd7f   : > { %4524 = vmatprep.subr.bf16.mxu1 %v5063_v48 }
 0xd82   : > { %4525 = vmatpush3.bf16.msra.mxu1 %v5064_v38 }
 0xd83   : > { %4526 = vmatprep.subr.bf16.mxu1 %v5065_v43 }
 0xd86   : > { %4527 = vmatpush3.bf16.msra.mxu1 %v5066_v42 }
 0xe3c   : > { %v3476_v5 = vpop.f32.mrb[44].mxu1 }
 0xe3d   : > { %v3477_v52 = vadd.f32 %v4321_v58, %v3476_v5  ;;  %v4800_v10 = vpop.f32.mrb[45].mxu1 }
 0xe3e   : > { %v3479_v53 = vpop.f32.mrb[46].mxu1  ;;  %v3848_v10 = vrot.slane %v3847_v49, 1 }
 0xe3f   : > { %v3482_v6 = vmax.f32 %v3477_v52, 0.0  ;;  %v4801_v22 = vpop.f32.mrb[47].mxu1 }
 0xe40   : > { %v3849_v48 = vadd.f32 %v3848_v10, %v3847_v49 }
 0xe41   : > { %v3483_v27 = vmul.f32 %v3482_v6, %v3337_v20  ;;  %v3501_v20 = vld [vmem:[#allocation13] sm:$0x3]  ;;  %v3837_v6 = vadd.f32 %v3836_v16, %v3835_v45 }
 0xe42   : > { %v3506_v36 = vrot.slane %v3501_v20, %v6183_v0  ;;  %v3510_v39 = vrot.slane %v3501_v20, %v6189_v2  ;;  %v3826_v0 = vrot.slane %v6922_v61, 4  ;;  %v3815_v2 = vadd.f32 %v3814_v31, %v6918_v50 }
 0xe43   : > { %v3484_v33 = vpack.c.bf16 %v3483_v27, %v3483_v27  ;;  %3880 = vst [vmem:[%s7226_s24] sm:$0xff] %v3483_v27  ;;  %v3839_v50 = vadd.f32 %v3838_v54, %v6931_v14 }
 0xe44   : > { %v3827_v3 = vadd.f32 %v3826_v0, %v6922_v61  ;;  %v3816_v40 = vrot.slane %v3815_v2, 2  ;;  %v3851_v61 = vadd.f32 %v3850_v7, %v6939_v26  ;;  %v3859_v26 = vadd.f32 %v3858_v46, %v3857_v17 }
 0xe45   : > { %3626 = vmatmul.mubr.bf16.vlgmr.msra.gmra.mrb[60].mxu0 %v3484_v33  ;;  %v3840_v12 = vrot.slane %v3839_v50, 2 }
 0xe46   : > { %v3828_v62 = vrot.slane %v3827_v3, 2  ;;  %v3817_v51 = vadd.f32 %v3816_v40, %v3815_v2  ;;  %v3852_v30 = vrot.slane %v3851_v61, 2  ;;  %v3860_v22 = vrot.slane %v3859_v26, 1 }
 0xe47   : > { %v3841_v47 = vadd.f32 %v3840_v12, %v3839_v50 }
 0xe48   : > { %v3829_v28 = vadd.f32 %v3828_v62, %v3827_v3  ;;  %v3818_v59 = vrot.slane %v3817_v51, 1  ;;  %v3853_v58 = vadd.f32 %v3852_v30, %v3851_v61  ;;  %v3861_v43 = vadd.f32 %v3860_v22, %v3859_v26 }
 0xe49   : > { %v3842_v18 = vrot.slane %v3841_v47, 1 }
 0xe4a   : > { %v3830_v60 = vrot.slane %v3829_v28, 1  ;;  %v3819_v14 = vadd.f32 %v3818_v59, %v3817_v51  ;;  %v3854_v53 = vrot.slane %v3853_v58, 1 }
 0xe4b   : > { %v3843_v33 = vadd.f32 %v3842_v18, %v3841_v47 }
 0xe4c   : > { %v3831_v5 = vadd.f32 %v3830_v60, %v3829_v28  ;;  %v3870_v52 = vsel %vm2921_vm1, %v3825_v56, %v3819_v14  ;;  %v3855_v38 = vadd.f32 %v3854_v53, %v3853_v58 }
 0xe4e   : > { %v3871_v27 = vsel %vm2923_vm2, %v3831_v5, %v3870_v52 }
 0xe4f   : > { %v3872_v42 = vsel %vm2925_vm3, %v3837_v6, %v3871_v27 }
 0xe50   : > { %v3873_v20 = vsel %vm2927_vm4, %v3843_v33, %v3872_v42 }
 0xf18   : > { %v3627_v9 = vpop.f32.mrb[60].mxu0 }
 0xf19   : > { %v3628_v8 = vadd.f32 %v3627_v9, %v3506_v36  ;;  %v3629_v35 = vpop.f32.mrb[61].mxu0  ;;  %v3874_v36 = vsel %vm2929_vm5, %v3849_v48, %v3873_v20 }
 0xf1a   : > { %v3630_v37 = vadd.f32 %v3629_v35, %v3510_v39  ;;  %v3631_v55 = vpop.f32.mrb[62].mxu0  ;;  %v3875_v39 = vsel %vm2931_vm6, %v3855_v38, %v3874_v36 }
 0xf1b   : > { %v3634_v15 = vmax.f32 %v3628_v8, 0.0  ;;  %v3632_v19 = vpop.f32.mrb[63].mxu0  ;;  %v3876_v9 = vsel %vm2933_vm7, %v3861_v43, %v3875_v39 }
 0xf1c   : > { %v3635_v23 = vmax.f32 %v3630_v37, 0.0  ;;  %3878 = vst [vmem:[%s884_s21] sm:$0xff] %v3876_v9 }
 0xf1d   : > { %v3636_v25 = vpack.c.bf16 %v3634_v15, %v3634_v15 }
 0xf1e   : > { %v3637_v24 = vpack.c.bf16 %v3635_v23, %v3635_v23 }
 0xf20   : > { %3805 = vmatprep.mubr.bf16.mxu1 %v3637_v24 }
 0xf21   : > { %3806 = vmatmul.mubr.bf16.vlgmr.msra.gmra.mrb[48].mxu1 %v3636_v25 }
 0xf22   : > { %5375 = shalt.err (!%p5372_p10)
}
 0xf23   : > { %s5376_s24 = scalar_lea.hbm %s7051_s6, 128  ;;  %s5380_s11 = scalar_lea.hbm %s7281_s2, 256 }
 0xf24   : > { %p5377_p11 = scmp.ne.s32.totalorder %s7051_s6, %s5376_s24  ;;  %p5381_p7 = scmp.lt.u32.totalorder %s7051_s6, %s7281_s2 }
 0xf25   : > { %p5382_p8 = scmp.lt.u32.totalorder %s5380_s11, %s5376_s24  ;;  %p5384_p2 = scmp.lt.u32.totalorder %s5376_s24, %s7051_s6 }
 0xf26   : > { %p5378_p12 = pnand %p5377_p11, %p7283_p13 }
 0xf27   : > { %p5383_p9 = por %p5382_p8, %p5381_p7 }
 0xf28   : > { %p5379_p4 = pneg %p5378_p12 }
 0xf29   : > { %p5385_p0 = por %p5384_p2, %p5383_p9 }
 0xf2b   : > { %p5386_p3 = pnand %p5385_p0, %p5379_p4 }
 0xf2d   : > { %5389 = shalt.err (!%p5386_p3)
}
 0xf2e   : > { %4827 = dma.vmem_to_hbm [thread:$0]  (%p7283_p13), %s7053_s22, 128, %s7051_s6, %s7062_s4  }
 0xf2f   : > { %s7284_s8 = scalar_lea.vmem [#allocation19], %s6758_s27  ;;  %s5545_s24 = smov [#allocation19]  }
 0xf30   : > { %s3936_s7 = sshll.u32 %s7284_s8, 4  ;;  %s5394_s21 = sshll.u32 %s5545_s24, 4  ;;  %s3937_s7 = int_to_ptr.vmem [resolvable:$true] %s3936_s7  ;;  %s5395_s21 = int_to_ptr.vmem [resolvable:$false] %s5394_s21 }
 0xf31   : > { %s5390_s30 = scalar_lea.vmem %s3937_s7, 128  ;;  %s5396_s11 = scalar_lea.vmem %s5395_s21, 256 }
 0xf32   : > { %p5391_p6 = scmp.ne.s32.totalorder %s3937_s7, %s5390_s30  ;;  %p5397_p11 = scmp.lt.s32.totalorder %s3937_s7, %s5395_s21 }
 0xf33   : > { %p5398_p12 = scmp.lt.s32.totalorder %s5396_s11, %s5390_s30 }
 0xf34   : > { %p5392_p5 = pnand %p5391_p6, %p7283_p13 }
 0xf35   : > { %p5399_p4 = por %p5398_p12, %p5397_p11 }
 0xf36   : > { %p5393_p10 = pneg %p5392_p5 }
 0xf38   : > { %p5400_p7 = pnand %p5399_p4, %p5393_p10 }
 0xf3a   : > { %5403 = shalt.err (!%p5400_p7)
}
 0xf3b   : > { %s5404_s22 = scalar_lea.hbm %s7060_s3, 128  ;;  %s5408_s29 = scalar_lea.hbm %s7282_s23, 256 }
 0xf3c   : > { %p5405_p8 = scmp.ne.s32.totalorder %s7060_s3, %s5404_s22  ;;  %p5409_p0 = scmp.lt.u32.totalorder %s7060_s3, %s7282_s23 }
 0xf3d   : > { %p5410_p3 = scmp.lt.u32.totalorder %s5408_s29, %s5404_s22  ;;  %p5412_p5 = scmp.lt.u32.totalorder %s5404_s22, %s7060_s3 }
 0xf3e   : > { %p5406_p9 = pnand %p5405_p8, %p7283_p13 }
 0xf3f   : > { %p5411_p6 = por %p5410_p3, %p5409_p0 }
 0xf40   : > { %p5407_p2 = pneg %p5406_p9 }
 0xf41   : > { %p5413_p10 = por %p5412_p5, %p5411_p6 }
 0xf43   : > { %p5414_p11 = pnand %p5413_p10, %p5407_p2 }
 0xf45   : > { %5417 = shalt.err (!%p5414_p11)
}
 0xf46   : > { %4828 = dma.vmem_to_hbm [thread:$0]  (%p7283_p13), %s3937_s7, 128, %s7060_s3, %s7062_s4  }
 0xf47   : > { %s7285_s11 = sld [smem:[#allocation48_spill]]  ;;  %s7286_s0 = scalar_lea.vmem [#allocation20], %s6758_s27 }
 0xf48   : > { %s3949_s29 = sshll.u32 %s7286_s0, 4  ;;  %s3897_s22 = scalar_lea.sflag [#allocation21], %s5882_s28  ;;  %s3950_s29 = int_to_ptr.vmem [resolvable:$true] %s3949_s29 }
 0xf49   : > { %s5418_s8 = scalar_lea.vmem %s3950_s29, 128  ;;  %s5546_s24 = smov [#allocation20]  }
 0xf4a   : > { %p5419_p12 = scmp.ne.s32.totalorder %s3950_s29, %s5418_s8  ;;  %s5422_s2 = sshll.u32 %s5546_s24, 4  ;;  %s5423_s2 = int_to_ptr.vmem [resolvable:$false] %s5422_s2 }
 0xf4b   : > { %s5424_s9 = scalar_lea.vmem %s5423_s2, 256  ;;  %p5425_p8 = scmp.lt.s32.totalorder %s3950_s29, %s5423_s2 }
 0xf4c   : > { %p5420_p4 = pnand %p5419_p12, %p7283_p13  ;;  %p5426_p9 = scmp.lt.s32.totalorder %s5424_s9, %s5418_s8 }
 0xf4d   : > { %s7110_s6 = scalar_lea.hbm %s7285_s11, %s7042_s26 }
 0xf4e   : > { %p5421_p7 = pneg %p5420_p4  ;;  %p5427_p2 = por %p5426_p9, %p5425_p8 }
 0xf50   : > { %p5428_p0 = pnand %p5427_p2, %p5421_p7 }
 0xf52   : > { %5431 = shalt.err (!%p5428_p0)
}
 0xf53   : > { %s5432_s4 = scalar_lea.hbm %s7110_s6, 128  ;;  %s5436_s30 = scalar_lea.hbm %s7285_s11, 256 }
 0xf54   : > { %p5433_p3 = scmp.ne.s32.totalorder %s7110_s6, %s5432_s4  ;;  %p5437_p10 = scmp.lt.u32.totalorder %s7110_s6, %s7285_s11 }
 0xf55   : > { %p5438_p11 = scmp.lt.u32.totalorder %s5436_s30, %s5432_s4  ;;  %p5440_p4 = scmp.lt.u32.totalorder %s5432_s4, %s7110_s6 }
 0xf56   : > { %p5434_p6 = pnand %p5433_p3, %p7283_p13 }
 0xf57   : > { %p5439_p12 = por %p5438_p11, %p5437_p10 }
 0xf58   : > { %p5435_p5 = pneg %p5434_p6 }
 0xf59   : > { %p5441_p7 = por %p5440_p4, %p5439_p12 }
 0xf5b   : > { %p5442_p8 = pnand %p5441_p7, %p5435_p5 }
 0xf5d   : > { %5445 = shalt.err (!%p5442_p8)
}
 0xf5e   : > { %4829 = dma.vmem_to_hbm [thread:$0]  (%p7283_p13), %s3950_s29, 128, %s7110_s6, %s3897_s22   ;;  %v4346_v35 = vld [vmem:[#allocation14] ss:$0 sm:$0xff] }
 0xf5f   : > { %s877_s9 = scalar_lea.vmem [#allocation16], %s6758_s27  ;;  %s7287_s4 = sld [smem:[#allocation45_spill]] }
 0xf60   : > { %s3910_s0 = sshll.u32 %s877_s9, 4  ;;  %s3882_s6 = scalar_lea.sflag [#allocation7], %s5882_s28  ;;  %s7139_s0 = int_to_ptr.vmem [resolvable:$true] %s3910_s0 }
 0xf61   : > { %s5446_s29 = scalar_lea.vmem %s7139_s0, 128  ;;  %s5547_s27 = smov [#allocation16]  }
 0xf62   : > { %p5447_p9 = scmp.ne.s32.totalorder %s7139_s0, %s5446_s29  ;;  %s5450_s22 = sshll.u32 %s5547_s27, 4  ;;  %s5451_s22 = int_to_ptr.vmem [resolvable:$false] %s5450_s22 }
 0xf63   : > { %s5452_s7 = scalar_lea.vmem %s5451_s22, 256  ;;  %p5453_p3 = scmp.lt.s32.totalorder %s7139_s0, %s5451_s22 }
 0xf64   : > { %p5448_p2 = pnand %p5447_p9, %p7283_p13  ;;  %p5454_p6 = scmp.lt.s32.totalorder %s5452_s7, %s5446_s29 }
 0xf65   : > { %s7137_s3 = scalar_lea.hbm %s7287_s4, %s7042_s26 }
 0xf66   : > { %p5449_p0 = pneg %p5448_p2  ;;  %p5455_p5 = por %p5454_p6, %p5453_p3 }
 0xf68   : > { %p5456_p10 = pnand %p5455_p5, %p5449_p0 }
 0xff4   : > { %v4528_v8 = vpop.f32.mrb[48].mxu1 }
 0xff5   : > { %v4529_v37 = vpop.f32.mrb[49].mxu1 }
 0xff6   : > { %v4530_v55 = vadd.f32 %v4529_v37, %v4528_v8  ;;  %v4531_v15 = vpop.f32.mrb[50].mxu1 }
 0xff7   : > { %v4532_v19 = vpop.f32.mrb[51].mxu1 }
 0xff8   : > { %v3808_v23 = vadd.f32 %v4530_v55, %v4346_v35 }
 0xffa   : > { %3813 = vst [vmem:[%s877_s9] sm:$0xff] %v3808_v23 }
 0xffb   : > { %5459 = shalt.err (!%p5456_p10)
}
 0xffc   : > { %s5460_s28 = scalar_lea.hbm %s7137_s3, 128  ;;  %s5464_s21 = scalar_lea.hbm %s7287_s4, 256 }
 0xffd   : > { %p5461_p11 = scmp.ne.s32.totalorder %s7137_s3, %s5460_s28  ;;  %p5465_p7 = scmp.lt.u32.totalorder %s7137_s3, %s7287_s4 }
 0xffe   : > { %p5466_p8 = scmp.lt.u32.totalorder %s5464_s21, %s5460_s28  ;;  %p5468_p2 = scmp.lt.u32.totalorder %s5460_s28, %s7137_s3 }
 0xfff   : > { %p5462_p12 = pnand %p5461_p11, %p7283_p13 }
0x1000   : > { %p5467_p9 = por %p5466_p8, %p5465_p7 }
0x1001   : > { %p5463_p4 = pneg %p5462_p12 }
0x1002   : > { %p5469_p0 = por %p5468_p2, %p5467_p9 }
0x1004   : > { %p5470_p3 = pnand %p5469_p0, %p5463_p4 }
0x1006   : > { %5473 = shalt.err (!%p5470_p3)
}
0x1007   : > { %4826 = dma.vmem_to_hbm [thread:$0]  (%p7283_p13), %s7139_s0, 128, %s7137_s3, %s3882_s6  }
0x1008 PF: > { %s7288_s8 = sld [smem:[#allocation29_spill]]  ;;  %s7289_s24 = sld [smem:[#allocation33_spill]] }
0x100e   : > { %s3961_s29 = sand.u32 1, %s7288_s8   ;;  %p7290_p6 = scmp.ne.s32.totalorder %s7289_s24, 0 }
0x100f   : > { %s3962_s27 = scalar_lea.sflag [#allocation7], %s3961_s29 }
0x1010   : > { %p4854_p5 = pnand %p4187_p1, %p7290_p6 }
0x1012   : > { %5507 = dma.done.wait (!%p4854_p5), %s3962_s27, 128  }
0x1013   : > { %5509 = vsyncadd (!%p4854_p5), %s3962_s27, 4294967168  ;;  %s7291_s22 = sadd.s32 4294967294, %s5532_s1  }
0x1014   : > { %s3970_s7 = sand.u32 1, %s7291_s22  }
0x1015   : > { %s3971_s28 = scalar_lea.sflag [#allocation18], %s3970_s7 }
0x1016   : > { %5511 = dma.done.wait (!%p4854_p5), %s3971_s28, 256  }
0x1017   : > { %5513 = vsyncadd (!%p4854_p5), %s3971_s28, 4294967040  ;;  %s3989_s15 = scalar_lea.sflag [#allocation21], %s3961_s29 }
0x1018   : > { %5515 = dma.done.wait (!%p4854_p5), %s3989_s15, 128  }
0x1019   : > { %5517 = vsyncadd (!%p4854_p5), %s3989_s15, 4294967168  ;;  %s7292_s1 = sld [smem:[#allocation30_spill]]  ;;  %s7293_s0 = sld [smem:[#allocation31_spill]] }
0x101a   : > { %s7294_s24 = smov %s5524_s25  ;;  %s7295_s25 = smov %s5528_s5 }
0x101f   : > { %p45_p13 = scmp.ge.s32.totalorder %s7292_s1, 4   ;;  %s7296_s5 = smov %s7293_s0 }
0x1021   :  { %47 = sbr.rel (!%p45_p13) target bundleno = 28 (0x1c), region = 265 }
0x1028   :  { %3994 = vsyncpa [#allocation6], 1 }
0x1029   :  { %3996 = vsyncpa [#allocation6 + $0x1], 1 }
0x102a   :  { %3997 = vsyncpa [#allocation9], 1 }
0x102b   :  { %3998 = vsyncpa [#allocation12], 1 }
0x102c   :  { %3999 = vsyncpa [#allocation15], 1 }
0x102d   :  { %4000 = vsyncpa [#allocation7], 1 }
0x102e   :  { %4002 = vsyncpa [#allocation7 + $0x1], 1 }
0x102f   :  { %4003 = vsyncpa [#allocation18], 1 }
0x1030   :  { %4005 = vsyncpa [#allocation18 + $0x1], 1 }
0x1031   :  { %4006 = vsyncpa [#allocation21], 1 }
0x1032   :  { %4008 = vsyncpa [#allocation21 + $0x1], 1 }

// kernel: _forward_impl.1
= control target key start
LH: loop header
LB: loop body
LE: loop exit
PB: predicated region body
PF: predicated region fallthrough
CT: control target
= control target key end

     0   :  { %s7183_s0 = inlined_call_operand.vmem [shape: bf16[8,16,128], index: 0, kind: input, shape index: {}]   ;;  %s7184_s1 = inlined_call_operand.vmem [shape: bf16[16,8,128], index: 1, kind: input, shape index: {}]   ;;  %s7185_s2 = inlined_call_operand.vmem [shape: bf16[128,384], index: 2, kind: input, shape index: {}]   ;;  %s7186_s3 = inlined_call_operand.vmem [shape: bf16[128,384], index: 3, kind: input, shape index: {}]   ;;  %s7187_s4 = inlined_call_operand.vmem [shape: f32[1,384], index: 4, kind: input, shape index: {}]   ;;  %s7188_s5 = inlined_call_operand.vmem [shape: f32[1,128], index: 5, kind: input, shape index: {}]   ;;  %s7189_s6 = inlined_call_operand.vmem [shape: bf16[128,128], index: 6, kind: input, shape index: {}]   ;;  %s7190_s7 = inlined_call_operand.hbm [shape: f32[1,128], index: 7, kind: input, shape index: {}]   ;;  %s7191_s8 = inlined_call_operand.vmem [shape: bf16[128,128], index: 8, kind: input, shape index: {}]   ;;  %s7192_s9 = inlined_call_operand.hbm [shape: f32[1,128], index: 9, kind: input, shape index: {}]   ;;  %s7193_s10 = inlined_call_operand.vmem [shape: f32[1,128], index: 10, kind: input, shape index: {}]   ;;  %s7194_s11 = inlined_call_operand.<no memory space> [shape: f32[1,1], index: 11, kind: input, shape index: {}]   ;;  %s7195_s12 = inlined_call_operand.vmem [shape: bf16[128,128], index: 12, kind: input, shape index: {}]   ;;  %s7196_s13 = inlined_call_operand.hbm [shape: f32[1,128], index: 13, kind: input, shape index: {}]   ;;  %s7197_s14 = inlined_call_operand.vmem [shape: bf16[128,128], index: 14, kind: input, shape index: {}]   ;;  %s7198_s15 = inlined_call_operand.hbm [shape: f32[1,128], index: 15, kind: input, shape index: {}]   ;;  %s7199_s16 = inlined_call_operand.vmem [shape: bf16[128,256], index: 16, kind: input, shape index: {}]   ;;  %s7200_s17 = inlined_call_operand.hbm [shape: f32[1,256], index: 17, kind: input, shape index: {}]   ;;  %s7201_s18 = inlined_call_operand.vmem [shape: bf16[256,128], index: 18, kind: input, shape index: {}]   ;;  %s7202_s19 = inlined_call_operand.hbm [shape: f32[1,128], index: 19, kind: input, shape index: {}]   ;;  %s7203_s20 = inlined_call_operand.hbm [shape: f32[16,128], index: 20, kind: output, shape index: {0}]   ;;  %s7204_s21 = inlined_call_operand.hbm [shape: f32[16,128], index: 21, kind: output, shape index: {1}]   ;;  %s7205_s22 = inlined_call_operand.hbm [shape: f32[16,128], index: 22, kind: output, shape index: {2}]   ;;  %s7206_s23 = inlined_call_operand.hbm [shape: f32[16,128], index: 23, kind: output, shape index: {3}]  }
   0x1   :  { %7233 = sst [smem:[#allocation34_spill]] %s7183_s0 }
   0x2   :  { %7234 = sst [smem:[#allocation35_spill]] %s7184_s1 }
   0x3   :  { %7235 = sst [smem:[#allocation36_spill]] %s7185_s2 }
   0x4   :  { %7236 = sst [smem:[#allocation37_spill]] %s7186_s3 }
   0x5   :  { %7237 = sst [smem:[#allocation38_spill]] %s7187_s4 }
   0x6   :  { %7238 = sst [smem:[#allocation39_spill]] %s7188_s5 }
   0x7   :  { %7239 = sst [smem:[#allocation40_spill]] %s7189_s6 }
   0x8   :  { %7240 = sst [smem:[#allocation41_spill]] %s7190_s7 }
   0x9   :  { %7241 = sst [smem:[#allocation42_spill]] %s7191_s8 }
   0xa   :  { %7242 = sst [smem:[#allocation43_spill]] %s7192_s9 }
   0xb   :  { %7243 = sst [smem:[#allocation44_spill]] %s7198_s15 }
   0xc   :  { %7244 = sst [smem:[#allocation45_spill]] %s7203_s20 }
   0xd   :  { %7245 = sst [smem:[#allocation46_spill]] %s7204_s21 }
   0xe   :  { %7246 = sst [smem:[#allocation47_spill]] %s7205_s22 }
   0xf   :  { %7247 = sst [smem:[#allocation48_spill]] %s7206_s23 }
  0x10   :  { %29 = sst [smem:[#allocation3]] %s7194_s11 }
  0x11   :  { %30 = vsyncpa [#allocation6], 0 }
  0x12   :  { %31 = vsyncpa [#allocation9], 0 }
  0x13   :  { %32 = vsyncpa [#allocation12], 0 }
  0x14   :  { %33 = vsyncpa [#allocation15], 0 }
  0x15   :  { %34 = vsyncpa [#allocation7], 0 }
  0x16   :  { %36 = vsyncpa [#allocation7 + $0x1], 0 }
  0x17   :  { %37 = vsyncpa [#allocation18], 0 }
  0x18   :  { %39 = vsyncpa [#allocation18 + $0x1], 0 }
  0x19   :  { %40 = vsyncpa [#allocation21], 0 }
  0x1a   :  { %42 = vsyncpa [#allocation21 + $0x1], 0  ;;  %s5671_s24 = smov 0   ;;  %s5673_s25 = smov 0  }
  0x1b   :  { %s5675_s5 = smov 0   ;;  %s5677_s1 = smov 0  }
  0x1c LB: > { %7248 = sst [smem:[#allocation29_spill]] %s5520_s24  ;;  %s5692_s11 = sadd.s32 4294967295, %s5532_s1   ;;  %s5532_s1 = sphi %s5677_s1, %s7292_s1   ;;  %s5528_s5 = sphi %s5675_s5, %s7296_s5   ;;  %s5524_s25 = sphi %s5673_s25, %s7295_s25   ;;  %s5520_s24 = sphi %s5671_s24, %s7294_s24  }
  0x1d   : > { %s7212_s26 = sadd.s32 4294967294, %s5532_s1   ;;  %s5696_s2 = sadd.s32 1, %s5532_s1  }
  0x1e   : > { %7249 = sst [smem:[#allocation30_spill]] %s5696_s2  ;;  %s55_s6 = sadd.s32 1, %s5528_s5 }
  0x1f   : > { %s52_s27 = ssub.s32 %s5532_s1, %s5696_s2  ;;  %p62_p0 = scmp.ne.s32.totalorder %s5528_s5, %s5524_s25 }
  0x20   : > { %p53_p1 = scmp.eq.s32.totalorder %s52_s27, 0  ;;  %p63_p2 = scmp.eq.s32.totalorder %s5532_s1, 0 }
  0x21   : > { %p496_p3 = scmp.eq.s32.totalorder %s5692_s11, 1  ;;  %p501_p4 = scmp.ne.s32.totalorder %s5524_s25, %s5520_s24 }
  0x22   : > { %s5708_s7 = scalar_select %p53_p1, %s5528_s5, %s55_s6  }
  0x23   : > { %p5710_p5 = por %p63_p2, %p62_p0  ;;  %p5714_p6 = por %p496_p3, %p62_p0 }
  0x24   : > { %7250 = sst [smem:[#allocation31_spill]] %s5708_s7  ;;  %p502_p7 = scmp.eq.s32.totalorder %s7212_s26, 1 }
  0x25   : > { %s7251_s28 = scalar_select %p5710_p5, 1, 0 }
  0x26   : > { %s7252_s29 = scalar_select %p5714_p6, 1, 0 }
  0x27   : > { %p4180_p8 = scmp.ge.s32.totalorder %s5532_s1, 1  ;;  %p587_p9 = scmp.lt.s32.totalorder %s5532_s1, 3 }
  0x28   : > { %7253 = sst [smem:[#allocation32_spill]] %s7252_s29  ;;  %p5722_p10 = por %p502_p7, %p501_p4 }
  0x29   : > { %p7220_p11 = scmp.eq.s32.totalorder %s5692_s11, 0  ;;  %p5727_p12 = pnand %p4180_p8, %p587_p9 }
  0x2a   : > { %s7254_s3 = scalar_select %p5722_p10, 1, 0 }
  0x2b   : > { %s7256_s0 = scalar_select %p5727_p12, 1, 0 }
  0x2c   : > { %7255 = sst [smem:[#allocation33_spill]] %s7254_s3  ;;  %s5534_s4 = smov [#allocation8]  }
  0x2d   : > { %s629_s30 = sshll.u32 %s5534_s4, 4  ;;  %p4834_p13 = pneg %p5727_p12  ;;  %s630_s30 = int_to_ptr.vmem [resolvable:$true] %s629_s30 }
  0x2e   : > { %s5535_s6 = smov [#allocation11]   ;;  %s5536_s7 = smov [#allocation5]  }
  0x2f   : > { %s663_s27 = sshll.u32 %s5535_s6, 4  ;;  %p5735_p0 = pnand %p7220_p11, %p4834_p13  ;;  %s5739_s27 = int_to_ptr.vmem [resolvable:$true] %s663_s27 }
  0x30   : > { %s615_s2 = sshll.u32 %s5536_s7, 4  ;;  %s7258_s9 = sld [smem:[#allocation43_spill]]  ;;  %s5741_s2 = int_to_ptr.vmem [resolvable:$true] %s615_s2 }
  0x31   : > { %p5751_p2 = pneg %p5735_p0 }
  0x36   : > { %s5194_s4 = scalar_lea.hbm %s7258_s9, 16 }
  0x37   : > { %p5195_p1 = scmp.ne.s32.totalorder %s7258_s9, %s5194_s4  ;;  %p5201_p7 = scmp.lt.u32.totalorder %s5194_s4, %s7258_s9 }
  0x39   : > { %p5197_p3 = pnand %p5751_p2, %p5195_p1 }
  0x3b   : > { %p5198_p4 = pneg %p5197_p3 }
  0x3d   : > { %p5203_p8 = pnand %p5201_p7, %p5198_p4 }
  0x3f   : > { %5206 = shalt.err (!%p5203_p8)
}
  0x40   : > { %s5207_s24 = scalar_lea.vmem %s630_s30, 16  ;;  %s5214_s20 = scalar_lea.vmem %s630_s30, 32 }
  0x41   : > { %p5208_p9 = scmp.ne.s32.totalorder %s630_s30, %s5207_s24  ;;  %p5215_p10 = scmp.lt.s32.totalorder %s630_s30, %s630_s30 }
  0x42   : > { %p5216_p6 = scmp.lt.s32.totalorder %s5214_s20, %s5207_s24 }
  0x43   : > { %p5210_p13 = pnand %p5208_p9, %p5751_p2 }
  0x44   : > { %p5217_p12 = por %p5216_p6, %p5215_p10 }
  0x45   : > { %p5211_p11 = pneg %p5210_p13 }
  0x47   : > { %p5218_p5 = pnand %p5217_p12, %p5211_p11 }
  0x49   : > { %5221 = shalt.err (!%p5218_p5)
}
  0x4a   : > { %4840 = dma.hbm_to_vmem [thread:$0]  (!%p5735_p0), %s7258_s9, 16, %s630_s30, [#allocation9]  }
  0x4b   : > { %s7260_s15 = sld [smem:[#allocation44_spill]] }
  0x51   : > { %s5222_s7 = scalar_lea.hbm %s7260_s15, 16 }
  0x52   : > { %p5223_p1 = scmp.ne.s32.totalorder %s7260_s15, %s5222_s7  ;;  %p5229_p5 = scmp.lt.u32.totalorder %s5222_s7, %s7260_s15 }
  0x54   : > { %p5225_p3 = pnand %p5223_p1, %p5751_p2 }
  0x56   : > { %p5226_p6 = pneg %p5225_p3 }
  0x58   : > { %p5231_p10 = pnand %p5229_p5, %p5226_p6 }
  0x5a   : > { %5234 = shalt.err (!%p5231_p10)
}
  0x5b   : > { %s5235_s30 = scalar_lea.vmem %s5739_s27, 16  ;;  %s5242_s21 = scalar_lea.vmem %s5739_s27, 32 }
  0x5c   : > { %p5236_p11 = scmp.ne.s32.totalorder %s5739_s27, %s5235_s30  ;;  %p5243_p7 = scmp.lt.s32.totalorder %s5739_s27, %s5739_s27 }
  0x5d   : > { %p5244_p8 = scmp.lt.s32.totalorder %s5242_s21, %s5235_s30 }
  0x5e   : > { %p5238_p12 = pnand %p5236_p11, %p5751_p2 }
  0x5f   : > { %p5245_p9 = por %p5244_p8, %p5243_p7 }
  0x60   : > { %p5239_p4 = pneg %p5238_p12 }
  0x62   : > { %p5246_p13 = pnand %p5245_p9, %p5239_p4 }
  0x64   : > { %5249 = shalt.err (!%p5246_p13)
}
  0x65   : > { %4846 = dma.hbm_to_vmem [thread:$0]  (!%p5735_p0), %s7260_s15, 16, %s5739_s27, [#allocation12]  }
  0x66   : > { %s7261_s4 = sld [smem:[#allocation41_spill]] }
  0x6c   : > { %s5250_s7 = scalar_lea.hbm %s7261_s4, 16 }
  0x6d   : > { %p5251_p1 = scmp.ne.s32.totalorder %s7261_s4, %s5250_s7  ;;  %p5257_p5 = scmp.lt.u32.totalorder %s5250_s7, %s7261_s4 }
  0x6f   : > { %p5253_p3 = pnand %p5251_p1, %p5751_p2 }
  0x71   : > { %p5254_p6 = pneg %p5253_p3 }
  0x73   : > { %p5259_p10 = pnand %p5257_p5, %p5254_p6 }
  0x75   : > { %5262 = shalt.err (!%p5259_p10)
}
  0x76   : > { %s5263_s27 = scalar_lea.vmem %s5741_s2, 16  ;;  %s5270_s29 = scalar_lea.vmem %s5741_s2, 32 }
  0x77   : > { %p5264_p11 = scmp.ne.s32.totalorder %s5741_s2, %s5263_s27  ;;  %p5271_p7 = scmp.lt.s32.totalorder %s5741_s2, %s5741_s2 }
  0x78   : > { %p5272_p8 = scmp.lt.s32.totalorder %s5270_s29, %s5263_s27 }
  0x79   : > { %p5266_p12 = pnand %p5264_p11, %p5751_p2 }
  0x7a   : > { %p5273_p9 = por %p5272_p8, %p5271_p7 }
  0x7b   : > { %p5267_p4 = pneg %p5266_p12 }
  0x7d   : > { %p5274_p13 = pnand %p5273_p9, %p5267_p4 }
  0x7f   : > { %5277 = shalt.err (!%p5274_p13)
}
  0x80   : > { %4837 = dma.hbm_to_vmem [thread:$0]  (!%p5735_p0), %s7261_s4, 16, %s5741_s2, [#allocation6]  }
  0x81   : > { %s5537_s22 = smov [#allocation10]   ;;  %s5538_s24 = smov [#allocation13]  }
  0x82   : > { %s649_s7 = sshll.u32 %s5537_s22, 4  ;;  %s677_s20 = sshll.u32 %s5538_s24, 4  ;;  %s650_s7 = int_to_ptr.vmem [resolvable:$true] %s649_s7  ;;  %s678_s20 = int_to_ptr.vmem [resolvable:$true] %s677_s20 }
  0x83   : > { %s5278_s27 = scalar_lea.hbm %s7196_s13, 16 }
  0x84   : > { %p5279_p1 = scmp.ne.s32.totalorder %s7196_s13, %s5278_s27  ;;  %p5285_p5 = scmp.lt.u32.totalorder %s5278_s27, %s7196_s13 }
  0x86   : > { %p5281_p3 = pnand %p5279_p1, %p5751_p2 }
  0x88   : > { %p5282_p6 = pneg %p5281_p3 }
  0x8a   : > { %p5287_p10 = pnand %p5285_p5, %p5282_p6 }
  0x8c   : > { %5290 = shalt.err (!%p5287_p10)
}
  0x8d   : > { %s5291_s2 = scalar_lea.vmem %s650_s7, 16  ;;  %s5298_s3 = scalar_lea.vmem %s650_s7, 32 }
  0x8e   : > { %p5292_p11 = scmp.ne.s32.totalorder %s650_s7, %s5291_s2  ;;  %p5299_p7 = scmp.lt.s32.totalorder %s650_s7, %s650_s7 }
  0x8f   : > { %p5300_p8 = scmp.lt.s32.totalorder %s5298_s3, %s5291_s2 }
  0x90   : > { %p5294_p12 = pnand %p5292_p11, %p5751_p2 }
  0x91   : > { %p5301_p9 = por %p5300_p8, %p5299_p7 }
  0x92   : > { %p5295_p4 = pneg %p5294_p12 }
  0x94   : > { %p5302_p13 = pnand %p5301_p9, %p5295_p4 }
  0x96   : > { %5305 = shalt.err (!%p5302_p13)
}
  0x97   : > { %4843 = dma.hbm_to_vmem [thread:$0]  (!%p5735_p0), %s7196_s13, 16, %s650_s7, [#allocation9]  }
  0x98   : > { %s5306_s30 = scalar_lea.hbm %s7200_s17, 32 }
  0x99   : > { %p5307_p1 = scmp.ne.s32.totalorder %s7200_s17, %s5306_s30  ;;  %p5313_p5 = scmp.lt.u32.totalorder %s5306_s30, %s7200_s17 }
  0x9b   : > { %p5309_p3 = pnand %p5307_p1, %p5751_p2 }
  0x9d   : > { %p5310_p6 = pneg %p5309_p3 }
  0x9f   : > { %p5315_p10 = pnand %p5313_p5, %p5310_p6 }
  0xa1   : > { %5318 = shalt.err (!%p5315_p10)
}
  0xa2   : > { %s5319_s2 = scalar_lea.vmem %s678_s20, 32  ;;  %p5327_p7 = scmp.lt.s32.totalorder %s678_s20, %s678_s20 }
  0xa3   : > { %p5320_p11 = scmp.ne.s32.totalorder %s678_s20, %s5319_s2  ;;  %p5328_p8 = scmp.lt.s32.totalorder %s5319_s2, %s5319_s2 }
  0xa5   : > { %p5322_p12 = pnand %p5320_p11, %p5751_p2  ;;  %p5329_p9 = por %p5328_p8, %p5327_p7 }
  0xa7   : > { %p5323_p4 = pneg %p5322_p12 }
  0xa9   : > { %p5330_p13 = pnand %p5329_p9, %p5323_p4 }
  0xab   : > { %5333 = shalt.err (!%p5330_p13)
}
  0xac   : > { %4849 = dma.hbm_to_vmem [thread:$0]  (!%p5735_p0), %s7200_s17, 32, %s678_s20, [#allocation12]  }
  0xad   : > { %s5539_s9 = smov [#allocation14]   ;;  %s5334_s30 = scalar_lea.hbm %s7202_s19, 16 }
  0xae   : > { %s691_s22 = sshll.u32 %s5539_s9, 4  ;;  %p5335_p1 = scmp.ne.s32.totalorder %s7202_s19, %s5334_s30  ;;  %s692_s22 = int_to_ptr.vmem [resolvable:$true] %s691_s22 }
  0xaf   : > { %p5341_p5 = scmp.lt.u32.totalorder %s5334_s30, %s7202_s19 }
  0xb0   : > { %p5337_p3 = pnand %p5335_p1, %p5751_p2 }
  0xb2   : > { %p5338_p6 = pneg %p5337_p3 }
  0xb4   : > { %p5343_p10 = pnand %p5341_p5, %p5338_p6 }
  0xb6   : > { %5346 = shalt.err (!%p5343_p10)
}
  0xb7   : > { %s5347_s20 = scalar_lea.vmem %s692_s22, 16  ;;  %s5354_s2 = scalar_lea.vmem %s692_s22, 32 }
  0xb8   : > { %p5348_p11 = scmp.ne.s32.totalorder %s692_s22, %s5347_s20  ;;  %p5355_p7 = scmp.lt.s32.totalorder %s692_s22, %s692_s22 }
  0xb9   : > { %p5356_p8 = scmp.lt.s32.totalorder %s5354_s2, %s5347_s20 }
  0xba   : > { %p5350_p12 = pnand %p5348_p11, %p5751_p2 }
  0xbb   : > { %p5357_p9 = por %p5356_p8, %p5355_p7 }
  0xbc   : > { %p5351_p4 = pneg %p5350_p12 }
  0xbe   : > { %p5358_p13 = pnand %p5357_p9, %p5351_p4 }
  0xc0   : > { %5361 = shalt.err (!%p5358_p13)
}
  0xc1   : > { %4852 = dma.hbm_to_vmem [thread:$0]  (!%p5735_p0), %s7202_s19, 16, %s692_s22, [#allocation15]  }
  0xc2   : > { %p4187_p1 = scmp.ge.s32.totalorder %s5532_s1, 2 }
  0xc3   : > { %p7262_p2 = scmp.ne.s32.totalorder (!%p4187_p1), %s7251_s28, 0 }
  0xc4   : > { %698 = sbr.rel (%p4187_p1) target bundleno = 218 (0xda), region = 88 }
  0xcb   : > { %701 = sbr.rel (!%p7262_p2) target bundleno = 218 (0xda), region = 92  ;;  %s703_s6 = sand.u32 (%p7262_p2), 1, %s5528_s5  }
  0xcc   : > { %s4189_s9 = sshll.u32 (%p7262_p2), %s5532_s1, 2  ;;  %s4188_s15 = sshll.u32 (%p7262_p2), %s703_s6, 5 }
  0xcd   : > { %s7263_s26 = sld [smem:[#allocation34_spill]] (%p7262_p2)  ;;  %s705_s22 = scalar_lea.vmem (%p7262_p2), [#allocation4], %s4188_s15 }
  0xd3   : > { %s707_s21 = scalar_lea.vmem %s7263_s26, %s4189_s9 }
  0xd4   : > { %v723_v0 = vld [vmem:[%s707_s21] sm:$0xf]  ;;  %v725_v1 = vld [vmem:[%s707_s21 + $0x8] sm:$0xf]  ;;  %v727_v2 = vld [vmem:[%s707_s21 + $0x10] sm:$0xf] }
  0xd5   : > { %724 = vst [vmem:[%s705_s22] sm:$0xf] %v723_v0  ;;  %726 = vst [vmem:[%s705_s22 + $0x4] sm:$0xf] %v725_v1  ;;  %v729_v3 = vld [vmem:[%s707_s21 + $0x18] sm:$0xf] }
  0xd6   : > { %v731_v4 = vld [vmem:[%s707_s21 + $0x20] sm:$0xf]  ;;  %728 = vst [vmem:[%s705_s22 + $0x8] sm:$0xf] %v727_v2  ;;  %730 = vst [vmem:[%s705_s22 + $0xc] sm:$0xf] %v729_v3 }
  0xd7   : > { %732 = vst [vmem:[%s705_s22 + $0x10] sm:$0xf] %v731_v4  ;;  %v733_v5 = vld [vmem:[%s707_s21 + $0x28] sm:$0xf]  ;;  %v735_v6 = vld [vmem:[%s707_s21 + $0x30] sm:$0xf] }
  0xd8   : > { %v737_v7 = vld [vmem:[%s707_s21 + $0x38] sm:$0xf]  ;;  %734 = vst [vmem:[%s705_s22 + $0x14] sm:$0xf] %v733_v5  ;;  %736 = vst [vmem:[%s705_s22 + $0x18] sm:$0xf] %v735_v6 }
  0xd9   : > { %738 = vst [vmem:[%s705_s22 + $0x1c] sm:$0xf] %v737_v7 }
  0xda PF: > { %p7264_p0 = scmp.ne.s32.totalorder %s7256_s0, 0 }
  0xdb   : > { %s5882_s28 = sand.u32 (!%p7264_p0), 1, %s5524_s25   ;;  %p7265_p3 = scmp.eq.s32.totalorder (!%p7264_p0), %s5692_s11, 0 }
  0xdc   : > { %789 = sbr.rel (%p7264_p0) target bundleno = 4104 (0x1008), region = 137  ;;  %s4191_s27 = sshll.u32 (!%p7264_p0), %s5882_s28, 5 }
  0xdd   : > { %s5885_s29 = scalar_lea.vmem (!%p7264_p0), [#allocation4], %s4191_s27 }
  0xe3   : > { %5491 = dma.done.wait (%p7265_p3), [#allocation6], 16   ;;  %p7266_p6 = pmov %p7265_p3 }
  0xe4   : > { %p7267_p5 = pmov %p7265_p3 }
  0xe5   : > { %5493 = vsyncadd (%p7266_p6), [#allocation6], 4294967280 }
  0xe6   : > { %5495 = dma.done.wait (%p7267_p5), [#allocation9], 32   ;;  %p7268_p10 = pmov %p7265_p3 }
  0xe7   : > { %p7269_p11 = pmov %p7265_p3 }
  0xe8   : > { %5497 = vsyncadd (%p7268_p10), [#allocation9], 4294967264 }
  0xe9   : > { %5499 = dma.done.wait (%p7269_p11), [#allocation12], 48   ;;  %p7270_p12 = pmov %p7265_p3 }
  0xea   : > { %p7271_p4 = pmov %p7265_p3 }
  0xeb   : > { %5501 = vsyncadd (%p7270_p12), [#allocation12], 4294967248 }
  0xec   : > { %5503 = dma.done.wait (%p7271_p4), [#allocation15], 16   ;;  %p7272_p7 = pmov %p7265_p3 }
  0xed   : > { %v5540_v8 = vmov 0   ;;  %s7273_s20 = sld [smem:[#allocation36_spill]]  ;;  %v4949_v20 = vld [vmem:[%s5885_s29] sm:$0xff]   ;;  %s7274_s3 = sld [smem:[#allocation37_spill]]  ;;  %v4958_v39 = vld [vmem:[%s5885_s29 + $0x8] sm:$0xff]   ;;  %v4967_v43 = vld [vmem:[%s5885_s29 + $0x10] sm:$0xff]   ;;  %v948_v62 = vlaneseq }
  0xee   : > { %5505 = vsyncadd (%p7272_p7), [#allocation15], 4294967280  ;;  %1147 = vmatprep.mubr.bf16.mxu0 %v5540_v8  ;;  %4922 = vset.pattern.permute.xlu0 %v5540_v8  ;;  %v5541_v44 = vmov 0.0   ;;  %v4976_v51 = vld [vmem:[%s5885_s29 + $0x18] sm:$0xff]   ;;  %vm5542_vm0 = vmmov 0   ;;  %s7275_s2 = sld [smem:[#allocation38_spill]] }
  0xef   : > { %4921 = vset.pattern.permute.xlu1 %v5540_v8  ;;  %4550 = vmatprep.mubr.bf16.mxu1 %v4949_v20  ;;  %v6180_v63 = vshrl.u32 %v948_v62, 7  ;;  %s7276_s9 = sld [smem:[#allocation39_spill]]  ;;  %s7277_s7 = sld [smem:[#allocation40_spill]]  ;;  %vm2921_vm1 = vcmask 1041409   ;;  %vm2923_vm2 = vcmask 1042434   ;;  %vm2925_vm3 = vcmask 1043459  }
  0xf0   : > { %s4202_s6 = sshll.u32 %s5692_s11, 3  ;;  %s7278_s22 = sld [smem:[#allocation35_spill]]  ;;  %vm2927_vm4 = vcmask 1044484   ;;  %vm2929_vm5 = vcmask 1045509   ;;  %vm2931_vm6 = vcmask 1046534   ;;  %vm2933_vm7 = vcmask 1047559  }
  0xf1   : > { %v6183_v0 = vsub.s32 0, %v6180_v63  ;;  %v6189_v2 = vsub.s32 1, %v6180_v63  ;;  %p900_p8 = scmp.lt.s32.totalorder %s4202_s6, 15  ;;  %s7279_s8 = sld [smem:[#allocation42_spill]]  ;;  %vm2936_vm8 = vcmask 64512  }
  0xf2   : > { %s6758_s27 = sshll.u32 %s5882_s28, 3  ;;  %s7280_s15 = sld [smem:[#allocation32_spill]] }
  0xf3   : > { %v4923_v9 = vld [vmem:[%s7273_s20 + $0x4] ss:$12 sps:$4 sm:$0xff]   ;;  %v4925_v10 = vld [vmem:[%s7273_s20] ss:$12 sps:$4 sm:$0xff]   ;;  %v4926_v11 = vld [vmem:[%s7273_s20 + $0x1c] ss:$12 sps:$4 sm:$0xff]  }
  0xf4   : > { %1115 = vmatprep.subr.bf16.mxu0 %v4923_v9  ;;  %v4928_v12 = vld [vmem:[%s7273_s20 + $0x18] ss:$12 sps:$4 sm:$0xff]   ;;  %v4929_v13 = vld [vmem:[%s7273_s20 + $0x34] ss:$12 sps:$4 sm:$0xff]   ;;  %v4931_v14 = vld [vmem:[%s7273_s20 + $0x30] ss:$12 sps:$4 sm:$0xff]  }
  0xf5   : > { %1116 = vmatpush1.bf16.msra.mxu0 %v4925_v10  ;;  %v4932_v15 = vld [vmem:[%s7273_s20 + $0x4c] ss:$12 sps:$4 sm:$0xff]   ;;  %v4943_v16 = vld [vmem:[%s7273_s20 + $0x8] ss:$12 sps:$4 sm:$0xff]   ;;  %v4935_v18 = vld [vmem:[%s7273_s20 + $0x64] ss:$12 sps:$4 sm:$0xff]  }
  0xf6   : > { %1117 = vmatprep.subr.bf16.mxu0 %v4926_v11  ;;  %v4934_v17 = vld [vmem:[%s7273_s20 + $0x48] ss:$12 sps:$4 sm:$0xff]   ;;  %4534 = vmatprep.subr.bf16.mxu1 %v4943_v16  ;;  %v4947_v19 = vld [vmem:[%s7273_s20 + $0x20] ss:$12 sps:$4 sm:$0xff]   ;;  %v4950_v21 = vld [vmem:[%s7273_s20 + $0x38] ss:$12 sps:$4 sm:$0xff]  }
  0xf7   : > { %4535 = vmatpush3.bf16.msra.mxu1 %v4943_v16  ;;  %v4937_v22 = vld [vmem:[%s7273_s20 + $0x60] ss:$12 sps:$4 sm:$0xff]   ;;  %v4938_v23 = vld [vmem:[%s7273_s20 + $0x7c] ss:$12 sps:$4 sm:$0xff]   ;;  %v4940_v25 = vld [vmem:[%s7273_s20 + $0x78] ss:$12 sps:$4 sm:$0xff]  }
  0xf8   : > { %4536 = vmatprep.subr.bf16.mxu1 %v4947_v19  ;;  %v4954_v24 = vld [vmem:[%s7273_s20 + $0x50] ss:$12 sps:$4 sm:$0xff]   ;;  %v4941_v26 = vld [vmem:[%s7273_s20 + $0x94] ss:$12 sps:$4 sm:$0xff]   ;;  %v4945_v29 = vld [vmem:[%s7273_s20 + $0xac] ss:$12 sps:$4 sm:$0xff]  }
  0xf9   : > { %1118 = vmatpush1.bf16.msra.mxu0 %v4928_v12  ;;  %v4959_v27 = vld [vmem:[%s7273_s20 + $0x68] ss:$12 sps:$4 sm:$0xff]   ;;  %v4944_v28 = vld [vmem:[%s7273_s20 + $0x90] ss:$12 sps:$4 sm:$0xff]   ;;  %v4963_v30 = vld [vmem:[%s7273_s20 + $0x80] ss:$12 sps:$4 sm:$0xff]  }
  0xfa   : > { %1119 = vmatprep.subr.bf16.mxu0 %v4929_v13  ;;  %v4948_v31 = vld [vmem:[%s7273_s20 + $0xa8] ss:$12 sps:$4 sm:$0xff]   ;;  %v5976_v32 = vld [vmem:[%s7274_s3 + $0x4] ss:$12 sps:$4 sm:$0xff]   ;;  %v5984_v34 = vld [vmem:[%s7274_s3] ss:$12 sps:$4 sm:$0xff]  }
  0xfb   : > { %4537 = vmatpush3.bf16.msra.mxu1 %v4947_v19  ;;  %v4968_v33 = vld [vmem:[%s7273_s20 + $0x98] ss:$12 sps:$4 sm:$0xff]   ;;  %v5990_v35 = vld [vmem:[%s7274_s3 + $0x1c] ss:$12 sps:$4 sm:$0xff]   ;;  %v6006_v38 = vld [vmem:[%s7274_s3 + $0x34] ss:$12 sps:$4 sm:$0xff]  }
  0xfc   : > { %4538 = vmatprep.subr.bf16.mxu1 %v4950_v21  ;;  %v4972_v36 = vld [vmem:[%s7273_s20 + $0xb0] ss:$12 sps:$4 sm:$0xff]   ;;  %v5999_v37 = vld [vmem:[%s7274_s3 + $0x18] ss:$12 sps:$4 sm:$0xff]   ;;  %v6024_v42 = vld [vmem:[%s7274_s3 + $0x48] ss:$12 sps:$4 sm:$0xff]  }
  0xfd   : > { %1120 = vmatpush1.bf16.msra.mxu0 %v4931_v14  ;;  %v6013_v40 = vld [vmem:[%s7274_s3 + $0x30] ss:$12 sps:$4 sm:$0xff]   ;;  %v6019_v41 = vld [vmem:[%s7274_s3 + $0x4c] ss:$12 sps:$4 sm:$0xff]   ;;  %v6031_v45 = vld [vmem:[%s7274_s3 + $0x8] ss:$12 sps:$4 sm:$0xff]  }
  0xfe   : > { %1121 = vmatprep.subr.bf16.mxu0 %v4932_v15  ;;  %v6036_v46 = vld [vmem:[%s7274_s3 + $0x64] ss:$12 sps:$4 sm:$0xff]   ;;  %v6043_v47 = vld [vmem:[%s7274_s3 + $0x20] ss:$12 sps:$4 sm:$0xff]   ;;  %v6055_v49 = vld [vmem:[%s7274_s3 + $0x7c] ss:$12 sps:$4 sm:$0xff]  }
  0xff   : > { %4539 = vmatpush3.bf16.msra.mxu1 %v4950_v21  ;;  %v6049_v48 = vld [vmem:[%s7274_s3 + $0x60] ss:$12 sps:$4 sm:$0xff]   ;;  %v6062_v50 = vld [vmem:[%s7274_s3 + $0x38] ss:$12 sps:$4 sm:$0xff]   ;;  %v6083_v54 = vld [vmem:[%s7274_s3 + $0x50] ss:$12 sps:$4 sm:$0xff]  }
 0x100   : > { %4540 = vmatprep.subr.bf16.mxu1 %v4954_v24  ;;  %v6069_v52 = vld [vmem:[%s7274_s3 + $0x78] ss:$12 sps:$4 sm:$0xff]   ;;  %v6075_v53 = vld [vmem:[%s7274_s3 + $0x94] ss:$12 sps:$4 sm:$0xff]   ;;  %v6089_v55 = vld [vmem:[%s7274_s3 + $0x90] ss:$12 sps:$4 sm:$0xff]  }
 0x101   : > { %1122 = vmatpush1.bf16.msra.mxu0 %v4934_v17  ;;  %v6097_v56 = vld [vmem:[%s7274_s3 + $0xac] ss:$12 sps:$4 sm:$0xff]   ;;  %v6104_v57 = vld [vmem:[%s7274_s3 + $0x68] ss:$12 sps:$4 sm:$0xff]   ;;  %v6137_v61 = vld [vmem:[%s7274_s3 + $0xb0] ss:$12 sps:$4 sm:$0xff]  }
 0x102   : > { %1123 = vmatprep.subr.bf16.mxu0 %v4935_v18  ;;  %v6110_v58 = vld [vmem:[%s7274_s3 + $0xa8] ss:$12 sps:$4 sm:$0xff]   ;;  %v6119_v59 = vld [vmem:[%s7274_s3 + $0x80] ss:$12 sps:$4 sm:$0xff]   ;;  %v6128_v60 = vld [vmem:[%s7274_s3 + $0x98] ss:$12 sps:$4 sm:$0xff]  }
 0x103   : > { %4541 = vmatpush3.bf16.msra.mxu1 %v4954_v24  ;;  %v946_v1 = vld [vmem:[%s7275_s2] sm:$0x7]  ;;  %v6201_v13 = vsub.s32 2, %v6180_v63  ;;  %s7298_s6 = smov (!%p900_p8, %s4202_s6), 15  ;;  %s7227_s23 = scalar_lea.vmem [#allocation19], %s6758_s27 }
 0x104   : > { %4542 = vmatprep.subr.bf16.mxu1 %v4959_v27  ;;  %v6192_v3 = vrot.slane %v946_v1, %v6183_v0  ;;  %v6195_v4 = vrot.slane %v946_v1, %v6189_v2  ;;  %s4203_s30 = sshll.u32 %s7298_s6, 2  ;;  %s2869_s2 = sld [smem:[#allocation3]] }
 0x105   : > { %1124 = vmatpush1.bf16.msra.mxu0 %v4937_v22  ;;  %v959_v17 = vrot.slane %v946_v1, %v6201_v13  ;;  %s6665_s29 = scalar_lea.vmem %s7278_s22, %s4203_s30  ;;  %s7226_s24 = scalar_lea.vmem [#allocation20], %s6758_s27 }
 0x106   : > { %1125 = vmatprep.subr.bf16.mxu0 %v4938_v23  ;;  %s3886_s30 = sand.u32 1, %s5692_s11   ;;  %s7042_s26 = sshll.u32 %s5692_s11, 7 }
 0x107   : > { %4543 = vmatpush3.bf16.msra.mxu1 %v4959_v27  ;;  %s884_s21 = scalar_lea.vmem [#allocation17], %s6758_s27  ;;  %s7062_s4 = scalar_lea.sflag [#allocation18], %s3886_s30 }
 0x108   : > { %4544 = vmatprep.subr.bf16.mxu1 %v4963_v30  ;;  %s3923_s22 = sshll.u32 %s884_s21, 4  ;;  %p7283_p13 = scmp.ne.s32.totalorder %s7280_s15, 0  ;;  %s7053_s22 = int_to_ptr.vmem [resolvable:$true] %s3923_s22 }
 0x109   : > { %1126 = vmatpush1.bf16.msra.mxu0 %v4940_v25  ;;  %s5544_s0 = smov [#allocation17]  }
 0x10a   : > { %1127 = vmatprep.subr.bf16.mxu0 %v4941_v26 }
 0x10b   : > { %4545 = vmatpush3.bf16.msra.mxu1 %v4963_v30 }
 0x10c   : > { %4546 = vmatprep.subr.bf16.mxu1 %v4968_v33 }
 0x10d   : > { %1128 = vmatpush1.bf16.msra.mxu0 %v4944_v28 }
 0x10e   : > { %1129 = vmatprep.subr.bf16.mxu0 %v4945_v29 }
 0x10f   : > { %4547 = vmatpush3.bf16.msra.mxu1 %v4968_v33 }
 0x110   : > { %4548 = vmatprep.subr.bf16.mxu1 %v4972_v36 }
 0x111   : > { %1130 = vmatpush1.bf16.msra.mxu0 %v4948_v31 }
 0x112   : > { %1542 = vmatprep.subr.bf16.mxu0 %v5976_v32 }
 0x113   : > { %4549 = vmatpush3.bf16.msra.mxu1 %v4972_v36 }
 0x114   : > { %1148 = vmatmul.mubr.bf16.vlgmr.msra.gmra.mrb[0].mxu0 %v4949_v20  ;;  %4558 = vmatprep.subr.bf16.mxu1 %v5541_v44 }
 0x115   : > { %1543 = vmatpush1.bf16.msra.mxu0 %v5984_v34  ;;  %1157 = vmatprep.mubr.bf16.mxu0 %v5540_v8 }
 0x116   : > { %1544 = vmatprep.subr.bf16.mxu0 %v5990_v35  ;;  %4551 = vmatmul.mubr.bf16.vlgmr.msra.gmra.mrb[0].mxu1 %v4958_v39 }
 0x117   : > { %4559 = vmatpush3.bf16.msra.mxu1 %v6031_v45  ;;  %4554 = vmatprep.mubr.bf16.mxu1 %v4967_v43 }
 0x118   : > { %4560 = vmatprep.subr.bf16.mxu1 %v5541_v44 }
 0x119   : > { %1545 = vmatpush1.bf16.msra.mxu0 %v5999_v37 }
 0x11a   : > { %1546 = vmatprep.subr.bf16.mxu0 %v6006_v38 }
 0x11b   : > { %4561 = vmatpush3.bf16.msra.mxu1 %v6043_v47 }
 0x11c   : > { %1158 = vmatmul.mubr.bf16.gmra.mrb[4].mxu0 %v4958_v39  ;;  %4562 = vmatprep.subr.bf16.mxu1 %v5541_v44 }
 0x11d   : > { %1547 = vmatpush1.bf16.msra.mxu0 %v6013_v40  ;;  %1167 = vmatprep.mubr.bf16.mxu0 %v5540_v8 }
 0x11e   : > { %1548 = vmatprep.subr.bf16.mxu0 %v6019_v41  ;;  %4555 = vmatmul.mubr.bf16.gmra.mrb[4].mxu1 %v4976_v51 }
 0x11f   : > { %4563 = vmatpush3.bf16.msra.mxu1 %v6062_v50  ;;  %4574 = vmatprep.mubr.msk.bf16.mxu1 %vm5542_vm0, %v5541_v44 }
 0x120   : > { %4564 = vmatprep.subr.bf16.mxu1 %v5541_v44 }
 0x121   : > { %1549 = vmatpush1.bf16.msra.mxu0 %v6024_v42 }
 0x122   : > { %1550 = vmatprep.subr.bf16.mxu0 %v6036_v46 }
 0x123   : > { %4565 = vmatpush3.bf16.msra.mxu1 %v6083_v54 }
 0x124   : > { %1168 = vmatmul.mubr.bf16.gmra.mrb[8].mxu0 %v4967_v43  ;;  %4566 = vmatprep.subr.bf16.mxu1 %v5541_v44 }
 0x125   : > { %1551 = vmatpush1.bf16.msra.mxu0 %v6049_v48  ;;  %1177 = vmatprep.mubr.bf16.mxu0 %v5540_v8 }
 0x126   : > { %1552 = vmatprep.subr.bf16.mxu0 %v6055_v49 }
 0x127   : > { %4567 = vmatpush3.bf16.msra.mxu1 %v6104_v57 }
 0x128   : > { %4568 = vmatprep.subr.bf16.mxu1 %v5541_v44 }
 0x129   : > { %1553 = vmatpush1.bf16.msra.mxu0 %v6069_v52 }
 0x12a   : > { %1554 = vmatprep.subr.bf16.mxu0 %v6075_v53 }
 0x12b   : > { %4569 = vmatpush3.bf16.msra.mxu1 %v6119_v59 }
 0x12c   : > { %1178 = vmatmul.mubr.bf16.gmra.mrb[12].mxu0 %v4976_v51  ;;  %4570 = vmatprep.subr.bf16.mxu1 %v5541_v44 }
 0x12d   : > { %1555 = vmatpush1.bf16.msra.mxu0 %v6089_v55  ;;  %1574 = vmatprep.mubr.bf16.mxu0 %v5540_v8 }
 0x12e   : > { %1556 = vmatprep.subr.bf16.mxu0 %v6097_v56 }
 0x12f   : > { %4571 = vmatpush3.bf16.msra.mxu1 %v6128_v60 }
 0x130   : > { %4572 = vmatprep.subr.bf16.mxu1 %v5541_v44 }
 0x131   : > { %1557 = vmatpush1.bf16.msra.mxu0 %v6110_v58 }
 0x132   : > { %1655 = vmatprep.subr.bf16.mxu0 %v5976_v32 }
 0x133   : > { %4573 = vmatpush3.bf16.msra.mxu1 %v6137_v61 }
 0x134   : > { %1575 = vmatmul.mubr.bf16.vlgmr.msra.gmra.mrb[16].mxu0 %v5540_v8  ;;  %4578 = vmatprep.subr.bf16.mxu1 %v5541_v44 }
 0x135   : > { %1656 = vmatpush1.bf16.msra.mxu0 %v5984_v34  ;;  %1687 = vmatprep.mubr.bf16.mxu0 %v5540_v8 }
 0x136   : > { %1657 = vmatprep.subr.bf16.mxu0 %v5990_v35  ;;  %4575 = vmatmul.mubr.bf16.vlgmr.msra.gmra.mrb[8].mxu1 %v5540_v8 }
 0x137   : > { %4579 = vmatpush3.bf16.msra.mxu1 %v6031_v45  ;;  %4594 = vmatprep.mubr.msk.bf16.mxu1 %vm5542_vm0, %v5541_v44 }
 0x138   : > { %4580 = vmatprep.subr.bf16.mxu1 %v5541_v44 }
 0x139   : > { %1658 = vmatpush1.bf16.msra.mxu0 %v5999_v37 }
 0x13a   : > { %1659 = vmatprep.subr.bf16.mxu0 %v6006_v38 }
 0x13b   : > { %4581 = vmatpush3.bf16.msra.mxu1 %v6043_v47 }
 0x13c   : > { %4582 = vmatprep.subr.bf16.mxu1 %v5541_v44 }
 0x13d   : > { %1660 = vmatpush1.bf16.msra.mxu0 %v6013_v40 }
 0x13e   : > { %1661 = vmatprep.subr.bf16.mxu0 %v6019_v41 }
 0x13f   : > { %4583 = vmatpush3.bf16.msra.mxu1 %v6062_v50 }
 0x140   : > { %4584 = vmatprep.subr.bf16.mxu1 %v5541_v44 }
 0x141   : > { %1662 = vmatpush1.bf16.msra.mxu0 %v6024_v42 }
 0x142   : > { %1663 = vmatprep.subr.bf16.mxu0 %v6036_v46 }
 0x143   : > { %4585 = vmatpush3.bf16.msra.mxu1 %v6083_v54 }
 0x144   : > { %4586 = vmatprep.subr.bf16.mxu1 %v5541_v44 }
 0x145   : > { %1664 = vmatpush1.bf16.msra.mxu0 %v6049_v48 }
 0x146   : > { %1665 = vmatprep.subr.bf16.mxu0 %v6055_v49 }
 0x147   : > { %4587 = vmatpush3.bf16.msra.mxu1 %v6104_v57 }
 0x148   : > { %4588 = vmatprep.subr.bf16.mxu1 %v5541_v44 }
 0x149   : > { %1666 = vmatpush1.bf16.msra.mxu0 %v6069_v52 }
 0x14a   : > { %1667 = vmatprep.subr.bf16.mxu0 %v6075_v53 }
 0x14b   : > { %4589 = vmatpush3.bf16.msra.mxu1 %v6119_v59 }
 0x14c   : > { %4590 = vmatprep.subr.bf16.mxu1 %v5541_v44 }
 0x14d   : > { %1668 = vmatpush1.bf16.msra.mxu0 %v6089_v55 }
 0x14e   : > { %1669 = vmatprep.subr.bf16.mxu0 %v6097_v56 }
 0x14f   : > { %4591 = vmatpush3.bf16.msra.mxu1 %v6128_v60 }
 0x150   : > { %4592 = vmatprep.subr.bf16.mxu1 %v5541_v44 }
 0x151   : > { %1670 = vmatpush1.bf16.msra.mxu0 %v6110_v58 }
 0x152   : > { %1768 = vmatprep.subr.bf16.mxu0 %v5976_v32 }
 0x153   : > { %4593 = vmatpush3.bf16.msra.mxu1 %v6137_v61 }
 0x154   : > { %4598 = vmatprep.subr.bf16.mxu1 %v5541_v44 }
 0x1e7   : > { %v1149_v5 = vpop.f32.mrb[0].mxu0 }
 0x1e8   : > { %v1150_v6 = vadd.f32 %v1149_v5, %v6192_v3  ;;  %v1151_v7 = vpop.f32.mrb[1].mxu0 }
 0x1e9   : > { %v1152_v9 = vadd.f32 %v1151_v7, %v6195_v4  ;;  %v1153_v10 = vpop.f32.mrb[2].mxu0  ;;  %v4552_v23 = vpop.f32.mrb[0].mxu1 }
 0x1ea   : > { %v1154_v11 = vadd.f32 %v1153_v10, %v6192_v3  ;;  %v1155_v12 = vpop.f32.mrb[3].mxu0  ;;  %v1231_v26 = vadd.f32 %v4552_v23, %v959_v17  ;;  %v1222_v27 = vpop.f32.mrb[1].mxu1 }
 0x1eb   : > { %v6203_v14 = vpack.c.bf16 %v1152_v9, %v1150_v6  ;;  %v1156_v15 = vadd.f32 %v1155_v12, %v6195_v4  ;;  %v1223_v30 = vadd.f32 %v1222_v27, %v959_v17  ;;  %v4553_v31 = vpop.f32.mrb[2].mxu1 }
 0x1ec   : > { %v4378_v33 = vpack.c.bf16 %v1231_v26, %v1231_v26  ;;  %v1234_v36 = vadd.f32 %v4553_v31, %v959_v17  ;;  %v1225_v39 = vpop.f32.mrb[3].mxu1 }
 0x1ed   : > { %v6206_v16 = vpack.c.bf16 %v1156_v15, %v1154_v11  ;;  %v4374_v51 = vpack.c.bf16 %v1223_v30, %v1223_v30  ;;  %v1226_v1 = vadd.f32 %v1225_v39, %v959_v17 }
 0x1ee   : > { %1362 = vst [vmem:[#allocation2 + $0x20] sm:$0xf] %v4378_v33  ;;  %v4380_v5 = vpack.c.bf16 %v1234_v36, %v1234_v36 }
 0x1ef   : > { %v1159_v18 = vpop.f32.mrb[4].mxu0  ;;  %1358 = vst [vmem:[#allocation2 + $0x8] sm:$0xf] %v4374_v51  ;;  %v4376_v7 = vpack.c.bf16 %v1226_v1, %v1226_v1 }
 0x1f0   : > { %v1160_v19 = vadd.f32 %v1159_v18, %v6192_v3  ;;  %v1161_v20 = vpop.f32.mrb[5].mxu0  ;;  %1364 = vst [vmem:[#allocation2 + $0x2c] sm:$0xf] %v4380_v5 }
 0x1f1   : > { %v1162_v21 = vadd.f32 %v1161_v20, %v6195_v4  ;;  %v1163_v22 = vpop.f32.mrb[6].mxu0  ;;  %1360 = vst [vmem:[#allocation2 + $0x14] sm:$0xf] %v4376_v7  ;;  %v4556_v15 = vpop.f32.mrb[4].mxu1 }
 0x1f2   : > { %v1164_v24 = vadd.f32 %v1163_v22, %v6192_v3  ;;  %v1165_v25 = vpop.f32.mrb[7].mxu0  ;;  %v1247_v20 = vadd.f32 %v4556_v15, %v959_v17 }
 0x1f3   : > { %v6212_v28 = vpack.c.bf16 %v1162_v21, %v1160_v19  ;;  %v1166_v29 = vadd.f32 %v1165_v25, %v6195_v4  ;;  %v1238_v21 = vpop.f32.mrb[5].mxu1 }
 0x1f4   : > { %v4557_v25 = vpop.f32.mrb[6].mxu1  ;;  %v4386_v26 = vpack.c.bf16 %v1247_v20, %v1247_v20 }
 0x1f5   : > { %v6215_v43 = vpack.c.bf16 %v1166_v29, %v1164_v24  ;;  %v1239_v24 = vadd.f32 %v1238_v21, %v959_v17  ;;  %v1250_v27 = vadd.f32 %v4557_v25, %v959_v17  ;;  %v1241_v29 = vpop.f32.mrb[7].mxu1 }
 0x1f6   : > { %v1242_v33 = vadd.f32 %v1241_v29, %v959_v17  ;;  %1370 = vst [vmem:[#allocation2 + $0x50] sm:$0xf] %v4386_v26 }
 0x1f7   : > { %v1169_v6 = vpop.f32.mrb[8].mxu0  ;;  %v4382_v31 = vpack.c.bf16 %v1239_v24, %v1239_v24  ;;  %v4388_v36 = vpack.c.bf16 %v1250_v27, %v1250_v27 }
 0x1f8   : > { %v1170_v9 = vadd.f32 %v1169_v6, %v6192_v3  ;;  %v1171_v10 = vpop.f32.mrb[9].mxu0  ;;  %v4384_v51 = vpack.c.bf16 %v1242_v33, %v1242_v33 }
 0x1f9   : > { %v1172_v11 = vadd.f32 %v1171_v10, %v6195_v4  ;;  %v1173_v12 = vpop.f32.mrb[10].mxu0  ;;  %1366 = vst [vmem:[#allocation2 + $0x38] sm:$0xf] %v4382_v31  ;;  %1372 = vst [vmem:[#allocation2 + $0x5c] sm:$0xf] %v4388_v36 }
 0x1fa   : > { %v1174_v18 = vadd.f32 %v1173_v12, %v6192_v3  ;;  %v1175_v19 = vpop.f32.mrb[11].mxu0  ;;  %1368 = vst [vmem:[#allocation2 + $0x44] sm:$0xf] %v4384_v51  ;;  %v1632_v12 = vrot.slane %v6203_v14, 4  ;;  %v6236_v51 = vld [vmem:[%s7276_s9] ss:$0 sm:$0xff] }
 0x1fb   : > { %v6220_v22 = vpack.c.bf16 %v1172_v11, %v1170_v9  ;;  %v1176_v23 = vadd.f32 %v1175_v19, %v6195_v4 }
 0x1fc   : > { %v1634_v20 = vunpack.c.l.bf16 %v1632_v12 }
 0x1fd   : > { %v6223_v30 = vpack.c.bf16 %v1176_v23, %v1174_v18  ;;  %v1623_v18 = vunpack.c.l.bf16 %v6203_v14 }
 0x1ff   : > { %v1179_v39 = vpop.f32.mrb[12].mxu0 }
 0x200   : > { %v1180_v1 = vadd.f32 %v1179_v39, %v6192_v3  ;;  %v1181_v5 = vpop.f32.mrb[13].mxu0 }
 0x201   : > { %v1182_v6 = vadd.f32 %v1181_v5, %v6195_v4  ;;  %v1183_v7 = vpop.f32.mrb[14].mxu0 }
 0x202   : > { %v1184_v9 = vadd.f32 %v1183_v7, %v6192_v3  ;;  %v1185_v10 = vpop.f32.mrb[15].mxu0 }
 0x203   : > { %v6228_v11 = vpack.c.bf16 %v1182_v6, %v1180_v1  ;;  %v1186_v17 = vadd.f32 %v1185_v10, %v6195_v4  ;;  %v6239_v6 = vld [vmem:[#allocation2 + $0x8] ss:$12 sps:$4 sm:$0xff]  }
 0x204   : > { %v1644_v10 = vunpack.c.l.bf16 %v6239_v6 }
 0x205   : > { %v4387_v15 = vpack.c.bf16 %v1186_v17, %v1184_v9 }
 0x207   : > { %1371 = vst [vmem:[#allocation2 + $0x54] sm:$0xff] %v4387_v15  ;;  %v1576_v19 = vpop.f32.mrb[16].mxu0 }
 0x208   : > { %v1624_v21 = vadd.f32 %v1623_v18, %v1576_v19  ;;  %v1578_v23 = vpop.f32.mrb[17].mxu0 }
 0x209   : > { %v1635_v24 = vadd.f32 %v1634_v20, %v1578_v23  ;;  %v1580_v25 = vpop.f32.mrb[18].mxu0  ;;  %v1617_v29 = vpop.f32.mrb[8].mxu1 }
 0x20a   : > { %v4273_v26 = vmul.f32 -1.442695, %v1624_v21  ;;  %v1581_v27 = vpop.f32.mrb[19].mxu0  ;;  %v4576_v31 = vpop.f32.mrb[9].mxu1  ;;  %v1642_v5 = vadd.f32 %v6236_v51, %v1617_v29  ;;  %v1736_v25 = vunpack.c.l.bf16 %v6206_v16 }
 0x20b   : > { %v4274_v3 = vmul.f32 -1.442695, %v1635_v24  ;;  %v1620_v4 = vpop.f32.mrb[10].mxu1  ;;  %v1745_v24 = vrot.slane %v6206_v16, 4 }
 0x20c   : > { %5071 = vpow2.f32 %v4273_v26  ;;  %v4577_v33 = vpop.f32.mrb[11].mxu1 }
 0x20d   : > { %5073 = vpow2.f32 %v4274_v3  ;;  %v1747_v3 = vunpack.c.l.bf16 %v1745_v24 }
 0x216   : > { %v5072_v36 = vpop.eup %5071 }
 0x217   : > { %v1628_v39 = vadd.f32 1.0, %v5072_v36  ;;  %v5074_v14 = vpop.eup %5073 }
 0x218   : > { %v1639_v1 = vadd.f32 1.0, %v5074_v14 }
 0x219   : > { %5075 = vrcp.f32 %v1628_v39 }
 0x21a   : > { %5077 = vrcp.f32 %v1639_v1 }
 0x223   : > { %v5076_v7 = vpop.eup %5075 }
 0x224   : > { %v1643_v9 = vmul.f32 %v5076_v7, %v1642_v5  ;;  %v5078_v12 = vpop.eup %5077 }
 0x225   : > { %v1647_v15 = vsub.f32 1.0, %v5078_v12  ;;  %v1649_v20 = vmul.f32 0.0, %v5078_v12 }
 0x226   : > { %v1645_v17 = vadd.f32 %v1644_v10, %v1643_v9 }
 0x228   : > { %5079 = vtanh.f32 %v1645_v17 }
 0x232   : > { %v5080_v18 = vpop.eup %5079 }
 0x233   : > { %v1648_v19 = vmul.f32 %v5080_v18, %v1647_v15 }
 0x235   : > { %v6242_v21 = vadd.f32 %v1649_v20, %v1648_v19  ;;  %v1757_v19 = vunpack.c.h.bf16 %v6239_v6 }
 0x237   : > { %v1654_v23 = vpack.c.bf16 %v6242_v21, %v6242_v21 }
 0x239   : > { %1688 = vmatmul.mubr.bf16.vlgmr.msra.gmra.mrb[20].mxu0 %v1654_v23  ;;  %4595 = vmatmul.mubr.bf16.vlgmr.msra.gmra.mrb[12].mxu1 %v1654_v23 }
 0x23a   : > { %1769 = vmatpush1.bf16.msra.mxu0 %v5984_v34  ;;  %4599 = vmatpush3.bf16.msra.mxu1 %v6031_v45 }
 0x23b   : > { %1770 = vmatprep.subr.bf16.mxu0 %v5990_v35  ;;  %4600 = vmatprep.subr.bf16.mxu1 %v5541_v44 }
 0x23c   : > { %1800 = vmatprep.mubr.bf16.mxu0 %v5540_v8  ;;  %4614 = vmatprep.mubr.msk.bf16.mxu1 %vm5542_vm0, %v5541_v44 }
 0x23e   : > { %1771 = vmatpush1.bf16.msra.mxu0 %v5999_v37  ;;  %4601 = vmatpush3.bf16.msra.mxu1 %v6043_v47 }
 0x23f   : > { %1772 = vmatprep.subr.bf16.mxu0 %v6006_v38  ;;  %4602 = vmatprep.subr.bf16.mxu1 %v5541_v44 }
 0x242   : > { %1773 = vmatpush1.bf16.msra.mxu0 %v6013_v40  ;;  %4603 = vmatpush3.bf16.msra.mxu1 %v6062_v50 }
 0x243   : > { %1774 = vmatprep.subr.bf16.mxu0 %v6019_v41  ;;  %4604 = vmatprep.subr.bf16.mxu1 %v5541_v44 }
 0x246   : > { %1775 = vmatpush1.bf16.msra.mxu0 %v6024_v42  ;;  %4605 = vmatpush3.bf16.msra.mxu1 %v6083_v54 }
 0x247   : > { %1776 = vmatprep.subr.bf16.mxu0 %v6036_v46  ;;  %4606 = vmatprep.subr.bf16.mxu1 %v5541_v44 }
 0x24a   : > { %1777 = vmatpush1.bf16.msra.mxu0 %v6049_v48  ;;  %4607 = vmatpush3.bf16.msra.mxu1 %v6104_v57 }
 0x24b   : > { %1778 = vmatprep.subr.bf16.mxu0 %v6055_v49  ;;  %4608 = vmatprep.subr.bf16.mxu1 %v5541_v44 }
 0x24e   : > { %1779 = vmatpush1.bf16.msra.mxu0 %v6069_v52  ;;  %4609 = vmatpush3.bf16.msra.mxu1 %v6119_v59 }
 0x24f   : > { %1780 = vmatprep.subr.bf16.mxu0 %v6075_v53  ;;  %4610 = vmatprep.subr.bf16.mxu1 %v5541_v44 }
 0x252   : > { %1781 = vmatpush1.bf16.msra.mxu0 %v6089_v55  ;;  %4611 = vmatpush3.bf16.msra.mxu1 %v6128_v60 }
 0x253   : > { %1782 = vmatprep.subr.bf16.mxu0 %v6097_v56  ;;  %4612 = vmatprep.subr.bf16.mxu1 %v5541_v44 }
 0x256   : > { %1783 = vmatpush1.bf16.msra.mxu0 %v6110_v58  ;;  %4613 = vmatpush3.bf16.msra.mxu1 %v6137_v61 }
 0x257   : > { %1881 = vmatprep.subr.bf16.mxu0 %v5976_v32  ;;  %4618 = vmatprep.subr.bf16.mxu1 %v5541_v44 }
 0x30c   : > { %v1689_v26 = vpop.f32.mrb[20].mxu0  ;;  %v1730_v27 = vpop.f32.mrb[12].mxu1 }
 0x30d   : > { %v1737_v29 = vadd.f32 %v1736_v25, %v1689_v26  ;;  %v1691_v31 = vpop.f32.mrb[21].mxu0  ;;  %v4596_v4 = vpop.f32.mrb[13].mxu1  ;;  %v1755_v12 = vadd.f32 %v6236_v51, %v1730_v27 }
 0x30e   : > { %v1748_v33 = vadd.f32 %v1747_v3, %v1691_v31  ;;  %v1693_v36 = vpop.f32.mrb[22].mxu0  ;;  %v1733_v39 = vpop.f32.mrb[14].mxu1 }
 0x30f   : > { %v4275_v14 = vmul.f32 -1.442695, %v1737_v29  ;;  %v1694_v1 = vpop.f32.mrb[23].mxu0  ;;  %v4597_v5 = vpop.f32.mrb[15].mxu1 }
 0x310   : > { %v4276_v7 = vmul.f32 -1.442695, %v1748_v33 }
 0x311   : > { %5081 = vpow2.f32 %v4275_v14 }
 0x312   : > { %5083 = vpow2.f32 %v4276_v7 }
 0x31b   : > { %v5082_v9 = vpop.eup %5081 }
 0x31c   : > { %v1741_v10 = vadd.f32 1.0, %v5082_v9  ;;  %v5084_v17 = vpop.eup %5083 }
 0x31d   : > { %v1752_v16 = vadd.f32 1.0, %v5084_v17 }
 0x31e   : > { %5085 = vrcp.f32 %v1741_v10 }
 0x31f   : > { %5087 = vrcp.f32 %v1752_v16  ;;  %v6327_v16 = vld [vmem:[#allocation2 + $0x20] ss:$12 sps:$4 sm:$0xff]  }
 0x328   : > { %v5086_v15 = vpop.eup %5085 }
 0x329   : > { %v1756_v18 = vmul.f32 %v5086_v15, %v1755_v12  ;;  %v5088_v23 = vpop.eup %5087 }
 0x32a   : > { %v1760_v24 = vsub.f32 1.0, %v5088_v23  ;;  %v1762_v3 = vmul.f32 %v5088_v23, %v6242_v21 }
 0x32b   : > { %v1758_v20 = vadd.f32 %v1757_v19, %v1756_v18  ;;  %v1870_v19 = vunpack.c.l.bf16 %v6327_v16 }
 0x32d   : > { %5089 = vtanh.f32 %v1758_v20 }
 0x337   : > { %v5090_v25 = vpop.eup %5089 }
 0x338   : > { %v1761_v26 = vmul.f32 %v5090_v25, %v1760_v24 }
 0x33a   : > { %v6286_v29 = vadd.f32 %v1762_v3, %v1761_v26 }
 0x33c   : > { %v1767_v31 = vpack.c.bf16 %v6286_v29, %v6286_v29 }
 0x33e   : > { %1801 = vmatmul.mubr.bf16.vlgmr.msra.gmra.mrb[24].mxu0 %v1767_v31  ;;  %4615 = vmatmul.mubr.bf16.vlgmr.msra.gmra.mrb[16].mxu1 %v1767_v31 }
 0x33f   : > { %1882 = vmatpush1.bf16.msra.mxu0 %v5984_v34  ;;  %4619 = vmatpush3.bf16.msra.mxu1 %v6031_v45  ;;  %v1858_v34 = vrot.slane %v6212_v28, 4 }
 0x340   : > { %1883 = vmatprep.subr.bf16.mxu0 %v5990_v35  ;;  %4620 = vmatprep.subr.bf16.mxu1 %v5541_v44  ;;  %v1849_v35 = vunpack.c.l.bf16 %v6212_v28 }
 0x341   : > { %1913 = vmatprep.mubr.bf16.mxu0 %v5540_v8  ;;  %4634 = vmatprep.mubr.msk.bf16.mxu1 %vm5542_vm0, %v5541_v44  ;;  %v1860_v21 = vunpack.c.l.bf16 %v1858_v34 }
 0x343   : > { %1884 = vmatpush1.bf16.msra.mxu0 %v5999_v37  ;;  %4621 = vmatpush3.bf16.msra.mxu1 %v6043_v47 }
 0x344   : > { %1885 = vmatprep.subr.bf16.mxu0 %v6006_v38  ;;  %4622 = vmatprep.subr.bf16.mxu1 %v5541_v44 }
 0x347   : > { %1886 = vmatpush1.bf16.msra.mxu0 %v6013_v40  ;;  %4623 = vmatpush3.bf16.msra.mxu1 %v6062_v50 }
 0x348   : > { %1887 = vmatprep.subr.bf16.mxu0 %v6019_v41  ;;  %4624 = vmatprep.subr.bf16.mxu1 %v5541_v44 }
 0x34b   : > { %1888 = vmatpush1.bf16.msra.mxu0 %v6024_v42  ;;  %4625 = vmatpush3.bf16.msra.mxu1 %v6083_v54 }
 0x34c   : > { %1889 = vmatprep.subr.bf16.mxu0 %v6036_v46  ;;  %4626 = vmatprep.subr.bf16.mxu1 %v5541_v44 }
 0x34f   : > { %1890 = vmatpush1.bf16.msra.mxu0 %v6049_v48  ;;  %4627 = vmatpush3.bf16.msra.mxu1 %v6104_v57 }
 0x350   : > { %1891 = vmatprep.subr.bf16.mxu0 %v6055_v49  ;;  %4628 = vmatprep.subr.bf16.mxu1 %v5541_v44 }
 0x353   : > { %1892 = vmatpush1.bf16.msra.mxu0 %v6069_v52  ;;  %4629 = vmatpush3.bf16.msra.mxu1 %v6119_v59 }
 0x354   : > { %1893 = vmatprep.subr.bf16.mxu0 %v6075_v53  ;;  %4630 = vmatprep.subr.bf16.mxu1 %v5541_v44 }
 0x357   : > { %1894 = vmatpush1.bf16.msra.mxu0 %v6089_v55  ;;  %4631 = vmatpush3.bf16.msra.mxu1 %v6128_v60 }
 0x358   : > { %1895 = vmatprep.subr.bf16.mxu0 %v6097_v56  ;;  %4632 = vmatprep.subr.bf16.mxu1 %v5541_v44 }
 0x35b   : > { %1896 = vmatpush1.bf16.msra.mxu0 %v6110_v58  ;;  %4633 = vmatpush3.bf16.msra.mxu1 %v6137_v61 }
 0x35c   : > { %1994 = vmatprep.subr.bf16.mxu0 %v5976_v32  ;;  %4638 = vmatprep.subr.bf16.mxu1 %v5541_v44 }
 0x411   : > { %v1802_v37 = vpop.f32.mrb[24].mxu0  ;;  %v1843_v6 = vpop.f32.mrb[16].mxu1 }
 0x412   : > { %v1850_v27 = vadd.f32 %v1849_v35, %v1802_v37  ;;  %v1804_v4 = vpop.f32.mrb[25].mxu0  ;;  %v4616_v33 = vpop.f32.mrb[17].mxu1  ;;  %v1868_v12 = vadd.f32 %v6236_v51, %v1843_v6  ;;  %v6339_v35 = vld [vmem:[%s7274_s3] ss:$12 sps:$4 sm:$0xff]   ;;  %v6356_v37 = vld [vmem:[%s7274_s3 + $0x18] ss:$12 sps:$4 sm:$0xff]  }
 0x413   : > { %v1861_v36 = vadd.f32 %v1860_v21, %v1804_v4  ;;  %v1806_v39 = vpop.f32.mrb[26].mxu0  ;;  %v1846_v14 = vpop.f32.mrb[18].mxu1 }
 0x414   : > { %v4277_v1 = vmul.f32 -1.442695, %v1850_v27  ;;  %v1807_v5 = vpop.f32.mrb[27].mxu0  ;;  %v4617_v7 = vpop.f32.mrb[19].mxu1 }
 0x415   : > { %v4278_v32 = vmul.f32 -1.442695, %v1861_v36 }
 0x416   : > { %5091 = vpow2.f32 %v4277_v1  ;;  %v1983_v1 = vunpack.c.h.bf16 %v6327_v16  ;;  %v6404_v16 = vld [vmem:[%s7274_s3 + $0x8] ss:$12 sps:$4 sm:$0xff]  }
 0x417   : > { %5093 = vpow2.f32 %v4278_v32 }
 0x420   : > { %v5092_v9 = vpop.eup %5091 }
 0x421   : > { %v1854_v10 = vadd.f32 1.0, %v5092_v9  ;;  %v5094_v17 = vpop.eup %5093 }
 0x422   : > { %v1865_v28 = vadd.f32 1.0, %v5094_v17 }
 0x423   : > { %5095 = vrcp.f32 %v1854_v10 }
 0x424   : > { %5097 = vrcp.f32 %v1865_v28 }
 0x42d   : > { %v5096_v15 = vpop.eup %5095 }
 0x42e   : > { %v1869_v18 = vmul.f32 %v5096_v15, %v1868_v12  ;;  %v5098_v23 = vpop.eup %5097  ;;  %v6416_v15 = vld [vmem:[%s7274_s3 + $0x20] ss:$12 sps:$4 sm:$0xff]  }
 0x42f   : > { %v1873_v24 = vsub.f32 1.0, %v5098_v23  ;;  %v1875_v3 = vmul.f32 %v5098_v23, %v6286_v29  ;;  %v6346_v29 = vld [vmem:[%s7274_s3 + $0x1c] ss:$12 sps:$4 sm:$0xff]   ;;  %v6441_v23 = vld [vmem:[%s7274_s3 + $0x4c] ss:$12 sps:$4 sm:$0xff]  }
 0x430   : > { %v1871_v20 = vadd.f32 %v1870_v19, %v1869_v18  ;;  %v6422_v18 = vld [vmem:[%s7274_s3 + $0x34] ss:$12 sps:$4 sm:$0xff]   ;;  %v6429_v19 = vld [vmem:[%s7274_s3 + $0x30] ss:$12 sps:$4 sm:$0xff]  }
 0x432   : > { %5099 = vtanh.f32 %v1871_v20  ;;  %v6435_v20 = vld [vmem:[%s7274_s3 + $0x38] ss:$12 sps:$4 sm:$0xff]  }
 0x43c   : > { %v5100_v25 = vpop.eup %5099 }
 0x43d   : > { %v1874_v26 = vmul.f32 %v5100_v25, %v1873_v24  ;;  %v6448_v24 = vld [vmem:[%s7274_s3 + $0x48] ss:$12 sps:$4 sm:$0xff]   ;;  %v6454_v25 = vld [vmem:[%s7274_s3 + $0x50] ss:$12 sps:$4 sm:$0xff]  }
 0x43f   : > { %v6332_v31 = vadd.f32 %v1875_v3, %v1874_v26  ;;  %v6460_v26 = vld [vmem:[%s7274_s3 + $0x64] ss:$12 sps:$4 sm:$0xff]   ;;  %v6467_v3 = vld [vmem:[%s7274_s3 + $0x60] ss:$12 sps:$4 sm:$0xff]  }
 0x441   : > { %v1880_v34 = vpack.c.bf16 %v6332_v31, %v6332_v31 }
 0x443   : > { %1914 = vmatmul.mubr.bf16.vlgmr.msra.gmra.mrb[28].mxu0 %v1880_v34  ;;  %4635 = vmatmul.mubr.bf16.vlgmr.msra.gmra.mrb[20].mxu1 %v1880_v34  ;;  %v6481_v34 = vld [vmem:[%s7274_s3 + $0x78] ss:$12 sps:$4 sm:$0xff]  }
 0x444   : > { %1995 = vmatpush1.bf16.msra.mxu0 %v6339_v35  ;;  %4639 = vmatpush3.bf16.msra.mxu1 %v6031_v45 }
 0x445   : > { %1996 = vmatprep.subr.bf16.mxu0 %v6346_v29  ;;  %4640 = vmatprep.subr.bf16.mxu1 %v5541_v44 }
 0x446   : > { %2026 = vmatprep.mubr.bf16.mxu0 %v5540_v8  ;;  %4654 = vmatprep.mubr.msk.bf16.mxu1 %vm5542_vm0, %v5541_v44 }
 0x448   : > { %1997 = vmatpush1.bf16.msra.mxu0 %v6356_v37  ;;  %4641 = vmatpush3.bf16.msra.mxu1 %v6043_v47 }
 0x449   : > { %1998 = vmatprep.subr.bf16.mxu0 %v6006_v38  ;;  %4642 = vmatprep.subr.bf16.mxu1 %v5541_v44  ;;  %v6387_v38 = vld [vmem:[%s7274_s3 + $0x4] ss:$12 sps:$4 sm:$0xff]  }
 0x44c   : > { %1999 = vmatpush1.bf16.msra.mxu0 %v6013_v40  ;;  %4643 = vmatpush3.bf16.msra.mxu1 %v6062_v50  ;;  %v1971_v40 = vrot.slane %v6215_v43, 4 }
 0x44d   : > { %2000 = vmatprep.subr.bf16.mxu0 %v6019_v41  ;;  %4644 = vmatprep.subr.bf16.mxu1 %v5541_v44  ;;  %v1962_v41 = vunpack.c.l.bf16 %v6215_v43 }
 0x450   : > { %2001 = vmatpush1.bf16.msra.mxu0 %v6024_v42  ;;  %4645 = vmatpush3.bf16.msra.mxu1 %v6083_v54 }
 0x451   : > { %2002 = vmatprep.subr.bf16.mxu0 %v6036_v46  ;;  %4646 = vmatprep.subr.bf16.mxu1 %v5541_v44  ;;  %v1973_v46 = vunpack.c.l.bf16 %v1971_v40  ;;  %v6495_v40 = vld [vmem:[%s7274_s3 + $0x90] ss:$12 sps:$4 sm:$0xff]  }
 0x454   : > { %2003 = vmatpush1.bf16.msra.mxu0 %v6049_v48  ;;  %4647 = vmatpush3.bf16.msra.mxu1 %v6104_v57 }
 0x455   : > { %2004 = vmatprep.subr.bf16.mxu0 %v6055_v49  ;;  %4648 = vmatprep.subr.bf16.mxu1 %v5541_v44 }
 0x458   : > { %2005 = vmatpush1.bf16.msra.mxu0 %v6069_v52  ;;  %4649 = vmatpush3.bf16.msra.mxu1 %v6119_v59 }
 0x459   : > { %2006 = vmatprep.subr.bf16.mxu0 %v6075_v53  ;;  %4650 = vmatprep.subr.bf16.mxu1 %v5541_v44 }
 0x45c   : > { %2007 = vmatpush1.bf16.msra.mxu0 %v6089_v55  ;;  %4651 = vmatpush3.bf16.msra.mxu1 %v6128_v60 }
 0x45d   : > { %2008 = vmatprep.subr.bf16.mxu0 %v6097_v56  ;;  %4652 = vmatprep.subr.bf16.mxu1 %v5541_v44 }
 0x460   : > { %2009 = vmatpush1.bf16.msra.mxu0 %v6110_v58  ;;  %4653 = vmatpush3.bf16.msra.mxu1 %v6137_v61 }
 0x461   : > { %2107 = vmatprep.subr.bf16.mxu0 %v6387_v38  ;;  %4658 = vmatprep.subr.bf16.mxu1 %v5541_v44 }
 0x516   : > { %v1915_v42 = vpop.f32.mrb[28].mxu0  ;;  %v1956_v45 = vpop.f32.mrb[20].mxu1 }
 0x517   : > { %v1963_v47 = vadd.f32 %v1962_v41, %v1915_v42  ;;  %v1917_v48 = vpop.f32.mrb[29].mxu0  ;;  %v4636_v49 = vpop.f32.mrb[21].mxu1  ;;  %v1981_v36 = vadd.f32 %v6236_v51, %v1956_v45  ;;  %v2075_v41 = vunpack.c.l.bf16 %v6220_v22 }
 0x518   : > { %v1974_v50 = vadd.f32 %v1973_v46, %v1917_v48  ;;  %v1919_v52 = vpop.f32.mrb[30].mxu0  ;;  %v1959_v53 = vpop.f32.mrb[22].mxu1 }
 0x519   : > { %v4279_v54 = vmul.f32 -1.442695, %v1963_v47  ;;  %v1920_v55 = vpop.f32.mrb[31].mxu0  ;;  %v4637_v6 = vpop.f32.mrb[23].mxu1 }
 0x51a   : > { %v4280_v21 = vmul.f32 -1.442695, %v1974_v50 }
 0x51b   : > { %5101 = vpow2.f32 %v4279_v54 }
 0x51c   : > { %5103 = vpow2.f32 %v4280_v21  ;;  %v6507_v21 = vld [vmem:[#allocation2 + $0x38] ss:$12 sps:$4 sm:$0xff]  }
 0x525   : > { %v5102_v27 = vpop.eup %5101 }
 0x526   : > { %v1967_v4 = vadd.f32 1.0, %v5102_v27  ;;  %v5104_v33 = vpop.eup %5103 }
 0x527   : > { %v1978_v43 = vadd.f32 1.0, %v5104_v33 }
 0x528   : > { %5105 = vrcp.f32 %v1967_v4 }
 0x529   : > { %5107 = vrcp.f32 %v1978_v43  ;;  %v2096_v43 = vunpack.c.l.bf16 %v6507_v21 }
 0x532   : > { %v5106_v39 = vpop.eup %5105 }
 0x533   : > { %v1982_v14 = vmul.f32 %v5106_v39, %v1981_v36  ;;  %v5108_v7 = vpop.eup %5107 }
 0x534   : > { %v1986_v32 = vsub.f32 1.0, %v5108_v7  ;;  %v1988_v17 = vmul.f32 %v5108_v7, %v6332_v31  ;;  %v6474_v31 = vld [vmem:[%s7274_s3 + $0x7c] ss:$12 sps:$4 sm:$0xff]  }
 0x535   : > { %v1984_v5 = vadd.f32 %v1983_v1, %v1982_v14 }
 0x537   : > { %5109 = vtanh.f32 %v1984_v5 }
 0x541   : > { %v5110_v9 = vpop.eup %5109 }
 0x542   : > { %v1987_v10 = vmul.f32 %v5110_v9, %v1986_v32 }
 0x544   : > { %v6396_v28 = vadd.f32 %v1988_v17, %v1987_v10  ;;  %v6539_v10 = vld [vmem:[%s7274_s3 + $0x68] ss:$12 sps:$4 sm:$0xff]   ;;  %v6548_v17 = vld [vmem:[%s7274_s3 + $0x80] ss:$12 sps:$4 sm:$0xff]  }
 0x546   : > { %v1993_v12 = vpack.c.bf16 %v6396_v28, %v6396_v28 }
 0x548   : > { %2027 = vmatmul.mubr.bf16.vlgmr.msra.gmra.mrb[32].mxu0 %v1993_v12  ;;  %4655 = vmatmul.mubr.bf16.vlgmr.msra.gmra.mrb[24].mxu1 %v1993_v12  ;;  %v6563_v12 = vld [vmem:[%s7274_s3 + $0xac] ss:$12 sps:$4 sm:$0xff]  }
 0x549   : > { %2108 = vmatpush1.bf16.msra.mxu0 %v6339_v35  ;;  %4659 = vmatpush3.bf16.msra.mxu1 %v6404_v16 }
 0x54a   : > { %2109 = vmatprep.subr.bf16.mxu0 %v6346_v29  ;;  %4660 = vmatprep.subr.bf16.mxu1 %v5541_v44 }
 0x54b   : > { %2139 = vmatprep.mubr.bf16.mxu0 %v5540_v8  ;;  %4674 = vmatprep.mubr.msk.bf16.mxu1 %vm5542_vm0, %v5541_v44 }
 0x54d   : > { %2110 = vmatpush1.bf16.msra.mxu0 %v6356_v37  ;;  %4661 = vmatpush3.bf16.msra.mxu1 %v6416_v15 }
 0x54e   : > { %2111 = vmatprep.subr.bf16.mxu0 %v6422_v18  ;;  %4662 = vmatprep.subr.bf16.mxu1 %v5541_v44 }
 0x551   : > { %2112 = vmatpush1.bf16.msra.mxu0 %v6429_v19  ;;  %4663 = vmatpush3.bf16.msra.mxu1 %v6435_v20 }
 0x552   : > { %2113 = vmatprep.subr.bf16.mxu0 %v6441_v23  ;;  %4664 = vmatprep.subr.bf16.mxu1 %v5541_v44 }
 0x555   : > { %2114 = vmatpush1.bf16.msra.mxu0 %v6448_v24  ;;  %4665 = vmatpush3.bf16.msra.mxu1 %v6454_v25 }
 0x556   : > { %2115 = vmatprep.subr.bf16.mxu0 %v6460_v26  ;;  %4666 = vmatprep.subr.bf16.mxu1 %v5541_v44 }
 0x559   : > { %2116 = vmatpush1.bf16.msra.mxu0 %v6467_v3  ;;  %4667 = vmatpush3.bf16.msra.mxu1 %v6104_v57  ;;  %v6488_v57 = vld [vmem:[%s7274_s3 + $0x94] ss:$12 sps:$4 sm:$0xff]  }
 0x55a   : > { %2117 = vmatprep.subr.bf16.mxu0 %v6474_v31  ;;  %4668 = vmatprep.subr.bf16.mxu1 %v5541_v44 }
 0x55d   : > { %2118 = vmatpush1.bf16.msra.mxu0 %v6481_v34  ;;  %4669 = vmatpush3.bf16.msra.mxu1 %v6119_v59  ;;  %v2084_v59 = vrot.slane %v6220_v22, 4 }
 0x55e   : > { %2119 = vmatprep.subr.bf16.mxu0 %v6488_v57  ;;  %4670 = vmatprep.subr.bf16.mxu1 %v5541_v44 }
 0x55f   : > { %v2086_v46 = vunpack.c.l.bf16 %v2084_v59  ;;  %v6570_v59 = vld [vmem:[%s7274_s3 + $0xa8] ss:$12 sps:$4 sm:$0xff]  }
 0x561   : > { %2120 = vmatpush1.bf16.msra.mxu0 %v6495_v40  ;;  %4671 = vmatpush3.bf16.msra.mxu1 %v6128_v60 }
 0x562   : > { %2121 = vmatprep.subr.bf16.mxu0 %v6097_v56  ;;  %4672 = vmatprep.subr.bf16.mxu1 %v5541_v44 }
 0x565   : > { %2122 = vmatpush1.bf16.msra.mxu0 %v6110_v58  ;;  %4673 = vmatpush3.bf16.msra.mxu1 %v6137_v61 }
 0x566   : > { %2220 = vmatprep.subr.bf16.mxu0 %v6387_v38  ;;  %4678 = vmatprep.subr.bf16.mxu1 %v5541_v44 }
 0x61b   : > { %v2028_v42 = vpop.f32.mrb[32].mxu0  ;;  %v2069_v45 = vpop.f32.mrb[24].mxu1 }
 0x61c   : > { %v2076_v60 = vadd.f32 %v2075_v41, %v2028_v42  ;;  %v2030_v47 = vpop.f32.mrb[33].mxu0  ;;  %v4656_v56 = vpop.f32.mrb[25].mxu1  ;;  %v2094_v27 = vadd.f32 %v6236_v51, %v2069_v45  ;;  %v6576_v41 = vld [vmem:[%s7274_s3 + $0xb0] ss:$12 sps:$4 sm:$0xff]   ;;  %v2197_v42 = vrot.slane %v6223_v30, 4  ;;  %v2188_v45 = vunpack.c.l.bf16 %v6223_v30 }
 0x61d   : > { %v2087_v48 = vadd.f32 %v2086_v46, %v2030_v47  ;;  %v2032_v49 = vpop.f32.mrb[34].mxu0  ;;  %v2072_v50 = vpop.f32.mrb[26].mxu1 }
 0x61e   : > { %v4281_v58 = vmul.f32 -1.442695, %v2076_v60  ;;  %v2033_v52 = vpop.f32.mrb[35].mxu0  ;;  %v4657_v61 = vpop.f32.mrb[27].mxu1  ;;  %v2199_v47 = vunpack.c.l.bf16 %v2197_v42 }
 0x61f   : > { %v4282_v53 = vmul.f32 -1.442695, %v2087_v48 }
 0x620   : > { %5111 = vpow2.f32 %v4281_v58 }
 0x621   : > { %5113 = vpow2.f32 %v4282_v53 }
 0x62a   : > { %v5112_v54 = vpop.eup %5111 }
 0x62b   : > { %v2080_v55 = vadd.f32 1.0, %v5112_v54  ;;  %v5114_v6 = vpop.eup %5113 }
 0x62c   : > { %v2091_v22 = vadd.f32 1.0, %v5114_v6 }
 0x62d   : > { %5115 = vrcp.f32 %v2080_v55 }
 0x62e   : > { %5117 = vrcp.f32 %v2091_v22 }
 0x637   : > { %v5116_v4 = vpop.eup %5115 }
 0x638   : > { %v2095_v33 = vmul.f32 %v5116_v4, %v2094_v27  ;;  %v5118_v39 = vpop.eup %5117 }
 0x639   : > { %v2099_v14 = vsub.f32 1.0, %v5118_v39  ;;  %v2101_v7 = vmul.f32 %v5118_v39, %v6396_v28  ;;  %v6557_v28 = vld [vmem:[%s7274_s3 + $0x98] ss:$12 sps:$4 sm:$0xff]  }
 0x63a   : > { %v2097_v36 = vadd.f32 %v2096_v43, %v2095_v33  ;;  %v2209_v43 = vunpack.c.h.bf16 %v6507_v21 }
 0x63c   : > { %5119 = vtanh.f32 %v2097_v36 }
 0x646   : > { %v5120_v1 = vpop.eup %5119 }
 0x647   : > { %v2100_v5 = vmul.f32 %v5120_v1, %v2099_v14 }
 0x649   : > { %v6512_v32 = vadd.f32 %v2101_v7, %v2100_v5 }
 0x64b   : > { %v2106_v9 = vpack.c.bf16 %v6512_v32, %v6512_v32 }
 0x64d   : > { %2140 = vmatmul.mubr.bf16.vlgmr.msra.gmra.mrb[36].mxu0 %v2106_v9  ;;  %4675 = vmatmul.mubr.bf16.vlgmr.msra.gmra.mrb[28].mxu1 %v2106_v9 }
 0x64e   : > { %2221 = vmatpush1.bf16.msra.mxu0 %v6339_v35  ;;  %4679 = vmatpush3.bf16.msra.mxu1 %v6404_v16 }
 0x64f   : > { %2222 = vmatprep.subr.bf16.mxu0 %v6346_v29  ;;  %4680 = vmatprep.subr.bf16.mxu1 %v5541_v44 }
 0x650   : > { %2252 = vmatprep.mubr.bf16.mxu0 %v5540_v8  ;;  %4694 = vmatprep.mubr.msk.bf16.mxu1 %vm5542_vm0, %v5541_v44 }
 0x652   : > { %2223 = vmatpush1.bf16.msra.mxu0 %v6356_v37  ;;  %4681 = vmatpush3.bf16.msra.mxu1 %v6416_v15 }
 0x653   : > { %2224 = vmatprep.subr.bf16.mxu0 %v6422_v18  ;;  %4682 = vmatprep.subr.bf16.mxu1 %v5541_v44 }
 0x656   : > { %2225 = vmatpush1.bf16.msra.mxu0 %v6429_v19  ;;  %4683 = vmatpush3.bf16.msra.mxu1 %v6435_v20 }
 0x657   : > { %2226 = vmatprep.subr.bf16.mxu0 %v6441_v23  ;;  %4684 = vmatprep.subr.bf16.mxu1 %v5541_v44 }
 0x65a   : > { %2227 = vmatpush1.bf16.msra.mxu0 %v6448_v24  ;;  %4685 = vmatpush3.bf16.msra.mxu1 %v6454_v25 }
 0x65b   : > { %2228 = vmatprep.subr.bf16.mxu0 %v6460_v26  ;;  %4686 = vmatprep.subr.bf16.mxu1 %v5541_v44 }
 0x65e   : > { %2229 = vmatpush1.bf16.msra.mxu0 %v6467_v3  ;;  %4687 = vmatpush3.bf16.msra.mxu1 %v6539_v10 }
 0x65f   : > { %2230 = vmatprep.subr.bf16.mxu0 %v6474_v31  ;;  %4688 = vmatprep.subr.bf16.mxu1 %v5541_v44 }
 0x662   : > { %2231 = vmatpush1.bf16.msra.mxu0 %v6481_v34  ;;  %4689 = vmatpush3.bf16.msra.mxu1 %v6548_v17 }
 0x663   : > { %2232 = vmatprep.subr.bf16.mxu0 %v6488_v57  ;;  %4690 = vmatprep.subr.bf16.mxu1 %v5541_v44 }
 0x666   : > { %2233 = vmatpush1.bf16.msra.mxu0 %v6495_v40  ;;  %4691 = vmatpush3.bf16.msra.mxu1 %v6557_v28 }
 0x667   : > { %2234 = vmatprep.subr.bf16.mxu0 %v6563_v12  ;;  %4692 = vmatprep.subr.bf16.mxu1 %v5541_v44 }
 0x66a   : > { %2235 = vmatpush1.bf16.msra.mxu0 %v6570_v59  ;;  %4693 = vmatpush3.bf16.msra.mxu1 %v6576_v41 }
 0x66b   : > { %2333 = vmatprep.subr.bf16.mxu0 %v6387_v38  ;;  %4698 = vmatprep.subr.bf16.mxu1 %v5541_v44 }
 0x720   : > { %v2141_v46 = vpop.f32.mrb[36].mxu0  ;;  %v2182_v60 = vpop.f32.mrb[28].mxu1 }
 0x721   : > { %v2189_v56 = vadd.f32 %v2188_v45, %v2141_v46  ;;  %v2143_v48 = vpop.f32.mrb[37].mxu0  ;;  %v4676_v49 = vpop.f32.mrb[29].mxu1  ;;  %v2207_v27 = vadd.f32 %v6236_v51, %v2182_v60 }
 0x722   : > { %v2200_v50 = vadd.f32 %v2199_v47, %v2143_v48  ;;  %v2145_v58 = vpop.f32.mrb[38].mxu0  ;;  %v2185_v52 = vpop.f32.mrb[30].mxu1 }
 0x723   : > { %v4283_v61 = vmul.f32 -1.442695, %v2189_v56  ;;  %v2146_v53 = vpop.f32.mrb[39].mxu0  ;;  %v4677_v54 = vpop.f32.mrb[31].mxu1  ;;  %v4994_v58 = vld [vmem:[%s7277_s7 + $0x18] sm:$0xff]   ;;  %v4995_v52 = vld [vmem:[%s7277_s7 + $0x20] sm:$0xff]  }
 0x724   : > { %v4284_v38 = vmul.f32 -1.442695, %v2200_v50  ;;  %v4993_v50 = vld [vmem:[%s7277_s7 + $0x10] sm:$0xff]   ;;  %v4998_v54 = vld [vmem:[%s7277_s7 + $0x38] sm:$0xff]  }
 0x725   : > { %5121 = vpow2.f32 %v4283_v61  ;;  %v4996_v61 = vld [vmem:[%s7277_s7 + $0x28] sm:$0xff]   ;;  %v4997_v53 = vld [vmem:[%s7277_s7 + $0x30] sm:$0xff]  }
 0x726   : > { %5123 = vpow2.f32 %v4284_v38  ;;  %v6668_v38 = vld [vmem:[%s6665_s29] sm:$0xff]  }
 0x72f   : > { %v5122_v55 = vpop.eup %5121 }
 0x730   : > { %v2193_v6 = vadd.f32 1.0, %v5122_v55  ;;  %v5124_v22 = vpop.eup %5123  ;;  %v6672_v55 = vld [vmem:[%s6665_s29 + $0x8] sm:$0xff]  }
 0x731   : > { %v2204_v30 = vadd.f32 1.0, %v5124_v22  ;;  %v5002_v22 = vld [vmem:[%s7195_s12] sm:$0xff]  }
 0x732   : > { %5125 = vrcp.f32 %v2193_v6  ;;  %v5001_v6 = vld [vmem:[%s7279_s8] sm:$0xff]  }
 0x733   : > { %5127 = vrcp.f32 %v2204_v30  ;;  %v5003_v30 = vld [vmem:[%s7279_s8 + $0x8] sm:$0xff]  }
 0x73c   : > { %v5126_v4 = vpop.eup %5125 }
 0x73d   : > { %v2208_v33 = vmul.f32 %v5126_v4, %v2207_v27  ;;  %v5128_v39 = vpop.eup %5127  ;;  %v5004_v27 = vld [vmem:[%s7195_s12 + $0x8] sm:$0xff]   ;;  %v5005_v4 = vld [vmem:[%s7279_s8 + $0x10] sm:$0xff]  }
 0x73e   : > { %v2212_v14 = vsub.f32 1.0, %v5128_v39  ;;  %v2214_v7 = vmul.f32 %v5128_v39, %v6512_v32  ;;  %v5009_v39 = vld [vmem:[%s7279_s8 + $0x20] sm:$0xff]  }
 0x73f   : > { %v2210_v36 = vadd.f32 %v2209_v43, %v2208_v33  ;;  %v5006_v33 = vld [vmem:[%s7195_s12 + $0x10] sm:$0xff]   ;;  %v5007_v43 = vld [vmem:[%s7279_s8 + $0x18] sm:$0xff]  }
 0x741   : > { %5129 = vtanh.f32 %v2210_v36  ;;  %v5008_v36 = vld [vmem:[%s7195_s12 + $0x18] sm:$0xff]  }
 0x74b   : > { %v5130_v1 = vpop.eup %5129 }
 0x74c   : > { %v2213_v5 = vmul.f32 %v5130_v1, %v2212_v14  ;;  %v5010_v14 = vld [vmem:[%s7195_s12 + $0x20] sm:$0xff]   ;;  %v6715_v1 = vld [vmem:[%s6665_s29 + $0x10] sm:$0xff]  }
 0x74e   : > { %v6586_v9 = vadd.f32 %v2214_v7, %v2213_v5  ;;  %v6718_v5 = vld [vmem:[%s6665_s29 + $0x18] sm:$0xff]   ;;  %v5011_v7 = vld [vmem:[%s7279_s8 + $0x28] sm:$0xff]   ;;  %s5366_s29 = sshll.u32 %s5544_s0, 4  ;;  %s5367_s29 = int_to_ptr.vmem [resolvable:$false] %s5366_s29 }
 0x74f   : > { %p5369_p3 = scmp.lt.s32.totalorder %s7053_s22, %s5367_s29 }
 0x750   : > { %v2219_v42 = vpack.c.bf16 %v6586_v9, %v6586_v9 }
 0x752   : > { %2253 = vmatmul.mubr.bf16.vlgmr.msra.gmra.mrb[40].mxu0 %v2219_v42  ;;  %4695 = vmatmul.mubr.bf16.vlgmr.msra.gmra.mrb[32].mxu1 %v2219_v42  ;;  %v5015_v42 = vld [vmem:[%s7279_s8 + $0x30] sm:$0xff]  }
 0x753   : > { %2334 = vmatpush1.bf16.msra.mxu0 %v6339_v35  ;;  %4699 = vmatpush3.bf16.msra.mxu1 %v6404_v16  ;;  %v4991_v35 = vld [vmem:[%s7277_s7] sm:$0xff]  }
 0x754   : > { %2335 = vmatprep.subr.bf16.mxu0 %v6346_v29  ;;  %4700 = vmatprep.subr.bf16.mxu1 %v5541_v44  ;;  %v2310_v29 = vrot.slane %v6228_v11, 4 }
 0x755   : > { %2365 = vmatprep.mubr.bf16.mxu0 %v5540_v8  ;;  %4714 = vmatprep.mubr.msk.bf16.mxu1 %vm5542_vm0, %v5541_v44 }
 0x757   : > { %2336 = vmatpush1.bf16.msra.mxu0 %v6356_v37  ;;  %4701 = vmatpush3.bf16.msra.mxu1 %v6416_v15  ;;  %v2301_v37 = vunpack.c.l.bf16 %v6228_v11 }
 0x758   : > { %2337 = vmatprep.subr.bf16.mxu0 %v6422_v18  ;;  %4702 = vmatprep.subr.bf16.mxu1 %v5541_v44  ;;  %v2312_v18 = vunpack.c.l.bf16 %v2310_v29  ;;  %v5017_v29 = vld [vmem:[%s7279_s8 + $0x38] sm:$0xff]   ;;  %s5368_s8 = scalar_lea.vmem %s5367_s29, 256 }
 0x75b   : > { %2338 = vmatpush1.bf16.msra.mxu0 %v6429_v19  ;;  %4703 = vmatpush3.bf16.msra.mxu1 %v6435_v20 }
 0x75c   : > { %2339 = vmatprep.subr.bf16.mxu0 %v6441_v23  ;;  %4704 = vmatprep.subr.bf16.mxu1 %v5541_v44 }
 0x75f   : > { %2340 = vmatpush1.bf16.msra.mxu0 %v6448_v24  ;;  %4705 = vmatpush3.bf16.msra.mxu1 %v6454_v25 }
 0x760   : > { %2341 = vmatprep.subr.bf16.mxu0 %v6460_v26  ;;  %4706 = vmatprep.subr.bf16.mxu1 %v5541_v44 }
 0x763   : > { %2342 = vmatpush1.bf16.msra.mxu0 %v6467_v3  ;;  %4707 = vmatpush3.bf16.msra.mxu1 %v6539_v10  ;;  %v6629_v10 = vld [vmem:[#allocation2 + $0x50] ss:$12 sps:$4 sm:$0xff]  }
 0x764   : > { %2343 = vmatprep.subr.bf16.mxu0 %v6474_v31  ;;  %4708 = vmatprep.subr.bf16.mxu1 %v5541_v44 }
 0x767   : > { %2344 = vmatpush1.bf16.msra.mxu0 %v6481_v34  ;;  %4709 = vmatpush3.bf16.msra.mxu1 %v6548_v17 }
 0x768   : > { %2345 = vmatprep.subr.bf16.mxu0 %v6488_v57  ;;  %4710 = vmatprep.subr.bf16.mxu1 %v5541_v44 }
 0x76b   : > { %2346 = vmatpush1.bf16.msra.mxu0 %v6495_v40  ;;  %4711 = vmatpush3.bf16.msra.mxu1 %v6557_v28 }
 0x76c   : > { %2347 = vmatprep.subr.bf16.mxu0 %v6563_v12  ;;  %4712 = vmatprep.subr.bf16.mxu1 %v5541_v44 }
 0x76f   : > { %2348 = vmatpush1.bf16.msra.mxu0 %v6570_v59  ;;  %4713 = vmatpush3.bf16.msra.mxu1 %v6576_v41  ;;  %v2322_v59 = vunpack.c.l.bf16 %v6629_v10 }
 0x770   : > { %4742 = vmatprep.subr.bf16.mxu1 %v5541_v44  ;;  %4718 = vmatprep.subr.bf16.mxu0 %v4991_v35 }
 0x825   : > { %v2254_v16 = vpop.f32.mrb[40].mxu0  ;;  %v2295_v15 = vpop.f32.mrb[32].mxu1 }
 0x826   : > { %v2302_v19 = vadd.f32 %v2301_v37, %v2254_v16  ;;  %v2256_v20 = vpop.f32.mrb[41].mxu0  ;;  %v4696_v23 = vpop.f32.mrb[33].mxu1  ;;  %v2320_v17 = vadd.f32 %v6236_v51, %v2295_v15  ;;  %v4992_v51 = vld [vmem:[%s7277_s7 + $0x8] sm:$0xff]   ;;  %v5018_v37 = vld [vmem:[%s7195_s12 + $0x38] sm:$0xff]   ;;  %s5362_s7 = scalar_lea.vmem %s7053_s22, 128 }
 0x827   : > { %v2313_v24 = vadd.f32 %v2312_v18, %v2256_v20  ;;  %v2258_v25 = vpop.f32.mrb[42].mxu0  ;;  %v2298_v26 = vpop.f32.mrb[34].mxu1  ;;  %v2330_v16 = vld [vmem:[#allocation2 + $0x54] sm:$0xff]  ;;  %p5363_p9 = scmp.ne.s32.totalorder %s7053_s22, %s5362_s7  ;;  %p5370_p6 = scmp.lt.s32.totalorder %s5368_s8, %s5362_s7 }
 0x828   : > { %v4285_v3 = vmul.f32 -1.442695, %v2302_v19  ;;  %v2259_v31 = vpop.f32.mrb[43].mxu0  ;;  %v4697_v34 = vpop.f32.mrb[35].mxu1  ;;  %v2423_v15 = vrot.slane %v2330_v16, 4  ;;  %v2414_v18 = vunpack.c.l.bf16 %v2330_v16 }
 0x829   : > { %v4286_v57 = vmul.f32 -1.442695, %v2313_v24  ;;  %p5364_p2 = pnand %p5363_p9, %p7283_p13  ;;  %p5371_p5 = por %p5370_p6, %p5369_p3 }
 0x82a   : > { %5131 = vpow2.f32 %v4285_v3  ;;  %v2425_v26 = vunpack.c.l.bf16 %v2423_v15 }
 0x82b   : > { %5133 = vpow2.f32 %v4286_v57  ;;  %p5365_p0 = pneg %p5364_p2 }
 0x82d   : > { %p5372_p10 = pnand %p5371_p5, %p5365_p0 }
 0x834   : > { %v5132_v40 = vpop.eup %5131 }
 0x835   : > { %v2306_v21 = vadd.f32 1.0, %v5132_v40  ;;  %v5134_v32 = vpop.eup %5133 }
 0x836   : > { %v2317_v11 = vadd.f32 1.0, %v5134_v32 }
 0x837   : > { %5135 = vrcp.f32 %v2306_v21 }
 0x838   : > { %5137 = vrcp.f32 %v2317_v11 }
 0x841   : > { %v5136_v28 = vpop.eup %5135 }
 0x842   : > { %v2321_v12 = vmul.f32 %v5136_v28, %v2320_v17  ;;  %v5138_v45 = vpop.eup %5137 }
 0x843   : > { %v2325_v46 = vsub.f32 1.0, %v5138_v45  ;;  %v2327_v56 = vmul.f32 %v5138_v45, %v6586_v9  ;;  %v5012_v9 = vld [vmem:[%s7195_s12 + $0x28] sm:$0xff]  }
 0x844   : > { %v2323_v41 = vadd.f32 %v2322_v59, %v2321_v12  ;;  %v5193_v59 = vld [vmem:[%s7276_s9] ss:$0 sm:$0xff] }
 0x846   : > { %5139 = vtanh.f32 %v2323_v41 }
 0x850   : > { %v5140_v60 = vpop.eup %5139 }
 0x851   : > { %v2326_v47 = vmul.f32 %v5140_v60, %v2325_v46  ;;  %v2435_v60 = vunpack.c.h.bf16 %v6629_v10 }
 0x853   : > { %v6634_v48 = vadd.f32 %v2327_v56, %v2326_v47 }
 0x855   : > { %v2332_v49 = vpack.c.bf16 %v6634_v48, %v6634_v48 }
 0x857   : > { %2366 = vmatmul.mubr.bf16.vlgmr.msra.gmra.mrb[44].mxu0 %v2332_v49  ;;  %4715 = vmatmul.mubr.bf16.vlgmr.msra.gmra.mrb[36].mxu1 %v2332_v49 }
 0x858   : > { %4719 = vmatpush3.bf16.msra.mxu0 %v4991_v35  ;;  %4758 = vmatprep.mubr.msk.bf16.mxu1 %vm5542_vm0, %v5541_v44  ;;  %v5016_v35 = vld [vmem:[%s7195_s12 + $0x30] sm:$0xff]  }
 0x859   : > { %4720 = vmatprep.subr.bf16.mxu0 %v4992_v51  ;;  %4734 = vmatprep.mubr.bf16.mxu0 %v6668_v38 }
 0x85a   : > { %4743 = vmatpush3.bf16.msra.mxu1 %v5001_v6 }
 0x85b   : > { %4744 = vmatprep.subr.bf16.mxu1 %v5541_v44 }
 0x85c   : > { %4721 = vmatpush3.bf16.msra.mxu0 %v4992_v51 }
 0x85d   : > { %4722 = vmatprep.subr.bf16.mxu0 %v4993_v50 }
 0x85e   : > { %4745 = vmatpush3.bf16.msra.mxu1 %v5003_v30 }
 0x85f   : > { %4746 = vmatprep.subr.bf16.mxu1 %v5541_v44 }
 0x860   : > { %4723 = vmatpush3.bf16.msra.mxu0 %v4993_v50 }
 0x861   : > { %4724 = vmatprep.subr.bf16.mxu0 %v4994_v58 }
 0x862   : > { %4747 = vmatpush3.bf16.msra.mxu1 %v5005_v4 }
 0x863   : > { %4748 = vmatprep.subr.bf16.mxu1 %v5541_v44 }
 0x864   : > { %4725 = vmatpush3.bf16.msra.mxu0 %v4994_v58 }
 0x865   : > { %4726 = vmatprep.subr.bf16.mxu0 %v4995_v52 }
 0x866   : > { %4749 = vmatpush3.bf16.msra.mxu1 %v5007_v43  ;;  %v4302_v43 = vld [vmem:[#allocation8] ss:$0 sm:$0xff] }
 0x867   : > { %4750 = vmatprep.subr.bf16.mxu1 %v5541_v44 }
 0x868   : > { %4727 = vmatpush3.bf16.msra.mxu0 %v4995_v52 }
 0x869   : > { %4728 = vmatprep.subr.bf16.mxu0 %v4996_v61 }
 0x86a   : > { %4751 = vmatpush3.bf16.msra.mxu1 %v5009_v39 }
 0x86b   : > { %4752 = vmatprep.subr.bf16.mxu1 %v5541_v44 }
 0x86c   : > { %4729 = vmatpush3.bf16.msra.mxu0 %v4996_v61 }
 0x86d   : > { %4730 = vmatprep.subr.bf16.mxu0 %v4997_v53 }
 0x86e   : > { %4753 = vmatpush3.bf16.msra.mxu1 %v5011_v7 }
 0x86f   : > { %4754 = vmatprep.subr.bf16.mxu1 %v5541_v44 }
 0x870   : > { %4731 = vmatpush3.bf16.msra.mxu0 %v4997_v53 }
 0x871   : > { %4732 = vmatprep.subr.bf16.mxu0 %v4998_v54 }
 0x872   : > { %4755 = vmatpush3.bf16.msra.mxu1 %v5015_v42 }
 0x873   : > { %4756 = vmatprep.subr.bf16.mxu1 %v5541_v44 }
 0x874   : > { %4733 = vmatpush3.bf16.msra.mxu0 %v4998_v54 }
 0x875   : > { %4762 = vmatprep.subr.bf16.mxu0 %v5541_v44 }
 0x876   : > { %4757 = vmatpush3.bf16.msra.mxu1 %v5017_v29 }
 0x877   : > { %4735 = vmatmul.mubr.bf16.vlgmr.msra.gmra.mrb[48].mxu0 %v6672_v55  ;;  %4782 = vmatprep.subr.bf16.mxu1 %v5541_v44 }
 0x878   : > { %4763 = vmatpush3.bf16.msra.mxu0 %v5002_v22  ;;  %4738 = vmatprep.mubr.bf16.mxu0 %v6715_v1 }
 0x879   : > { %4764 = vmatprep.subr.bf16.mxu0 %v5541_v44 }
 0x87c   : > { %4765 = vmatpush3.bf16.msra.mxu0 %v5004_v27 }
 0x87d   : > { %4766 = vmatprep.subr.bf16.mxu0 %v5541_v44 }
 0x87f   : > { %4739 = vmatmul.mubr.bf16.gmra.mrb[52].mxu0 %v6718_v5 }
 0x880   : > { %4767 = vmatpush3.bf16.msra.mxu0 %v5006_v33  ;;  %4778 = vmatprep.mubr.msk.bf16.mxu0 %vm5542_vm0, %v5541_v44  ;;  %v5543_v33 = vmov 1966171168  }
 0x881   : > { %4768 = vmatprep.subr.bf16.mxu0 %v5541_v44 }
 0x884   : > { %4769 = vmatpush3.bf16.msra.mxu0 %v5008_v36  ;;  %v4312_v36 = vld [vmem:[#allocation10] ss:$0 sm:$0xff] }
 0x885   : > { %4770 = vmatprep.subr.bf16.mxu0 %v5541_v44 }
 0x888   : > { %4771 = vmatpush3.bf16.msra.mxu0 %v5010_v14 }
 0x889   : > { %4772 = vmatprep.subr.bf16.mxu0 %v5541_v44 }
 0x88c   : > { %4773 = vmatpush3.bf16.msra.mxu0 %v5012_v9  ;;  %v4301_v9 = vld [vmem:[#allocation5] ss:$0 sm:$0xff] }
 0x88d   : > { %4774 = vmatprep.subr.bf16.mxu0 %v5541_v44 }
 0x890   : > { %4775 = vmatpush3.bf16.msra.mxu0 %v5016_v35 }
 0x891   : > { %4776 = vmatprep.subr.bf16.mxu0 %v5541_v44 }
 0x894   : > { %4777 = vmatpush3.bf16.msra.mxu0 %v5018_v37  ;;  %v4311_v37 = vld [vmem:[%s7193_s10] ss:$0 sm:$0xff] }
 0x92a   : > { %v2367_v19 = vpop.f32.mrb[44].mxu0  ;;  %v2408_v20 = vpop.f32.mrb[36].mxu1 }
 0x92b   : > { %v2415_v23 = vadd.f32 %v2414_v18, %v2367_v19  ;;  %v2369_v24 = vpop.f32.mrb[45].mxu0  ;;  %v4716_v25 = vpop.f32.mrb[37].mxu1  ;;  %v2433_v41 = vadd.f32 %v5193_v59, %v2408_v20 }
 0x92c   : > { %v2371_v3 = vpop.f32.mrb[46].mxu0  ;;  %v2411_v31 = vpop.f32.mrb[38].mxu1  ;;  %v2426_v21 = vadd.f32 %v2425_v26, %v2369_v24 }
 0x92d   : > { %v4287_v34 = vmul.f32 -1.442695, %v2415_v23  ;;  %v2372_v57 = vpop.f32.mrb[47].mxu0  ;;  %v4717_v40 = vpop.f32.mrb[39].mxu1 }
 0x92e   : > { %v4288_v32 = vmul.f32 -1.442695, %v2426_v21 }
 0x92f   : > { %5141 = vpow2.f32 %v4287_v34 }
 0x930   : > { %5143 = vpow2.f32 %v4288_v32 }
 0x939   : > { %v5142_v11 = vpop.eup %5141 }
 0x93a   : > { %v2419_v17 = vadd.f32 1.0, %v5142_v11  ;;  %v5144_v28 = vpop.eup %5143 }
 0x93b   : > { %v2430_v12 = vadd.f32 1.0, %v5144_v28 }
 0x93c   : > { %5145 = vrcp.f32 %v2419_v17 }
 0x93d   : > { %5147 = vrcp.f32 %v2430_v12 }
 0x946   : > { %v5146_v45 = vpop.eup %5145 }
 0x947   : > { %v2434_v46 = vmul.f32 %v5146_v45, %v2433_v41  ;;  %v5148_v56 = vpop.eup %5147 }
 0x948   : > { %v2438_v49 = vsub.f32 1.0, %v5148_v56  ;;  %v2440_v58 = vmul.f32 %v5148_v56, %v6634_v48  ;;  %v2758_v48 = vunpack.c.l.s4 %v5543_v33 }
 0x949   : > { %v2436_v47 = vadd.f32 %v2435_v60, %v2434_v46 }
 0x94a   : > { %v4736_v10 = vpop.f32.mrb[48].mxu0  ;;  %v2759_v39 = vunpack.c.0.s8 %v2758_v48 }
 0x94b   : > { %5149 = vtanh.f32 %v2436_v47  ;;  %v2581_v53 = vpop.f32.mrb[49].mxu0  ;;  %v2621_v3 = vadd.f32 %v4736_v10, %v4301_v9 }
 0x94c   : > { %v4737_v54 = vpop.f32.mrb[50].mxu0  ;;  %v2762_v19 = vsub.s32 %v2759_v39, %v6180_v63  ;;  %v2619_v25 = vadd.f32 %v4301_v9, %v2581_v53 }
 0x94d   : > { %v2584_v6 = vpop.f32.mrb[51].mxu0  ;;  %v2622_v31 = vadd.f32 %v4737_v54, %v4301_v9  ;;  %v2629_v59 = vmax.f32 %v2621_v3, 0.0 }
 0x94e   : > { %v2620_v40 = vadd.f32 %v4301_v9, %v2584_v6  ;;  %v2627_v11 = vmax.f32 %v2619_v25, 0.0 }
 0x94f   : > { %v2630_v41 = vmax.f32 %v2622_v31, 0.0 }
 0x952   : > { %v4740_v22 = vpop.f32.mrb[52].mxu0 }
 0x953   : > { %v2597_v30 = vpop.f32.mrb[53].mxu0  ;;  %v2625_v21 = vadd.f32 %v4740_v22, %v4301_v9 }
 0x954   : > { %v4741_v27 = vpop.f32.mrb[54].mxu0  ;;  %v2623_v32 = vadd.f32 %v4301_v9, %v2597_v30 }
 0x955   : > { %v5150_v51 = vpop.eup %5149  ;;  %v2600_v4 = vpop.f32.mrb[55].mxu0  ;;  %v2626_v45 = vadd.f32 %v4741_v27, %v4301_v9 }
 0x956   : > { %v2439_v50 = vmul.f32 %v5150_v51, %v2438_v49  ;;  %v2624_v46 = vadd.f32 %v4301_v9, %v2600_v4  ;;  %v2628_v51 = vmax.f32 %v2620_v40, 0.0 }
 0x957   : > { %v2634_v4 = vmax.f32 %v2626_v45, 0.0 }
 0x958   : > { %v2441_v52 = vadd.f32 %v2440_v58, %v2439_v50  ;;  %v2633_v50 = vmax.f32 %v2625_v21, 0.0  ;;  %v2631_v58 = vmax.f32 %v2623_v32, 0.0  ;;  %v2632_v6 = vmax.f32 %v2624_v46, 0.0 }
 0x95a   : > { %v2458_v61 = vpack.c.bf16 %v2441_v52, %v2441_v52 }
 0x95c   : > { %4759 = vmatmul.mubr.bf16.vlgmr.msra.gmra.mrb[40].mxu1 %v2458_v61  ;;  %4779 = vmatmul.mubr.bf16.vlgmr.msra.gmra.mrb[56].mxu0 %v2458_v61 }
 0x95d   : > { %4798 = vmatprep.mubr.msk.bf16.mxu1 %vm5542_vm0, %v5541_v44  ;;  %3625 = vmatprep.mubr.bf16.mxu0 %v5540_v8 }
 0xa2f   : > { %v2740_v14 = vpop.f32.mrb[40].mxu1  ;;  %v3331_v7 = vpop.f32.mrb[56].mxu0 }
 0xa30   : > { %v2741_v8 = vadd.f32 %v4302_v43, %v2740_v14  ;;  %v6760_v42 = vadd.f32 %v4312_v36, %v3331_v7  ;;  %v4760_v35 = vpop.f32.mrb[41].mxu1  ;;  %v4780_v29 = vpop.f32.mrb[57].mxu0 }
 0xa31   : > { %v2743_v16 = vpop.f32.mrb[42].mxu1  ;;  %v3334_v15 = vpop.f32.mrb[58].mxu0 }
 0xa32   : > { %v2746_v18 = vmax.f32 %v2741_v8, 0.0  ;;  %v3337_v20 = vmax.f32 %v6760_v42, 0.0  ;;  %v4761_v23 = vpop.f32.mrb[43].mxu1  ;;  %v4781_v24 = vpop.f32.mrb[59].mxu0  ;;  %v2888_v16 = vand.u32 127, %v948_v62  ;;  %v2870_v15 = vstv %s2869_s2  ;;  %v5066_v42 = vld [vmem:[%s7201_s18 + $0x38] sm:$0xff]  }
 0xa33   : > { %s7281_s2 = sld [smem:[#allocation46_spill]] }
 0xa34   : > { %v2754_v26 = vmul.f32 %v4311_v37, %v2746_v18  ;;  %3879 = vst [vmem:[%s7227_s23] sm:$0xff] %v3337_v20  ;;  %v6782_v23 = vsub.s32 %v2888_v16, %v6180_v63  ;;  %s7282_s23 = sld [smem:[#allocation47_spill]] }
 0xa36   : > { %v2756_v34 = vcombine.high %v2754_v26, %v2754_v26  ;;  %v2763_v57 = vrot.slane %v2754_v26, %v2762_v19 }
 0xa38   : > { %v2770_v17 = vrot.slane %v2756_v34, %v2762_v19  ;;  %v2771_v28 = vcombine.high %v2763_v57, %v2763_v57  ;;  %v2779_v12 = vrot.slane %v2763_v57, %v2762_v19 }
 0xa39   : > { %s7051_s6 = scalar_lea.hbm %s7281_s2, %s7042_s26 }
 0xa3a   : > { %v2808_v60 = vrot.slane %v2779_v12, %v6183_v0  ;;  %v2801_v47 = vcombine.high %v2779_v12, %v2779_v12  ;;  %v2793_v56 = vrot.slane %v2771_v28, %v2762_v19  ;;  %v2786_v49 = vrot.slane %v2770_v17, %v2762_v19  ;;  %s7060_s3 = scalar_lea.hbm %s7282_s23, %s7042_s26 }
 0xa3b   : > { %v2772_v52 = vcombine.high %v2770_v17, %v2770_v17 }
 0xa3c   : > { %v2845_v61 = vmul.f32 %v2808_v60, %v2627_v11  ;;  %v2816_v10 = vrot.slane %v2801_v47, %v6183_v0  ;;  %v2812_v53 = vrot.slane %v2793_v56, %v6183_v0  ;;  %v2803_v54 = vcombine.high %v2793_v56, %v2793_v56 }
 0xa3d   : > { %v2824_v22 = vrot.slane %v2786_v49, %v6183_v0  ;;  %v2800_v30 = vrot.slane %v2772_v52, %v2762_v19  ;;  %v2802_v27 = vcombine.high %v2786_v49, %v2786_v49 }
 0xa3e   : > { %2853 = vadd.xlane.f32.xlu0 %v2845_v61  ;;  %v2847_v33 = vmul.f32 %v2816_v10, %v2629_v59  ;;  %v2846_v48 = vmul.f32 %v2812_v53, %v2628_v51  ;;  %v2820_v43 = vrot.slane %v2803_v54, %v6183_v0  ;;  %v2955_v54 = vsub.s32 3, %v6180_v63 }
 0xa3f   : > { %v2849_v36 = vmul.f32 %v2824_v22, %v2631_v58  ;;  %v2828_v39 = vrot.slane %v2800_v30, %v6183_v0  ;;  %v2832_v14 = vrot.slane %v2802_v27, %v6183_v0  ;;  %v2804_v7 = vcombine.high %v2800_v30, %v2800_v30 }
 0xa40   : > { %2857 = vadd.xlane.f32.xlu1 %v2847_v33  ;;  %v2848_v9 = vmul.f32 %v2820_v43, %v2630_v41 }
 0xa41   : > { %v2850_v8 = vmul.f32 %v2828_v39, %v2632_v6  ;;  %v2851_v35 = vmul.f32 %v2832_v14, %v2633_v50  ;;  %v2836_v29 = vrot.slane %v2804_v7, %v6183_v0  ;;  %v2963_v7 = vsub.s32 5, %v6180_v63 }
 0xa42   : > { %2855 = vadd.xlane.f32.xlu0 %v2846_v48 }
 0xa43   : > { %v2852_v37 = vmul.f32 %v2836_v29, %v2634_v4  ;;  %v2959_v4 = vsub.s32 4, %v6180_v63  ;;  %v2967_v29 = vsub.s32 6, %v6180_v63 }
 0xa44   : > { %2859 = vadd.xlane.f32.xlu1 %v2848_v9 }
 0xa46   : > { %2861 = vadd.xlane.f32.xlu0 %v2849_v36 }
 0xa48   : > { %2863 = vadd.xlane.f32.xlu1 %v2850_v8 }
 0xa4a   : > { %2865 = vadd.xlane.f32.xlu0 %v2851_v35 }
 0xa4c   : > { %2867 = vadd.xlane.f32.xlu1 %v2852_v37 }
 0xacb   : > { %v2854_v18 = vpop.xlane.xlu0 %2853 }
 0xacc   : > { %v2871_v24 = vadd.f32 %v2870_v15, %v2854_v18  ;;  %v2971_v18 = vsub.s32 7, %v6180_v63  ;;  %v5021_v63 = vld [vmem:[%s7197_s14 + $0x10] sm:$0xff]  }
 0xacd   : > { %v2858_v19 = vpop.xlane.xlu1 %2857 }
 0xace   : > { %v2873_v25 = vadd.f32 %v2870_v15, %v2858_v19  ;;  %v2892_v34 = vrot.slane %v2871_v24, %v6782_v23 }
 0xacf   : > { %v2856_v26 = vpop.xlane.xlu0 %2855 }
 0xad0   : > { %v2872_v3 = vadd.f32 %v2870_v15, %v2856_v26  ;;  %v2900_v62 = vrot.slane %v2873_v25, %v6782_v23 }
 0xad1   : > { %v2860_v31 = vpop.xlane.xlu1 %2859 }
 0xad2   : > { %v2896_v57 = vrot.slane %v2872_v3, %v6782_v23  ;;  %v2874_v40 = vadd.f32 %v2870_v15, %v2860_v31 }
 0xad3   : > { %v2862_v21 = vpop.xlane.xlu0 %2861 }
 0xad4   : > { %v2922_v32 = vsel %vm2921_vm1, %v2896_v57, %v2892_v34  ;;  %v2904_v11 = vrot.slane %v2874_v40, %v6782_v23  ;;  %v2875_v17 = vadd.f32 %v2870_v15, %v2862_v21 }
 0xad5   : > { %v2924_v28 = vsel %vm2923_vm2, %v2900_v62, %v2922_v32  ;;  %v2864_v12 = vpop.xlane.xlu1 %2863 }
 0xad6   : > { %v2926_v59 = vsel %vm2925_vm3, %v2904_v11, %v2924_v28  ;;  %v2908_v41 = vrot.slane %v2875_v17, %v6782_v23  ;;  %v2876_v45 = vadd.f32 %v2870_v15, %v2864_v12 }
 0xad7   : > { %v2866_v46 = vpop.xlane.xlu0 %2865 }
 0xad8   : > { %v2928_v60 = vsel %vm2927_vm4, %v2908_v41, %v2926_v59  ;;  %v2912_v47 = vrot.slane %v2876_v45, %v6782_v23  ;;  %v2877_v56 = vadd.f32 %v2870_v15, %v2866_v46 }
 0xad9   : > { %v2868_v49 = vpop.xlane.xlu1 %2867 }
 0xada   : > { %v2916_v51 = vrot.slane %v2877_v56, %v6782_v23  ;;  %v2878_v50 = vadd.f32 %v2870_v15, %v2868_v49  ;;  %v2930_v58 = vsel %vm2929_vm5, %v2912_v47, %v2928_v60 }
 0xadc   : > { %v2920_v52 = vrot.slane %v2878_v50, %v6782_v23  ;;  %v2932_v61 = vsel %vm2931_vm6, %v2916_v51, %v2930_v58 }
 0xade   : > { %v2934_v10 = vsel %vm2933_vm7, %v2920_v52, %v2932_v61 }
 0xadf   : > { %v2937_v53 = vsel %vm2936_vm8, %v2934_v10, -inf }
 0xae0   : > { %2938 = vmax.xlane.f32.xlu0 %v2937_v53 }
 0xb6d   : > { %v2939_v6 = vpop.xlane.xlu0 %2938 }
 0xb6e   : > { %v2944_v22 = vrot.slane %v2939_v6, %v6183_v0  ;;  %v2948_v30 = vrot.slane %v2939_v6, %v6189_v2  ;;  %v2952_v27 = vrot.slane %v2939_v6, %v6201_v13  ;;  %v2956_v33 = vrot.slane %v2939_v6, %v2955_v54 }
 0xb6f   : > { %v2960_v9 = vrot.slane %v2939_v6, %v2959_v4  ;;  %v2964_v37 = vrot.slane %v2939_v6, %v2963_v7  ;;  %v2968_v19 = vrot.slane %v2939_v6, %v2967_v29  ;;  %v2972_v31 = vrot.slane %v2939_v6, %v2971_v18 }
 0xb70   : > { %v2981_v48 = vsub.f32 %v2871_v24, %v2944_v22  ;;  %v2982_v43 = vsub.f32 %v2872_v3, %v2948_v30  ;;  %v2983_v36 = vsub.f32 %v2873_v25, %v2952_v27  ;;  %v2984_v8 = vsub.f32 %v2874_v40, %v2956_v33 }
 0xb71   : > { %v2985_v16 = vsub.f32 %v2875_v17, %v2960_v9  ;;  %v2986_v24 = vsub.f32 %v2876_v45, %v2964_v37  ;;  %v2987_v34 = vsub.f32 %v2877_v56, %v2968_v19  ;;  %v2988_v62 = vsub.f32 %v2878_v50, %v2972_v31 }
 0xb72   : > { %v2989_v39 = vmul.f32 1.442695, %v2981_v48  ;;  %v2991_v14 = vmul.f32 1.442695, %v2982_v43  ;;  %v2993_v35 = vmul.f32 1.442695, %v2983_v36 }
 0xb73   : > { %v2995_v15 = vmul.f32 1.442695, %v2984_v8  ;;  %v2997_v25 = vmul.f32 1.442695, %v2985_v16  ;;  %v2999_v57 = vmul.f32 1.442695, %v2986_v24 }
 0xb74   : > { %5151 = vpow2.f32 %v2989_v39  ;;  %v3001_v21 = vmul.f32 1.442695, %v2987_v34  ;;  %v3003_v11 = vmul.f32 1.442695, %v2988_v62  ;;  %v5024_v62 = vld [vmem:[%s7197_s14 + $0x28] sm:$0xff]  }
 0xb75   : > { %5153 = vpow2.f32 %v2991_v14 }
 0xb76   : > { %5155 = vpow2.f32 %v2993_v35 }
 0xb77   : > { %5157 = vpow2.f32 %v2995_v15 }
 0xb78   : > { %5159 = vpow2.f32 %v2997_v25 }
 0xb79   : > { %5161 = vpow2.f32 %v2999_v57 }
 0xb7a   : > { %5163 = vpow2.f32 %v3001_v21  ;;  %v5025_v21 = vld [vmem:[%s7197_s14 + $0x30] sm:$0xff]  }
 0xb7b   : > { %5165 = vpow2.f32 %v3003_v11  ;;  %v5027_v11 = vld [vmem:[%s7199_s16] ss:$8 sps:$4 sm:$0xff]  }
 0xb7e   : > { %v5152_v26 = vpop.eup %5151 }
 0xb7f   : > { %v5154_v3 = vpop.eup %5153  ;;  %3014 = vperm.xlu1 %4921, %v5152_v26  }
 0xb80   : > { %3017 = vperm.xlu0 %4922, %v5154_v3   ;;  %v5156_v40 = vpop.eup %5155 }
 0xb81   : > { %v5158_v32 = vpop.eup %5157 }
 0xb82   : > { %v5160_v17 = vpop.eup %5159 }
 0xb83   : > { %3020 = vperm.xlu1 %4921, %v5156_v40   ;;  %v5162_v28 = vpop.eup %5161 }
 0xb84   : > { %v5164_v12 = vpop.eup %5163 }
 0xb85   : > { %v5166_v59 = vpop.eup %5165 }
 0xb87   : > { %3023 = vperm.xlu1 %4921, %v5158_v32  }
 0xb8b   : > { %3026 = vperm.xlu1 %4921, %v5160_v17  }
 0xb8f   : > { %3029 = vperm.xlu1 %4921, %v5162_v28  }
 0xb93   : > { %3032 = vperm.xlu1 %4921, %v5164_v12  }
 0xb97   : > { %3035 = vperm.xlu1 %4921, %v5166_v59  }
 0xbfe   : > { %v3015_v41 = vpop.permute.xlu1 %3014 }
 0xbff   : > { %v3018_v47 = vpop.permute.xlu0 %3017  ;;  %v3040_v51 = vrot.slane %v3015_v41, %v6782_v23  ;;  %v5038_v41 = vld [vmem:[%s7199_s16 + $0x34] ss:$8 sps:$4 sm:$0xff]  }
 0xc00   : > { %v3044_v49 = vrot.slane %v3018_v47, %v6782_v23  ;;  %v5044_v47 = vld [vmem:[%s7199_s16 + $0x54] ss:$8 sps:$4 sm:$0xff]  }
 0xc02   : > { %v3021_v45 = vpop.permute.xlu1 %3020  ;;  %v3069_v10 = vsel %vm2921_vm1, %v3044_v49, %v3040_v51  ;;  %v6915_v51 = vunpack.c.h.bf16 %v6668_v38 }
 0xc03   : > { %v3048_v50 = vrot.slane %v3021_v45, %v6782_v23  ;;  %v5036_v45 = vld [vmem:[%s7199_s16 + $0x30] ss:$8 sps:$4 sm:$0xff]  }
 0xc05   : > { %v3070_v6 = vsel %vm2923_vm2, %v3048_v50, %v3069_v10  ;;  %v6918_v50 = vunpack.c.l.bf16 %v6668_v38 }
 0xc06   : > { %v3024_v46 = vpop.permute.xlu1 %3023 }
 0xc07   : > { %v3052_v58 = vrot.slane %v3024_v46, %v6782_v23  ;;  %v5041_v46 = vld [vmem:[%s7199_s16 + $0x44] ss:$8 sps:$4 sm:$0xff]  }
 0xc09   : > { %v3071_v30 = vsel %vm2925_vm3, %v3052_v58, %v3070_v6 }
 0xc0a   : > { %v3027_v60 = vpop.permute.xlu1 %3026 }
 0xc0b   : > { %v3056_v52 = vrot.slane %v3027_v60, %v6782_v23  ;;  %v5039_v60 = vld [vmem:[%s7199_s16 + $0x40] ss:$8 sps:$4 sm:$0xff]  }
 0xc0d   : > { %v3072_v27 = vsel %vm2927_vm4, %v3056_v52, %v3071_v30  ;;  %v6927_v30 = vunpack.c.h.bf16 %v6672_v55 }
 0xc0e   : > { %v3030_v56 = vpop.permute.xlu1 %3029 }
 0xc0f   : > { %v3060_v53 = vrot.slane %v3030_v56, %v6782_v23  ;;  %v5042_v56 = vld [vmem:[%s7199_s16 + $0x50] ss:$8 sps:$4 sm:$0xff]  }
 0xc11   : > { %v3073_v48 = vsel %vm2929_vm5, %v3060_v53, %v3072_v27 }
 0xc12   : > { %v3033_v61 = vpop.permute.xlu1 %3032 }
 0xc13   : > { %v3064_v22 = vrot.slane %v3033_v61, %v6782_v23  ;;  %v6922_v61 = vunpack.c.l.bf16 %v6672_v55 }
 0xc15   : > { %v3074_v36 = vsel %vm2931_vm6, %v3064_v22, %v3073_v48 }
 0xc16   : > { %v3036_v33 = vpop.permute.xlu1 %3035 }
 0xc17   : > { %v3068_v43 = vrot.slane %v3036_v33, %v6782_v23 }
 0xc19   : > { %v3075_v39 = vsel %vm2933_vm7, %v3068_v43, %v3074_v36 }
 0xc1a   : > { %v3077_v14 = vsel %vm2936_vm8, %v3075_v39, 0.0 }
 0xc1b   : > { %3078 = vadd.xlane.f32.xlu1 %v3077_v14  ;;  %v6931_v14 = vunpack.c.l.bf16 %v6715_v1 }
 0xca8   : > { %v3079_v9 = vpop.xlane.xlu1 %3078 }
 0xca9   : > { %5167 = vrcp.f32 %v3079_v9 }
 0xcb3   : > { %v5168_v8 = vpop.eup %5167 }
 0xcb4   : > { %v3085_v35 = vrot.slane %v5168_v8, %v6183_v0  ;;  %v3089_v16 = vrot.slane %v5168_v8, %v6189_v2  ;;  %v3093_v19 = vrot.slane %v5168_v8, %v6201_v13  ;;  %v3097_v24 = vrot.slane %v5168_v8, %v2955_v54 }
 0xcb5   : > { %v3101_v31 = vrot.slane %v5168_v8, %v2959_v4  ;;  %v3109_v13 = vrot.slane %v5168_v8, %v2967_v29  ;;  %v3113_v54 = vrot.slane %v5168_v8, %v2971_v18  ;;  %v5022_v29 = vld [vmem:[%s7197_s14 + $0x18] sm:$0xff]   ;;  %v5023_v18 = vld [vmem:[%s7197_s14 + $0x20] sm:$0xff]  }
 0xcb6   : > { %v3122_v37 = vmul.f32 %v5152_v26, %v3085_v35  ;;  %v3123_v15 = vmul.f32 %v5154_v3, %v3089_v16  ;;  %v3124_v23 = vmul.f32 %v5156_v40, %v3093_v19  ;;  %v3125_v25 = vmul.f32 %v5158_v32, %v3097_v24  ;;  %v5019_v40 = vld [vmem:[%s7197_s14] sm:$0xff]   ;;  %v5026_v32 = vld [vmem:[%s7197_s14 + $0x38] sm:$0xff]  }
 0xcb7   : > { %v3126_v34 = vmul.f32 %v5160_v17, %v3101_v31  ;;  %v3105_v26 = vrot.slane %v5168_v8, %v2963_v7  ;;  %v3128_v3 = vmul.f32 %v5164_v12, %v3109_v13  ;;  %4783 = vmatpush3.bf16.msra.mxu1 %v5019_v40  ;;  %v3129_v4 = vmul.f32 %v5166_v59, %v3113_v54  ;;  %v5020_v7 = vld [vmem:[%s7197_s14 + $0x8] sm:$0xff]   ;;  %v5030_v12 = vld [vmem:[%s7199_s16 + $0x10] ss:$8 sps:$4 sm:$0xff]  }
 0xcb8   : > { %3132 = vperm.xlu0 %4922, %v3122_v37   ;;  %4784 = vmatprep.subr.bf16.mxu1 %v5541_v44  ;;  %v5029_v17 = vld [vmem:[%s7199_s16 + $0x4] ss:$8 sps:$4 sm:$0xff]   ;;  %v6934_v16 = vunpack.c.h.bf16 %v6715_v1 }
 0xcb9   : > { %v3127_v57 = vmul.f32 %v5162_v28, %v3105_v26  ;;  %v5032_v28 = vld [vmem:[%s7199_s16 + $0x14] ss:$8 sps:$4 sm:$0xff]   ;;  %3593 = vmatprep.subr.bf16.mxu0 %v5029_v17  ;;  %v5035_v59 = vld [vmem:[%s7199_s16 + $0x24] ss:$8 sps:$4 sm:$0xff]   ;;  %v6939_v26 = vunpack.c.l.bf16 %v6718_v5 }
 0xcba   : > { %3594 = vmatpush1.bf16.msra.mxu0 %v5027_v11 }
 0xcbb   : > { %4785 = vmatpush3.bf16.msra.mxu1 %v5020_v7  ;;  %3595 = vmatprep.subr.bf16.mxu0 %v5032_v28 }
 0xcbc   : > { %3137 = vperm.xlu0 %4922, %v3123_v15   ;;  %4786 = vmatprep.subr.bf16.mxu1 %v5541_v44 }
 0xcbe   : > { %3596 = vmatpush1.bf16.msra.mxu0 %v5030_v12 }
 0xcbf   : > { %4787 = vmatpush3.bf16.msra.mxu1 %v5021_v63  ;;  %3597 = vmatprep.subr.bf16.mxu0 %v5035_v59 }
 0xcc0   : > { %3142 = vperm.xlu0 %4922, %v3124_v23   ;;  %4788 = vmatprep.subr.bf16.mxu1 %v5541_v44 }
 0xcc3   : > { %4789 = vmatpush3.bf16.msra.mxu1 %v5022_v29 }
 0xcc4   : > { %3147 = vperm.xlu0 %4922, %v3125_v25   ;;  %4790 = vmatprep.subr.bf16.mxu1 %v5541_v44 }
 0xcc7   : > { %4791 = vmatpush3.bf16.msra.mxu1 %v5023_v18  ;;  %v6943_v18 = vunpack.c.h.bf16 %v6718_v5 }
 0xcc8   : > { %3152 = vperm.xlu0 %4922, %v3126_v34   ;;  %4792 = vmatprep.subr.bf16.mxu1 %v5541_v44 }
 0xccb   : > { %4793 = vmatpush3.bf16.msra.mxu1 %v5024_v62 }
 0xccc   : > { %3157 = vperm.xlu0 %4922, %v3127_v57   ;;  %4794 = vmatprep.subr.bf16.mxu1 %v5541_v44 }
 0xccf   : > { %4795 = vmatpush3.bf16.msra.mxu1 %v5025_v21 }
 0xcd0   : > { %3162 = vperm.xlu0 %4922, %v3128_v3   ;;  %4796 = vmatprep.subr.bf16.mxu1 %v5541_v44  ;;  %v5033_v44 = vld [vmem:[%s7199_s16 + $0x20] ss:$8 sps:$4 sm:$0xff]  }
 0xcd1   : > { %3598 = vmatpush1.bf16.msra.mxu0 %v5033_v44 }
 0xcd2   : > { %3599 = vmatprep.subr.bf16.mxu0 %v5038_v41 }
 0xcd3   : > { %4797 = vmatpush3.bf16.msra.mxu1 %v5026_v32 }
 0xcd4   : > { %3167 = vperm.xlu0 %4922, %v3129_v4  }
 0xcd5   : > { %3600 = vmatpush1.bf16.msra.mxu0 %v5036_v45 }
 0xcd6   : > { %3601 = vmatprep.subr.bf16.mxu0 %v5041_v46 }
 0xcd9   : > { %3602 = vmatpush1.bf16.msra.mxu0 %v5039_v60 }
 0xcda   : > { %3603 = vmatprep.subr.bf16.mxu0 %v5044_v47 }
 0xcdd   : > { %3604 = vmatpush1.bf16.msra.mxu0 %v5042_v56 }
 0xd37   : > { %v3133_v49 = vpop.permute.xlu0 %3132 }
 0xd38   : > { %v3170_v10 = vmul.f32 %v3133_v49, %v6918_v50 }
 0xd3a   : > { %v3178_v27 = vrot.slane %v3170_v10, 4 }
 0xd3b   : > { %v3138_v58 = vpop.permute.xlu0 %3137 }
 0xd3c   : > { %v3171_v52 = vmul.f32 %v3138_v58, %v6915_v51  ;;  %v3179_v36 = vadd.f32 %v3178_v27, %v3170_v10 }
 0xd3e   : > { %v3184_v6 = vrot.slane %v3171_v52, 4  ;;  %v3180_v55 = vrot.slane %v3179_v36, 2 }
 0xd3f   : > { %v3143_v53 = vpop.permute.xlu0 %3142 }
 0xd40   : > { %v3172_v22 = vmul.f32 %v3143_v53, %v6922_v61  ;;  %v3185_v38 = vadd.f32 %v3184_v6, %v3171_v52  ;;  %v3181_v57 = vadd.f32 %v3180_v55, %v3179_v36 }
 0xd42   : > { %v3190_v33 = vrot.slane %v3172_v22, 4  ;;  %v3186_v35 = vrot.slane %v3185_v38, 2  ;;  %v3182_v62 = vrot.slane %v3181_v57, 1 }
 0xd43   : > { %v3148_v48 = vpop.permute.xlu0 %3147 }
 0xd44   : > { %v3173_v43 = vmul.f32 %v3148_v48, %v6927_v30  ;;  %v3191_v39 = vadd.f32 %v3190_v33, %v3172_v22  ;;  %v3187_v31 = vadd.f32 %v3186_v35, %v3185_v38  ;;  %v3183_v60 = vadd.f32 %v3182_v62, %v3181_v57  ;;  %v5047_v62 = vld [vmem:[%s7199_s16 + $0x64] ss:$8 sps:$4 sm:$0xff]  }
 0xd45   : > { %3605 = vmatprep.subr.bf16.mxu0 %v5047_v62 }
 0xd46   : > { %v3196_v9 = vrot.slane %v3173_v43, 4  ;;  %v3192_v15 = vrot.slane %v3191_v39, 2  ;;  %v3188_v7 = vrot.slane %v3187_v31, 1  ;;  %v3338_v33 = vpack.c.bf16 %v3183_v60, %v3183_v60  ;;  %v5059_v60 = vld [vmem:[%s7201_s18 + $0x60] sm:$0xff]  }
 0xd47   : > { %v3153_v8 = vpop.permute.xlu0 %3152 }
 0xd48   : > { %v3197_v37 = vadd.f32 %v3196_v9, %v3173_v43  ;;  %v3174_v19 = vmul.f32 %v3153_v8, %v6931_v14  ;;  %v3193_v13 = vadd.f32 %v3192_v15, %v3191_v39  ;;  %v3189_v44 = vadd.f32 %v3188_v7, %v3187_v31 }
 0xd49   : > { %v3377_v55 = vunpack.c.l.b16 %v3338_v33 }
 0xd4a   : > { %v3198_v23 = vrot.slane %v3197_v37, 2  ;;  %v3202_v24 = vrot.slane %v3174_v19, 4  ;;  %v3194_v21 = vrot.slane %v3193_v13, 1  ;;  %v3339_v10 = vpack.c.bf16 %v3189_v44, %v3189_v44  ;;  %v5055_v44 = vld [vmem:[%s7201_s18 + $0x50] sm:$0xff]  }
 0xd4b   : > { %v3158_v25 = vpop.permute.xlu0 %3157 }
 0xd4c   : > { %v3175_v34 = vmul.f32 %v3158_v25, %v6934_v16  ;;  %v3203_v3 = vadd.f32 %v3202_v24, %v3174_v19  ;;  %v3199_v54 = vadd.f32 %v3198_v23, %v3197_v37  ;;  %v3195_v47 = vadd.f32 %v3194_v21, %v3193_v13  ;;  %v5045_v21 = vld [vmem:[%s7199_s16 + $0x60] ss:$8 sps:$4 sm:$0xff]  }
 0xd4d   : > { %v3378_v39 = vunpack.c.l.b16 %v3339_v10  ;;  %3606 = vmatpush1.bf16.msra.mxu0 %v5045_v21 }
 0xd4e   : > { %v3208_v40 = vrot.slane %v3175_v34, 4  ;;  %v3204_v1 = vrot.slane %v3203_v3, 2  ;;  %v3200_v11 = vrot.slane %v3199_v54, 1  ;;  %v3340_v27 = vpack.c.bf16 %v3195_v47, %v3195_v47  ;;  %v5060_v47 = vld [vmem:[%s7201_s18 + $0x20] sm:$0xff]  }
 0xd4f   : > { %v3163_v4 = vpop.permute.xlu0 %3162  ;;  %v3385_v25 = vsel %vm2921_vm1, %v3378_v39, %v3377_v55 }
 0xd50   : > { %v3209_v63 = vadd.f32 %v3208_v40, %v3175_v34  ;;  %v3176_v29 = vmul.f32 %v3163_v4, %v6939_v26  ;;  %v3205_v32 = vadd.f32 %v3204_v1, %v3203_v3  ;;  %v3201_v56 = vadd.f32 %v3200_v11, %v3199_v54  ;;  %v5048_v11 = vld [vmem:[%s7199_s16 + $0x70] ss:$8 sps:$4 sm:$0xff]  }
 0xd51   : > { %v3379_v37 = vunpack.c.l.b16 %v3340_v27 }
 0xd52   : > { %v3210_v17 = vrot.slane %v3209_v63, 2  ;;  %v3214_v28 = vrot.slane %v3176_v29, 4  ;;  %v3206_v12 = vrot.slane %v3205_v32, 1  ;;  %v3341_v48 = vpack.c.bf16 %v3201_v56, %v3201_v56  ;;  %v5061_v56 = vld [vmem:[%s7201_s18 + $0x68] sm:$0xff]  }
 0xd53   : > { %v3168_v59 = vpop.permute.xlu0 %3167  ;;  %v3386_v57 = vsel %vm2923_vm2, %v3379_v37, %v3385_v25 }
 0xd54   : > { %v3211_v41 = vadd.f32 %v3210_v17, %v3209_v63  ;;  %v3215_v45 = vadd.f32 %v3214_v28, %v3176_v29  ;;  %v3177_v46 = vmul.f32 %v3168_v59, %v6943_v18  ;;  %v3207_v52 = vadd.f32 %v3206_v12, %v3205_v32  ;;  %v5050_v32 = vld [vmem:[%s7199_s16 + $0x74] ss:$8 sps:$4 sm:$0xff]   ;;  %v5051_v17 = vld [vmem:[%s7201_s18 + $0x40] sm:$0xff]   ;;  %v5053_v12 = vld [vmem:[%s7201_s18 + $0x48] sm:$0xff]  }
 0xd55   : > { %v3380_v15 = vunpack.c.l.b16 %v3341_v48  ;;  %v5052_v28 = vld [vmem:[%s7201_s18] sm:$0xff]   ;;  %3607 = vmatprep.subr.bf16.mxu0 %v5050_v32  ;;  %4512 = vmatprep.subr.bf16.mxu1 %v5051_v17  ;;  %v5054_v59 = vld [vmem:[%s7201_s18 + $0x8] sm:$0xff]   ;;  %v5063_v48 = vld [vmem:[%s7201_s18 + $0x70] sm:$0xff]  }
 0xd56   : > { %v3212_v49 = vrot.slane %v3211_v41, 1  ;;  %v3216_v58 = vrot.slane %v3215_v45, 2  ;;  %v3220_v5 = vrot.slane %v3177_v46, 4  ;;  %v3342_v36 = vpack.c.bf16 %v3207_v52, %v3207_v52  ;;  %3608 = vmatpush1.bf16.msra.mxu0 %v5048_v11 }
 0xd57   : > { %v3387_v3 = vsel %vm2925_vm3, %v3380_v15, %v3386_v57 }
 0xd58   : > { %v3213_v53 = vadd.f32 %v3212_v49, %v3211_v41  ;;  %v3217_v6 = vadd.f32 %v3216_v58, %v3215_v45  ;;  %v3221_v22 = vadd.f32 %v3220_v5, %v3177_v46  ;;  %v3381_v24 = vunpack.c.l.b16 %v3342_v36  ;;  %v5056_v41 = vld [vmem:[%s7201_s18 + $0x10] sm:$0xff]   ;;  %v5057_v45 = vld [vmem:[%s7201_s18 + $0x58] sm:$0xff]   ;;  %v5062_v49 = vld [vmem:[%s7201_s18 + $0x28] sm:$0xff]  }
 0xd59   : > { %v5058_v46 = vld [vmem:[%s7201_s18 + $0x18] sm:$0xff]   ;;  %v4321_v58 = vld [vmem:[#allocation11] ss:$0 sm:$0xff] }
 0xd5a   : > { %v3218_v38 = vrot.slane %v3217_v6, 1  ;;  %v3222_v43 = vrot.slane %v3221_v22, 2  ;;  %v3343_v9 = vpack.c.bf16 %v3213_v53, %v3213_v53  ;;  %v3388_v40 = vsel %vm2927_vm4, %v3381_v24, %v3387_v3 }
 0xd5c   : > { %v3219_v8 = vadd.f32 %v3218_v38, %v3217_v6  ;;  %v3223_v35 = vadd.f32 %v3222_v43, %v3221_v22  ;;  %v3382_v31 = vunpack.c.l.b16 %v3343_v9  ;;  %v5064_v38 = vld [vmem:[%s7201_s18 + $0x30] sm:$0xff]   ;;  %v5065_v43 = vld [vmem:[%s7201_s18 + $0x78] sm:$0xff]  }
 0xd5e   : > { %v3344_v19 = vpack.c.bf16 %v3219_v8, %v3219_v8  ;;  %v3224_v23 = vrot.slane %v3223_v35, 1  ;;  %v3389_v1 = vsel %vm2929_vm5, %v3382_v31, %v3388_v40  ;;  %v3814_v31 = vrot.slane %v6918_v50, 4 }
 0xd60   : > { %v3225_v34 = vadd.f32 %v3224_v23, %v3223_v35  ;;  %v3383_v13 = vunpack.c.l.b16 %v3344_v19 }
 0xd62   : > { %v3345_v54 = vpack.c.bf16 %v3225_v34, %v3225_v34  ;;  %v3390_v7 = vsel %vm2931_vm6, %v3383_v13, %v3389_v1  ;;  %v3820_v34 = vrot.slane %v6915_v51, 4  ;;  %v3832_v13 = vrot.slane %v6927_v30, 4 }
 0xd64   : > { %v3384_v4 = vunpack.c.l.b16 %v3345_v54  ;;  %v3821_v57 = vadd.f32 %v3820_v34, %v6915_v51  ;;  %v3838_v54 = vrot.slane %v6931_v14, 4 }
 0xd66   : > { %v3391_v63 = vsel %vm2933_vm7, %v3384_v4, %v3390_v7  ;;  %v3822_v1 = vrot.slane %v3821_v57, 2  ;;  %v3844_v4 = vrot.slane %v6934_v16, 4  ;;  %v3850_v7 = vrot.slane %v6939_v26, 4 }
 0xd67   : > { %v3392_v29 = vpack.c.b16 %v3391_v63, %v3391_v63  ;;  %v3833_v63 = vadd.f32 %v3832_v13, %v6927_v30 }
 0xd68   : > { %v3823_v21 = vadd.f32 %v3822_v1, %v3821_v57  ;;  %v3845_v32 = vadd.f32 %v3844_v4, %v6934_v16 }
 0xd69   : > { %4799 = vmatmul.mubr.bf16.vlgmr.msra.gmra.mrb[44].mxu1 %v3392_v29  ;;  %v3856_v29 = vrot.slane %v6943_v18, 4  ;;  %v3834_v11 = vrot.slane %v3833_v63, 2 }
 0xd6a   : > { %4513 = vmatpush3.bf16.msra.mxu1 %v5052_v28 }
 0xd6b   : > { %4514 = vmatprep.subr.bf16.mxu1 %v5053_v12  ;;  %v3857_v17 = vadd.f32 %v3856_v29, %v6943_v18 }
 0xd6e   : > { %4515 = vmatpush3.bf16.msra.mxu1 %v5054_v59 }
 0xd6f   : > { %4516 = vmatprep.subr.bf16.mxu1 %v5055_v44  ;;  %v3824_v44 = vrot.slane %v3823_v21, 1 }
 0xd72   : > { %4517 = vmatpush3.bf16.msra.mxu1 %v5056_v41  ;;  %v3846_v41 = vrot.slane %v3845_v32, 2 }
 0xd73   : > { %4518 = vmatprep.subr.bf16.mxu1 %v5057_v45  ;;  %v3835_v45 = vadd.f32 %v3834_v11, %v3833_v63 }
 0xd75   : > { %v3836_v16 = vrot.slane %v3835_v45, 1 }
 0xd76   : > { %4519 = vmatpush3.bf16.msra.mxu1 %v5058_v46  ;;  %v3858_v46 = vrot.slane %v3857_v17, 2 }
 0xd77   : > { %4520 = vmatprep.subr.bf16.mxu1 %v5059_v60 }
 0xd7a   : > { %4521 = vmatpush3.bf16.msra.mxu1 %v5060_v47 }
 0xd7b   : > { %4522 = vmatprep.subr.bf16.mxu1 %v5061_v56  ;;  %v3825_v56 = vadd.f32 %v3824_v44, %v3823_v21 }
 0xd7e   : > { %4523 = vmatpush3.bf16.msra.mxu1 %v5062_v49  ;;  %v3847_v49 = vadd.f32 %v3846_v41, %v3845_v32 }
 0xd7f   : > { %4524 = vmatprep.subr.bf16.mxu1 %v5063_v48 }
 0xd82   : > { %4525 = vmatpush3.bf16.msra.mxu1 %v5064_v38 }
 0xd83   : > { %4526 = vmatprep.subr.bf16.mxu1 %v5065_v43 }
 0xd86   : > { %4527 = vmatpush3.bf16.msra.mxu1 %v5066_v42 }
 0xe3c   : > { %v3476_v5 = vpop.f32.mrb[44].mxu1 }
 0xe3d   : > { %v3477_v52 = vadd.f32 %v4321_v58, %v3476_v5  ;;  %v4800_v10 = vpop.f32.mrb[45].mxu1 }
 0xe3e   : > { %v3479_v53 = vpop.f32.mrb[46].mxu1  ;;  %v3848_v10 = vrot.slane %v3847_v49, 1 }
 0xe3f   : > { %v3482_v6 = vmax.f32 %v3477_v52, 0.0  ;;  %v4801_v22 = vpop.f32.mrb[47].mxu1 }
 0xe40   : > { %v3849_v48 = vadd.f32 %v3848_v10, %v3847_v49 }
 0xe41   : > { %v3483_v27 = vmul.f32 %v3482_v6, %v3337_v20  ;;  %v3501_v20 = vld [vmem:[#allocation13] sm:$0x3]  ;;  %v3837_v6 = vadd.f32 %v3836_v16, %v3835_v45 }
 0xe42   : > { %v3506_v36 = vrot.slane %v3501_v20, %v6183_v0  ;;  %v3510_v39 = vrot.slane %v3501_v20, %v6189_v2  ;;  %v3826_v0 = vrot.slane %v6922_v61, 4  ;;  %v3815_v2 = vadd.f32 %v3814_v31, %v6918_v50 }
 0xe43   : > { %v3484_v33 = vpack.c.bf16 %v3483_v27, %v3483_v27  ;;  %3880 = vst [vmem:[%s7226_s24] sm:$0xff] %v3483_v27  ;;  %v3839_v50 = vadd.f32 %v3838_v54, %v6931_v14 }
 0xe44   : > { %v3827_v3 = vadd.f32 %v3826_v0, %v6922_v61  ;;  %v3816_v40 = vrot.slane %v3815_v2, 2  ;;  %v3851_v61 = vadd.f32 %v3850_v7, %v6939_v26  ;;  %v3859_v26 = vadd.f32 %v3858_v46, %v3857_v17 }
 0xe45   : > { %3626 = vmatmul.mubr.bf16.vlgmr.msra.gmra.mrb[60].mxu0 %v3484_v33  ;;  %v3840_v12 = vrot.slane %v3839_v50, 2 }
 0xe46   : > { %v3828_v62 = vrot.slane %v3827_v3, 2  ;;  %v3817_v51 = vadd.f32 %v3816_v40, %v3815_v2  ;;  %v3852_v30 = vrot.slane %v3851_v61, 2  ;;  %v3860_v22 = vrot.slane %v3859_v26, 1 }
 0xe47   : > { %v3841_v47 = vadd.f32 %v3840_v12, %v3839_v50 }
 0xe48   : > { %v3829_v28 = vadd.f32 %v3828_v62, %v3827_v3  ;;  %v3818_v59 = vrot.slane %v3817_v51, 1  ;;  %v3853_v58 = vadd.f32 %v3852_v30, %v3851_v61  ;;  %v3861_v43 = vadd.f32 %v3860_v22, %v3859_v26 }
 0xe49   : > { %v3842_v18 = vrot.slane %v3841_v47, 1 }
 0xe4a   : > { %v3830_v60 = vrot.slane %v3829_v28, 1  ;;  %v3819_v14 = vadd.f32 %v3818_v59, %v3817_v51  ;;  %v3854_v53 = vrot.slane %v3853_v58, 1 }
 0xe4b   : > { %v3843_v33 = vadd.f32 %v3842_v18, %v3841_v47 }
 0xe4c   : > { %v3831_v5 = vadd.f32 %v3830_v60, %v3829_v28  ;;  %v3870_v52 = vsel %vm2921_vm1, %v3825_v56, %v3819_v14  ;;  %v3855_v38 = vadd.f32 %v3854_v53, %v3853_v58 }
 0xe4e   : > { %v3871_v27 = vsel %vm2923_vm2, %v3831_v5, %v3870_v52 }
 0xe4f   : > { %v3872_v42 = vsel %vm2925_vm3, %v3837_v6, %v3871_v27 }
 0xe50   : > { %v3873_v20 = vsel %vm2927_vm4, %v3843_v33, %v3872_v42 }
 0xf18   : > { %v3627_v9 = vpop.f32.mrb[60].mxu0 }
 0xf19   : > { %v3628_v8 = vadd.f32 %v3627_v9, %v3506_v36  ;;  %v3629_v35 = vpop.f32.mrb[61].mxu0  ;;  %v3874_v36 = vsel %vm2929_vm5, %v3849_v48, %v3873_v20 }
 0xf1a   : > { %v3630_v37 = vadd.f32 %v3629_v35, %v3510_v39  ;;  %v3631_v55 = vpop.f32.mrb[62].mxu0  ;;  %v3875_v39 = vsel %vm2931_vm6, %v3855_v38, %v3874_v36 }
 0xf1b   : > { %v3634_v15 = vmax.f32 %v3628_v8, 0.0  ;;  %v3632_v19 = vpop.f32.mrb[63].mxu0  ;;  %v3876_v9 = vsel %vm2933_vm7, %v3861_v43, %v3875_v39 }
 0xf1c   : > { %v3635_v23 = vmax.f32 %v3630_v37, 0.0  ;;  %3878 = vst [vmem:[%s884_s21] sm:$0xff] %v3876_v9 }
 0xf1d   : > { %v3636_v25 = vpack.c.bf16 %v3634_v15, %v3634_v15 }
 0xf1e   : > { %v3637_v24 = vpack.c.bf16 %v3635_v23, %v3635_v23 }
 0xf20   : > { %3805 = vmatprep.mubr.bf16.mxu1 %v3637_v24 }
 0xf21   : > { %3806 = vmatmul.mubr.bf16.vlgmr.msra.gmra.mrb[48].mxu1 %v3636_v25 }
 0xf22   : > { %5375 = shalt.err (!%p5372_p10)
}
 0xf23   : > { %s5376_s24 = scalar_lea.hbm %s7051_s6, 128  ;;  %s5380_s11 = scalar_lea.hbm %s7281_s2, 256 }
 0xf24   : > { %p5377_p11 = scmp.ne.s32.totalorder %s7051_s6, %s5376_s24  ;;  %p5381_p7 = scmp.lt.u32.totalorder %s7051_s6, %s7281_s2 }
 0xf25   : > { %p5382_p8 = scmp.lt.u32.totalorder %s5380_s11, %s5376_s24  ;;  %p5384_p2 = scmp.lt.u32.totalorder %s5376_s24, %s7051_s6 }
 0xf26   : > { %p5378_p12 = pnand %p5377_p11, %p7283_p13 }
 0xf27   : > { %p5383_p9 = por %p5382_p8, %p5381_p7 }
 0xf28   : > { %p5379_p4 = pneg %p5378_p12 }
 0xf29   : > { %p5385_p0 = por %p5384_p2, %p5383_p9 }
 0xf2b   : > { %p5386_p3 = pnand %p5385_p0, %p5379_p4 }
 0xf2d   : > { %5389 = shalt.err (!%p5386_p3)
}
 0xf2e   : > { %4827 = dma.vmem_to_hbm [thread:$0]  (%p7283_p13), %s7053_s22, 128, %s7051_s6, %s7062_s4  }
 0xf2f   : > { %s7284_s8 = scalar_lea.vmem [#allocation19], %s6758_s27  ;;  %s5545_s24 = smov [#allocation19]  }
 0xf30   : > { %s3936_s7 = sshll.u32 %s7284_s8, 4  ;;  %s5394_s21 = sshll.u32 %s5545_s24, 4  ;;  %s3937_s7 = int_to_ptr.vmem [resolvable:$true] %s3936_s7  ;;  %s5395_s21 = int_to_ptr.vmem [resolvable:$false] %s5394_s21 }
 0xf31   : > { %s5390_s30 = scalar_lea.vmem %s3937_s7, 128  ;;  %s5396_s11 = scalar_lea.vmem %s5395_s21, 256 }
 0xf32   : > { %p5391_p6 = scmp.ne.s32.totalorder %s3937_s7, %s5390_s30  ;;  %p5397_p11 = scmp.lt.s32.totalorder %s3937_s7, %s5395_s21 }
 0xf33   : > { %p5398_p12 = scmp.lt.s32.totalorder %s5396_s11, %s5390_s30 }
 0xf34   : > { %p5392_p5 = pnand %p5391_p6, %p7283_p13 }
 0xf35   : > { %p5399_p4 = por %p5398_p12, %p5397_p11 }
 0xf36   : > { %p5393_p10 = pneg %p5392_p5 }
 0xf38   : > { %p5400_p7 = pnand %p5399_p4, %p5393_p10 }
 0xf3a   : > { %5403 = shalt.err (!%p5400_p7)
}
 0xf3b   : > { %s5404_s22 = scalar_lea.hbm %s7060_s3, 128  ;;  %s5408_s29 = scalar_lea.hbm %s7282_s23, 256 }
 0xf3c   : > { %p5405_p8 = scmp.ne.s32.totalorder %s7060_s3, %s5404_s22  ;;  %p5409_p0 = scmp.lt.u32.totalorder %s7060_s3, %s7282_s23 }
 0xf3d   : > { %p5410_p3 = scmp.lt.u32.totalorder %s5408_s29, %s5404_s22  ;;  %p5412_p5 = scmp.lt.u32.totalorder %s5404_s22, %s7060_s3 }
 0xf3e   : > { %p5406_p9 = pnand %p5405_p8, %p7283_p13 }
 0xf3f   : > { %p5411_p6 = por %p5410_p3, %p5409_p0 }
 0xf40   : > { %p5407_p2 = pneg %p5406_p9 }
 0xf41   : > { %p5413_p10 = por %p5412_p5, %p5411_p6 }
 0xf43   : > { %p5414_p11 = pnand %p5413_p10, %p5407_p2 }
 0xf45   : > { %5417 = shalt.err (!%p5414_p11)
}
 0xf46   : > { %4828 = dma.vmem_to_hbm [thread:$0]  (%p7283_p13), %s3937_s7, 128, %s7060_s3, %s7062_s4  }
 0xf47   : > { %s7285_s11 = sld [smem:[#allocation48_spill]]  ;;  %s7286_s0 = scalar_lea.vmem [#allocation20], %s6758_s27 }
 0xf48   : > { %s3949_s29 = sshll.u32 %s7286_s0, 4  ;;  %s3897_s22 = scalar_lea.sflag [#allocation21], %s5882_s28  ;;  %s3950_s29 = int_to_ptr.vmem [resolvable:$true] %s3949_s29 }
 0xf49   : > { %s5418_s8 = scalar_lea.vmem %s3950_s29, 128  ;;  %s5546_s24 = smov [#allocation20]  }
 0xf4a   : > { %p5419_p12 = scmp.ne.s32.totalorder %s3950_s29, %s5418_s8  ;;  %s5422_s2 = sshll.u32 %s5546_s24, 4  ;;  %s5423_s2 = int_to_ptr.vmem [resolvable:$false] %s5422_s2 }
 0xf4b   : > { %s5424_s9 = scalar_lea.vmem %s5423_s2, 256  ;;  %p5425_p8 = scmp.lt.s32.totalorder %s3950_s29, %s5423_s2 }
 0xf4c   : > { %p5420_p4 = pnand %p5419_p12, %p7283_p13  ;;  %p5426_p9 = scmp.lt.s32.totalorder %s5424_s9, %s5418_s8 }
 0xf4d   : > { %s7110_s6 = scalar_lea.hbm %s7285_s11, %s7042_s26 }
 0xf4e   : > { %p5421_p7 = pneg %p5420_p4  ;;  %p5427_p2 = por %p5426_p9, %p5425_p8 }
 0xf50   : > { %p5428_p0 = pnand %p5427_p2, %p5421_p7 }
 0xf52   : > { %5431 = shalt.err (!%p5428_p0)
}
 0xf53   : > { %s5432_s4 = scalar_lea.hbm %s7110_s6, 128  ;;  %s5436_s30 = scalar_lea.hbm %s7285_s11, 256 }
 0xf54   : > { %p5433_p3 = scmp.ne.s32.totalorder %s7110_s6, %s5432_s4  ;;  %p5437_p10 = scmp.lt.u32.totalorder %s7110_s6, %s7285_s11 }
 0xf55   : > { %p5438_p11 = scmp.lt.u32.totalorder %s5436_s30, %s5432_s4  ;;  %p5440_p4 = scmp.lt.u32.totalorder %s5432_s4, %s7110_s6 }
 0xf56   : > { %p5434_p6 = pnand %p5433_p3, %p7283_p13 }
 0xf57   : > { %p5439_p12 = por %p5438_p11, %p5437_p10 }
 0xf58   : > { %p5435_p5 = pneg %p5434_p6 }
 0xf59   : > { %p5441_p7 = por %p5440_p4, %p5439_p12 }
 0xf5b   : > { %p5442_p8 = pnand %p5441_p7, %p5435_p5 }
 0xf5d   : > { %5445 = shalt.err (!%p5442_p8)
}
 0xf5e   : > { %4829 = dma.vmem_to_hbm [thread:$0]  (%p7283_p13), %s3950_s29, 128, %s7110_s6, %s3897_s22   ;;  %v4346_v35 = vld [vmem:[#allocation14] ss:$0 sm:$0xff] }
 0xf5f   : > { %s877_s9 = scalar_lea.vmem [#allocation16], %s6758_s27  ;;  %s7287_s4 = sld [smem:[#allocation45_spill]] }
 0xf60   : > { %s3910_s0 = sshll.u32 %s877_s9, 4  ;;  %s3882_s6 = scalar_lea.sflag [#allocation7], %s5882_s28  ;;  %s7139_s0 = int_to_ptr.vmem [resolvable:$true] %s3910_s0 }
 0xf61   : > { %s5446_s29 = scalar_lea.vmem %s7139_s0, 128  ;;  %s5547_s27 = smov [#allocation16]  }
 0xf62   : > { %p5447_p9 = scmp.ne.s32.totalorder %s7139_s0, %s5446_s29  ;;  %s5450_s22 = sshll.u32 %s5547_s27, 4  ;;  %s5451_s22 = int_to_ptr.vmem [resolvable:$false] %s5450_s22 }
 0xf63   : > { %s5452_s7 = scalar_lea.vmem %s5451_s22, 256  ;;  %p5453_p3 = scmp.lt.s32.totalorder %s7139_s0, %s5451_s22 }
 0xf64   : > { %p5448_p2 = pnand %p5447_p9, %p7283_p13  ;;  %p5454_p6 = scmp.lt.s32.totalorder %s5452_s7, %s5446_s29 }
 0xf65   : > { %s7137_s3 = scalar_lea.hbm %s7287_s4, %s7042_s26 }
 0xf66   : > { %p5449_p0 = pneg %p5448_p2  ;;  %p5455_p5 = por %p5454_p6, %p5453_p3 }
 0xf68   : > { %p5456_p10 = pnand %p5455_p5, %p5449_p0 }
 0xff4   : > { %v4528_v8 = vpop.f32.mrb[48].mxu1 }
 0xff5   : > { %v4529_v37 = vpop.f32.mrb[49].mxu1 }
 0xff6   : > { %v4530_v55 = vadd.f32 %v4529_v37, %v4528_v8  ;;  %v4531_v15 = vpop.f32.mrb[50].mxu1 }
 0xff7   : > { %v4532_v19 = vpop.f32.mrb[51].mxu1 }
 0xff8   : > { %v3808_v23 = vadd.f32 %v4530_v55, %v4346_v35 }
 0xffa   : > { %3813 = vst [vmem:[%s877_s9] sm:$0xff] %v3808_v23 }
 0xffb   : > { %5459 = shalt.err (!%p5456_p10)
}
 0xffc   : > { %s5460_s28 = scalar_lea.hbm %s7137_s3, 128  ;;  %s5464_s21 = scalar_lea.hbm %s7287_s4, 256 }
 0xffd   : > { %p5461_p11 = scmp.ne.s32.totalorder %s7137_s3, %s5460_s28  ;;  %p5465_p7 = scmp.lt.u32.totalorder %s7137_s3, %s7287_s4 }
 0xffe   : > { %p5466_p8 = scmp.lt.u32.totalorder %s5464_s21, %s5460_s28  ;;  %p5468_p2 = scmp.lt.u32.totalorder %s5460_s28, %s7137_s3 }
 0xfff   : > { %p5462_p12 = pnand %p5461_p11, %p7283_p13 }
0x1000   : > { %p5467_p9 = por %p5466_p8, %p5465_p7 }
0x1001   : > { %p5463_p4 = pneg %p5462_p12 }
0x1002   : > { %p5469_p0 = por %p5468_p2, %p5467_p9 }
0x1004   : > { %p5470_p3 = pnand %p5469_p0, %p5463_p4 }
0x1006   : > { %5473 = shalt.err (!%p5470_p3)
}
0x1007   : > { %4826 = dma.vmem_to_hbm [thread:$0]  (%p7283_p13), %s7139_s0, 128, %s7137_s3, %s3882_s6  }
0x1008 PF: > { %s7288_s8 = sld [smem:[#allocation29_spill]]  ;;  %s7289_s24 = sld [smem:[#allocation33_spill]] }
0x100e   : > { %s3961_s29 = sand.u32 1, %s7288_s8   ;;  %p7290_p6 = scmp.ne.s32.totalorder %s7289_s24, 0 }
0x100f   : > { %s3962_s27 = scalar_lea.sflag [#allocation7], %s3961_s29 }
0x1010   : > { %p4854_p5 = pnand %p4187_p1, %p7290_p6 }
0x1012   : > { %5507 = dma.done.wait (!%p4854_p5), %s3962_s27, 128  }
0x1013   : > { %5509 = vsyncadd (!%p4854_p5), %s3962_s27, 4294967168  ;;  %s7291_s22 = sadd.s32 4294967294, %s5532_s1  }
0x1014   : > { %s3970_s7 = sand.u32 1, %s7291_s22  }
0x1015   : > { %s3971_s28 = scalar_lea.sflag [#allocation18], %s3970_s7 }
0x1016   : > { %5511 = dma.done.wait (!%p4854_p5), %s3971_s28, 256  }
0x1017   : > { %5513 = vsyncadd (!%p4854_p5), %s3971_s28, 4294967040  ;;  %s3989_s15 = scalar_lea.sflag [#allocation21], %s3961_s29 }
0x1018   : > { %5515 = dma.done.wait (!%p4854_p5), %s3989_s15, 128  }
0x1019   : > { %5517 = vsyncadd (!%p4854_p5), %s3989_s15, 4294967168  ;;  %s7292_s1 = sld [smem:[#allocation30_spill]]  ;;  %s7293_s0 = sld [smem:[#allocation31_spill]] }
0x101a   : > { %s7294_s24 = smov %s5524_s25  ;;  %s7295_s25 = smov %s5528_s5 }
0x101f   : > { %p45_p13 = scmp.ge.s32.totalorder %s7292_s1, 4   ;;  %s7296_s5 = smov %s7293_s0 }
0x1021   :  { %47 = sbr.rel (!%p45_p13) target bundleno = 28 (0x1c), region = 265 }
0x1028   :  { %3994 = vsyncpa [#allocation6], 1 }
0x1029   :  { %3996 = vsyncpa [#allocation6 + $0x1], 1 }
0x102a   :  { %3997 = vsyncpa [#allocation9], 1 }
0x102b   :  { %3998 = vsyncpa [#allocation12], 1 }
0x102c   :  { %3999 = vsyncpa [#allocation15], 1 }
0x102d   :  { %4000 = vsyncpa [#allocation7], 1 }
0x102e   :  { %4002 = vsyncpa [#allocation7 + $0x1], 1 }
0x102f   :  { %4003 = vsyncpa [#allocation18], 1 }
0x1030   :  { %4005 = vsyncpa [#allocation18 + $0x1], 1 }
0x1031   :  { %4006 = vsyncpa [#allocation21], 1 }
0x1032   :  { %4008 = vsyncpa [#allocation21 + $0x1], 1 }

</bundles_post_ra>
